<compile_context>
chip_gen: v7x
topology: tpu7x:2x2x1
jax: 0.10.0
libtpu: 0.0.40
codegen_flags: <defaults>
</compile_context>

<pallas_src>
import functools
import math

import jax
import jax.numpy as jnp
from jax.experimental import pallas as pl
from jax.experimental.pallas import tpu as pltpu

F32 = jnp.float32
BF16 = jnp.bfloat16
LN_EPS = 1e-12
NUM_GRID_BLOCKS = 2  # 2 "parallel" steps -> both v7x TensorCores; near-free on v5e/v6e.

_PARALLEL = pltpu.CompilerParams(dimension_semantics=("parallel",))


# ----------------------------- in-kernel helpers ----------------------------

def _ln(x, g, b, eps):
    """LayerNorm over the last (lane) axis with single-pass moments. g, b are (1, H) f32."""
    mu = jnp.mean(x, axis=-1, keepdims=True)
    ex2 = jnp.mean(x * x, axis=-1, keepdims=True)
    var = jnp.maximum(ex2 - mu * mu, 0.0)
    return (x - mu) * jax.lax.rsqrt(var + eps) * g + b


def _layer_core(x, mask3, h1_sc,
                qkv_w, qkv_b, ao_w, ao_b, ln1_g, ln1_b,
                i_w, i_b, o_w, o_b, ln2_g, ln2_b,
                *, n_blk, seq, n_heads, scale, eps):
    """One post-LN BERT layer on x: (n_blk*seq, H) f32 rows (n_blk batch elements stacked).

    mask3: (n_blk, 1, seq) additive f32 attention mask.  h1_sc: (n_blk*seq, H) f32 VMEM scratch.
    Matmuls run with bf16 operands / f32 accumulation; everything else stays f32.
    Returns h2: (n_blk*seq, H) f32.
    """
    H = x.shape[-1]
    dh = H // n_heads

    # Fused QKV projection: one (B_blk*S, H) @ (H, 3H) MXU matmul.
    qkv = jnp.dot(x.astype(BF16), qkv_w[...],
                  preferred_element_type=jnp.float32) + qkv_b[...]
    q = (qkv[:, 0:H] * scale).astype(BF16)          # fold 1/sqrt(dh) into q
    k = qkv[:, H:2 * H].astype(BF16)
    v = qkv[:, 2 * H:3 * H].astype(BF16)

    # Per-batch, per-head attention (statically unrolled, all in VMEM/vregs).
    for b in range(n_blk):
        r0 = b * seq
        mb = mask3[b]                               # (1, seq) additive mask
        acc = jnp.zeros((seq, H), jnp.float32)      # output-projection accumulator
        for h in range(n_heads):
            c0 = h * dh
            qh = q[r0:r0 + seq, c0:c0 + dh]
            kh = k[r0:r0 + seq, c0:c0 + dh]
            vh = v[r0:r0 + seq, c0:c0 + dh]
            # q @ k^T expressed via dot_general so no explicit XLU transpose is emitted.
            s = jax.lax.dot_general(qh, kh, (((1,), (1,)), ((), ())),
                                    preferred_element_type=jnp.float32)   # (S, S)
            s = s + mb
            s = s - jnp.max(s, axis=-1, keepdims=True)
            p = jnp.exp(s)
            p = p * pl.reciprocal(jnp.sum(p, axis=-1, keepdims=True), approx=True)
            ctx_h = jnp.dot(p.astype(BF16), vh,
                            preferred_element_type=jnp.float32)           # (S, dh)
            # Fold the head into the output projection (no lane concat of head outputs).
            acc = acc + jnp.dot(ctx_h.astype(BF16), ao_w[c0:c0 + dh, :],
                                preferred_element_type=jnp.float32)       # (S, H)
        attn_out = acc + ao_b[...]
        h1_sc[r0:r0 + seq, :] = _ln(attn_out + x[r0:r0 + seq, :],
                                    ln1_g[...], ln1_b[...], eps)

    # FFN on the full (B_blk*S, H) block: two big MXU matmuls.
    h1 = h1_sc[...]
    inter = jnp.dot(h1.astype(BF16), i_w[...],
                    preferred_element_type=jnp.float32) + i_b[...]
    inter = jax.nn.gelu(inter, approximate=True)
    ffn = jnp.dot(inter.astype(BF16), o_w[...],
                  preferred_element_type=jnp.float32) + o_b[...]
    return _ln(ffn + h1, ln2_g[...], ln2_b[...], eps)


# ----------------------------- Pallas kernels ------------------------------

def _encoder_kernel(word_ref, typ_ref, pos_ref, mask_ref,
                    eg_ref, eb_ref,
                    qkv_w, qkv_b, ao_w, ao_b, ln1_g, ln1_b,
                    i_w, i_b, o_w, o_b, ln2_g, ln2_b,
                    o_ref, h1_sc,
                    *, n_blk, seq, n_heads, scale, eps):
    """Fused sub-encoder: (word + pos + type) embeddings + LN prologue -> 1 BERT layer."""
    x3 = word_ref[...] + typ_ref[...] + pos_ref[...]          # (n_blk, S, H)
    x = _ln(x3.reshape(n_blk * seq, -1), eg_ref[...], eb_ref[...], eps)
    h2 = _layer_core(x, mask_ref[...], h1_sc,
                     qkv_w, qkv_b, ao_w, ao_b, ln1_g, ln1_b,
                     i_w, i_b, o_w, o_b, ln2_g, ln2_b,
                     n_blk=n_blk, seq=seq, n_heads=n_heads, scale=scale, eps=eps)
    o_ref[...] = h2.reshape(n_blk, seq, -1).astype(o_ref.dtype)


def _cross_kernel(q_ref, c_ref, pos_ref, tt_ref, mask_ref,
                  eg_ref, eb_ref,
                  qkv_w, qkv_b, ao_w, ao_b, ln1_g, ln1_b,
                  i_w, i_b, o_w, o_b, ln2_g, ln2_b,
                  d_w, d_b, f_w, f_b,
                  o_ref, xh_sc,
                  *, n_blk, sq, sc, n_heads, scale, eps):
    """Fused cross encoder: double_question + seq-concat embeddings + LN -> BERT layer ->
    mean/max pool -> dense(2H->H) -> final_dense(H->1).  Output block: (1, n_blk, 1)."""
    seq = sq + sc
    pos = pos_ref[0]                                 # (Sq+Sc, H)
    tt = tt_ref[...]                                 # (2, H)
    H = pos.shape[-1]

    # Embedding prologue: q/ctx halves LN'ed separately and written to sublane-aligned
    # scratch slices (no sublane concat); cross row b uses question row b // 2.
    for b in range(n_blk):
        r0 = b * seq
        xq = q_ref[b // 2] + pos[0:sq, :] + tt[0:1, :]     # question tokens -> token_type 0
        xc = c_ref[b] + pos[sq:seq, :] + tt[1:2, :]        # context tokens  -> token_type 1
        xh_sc[r0:r0 + sq, :] = _ln(xq, eg_ref[...], eb_ref[...], eps)
        xh_sc[r0 + sq:r0 + seq, :] = _ln(xc, eg_ref[...], eb_ref[...], eps)

    x = xh_sc[...]                                   # (n_blk*seq, H) f32
    h2 = _layer_core(x, mask_ref[...], xh_sc,        # scratch reused for h1 (x already loaded)
                     qkv_w, qkv_b, ao_w, ao_b, ln1_g, ln1_b,
                     i_w, i_b, o_w, o_b, ln2_g, ln2_b,
                     n_blk=n_blk, seq=seq, n_heads=n_heads, scale=scale, eps=eps)

    # Pool-head epilogue: mean/max over the full sequence (incl. padded positions, as the
    # reference does); the 2H-lane concat is avoided by splitting dense_w into two H-row halves.
    h3 = h2.reshape(n_blk, seq, H)
    avg = jnp.mean(h3, axis=1)                       # (n_blk, H)
    mx = jnp.max(h3, axis=1)                         # (n_blk, H)
    hd = (jnp.dot(avg.astype(BF16), d_w[0:H, :], preferred_element_type=jnp.float32)
          + jnp.dot(mx.astype(BF16), d_w[H:2 * H, :], preferred_element_type=jnp.float32)
          + d_b[...])
    y = jnp.dot(hd.astype(BF16), f_w[...], preferred_element_type=jnp.float32) + f_b[...]
    o_ref[0] = y.astype(o_ref.dtype)                 # (n_blk, 1)


# ----------------------------- kernel wrappers ------------------------------

def _full2d(arr):
    """Weight / bias spec: whole 2-D array resident, same block for every grid step."""
    return pl.BlockSpec(arr.shape, lambda i: (0, 0))


def _additive_mask(attn_mask):
    B, S = attn_mask.shape
    return ((1.0 - attn_mask.astype(F32)) * -10000.0).reshape(B, 1, S)


def _num_steps(b):
    return NUM_GRID_BLOCKS if (b % NUM_GRID_BLOCKS == 0 and b >= NUM_GRID_BLOCKS) else 1


def encoder_forward(mp, ids, segments, attn_mask, *, n_heads):
    """Sub-model (question_model / ctx_model): fused embed+LN+layer -> sequence output.
    (The reference also produces a pooled output, but forward never uses it.)"""
    B, S = ids.shape
    H = mp["emb"]["word"].shape[-1]
    nsteps = _num_steps(B)
    n_blk = B // nsteps

    # Embedding-table gathers are tiny XLA glue; everything downstream is fused in-kernel.
    word = jnp.take(mp["emb"]["word"], ids, axis=0)          # (B, S, H) f32
    typ = jnp.take(mp["emb"]["type"], segments, axis=0)      # (B, S, H) f32
    pos = mp["emb"]["pos"][:S][None]                         # (1, S, H) f32
    mask_add = _additive_mask(attn_mask)                     # (B, 1, S) f32
    p = mp["layer"]

    kernel = functools.partial(_encoder_kernel, n_blk=n_blk, seq=S, n_heads=n_heads,
                               scale=1.0 / math.sqrt(H // n_heads), eps=LN_EPS)
    return pl.pallas_call(
        kernel,
        out_shape=jax.ShapeDtypeStruct((B, S, H), F32),
        grid=(nsteps,),
        in_specs=[
            pl.BlockSpec((n_blk, S, H), lambda i: (i, 0, 0)),    # word embeddings
            pl.BlockSpec((n_blk, S, H), lambda i: (i, 0, 0)),    # token-type embeddings
            pl.BlockSpec((1, S, H), lambda i: (0, 0, 0)),        # position embeddings (shared)
            pl.BlockSpec((n_blk, 1, S), lambda i: (i, 0, 0)),    # additive attention mask
            _full2d(mp["emb"]["ln_g"]), _full2d(mp["emb"]["ln_b"]),
            _full2d(p["qkv_w"]), _full2d(p["qkv_b"]),
            _full2d(p["ao_w"]), _full2d(p["ao_b"]),
            _full2d(p["ln1_g"]), _full2d(p["ln1_b"]),
            _full2d(p["i_w"]), _full2d(p["i_b"]),
            _full2d(p["o_w"]), _full2d(p["o_b"]),
            _full2d(p["ln2_g"]), _full2d(p["ln2_b"]),
        ],
        out_specs=pl.BlockSpec((n_blk, S, H), lambda i: (i, 0, 0)),
        scratch_shapes=[pltpu.VMEM((n_blk * S, H), F32)],
        compiler_params=_PARALLEL,
    )(word, typ, pos, mask_add,
      mp["emb"]["ln_g"], mp["emb"]["ln_b"],
      p["qkv_w"], p["qkv_b"], p["ao_w"], p["ao_b"],
      p["ln1_g"], p["ln1_b"], p["i_w"], p["i_b"],
      p["o_w"], p["o_b"], p["ln2_g"], p["ln2_b"])


def cross_forward(params, q_seq, ctx_seq, q_attn_mask, ctx_attn_mask, *, n_heads):
    """self.encoder(inputs_embeds=cat([double(q_seq), ctx_seq], 1), ...) + pool + dense heads,
    all in one fused pallas_call."""
    BQ, SQ, H = q_seq.shape
    BC, SC, _ = ctx_seq.shape
    S = SQ + SC
    nsteps = _num_steps(BQ)           # each grid step covers whole questions (BC = 2*BQ)
    n_blk = BC // nsteps              # cross rows per step (even)
    qb = n_blk // 2                   # question rows per step

    mp = params["encoder"]
    p = mp["layer"]
    pos = mp["emb"]["pos"][:S][None]                           # (1, S, H)

    # Only the tiny integer attention masks are repeated / concatenated in XLA.
    ext_q_mask = jnp.repeat(q_attn_mask, 2, axis=0)
    x_mask = jnp.concatenate([ext_q_mask, ctx_attn_mask], axis=1)
    mask_add = _additive_mask(x_mask)                          # (BC, 1, S)

    kernel = functools.partial(_cross_kernel, n_blk=n_blk, sq=SQ, sc=SC, n_heads=n_heads,
                               scale=1.0 / math.sqrt(H // n_heads), eps=LN_EPS)
    preds = pl.pallas_call(
        kernel,
        out_shape=jax.ShapeDtypeStruct((nsteps, n_blk, 1), F32),
        grid=(nsteps,),
        in_specs=[
            # interleaved double_question: cross block i reads question block i (rows used b//2)
            pl.BlockSpec((qb, SQ, H), lambda i: (i, 0, 0)),
            pl.BlockSpec((n_blk, SC, H), lambda i: (i, 0, 0)),
            pl.BlockSpec((1, S, H), lambda i: (0, 0, 0)),
            _full2d(mp["emb"]["type"]),
            pl.BlockSpec((n_blk, 1, S), lambda i: (i, 0, 0)),
            _full2d(mp["emb"]["ln_g"]), _full2d(mp["emb"]["ln_b"]),
            _full2d(p["qkv_w"]), _full2d(p["qkv_b"]),
            _full2d(p["ao_w"]), _full2d(p["ao_b"]),
            _full2d(p["ln1_g"]), _full2d(p["ln1_b"]),
            _full2d(p["i_w"]), _full2d(p["i_b"]),
            _full2d(p["o_w"]), _full2d(p["o_b"]),
            _full2d(p["ln2_g"]), _full2d(p["ln2_b"]),
            _full2d(params["dense_w"]), _full2d(params["dense_b"]),
            _full2d(params["final_w"]), _full2d(params["final_b"]),
        ],
        out_specs=pl.BlockSpec((1, n_blk, 1), lambda i: (i, 0, 0)),
        scratch_shapes=[pltpu.VMEM((n_blk * S, H), F32)],
        compiler_params=_PARALLEL,
    )(q_seq, ctx_seq, pos, mp["emb"]["type"], mask_add,
      mp["emb"]["ln_g"], mp["emb"]["ln_b"],
      p["qkv_w"], p["qkv_b"], p["ao_w"], p["ao_b"],
      p["ln1_g"], p["ln1_b"], p["i_w"], p["i_b"],
      p["o_w"], p["o_b"], p["ln2_g"], p["ln2_b"],
      params["dense_w"], params["dense_b"], params["final_w"], params["final_b"])
    return preds.reshape(BC, 1)


def biencoder_forward(params, question_ids, question_segments, question_attn_mask,
                      context_ids, ctx_segments, ctx_attn_mask, *, n_heads):
    q_seq = encoder_forward(params["question_model"], question_ids,
                            question_segments, question_attn_mask, n_heads=n_heads)
    ctx_seq = encoder_forward(params["ctx_model"], context_ids,
                              ctx_segments, ctx_attn_mask, n_heads=n_heads)
    return cross_forward(params, q_seq, ctx_seq, question_attn_mask, ctx_attn_mask,
                         n_heads=n_heads)


# ----------------------------- parameter init ------------------------------

def _winit(key, shape, dtype, scale=0.02):
    return (scale * jax.random.normal(key, shape)).astype(dtype)


def init_layer_params(key, H, ffn):
    ks = jax.random.split(key, 4)
    z = lambda n: jnp.zeros((1, n), F32)
    o = lambda n: jnp.ones((1, n), F32)
    return {
        "qkv_w": _winit(ks[0], (H, 3 * H), BF16), "qkv_b": z(3 * H),   # fused Q|K|V, bf16
        "ao_w": _winit(ks[1], (H, H), BF16), "ao_b": z(H),
        "ln1_g": o(H), "ln1_b": z(H),
        "i_w": _winit(ks[2], (H, ffn), BF16), "i_b": z(ffn),
        "o_w": _winit(ks[3], (ffn, H), BF16), "o_b": z(H),
        "ln2_g": o(H), "ln2_b": z(H),
    }


def init_emb_params(key, vocab, max_pos, H, with_word=True):
    ks = jax.random.split(key, 3)
    p = {
        "pos": _winit(ks[0], (max_pos, H), F32),
        "type": _winit(ks[1], (2, H), F32),
        "ln_g": jnp.ones((1, H), F32),
        "ln_b": jnp.zeros((1, H), F32),
    }
    if with_word:
        p["word"] = _winit(ks[2], (vocab, H), F32)
    return p


def init_biencoder_params(key, H, ffn, vocab, max_pos):
    ks = jax.random.split(key, 8)
    return {
        "question_model": {"emb": init_emb_params(ks[0], vocab, max_pos, H),
                           "layer": init_layer_params(ks[1], H, ffn)},
        "ctx_model": {"emb": init_emb_params(ks[2], vocab, max_pos, H),
                      "layer": init_layer_params(ks[3], H, ffn)},
        "encoder": {"emb": init_emb_params(ks[4], vocab, max_pos, H, with_word=False),
                    "layer": init_layer_params(ks[5], H, ffn)},
        "dense_w": _winit(ks[6], (2 * H, H), BF16), "dense_b": jnp.zeros((1, H), F32),
        "final_w": _winit(ks[7], (H, 1), BF16), "final_b": jnp.zeros((1, 1), F32),
    }


# ----------------------------------- main -----------------------------------

if __name__ == "__main__":
    H, N_HEADS, FFN = 128, 4, 512
    VOCAB, MAX_POS = 64, 64
    BQ, SQ, SC = 2, 8, 16
    BC = 2 * BQ  # context batch must be 2x question batch (double_question + cat dim=1)

    key = jax.random.PRNGKey(0)
    pkey, k1, k2 = jax.random.split(key, 3)
    params = init_biencoder_params(pkey, H, FFN, VOCAB, MAX_POS)

    question_ids = jax.random.randint(k1, (BQ, SQ), 0, VOCAB, dtype=jnp.int32)
    context_ids = jax.random.randint(k2, (BC, SC), 0, VOCAB, dtype=jnp.int32)
    question_segments = jnp.zeros((BQ, SQ), jnp.int32)
    ctx_segments = jnp.zeros((BC, SC), jnp.int32)
    question_attn_mask = jnp.ones((BQ, SQ), jnp.int32).at[:, -1].set(0)
    ctx_attn_mask = jnp.ones((BC, SC), jnp.int32).at[:, -2:].set(0)

    fwd = jax.jit(functools.partial(biencoder_forward, n_heads=N_HEADS))
    preds = fwd(params, question_ids, question_segments, question_attn_mask,
                context_ids, ctx_segments, ctx_attn_mask)
    preds = jax.block_until_ready(preds)

    assert preds.shape == (BC, 1), preds.shape
    assert preds.dtype == jnp.float32
    assert bool(jnp.all(jnp.isfinite(preds)))
    print("KERNEL_OK")
</pallas_src>

<mosaic_0001>
module attributes {stable_mosaic.version = 11 : i64} {
  func.func @_encoder_kernel(%arg0: i32, %arg1: memref<2x16x128xf32, #tpu.memory_space<vmem>>, %arg2: memref<2x16x128xf32, #tpu.memory_space<vmem>>, %arg3: memref<1x16x128xf32, #tpu.memory_space<vmem>>, %arg4: memref<2x1x16xf32, #tpu.memory_space<vmem>>, %arg5: memref<1x128xf32, #tpu.memory_space<vmem>>, %arg6: memref<1x128xf32, #tpu.memory_space<vmem>>, %arg7: memref<128x384xbf16, #tpu.memory_space<vmem>>, %arg8: memref<1x384xf32, #tpu.memory_space<vmem>>, %arg9: memref<128x128xbf16, #tpu.memory_space<vmem>>, %arg10: memref<1x128xf32, #tpu.memory_space<vmem>>, %arg11: memref<1x128xf32, #tpu.memory_space<vmem>>, %arg12: memref<1x128xf32, #tpu.memory_space<vmem>>, %arg13: memref<128x512xbf16, #tpu.memory_space<vmem>>, %arg14: memref<1x512xf32, #tpu.memory_space<vmem>>, %arg15: memref<512x128xbf16, #tpu.memory_space<vmem>>, %arg16: memref<1x128xf32, #tpu.memory_space<vmem>>, %arg17: memref<1x128xf32, #tpu.memory_space<vmem>>, %arg18: memref<1x128xf32, #tpu.memory_space<vmem>>, %arg19: memref<2x16x128xf32, #tpu.memory_space<vmem>>, %arg20: memref<32x128xf32, #tpu.memory_space<vmem>>) attributes {dimension_semantics = [#tpu.dimension_semantics<parallel>], iteration_bounds = array<i64: 2>, scalar_prefetch = 0 : i64, scratch_operands = 1 : i64, tpu.core_type = #tpu.core_type<tc>, window_params = [{transform_indices = @transform_0, window_bounds = array<i64: 2, 16, 128>}, {transform_indices = @transform_1, window_bounds = array<i64: 2, 16, 128>}, {pipeline_mode = #tpu.pipeline_mode<synchronous>, transform_indices = @transform_2, window_bounds = array<i64: 1, 16, 128>}, {transform_indices = @transform_3, window_bounds = array<i64: 2, 1, 16>}, {pipeline_mode = #tpu.pipeline_mode<synchronous>, transform_indices = @transform_4, window_bounds = array<i64: 1, 128>}, {pipeline_mode = #tpu.pipeline_mode<synchronous>, transform_indices = @transform_5, window_bounds = array<i64: 1, 128>}, {pipeline_mode = #tpu.pipeline_mode<synchronous>, transform_indices = @transform_6, window_bounds = array<i64: 128, 384>}, {pipeline_mode = #tpu.pipeline_mode<synchronous>, transform_indices = @transform_7, window_bounds = array<i64: 1, 384>}, {pipeline_mode = #tpu.pipeline_mode<synchronous>, transform_indices = @transform_8, window_bounds = array<i64: 128, 128>}, {pipeline_mode = #tpu.pipeline_mode<synchronous>, transform_indices = @transform_9, window_bounds = array<i64: 1, 128>}, {pipeline_mode = #tpu.pipeline_mode<synchronous>, transform_indices = @transform_10, window_bounds = array<i64: 1, 128>}, {pipeline_mode = #tpu.pipeline_mode<synchronous>, transform_indices = @transform_11, window_bounds = array<i64: 1, 128>}, {pipeline_mode = #tpu.pipeline_mode<synchronous>, transform_indices = @transform_12, window_bounds = array<i64: 128, 512>}, {pipeline_mode = #tpu.pipeline_mode<synchronous>, transform_indices = @transform_13, window_bounds = array<i64: 1, 512>}, {pipeline_mode = #tpu.pipeline_mode<synchronous>, transform_indices = @transform_14, window_bounds = array<i64: 512, 128>}, {pipeline_mode = #tpu.pipeline_mode<synchronous>, transform_indices = @transform_15, window_bounds = array<i64: 1, 128>}, {pipeline_mode = #tpu.pipeline_mode<synchronous>, transform_indices = @transform_16, window_bounds = array<i64: 1, 128>}, {pipeline_mode = #tpu.pipeline_mode<synchronous>, transform_indices = @transform_17, window_bounds = array<i64: 1, 128>}, {transform_indices = @transform_18, window_bounds = array<i64: 2, 16, 128>}]} {
    %c0 = arith.constant 0 : index
    %c0_0 = arith.constant 0 : index
    %c0_1 = arith.constant 0 : index
    %0 = vector.load %arg1[%c0, %c0_0, %c0_1] : memref<2x16x128xf32, #tpu.memory_space<vmem>>, vector<2x16x128xf32>
    %c0_2 = arith.constant 0 : index
    %c0_3 = arith.constant 0 : index
    %c0_4 = arith.constant 0 : index
    %1 = vector.load %arg2[%c0_2, %c0_3, %c0_4] : memref<2x16x128xf32, #tpu.memory_space<vmem>>, vector<2x16x128xf32>
    %2 = arith.addf %0, %1 : vector<2x16x128xf32>
    %c0_5 = arith.constant 0 : index
    %c0_6 = arith.constant 0 : index
    %c0_7 = arith.constant 0 : index
    %3 = vector.load %arg3[%c0_5, %c0_6, %c0_7] : memref<1x16x128xf32, #tpu.memory_space<vmem>>, vector<1x16x128xf32>
    %4 = vector.broadcast %3 : vector<1x16x128xf32> to vector<2x16x128xf32>
    %5 = arith.addf %2, %4 : vector<2x16x128xf32>
    %6 = vector.shape_cast %5 : vector<2x16x128xf32> to vector<32x128xf32>
    %c0_8 = arith.constant 0 : index
    %c0_9 = arith.constant 0 : index
    %7 = vector.load %arg5[%c0_8, %c0_9] : memref<1x128xf32, #tpu.memory_space<vmem>>, vector<1x128xf32>
    %c0_10 = arith.constant 0 : index
    %c0_11 = arith.constant 0 : index
    %8 = vector.load %arg6[%c0_10, %c0_11] : memref<1x128xf32, #tpu.memory_space<vmem>>, vector<1x128xf32>
    %cst = arith.constant dense<0.000000e+00> : vector<32xf32>
    %9 = vector.multi_reduction <add>, %6, %cst [1] : vector<32x128xf32> to vector<32xf32>
    %10 = vector.shape_cast %9 : vector<32xf32> to vector<32x1xf32>
    %cst_12 = arith.constant 1.280000e+02 : f32
    %11 = vector.broadcast %cst_12 : f32 to vector<32x1xf32>
    %12 = arith.divf %10, %11 : vector<32x1xf32>
    %13 = arith.mulf %6, %6 : vector<32x128xf32>
    %cst_13 = arith.constant dense<0.000000e+00> : vector<32xf32>
    %14 = vector.multi_reduction <add>, %13, %cst_13 [1] : vector<32x128xf32> to vector<32xf32>
    %15 = vector.shape_cast %14 : vector<32xf32> to vector<32x1xf32>
    %cst_14 = arith.constant 1.280000e+02 : f32
    %16 = vector.broadcast %cst_14 : f32 to vector<32x1xf32>
    %17 = arith.divf %15, %16 : vector<32x1xf32>
    %18 = arith.mulf %12, %12 : vector<32x1xf32>
    %19 = arith.subf %17, %18 : vector<32x1xf32>
    %cst_15 = arith.constant 0.000000e+00 : f32
    %20 = vector.broadcast %cst_15 : f32 to vector<32x1xf32>
    %21 = arith.maximumf %19, %20 : vector<32x1xf32>
    %22 = vector.broadcast %12 : vector<32x1xf32> to vector<32x128xf32>
    %23 = arith.subf %6, %22 : vector<32x128xf32>
    %cst_16 = arith.constant 9.99999996E-13 : f32
    %24 = vector.broadcast %cst_16 : f32 to vector<32x1xf32>
    %25 = arith.addf %21, %24 : vector<32x1xf32>
    %26 = math.rsqrt %25 : vector<32x1xf32>
    %27 = vector.broadcast %26 : vector<32x1xf32> to vector<32x128xf32>
    %28 = arith.mulf %23, %27 : vector<32x128xf32>
    %29 = vector.broadcast %7 : vector<1x128xf32> to vector<32x128xf32>
    %30 = arith.mulf %28, %29 : vector<32x128xf32>
    %31 = vector.broadcast %8 : vector<1x128xf32> to vector<32x128xf32>
    %32 = arith.addf %30, %31 : vector<32x128xf32>
    %c0_17 = arith.constant 0 : index
    %c0_18 = arith.constant 0 : index
    %c0_19 = arith.constant 0 : index
    %33 = vector.load %arg4[%c0_17, %c0_18, %c0_19] : memref<2x1x16xf32, #tpu.memory_space<vmem>>, vector<2x1x16xf32>
    %34 = arith.truncf %32 : vector<32x128xf32> to vector<32x128xbf16>
    %c0_20 = arith.constant 0 : index
    %c0_21 = arith.constant 0 : index
    %35 = vector.load %arg7[%c0_20, %c0_21] : memref<128x384xbf16, #tpu.memory_space<vmem>>, vector<128x384xbf16>
    %cst_22 = arith.constant dense<0.000000e+00> : vector<32x384xf32>
    %36 = tpu.matmul %34, %35, %cst_22 {dimension_numbers = #tpu.dot_dimension_numbers<[1], [0], [0], [1], [0, 0, 1, 1], [], []>} : vector<32x128xbf16>, vector<128x384xbf16>, vector<32x384xf32> -> vector<32x384xf32>
    %c0_23 = arith.constant 0 : index
    %c0_24 = arith.constant 0 : index
    %37 = vector.load %arg8[%c0_23, %c0_24] : memref<1x384xf32, #tpu.memory_space<vmem>>, vector<1x384xf32>
    %38 = vector.broadcast %37 : vector<1x384xf32> to vector<32x384xf32>
    %39 = arith.addf %36, %38 : vector<32x384xf32>
    %40 = vector.extract_strided_slice %39 {offsets = [0, 0], sizes = [32, 128], strides = [1, 1]} : vector<32x384xf32> to vector<32x128xf32>
    %cst_25 = arith.constant 0.176776692 : f32
    %41 = vector.broadcast %cst_25 : f32 to vector<32x128xf32>
    %42 = arith.mulf %40, %41 : vector<32x128xf32>
    %43 = arith.truncf %42 : vector<32x128xf32> to vector<32x128xbf16>
    %44 = vector.extract_strided_slice %39 {offsets = [0, 128], sizes = [32, 128], strides = [1, 1]} : vector<32x384xf32> to vector<32x128xf32>
    %45 = arith.truncf %44 : vector<32x128xf32> to vector<32x128xbf16>
    %46 = vector.extract_strided_slice %39 {offsets = [0, 256], sizes = [32, 128], strides = [1, 1]} : vector<32x384xf32> to vector<32x128xf32>
    %47 = arith.truncf %46 : vector<32x128xf32> to vector<32x128xbf16>
    %48 = vector.extract_strided_slice %33 {offsets = [0, 0, 0], sizes = [1, 1, 16], strides = [1, 1, 1]} : vector<2x1x16xf32> to vector<1x1x16xf32>
    %49 = vector.shape_cast %48 : vector<1x1x16xf32> to vector<1x16xf32>
    %cst_26 = arith.constant 0.000000e+00 : f32
    %50 = vector.broadcast %cst_26 : f32 to vector<16x128xf32>
    %51 = vector.extract_strided_slice %43 {offsets = [0, 0], sizes = [16, 32], strides = [1, 1]} : vector<32x128xbf16> to vector<16x32xbf16>
    %52 = vector.extract_strided_slice %45 {offsets = [0, 0], sizes = [16, 32], strides = [1, 1]} : vector<32x128xbf16> to vector<16x32xbf16>
    %53 = vector.extract_strided_slice %47 {offsets = [0, 0], sizes = [16, 32], strides = [1, 1]} : vector<32x128xbf16> to vector<16x32xbf16>
    %cst_27 = arith.constant dense<0.000000e+00> : vector<16x16xf32>
    %54 = tpu.matmul %51, %52, %cst_27 {dimension_numbers = #tpu.dot_dimension_numbers<[1], [1], [0], [0], [0, 0, 1, 0], [], []>} : vector<16x32xbf16>, vector<16x32xbf16>, vector<16x16xf32> -> vector<16x16xf32>
    %55 = vector.broadcast %49 : vector<1x16xf32> to vector<16x16xf32>
    %56 = arith.addf %54, %55 : vector<16x16xf32>
    %cst_28 = arith.constant dense<0xFF800000> : vector<16xf32>
    %57 = vector.multi_reduction <maximumf>, %56, %cst_28 [1] : vector<16x16xf32> to vector<16xf32>
    %58 = vector.shape_cast %57 : vector<16xf32> to vector<16x1xf32>
    %59 = vector.broadcast %58 : vector<16x1xf32> to vector<16x16xf32>
    %60 = arith.subf %56, %59 : vector<16x16xf32>
    %61 = math.exp %60 : vector<16x16xf32>
    %cst_29 = arith.constant dense<0.000000e+00> : vector<16xf32>
    %62 = vector.multi_reduction <add>, %61, %cst_29 [1] : vector<16x16xf32> to vector<16xf32>
    %63 = vector.shape_cast %62 : vector<16xf32> to vector<16x1xf32>
    %64 = tpu.reciprocal %63 {approx = true} : vector<16x1xf32> -> vector<16x1xf32>
    %65 = vector.broadcast %64 : vector<16x1xf32> to vector<16x16xf32>
    %66 = arith.mulf %61, %65 : vector<16x16xf32>
    %67 = arith.truncf %66 : vector<16x16xf32> to vector<16x16xbf16>
    %cst_30 = arith.constant dense<0.000000e+00> : vector<16x32xf32>
    %68 = tpu.matmul %67, %53, %cst_30 {dimension_numbers = #tpu.dot_dimension_numbers<[1], [0], [0], [1], [0, 0, 1, 1], [], []>} : vector<16x16xbf16>, vector<16x32xbf16>, vector<16x32xf32> -> vector<16x32xf32>
    %69 = arith.truncf %68 : vector<16x32xf32> to vector<16x32xbf16>
    %c0_31 = arith.constant 0 : index
    %c0_32 = arith.constant 0 : index
    %70 = vector.load %arg9[%c0_31, %c0_32] : memref<128x128xbf16, #tpu.memory_space<vmem>>, vector<32x128xbf16>
    %cst_33 = arith.constant dense<0.000000e+00> : vector<16x128xf32>
    %71 = tpu.matmul %69, %70, %cst_33 {dimension_numbers = #tpu.dot_dimension_numbers<[1], [0], [0], [1], [0, 0, 1, 1], [], []>} : vector<16x32xbf16>, vector<32x128xbf16>, vector<16x128xf32> -> vector<16x128xf32>
    %72 = arith.addf %50, %71 : vector<16x128xf32>
    %73 = vector.extract_strided_slice %43 {offsets = [0, 32], sizes = [16, 32], strides = [1, 1]} : vector<32x128xbf16> to vector<16x32xbf16>
    %74 = vector.extract_strided_slice %45 {offsets = [0, 32], sizes = [16, 32], strides = [1, 1]} : vector<32x128xbf16> to vector<16x32xbf16>
    %75 = vector.extract_strided_slice %47 {offsets = [0, 32], sizes = [16, 32], strides = [1, 1]} : vector<32x128xbf16> to vector<16x32xbf16>
    %cst_34 = arith.constant dense<0.000000e+00> : vector<16x16xf32>
    %76 = tpu.matmul %73, %74, %cst_34 {dimension_numbers = #tpu.dot_dimension_numbers<[1], [1], [0], [0], [0, 0, 1, 0], [], []>} : vector<16x32xbf16>, vector<16x32xbf16>, vector<16x16xf32> -> vector<16x16xf32>
    %77 = vector.broadcast %49 : vector<1x16xf32> to vector<16x16xf32>
    %78 = arith.addf %76, %77 : vector<16x16xf32>
    %cst_35 = arith.constant dense<0xFF800000> : vector<16xf32>
    %79 = vector.multi_reduction <maximumf>, %78, %cst_35 [1] : vector<16x16xf32> to vector<16xf32>
    %80 = vector.shape_cast %79 : vector<16xf32> to vector<16x1xf32>
    %81 = vector.broadcast %80 : vector<16x1xf32> to vector<16x16xf32>
    %82 = arith.subf %78, %81 : vector<16x16xf32>
    %83 = math.exp %82 : vector<16x16xf32>
    %cst_36 = arith.constant dense<0.000000e+00> : vector<16xf32>
    %84 = vector.multi_reduction <add>, %83, %cst_36 [1] : vector<16x16xf32> to vector<16xf32>
    %85 = vector.shape_cast %84 : vector<16xf32> to vector<16x1xf32>
    %86 = tpu.reciprocal %85 {approx = true} : vector<16x1xf32> -> vector<16x1xf32>
    %87 = vector.broadcast %86 : vector<16x1xf32> to vector<16x16xf32>
    %88 = arith.mulf %83, %87 : vector<16x16xf32>
    %89 = arith.truncf %88 : vector<16x16xf32> to vector<16x16xbf16>
    %cst_37 = arith.constant dense<0.000000e+00> : vector<16x32xf32>
    %90 = tpu.matmul %89, %75, %cst_37 {dimension_numbers = #tpu.dot_dimension_numbers<[1], [0], [0], [1], [0, 0, 1, 1], [], []>} : vector<16x16xbf16>, vector<16x32xbf16>, vector<16x32xf32> -> vector<16x32xf32>
    %91 = arith.truncf %90 : vector<16x32xf32> to vector<16x32xbf16>
    %c32 = arith.constant 32 : index
    %c0_38 = arith.constant 0 : index
    %92 = vector.load %arg9[%c32, %c0_38] : memref<128x128xbf16, #tpu.memory_space<vmem>>, vector<32x128xbf16>
    %cst_39 = arith.constant dense<0.000000e+00> : vector<16x128xf32>
    %93 = tpu.matmul %91, %92, %cst_39 {dimension_numbers = #tpu.dot_dimension_numbers<[1], [0], [0], [1], [0, 0, 1, 1], [], []>} : vector<16x32xbf16>, vector<32x128xbf16>, vector<16x128xf32> -> vector<16x128xf32>
    %94 = arith.addf %72, %93 : vector<16x128xf32>
    %95 = vector.extract_strided_slice %43 {offsets = [0, 64], sizes = [16, 32], strides = [1, 1]} : vector<32x128xbf16> to vector<16x32xbf16>
    %96 = vector.extract_strided_slice %45 {offsets = [0, 64], sizes = [16, 32], strides = [1, 1]} : vector<32x128xbf16> to vector<16x32xbf16>
    %97 = vector.extract_strided_slice %47 {offsets = [0, 64], sizes = [16, 32], strides = [1, 1]} : vector<32x128xbf16> to vector<16x32xbf16>
    %cst_40 = arith.constant dense<0.000000e+00> : vector<16x16xf32>
    %98 = tpu.matmul %95, %96, %cst_40 {dimension_numbers = #tpu.dot_dimension_numbers<[1], [1], [0], [0], [0, 0, 1, 0], [], []>} : vector<16x32xbf16>, vector<16x32xbf16>, vector<16x16xf32> -> vector<16x16xf32>
    %99 = vector.broadcast %49 : vector<1x16xf32> to vector<16x16xf32>
    %100 = arith.addf %98, %99 : vector<16x16xf32>
    %cst_41 = arith.constant dense<0xFF800000> : vector<16xf32>
    %101 = vector.multi_reduction <maximumf>, %100, %cst_41 [1] : vector<16x16xf32> to vector<16xf32>
    %102 = vector.shape_cast %101 : vector<16xf32> to vector<16x1xf32>
    %103 = vector.broadcast %102 : vector<16x1xf32> to vector<16x16xf32>
    %104 = arith.subf %100, %103 : vector<16x16xf32>
    %105 = math.exp %104 : vector<16x16xf32>
    %cst_42 = arith.constant dense<0.000000e+00> : vector<16xf32>
    %106 = vector.multi_reduction <add>, %105, %cst_42 [1] : vector<16x16xf32> to vector<16xf32>
    %107 = vector.shape_cast %106 : vector<16xf32> to vector<16x1xf32>
    %108 = tpu.reciprocal %107 {approx = true} : vector<16x1xf32> -> vector<16x1xf32>
    %109 = vector.broadcast %108 : vector<16x1xf32> to vector<16x16xf32>
    %110 = arith.mulf %105, %109 : vector<16x16xf32>
    %111 = arith.truncf %110 : vector<16x16xf32> to vector<16x16xbf16>
    %cst_43 = arith.constant dense<0.000000e+00> : vector<16x32xf32>
    %112 = tpu.matmul %111, %97, %cst_43 {dimension_numbers = #tpu.dot_dimension_numbers<[1], [0], [0], [1], [0, 0, 1, 1], [], []>} : vector<16x16xbf16>, vector<16x32xbf16>, vector<16x32xf32> -> vector<16x32xf32>
    %113 = arith.truncf %112 : vector<16x32xf32> to vector<16x32xbf16>
    %c64 = arith.constant 64 : index
    %c0_44 = arith.constant 0 : index
    %114 = vector.load %arg9[%c64, %c0_44] : memref<128x128xbf16, #tpu.memory_space<vmem>>, vector<32x128xbf16>
    %cst_45 = arith.constant dense<0.000000e+00> : vector<16x128xf32>
    %115 = tpu.matmul %113, %114, %cst_45 {dimension_numbers = #tpu.dot_dimension_numbers<[1], [0], [0], [1], [0, 0, 1, 1], [], []>} : vector<16x32xbf16>, vector<32x128xbf16>, vector<16x128xf32> -> vector<16x128xf32>
    %116 = arith.addf %94, %115 : vector<16x128xf32>
    %117 = vector.extract_strided_slice %43 {offsets = [0, 96], sizes = [16, 32], strides = [1, 1]} : vector<32x128xbf16> to vector<16x32xbf16>
    %118 = vector.extract_strided_slice %45 {offsets = [0, 96], sizes = [16, 32], strides = [1, 1]} : vector<32x128xbf16> to vector<16x32xbf16>
    %119 = vector.extract_strided_slice %47 {offsets = [0, 96], sizes = [16, 32], strides = [1, 1]} : vector<32x128xbf16> to vector<16x32xbf16>
    %cst_46 = arith.constant dense<0.000000e+00> : vector<16x16xf32>
    %120 = tpu.matmul %117, %118, %cst_46 {dimension_numbers = #tpu.dot_dimension_numbers<[1], [1], [0], [0], [0, 0, 1, 0], [], []>} : vector<16x32xbf16>, vector<16x32xbf16>, vector<16x16xf32> -> vector<16x16xf32>
    %121 = vector.broadcast %49 : vector<1x16xf32> to vector<16x16xf32>
    %122 = arith.addf %120, %121 : vector<16x16xf32>
    %cst_47 = arith.constant dense<0xFF800000> : vector<16xf32>
    %123 = vector.multi_reduction <maximumf>, %122, %cst_47 [1] : vector<16x16xf32> to vector<16xf32>
    %124 = vector.shape_cast %123 : vector<16xf32> to vector<16x1xf32>
    %125 = vector.broadcast %124 : vector<16x1xf32> to vector<16x16xf32>
    %126 = arith.subf %122, %125 : vector<16x16xf32>
    %127 = math.exp %126 : vector<16x16xf32>
    %cst_48 = arith.constant dense<0.000000e+00> : vector<16xf32>
    %128 = vector.multi_reduction <add>, %127, %cst_48 [1] : vector<16x16xf32> to vector<16xf32>
    %129 = vector.shape_cast %128 : vector<16xf32> to vector<16x1xf32>
    %130 = tpu.reciprocal %129 {approx = true} : vector<16x1xf32> -> vector<16x1xf32>
    %131 = vector.broadcast %130 : vector<16x1xf32> to vector<16x16xf32>
    %132 = arith.mulf %127, %131 : vector<16x16xf32>
    %133 = arith.truncf %132 : vector<16x16xf32> to vector<16x16xbf16>
    %cst_49 = arith.constant dense<0.000000e+00> : vector<16x32xf32>
    %134 = tpu.matmul %133, %119, %cst_49 {dimension_numbers = #tpu.dot_dimension_numbers<[1], [0], [0], [1], [0, 0, 1, 1], [], []>} : vector<16x16xbf16>, vector<16x32xbf16>, vector<16x32xf32> -> vector<16x32xf32>
    %135 = arith.truncf %134 : vector<16x32xf32> to vector<16x32xbf16>
    %c96 = arith.constant 96 : index
    %c0_50 = arith.constant 0 : index
    %136 = vector.load %arg9[%c96, %c0_50] : memref<128x128xbf16, #tpu.memory_space<vmem>>, vector<32x128xbf16>
    %cst_51 = arith.constant dense<0.000000e+00> : vector<16x128xf32>
    %137 = tpu.matmul %135, %136, %cst_51 {dimension_numbers = #tpu.dot_dimension_numbers<[1], [0], [0], [1], [0, 0, 1, 1], [], []>} : vector<16x32xbf16>, vector<32x128xbf16>, vector<16x128xf32> -> vector<16x128xf32>
    %138 = arith.addf %116, %137 : vector<16x128xf32>
    %c0_52 = arith.constant 0 : index
    %c0_53 = arith.constant 0 : index
    %139 = vector.load %arg10[%c0_52, %c0_53] : memref<1x128xf32, #tpu.memory_space<vmem>>, vector<1x128xf32>
    %140 = vector.broadcast %139 : vector<1x128xf32> to vector<16x128xf32>
    %141 = arith.addf %138, %140 : vector<16x128xf32>
    %142 = vector.extract_strided_slice %32 {offsets = [0, 0], sizes = [16, 128], strides = [1, 1]} : vector<32x128xf32> to vector<16x128xf32>
    %143 = arith.addf %141, %142 : vector<16x128xf32>
    %c0_54 = arith.constant 0 : index
    %c0_55 = arith.constant 0 : index
    %144 = vector.load %arg11[%c0_54, %c0_55] : memref<1x128xf32, #tpu.memory_space<vmem>>, vector<1x128xf32>
    %c0_56 = arith.constant 0 : index
    %c0_57 = arith.constant 0 : index
    %145 = vector.load %arg12[%c0_56, %c0_57] : memref<1x128xf32, #tpu.memory_space<vmem>>, vector<1x128xf32>
    %cst_58 = arith.constant dense<0.000000e+00> : vector<16xf32>
    %146 = vector.multi_reduction <add>, %143, %cst_58 [1] : vector<16x128xf32> to vector<16xf32>
    %147 = vector.shape_cast %146 : vector<16xf32> to vector<16x1xf32>
    %cst_59 = arith.constant 1.280000e+02 : f32
    %148 = vector.broadcast %cst_59 : f32 to vector<16x1xf32>
    %149 = arith.divf %147, %148 : vector<16x1xf32>
    %150 = arith.mulf %143, %143 : vector<16x128xf32>
    %cst_60 = arith.constant dense<0.000000e+00> : vector<16xf32>
    %151 = vector.multi_reduction <add>, %150, %cst_60 [1] : vector<16x128xf32> to vector<16xf32>
    %152 = vector.shape_cast %151 : vector<16xf32> to vector<16x1xf32>
    %cst_61 = arith.constant 1.280000e+02 : f32
    %153 = vector.broadcast %cst_61 : f32 to vector<16x1xf32>
    %154 = arith.divf %152, %153 : vector<16x1xf32>
    %155 = arith.mulf %149, %149 : vector<16x1xf32>
    %156 = arith.subf %154, %155 : vector<16x1xf32>
    %cst_62 = arith.constant 0.000000e+00 : f32
    %157 = vector.broadcast %cst_62 : f32 to vector<16x1xf32>
    %158 = arith.maximumf %156, %157 : vector<16x1xf32>
    %159 = vector.broadcast %149 : vector<16x1xf32> to vector<16x128xf32>
    %160 = arith.subf %143, %159 : vector<16x128xf32>
    %cst_63 = arith.constant 9.99999996E-13 : f32
    %161 = vector.broadcast %cst_63 : f32 to vector<16x1xf32>
    %162 = arith.addf %158, %161 : vector<16x1xf32>
    %163 = math.rsqrt %162 : vector<16x1xf32>
    %164 = vector.broadcast %163 : vector<16x1xf32> to vector<16x128xf32>
    %165 = arith.mulf %160, %164 : vector<16x128xf32>
    %166 = vector.broadcast %144 : vector<1x128xf32> to vector<16x128xf32>
    %167 = arith.mulf %165, %166 : vector<16x128xf32>
    %168 = vector.broadcast %145 : vector<1x128xf32> to vector<16x128xf32>
    %169 = arith.addf %167, %168 : vector<16x128xf32>
    %c0_64 = arith.constant 0 : index
    %c0_65 = arith.constant 0 : index
    %170 = vector.load %arg20[%c0_64, %c0_65] : memref<32x128xf32, #tpu.memory_space<vmem>>, vector<16x128xf32>
    tpu.vector_store %arg20[%c0_64, %c0_65], %169 {strides = array<i32>} : memref<32x128xf32, #tpu.memory_space<vmem>>, vector<16x128xf32>,
    %171 = vector.extract_strided_slice %33 {offsets = [1, 0, 0], sizes = [1, 1, 16], strides = [1, 1, 1]} : vector<2x1x16xf32> to vector<1x1x16xf32>
    %172 = vector.shape_cast %171 : vector<1x1x16xf32> to vector<1x16xf32>
    %cst_66 = arith.constant 0.000000e+00 : f32
    %173 = vector.broadcast %cst_66 : f32 to vector<16x128xf32>
    %174 = vector.extract_strided_slice %43 {offsets = [16, 0], sizes = [16, 32], strides = [1, 1]} : vector<32x128xbf16> to vector<16x32xbf16>
    %175 = vector.extract_strided_slice %45 {offsets = [16, 0], sizes = [16, 32], strides = [1, 1]} : vector<32x128xbf16> to vector<16x32xbf16>
    %176 = vector.extract_strided_slice %47 {offsets = [16, 0], sizes = [16, 32], strides = [1, 1]} : vector<32x128xbf16> to vector<16x32xbf16>
    %cst_67 = arith.constant dense<0.000000e+00> : vector<16x16xf32>
    %177 = tpu.matmul %174, %175, %cst_67 {dimension_numbers = #tpu.dot_dimension_numbers<[1], [1], [0], [0], [0, 0, 1, 0], [], []>} : vector<16x32xbf16>, vector<16x32xbf16>, vector<16x16xf32> -> vector<16x16xf32>
    %178 = vector.broadcast %172 : vector<1x16xf32> to vector<16x16xf32>
    %179 = arith.addf %177, %178 : vector<16x16xf32>
    %cst_68 = arith.constant dense<0xFF800000> : vector<16xf32>
    %180 = vector.multi_reduction <maximumf>, %179, %cst_68 [1] : vector<16x16xf32> to vector<16xf32>
    %181 = vector.shape_cast %180 : vector<16xf32> to vector<16x1xf32>
    %182 = vector.broadcast %181 : vector<16x1xf32> to vector<16x16xf32>
    %183 = arith.subf %179, %182 : vector<16x16xf32>
    %184 = math.exp %183 : vector<16x16xf32>
    %cst_69 = arith.constant dense<0.000000e+00> : vector<16xf32>
    %185 = vector.multi_reduction <add>, %184, %cst_69 [1] : vector<16x16xf32> to vector<16xf32>
    %186 = vector.shape_cast %185 : vector<16xf32> to vector<16x1xf32>
    %187 = tpu.reciprocal %186 {approx = true} : vector<16x1xf32> -> vector<16x1xf32>
    %188 = vector.broadcast %187 : vector<16x1xf32> to vector<16x16xf32>
    %189 = arith.mulf %184, %188 : vector<16x16xf32>
    %190 = arith.truncf %189 : vector<16x16xf32> to vector<16x16xbf16>
    %cst_70 = arith.constant dense<0.000000e+00> : vector<16x32xf32>
    %191 = tpu.matmul %190, %176, %cst_70 {dimension_numbers = #tpu.dot_dimension_numbers<[1], [0], [0], [1], [0, 0, 1, 1], [], []>} : vector<16x16xbf16>, vector<16x32xbf16>, vector<16x32xf32> -> vector<16x32xf32>
    %192 = arith.truncf %191 : vector<16x32xf32> to vector<16x32xbf16>
    %c0_71 = arith.constant 0 : index
    %c0_72 = arith.constant 0 : index
    %193 = vector.load %arg9[%c0_71, %c0_72] : memref<128x128xbf16, #tpu.memory_space<vmem>>, vector<32x128xbf16>
    %cst_73 = arith.constant dense<0.000000e+00> : vector<16x128xf32>
    %194 = tpu.matmul %192, %193, %cst_73 {dimension_numbers = #tpu.dot_dimension_numbers<[1], [0], [0], [1], [0, 0, 1, 1], [], []>} : vector<16x32xbf16>, vector<32x128xbf16>, vector<16x128xf32> -> vector<16x128xf32>
    %195 = arith.addf %173, %194 : vector<16x128xf32>
    %196 = vector.extract_strided_slice %43 {offsets = [16, 32], sizes = [16, 32], strides = [1, 1]} : vector<32x128xbf16> to vector<16x32xbf16>
    %197 = vector.extract_strided_slice %45 {offsets = [16, 32], sizes = [16, 32], strides = [1, 1]} : vector<32x128xbf16> to vector<16x32xbf16>
    %198 = vector.extract_strided_slice %47 {offsets = [16, 32], sizes = [16, 32], strides = [1, 1]} : vector<32x128xbf16> to vector<16x32xbf16>
    %cst_74 = arith.constant dense<0.000000e+00> : vector<16x16xf32>
    %199 = tpu.matmul %196, %197, %cst_74 {dimension_numbers = #tpu.dot_dimension_numbers<[1], [1], [0], [0], [0, 0, 1, 0], [], []>} : vector<16x32xbf16>, vector<16x32xbf16>, vector<16x16xf32> -> vector<16x16xf32>
    %200 = vector.broadcast %172 : vector<1x16xf32> to vector<16x16xf32>
    %201 = arith.addf %199, %200 : vector<16x16xf32>
    %cst_75 = arith.constant dense<0xFF800000> : vector<16xf32>
    %202 = vector.multi_reduction <maximumf>, %201, %cst_75 [1] : vector<16x16xf32> to vector<16xf32>
    %203 = vector.shape_cast %202 : vector<16xf32> to vector<16x1xf32>
    %204 = vector.broadcast %203 : vector<16x1xf32> to vector<16x16xf32>
    %205 = arith.subf %201, %204 : vector<16x16xf32>
    %206 = math.exp %205 : vector<16x16xf32>
    %cst_76 = arith.constant dense<0.000000e+00> : vector<16xf32>
    %207 = vector.multi_reduction <add>, %206, %cst_76 [1] : vector<16x16xf32> to vector<16xf32>
    %208 = vector.shape_cast %207 : vector<16xf32> to vector<16x1xf32>
    %209 = tpu.reciprocal %208 {approx = true} : vector<16x1xf32> -> vector<16x1xf32>
    %210 = vector.broadcast %209 : vector<16x1xf32> to vector<16x16xf32>
    %211 = arith.mulf %206, %210 : vector<16x16xf32>
    %212 = arith.truncf %211 : vector<16x16xf32> to vector<16x16xbf16>
    %cst_77 = arith.constant dense<0.000000e+00> : vector<16x32xf32>
    %213 = tpu.matmul %212, %198, %cst_77 {dimension_numbers = #tpu.dot_dimension_numbers<[1], [0], [0], [1], [0, 0, 1, 1], [], []>} : vector<16x16xbf16>, vector<16x32xbf16>, vector<16x32xf32> -> vector<16x32xf32>
    %214 = arith.truncf %213 : vector<16x32xf32> to vector<16x32xbf16>
    %c32_78 = arith.constant 32 : index
    %c0_79 = arith.constant 0 : index
    %215 = vector.load %arg9[%c32_78, %c0_79] : memref<128x128xbf16, #tpu.memory_space<vmem>>, vector<32x128xbf16>
    %cst_80 = arith.constant dense<0.000000e+00> : vector<16x128xf32>
    %216 = tpu.matmul %214, %215, %cst_80 {dimension_numbers = #tpu.dot_dimension_numbers<[1], [0], [0], [1], [0, 0, 1, 1], [], []>} : vector<16x32xbf16>, vector<32x128xbf16>, vector<16x128xf32> -> vector<16x128xf32>
    %217 = arith.addf %195, %216 : vector<16x128xf32>
    %218 = vector.extract_strided_slice %43 {offsets = [16, 64], sizes = [16, 32], strides = [1, 1]} : vector<32x128xbf16> to vector<16x32xbf16>
    %219 = vector.extract_strided_slice %45 {offsets = [16, 64], sizes = [16, 32], strides = [1, 1]} : vector<32x128xbf16> to vector<16x32xbf16>
    %220 = vector.extract_strided_slice %47 {offsets = [16, 64], sizes = [16, 32], strides = [1, 1]} : vector<32x128xbf16> to vector<16x32xbf16>
    %cst_81 = arith.constant dense<0.000000e+00> : vector<16x16xf32>
    %221 = tpu.matmul %218, %219, %cst_81 {dimension_numbers = #tpu.dot_dimension_numbers<[1], [1], [0], [0], [0, 0, 1, 0], [], []>} : vector<16x32xbf16>, vector<16x32xbf16>, vector<16x16xf32> -> vector<16x16xf32>
    %222 = vector.broadcast %172 : vector<1x16xf32> to vector<16x16xf32>
    %223 = arith.addf %221, %222 : vector<16x16xf32>
    %cst_82 = arith.constant dense<0xFF800000> : vector<16xf32>
    %224 = vector.multi_reduction <maximumf>, %223, %cst_82 [1] : vector<16x16xf32> to vector<16xf32>
    %225 = vector.shape_cast %224 : vector<16xf32> to vector<16x1xf32>
    %226 = vector.broadcast %225 : vector<16x1xf32> to vector<16x16xf32>
    %227 = arith.subf %223, %226 : vector<16x16xf32>
    %228 = math.exp %227 : vector<16x16xf32>
    %cst_83 = arith.constant dense<0.000000e+00> : vector<16xf32>
    %229 = vector.multi_reduction <add>, %228, %cst_83 [1] : vector<16x16xf32> to vector<16xf32>
    %230 = vector.shape_cast %229 : vector<16xf32> to vector<16x1xf32>
    %231 = tpu.reciprocal %230 {approx = true} : vector<16x1xf32> -> vector<16x1xf32>
    %232 = vector.broadcast %231 : vector<16x1xf32> to vector<16x16xf32>
    %233 = arith.mulf %228, %232 : vector<16x16xf32>
    %234 = arith.truncf %233 : vector<16x16xf32> to vector<16x16xbf16>
    %cst_84 = arith.constant dense<0.000000e+00> : vector<16x32xf32>
    %235 = tpu.matmul %234, %220, %cst_84 {dimension_numbers = #tpu.dot_dimension_numbers<[1], [0], [0], [1], [0, 0, 1, 1], [], []>} : vector<16x16xbf16>, vector<16x32xbf16>, vector<16x32xf32> -> vector<16x32xf32>
    %236 = arith.truncf %235 : vector<16x32xf32> to vector<16x32xbf16>
    %c64_85 = arith.constant 64 : index
    %c0_86 = arith.constant 0 : index
    %237 = vector.load %arg9[%c64_85, %c0_86] : memref<128x128xbf16, #tpu.memory_space<vmem>>, vector<32x128xbf16>
    %cst_87 = arith.constant dense<0.000000e+00> : vector<16x128xf32>
    %238 = tpu.matmul %236, %237, %cst_87 {dimension_numbers = #tpu.dot_dimension_numbers<[1], [0], [0], [1], [0, 0, 1, 1], [], []>} : vector<16x32xbf16>, vector<32x128xbf16>, vector<16x128xf32> -> vector<16x128xf32>
    %239 = arith.addf %217, %238 : vector<16x128xf32>
    %240 = vector.extract_strided_slice %43 {offsets = [16, 96], sizes = [16, 32], strides = [1, 1]} : vector<32x128xbf16> to vector<16x32xbf16>
    %241 = vector.extract_strided_slice %45 {offsets = [16, 96], sizes = [16, 32], strides = [1, 1]} : vector<32x128xbf16> to vector<16x32xbf16>
    %242 = vector.extract_strided_slice %47 {offsets = [16, 96], sizes = [16, 32], strides = [1, 1]} : vector<32x128xbf16> to vector<16x32xbf16>
    %cst_88 = arith.constant dense<0.000000e+00> : vector<16x16xf32>
    %243 = tpu.matmul %240, %241, %cst_88 {dimension_numbers = #tpu.dot_dimension_numbers<[1], [1], [0], [0], [0, 0, 1, 0], [], []>} : vector<16x32xbf16>, vector<16x32xbf16>, vector<16x16xf32> -> vector<16x16xf32>
    %244 = vector.broadcast %172 : vector<1x16xf32> to vector<16x16xf32>
    %245 = arith.addf %243, %244 : vector<16x16xf32>
    %cst_89 = arith.constant dense<0xFF800000> : vector<16xf32>
    %246 = vector.multi_reduction <maximumf>, %245, %cst_89 [1] : vector<16x16xf32> to vector<16xf32>
    %247 = vector.shape_cast %246 : vector<16xf32> to vector<16x1xf32>
    %248 = vector.broadcast %247 : vector<16x1xf32> to vector<16x16xf32>
    %249 = arith.subf %245, %248 : vector<16x16xf32>
    %250 = math.exp %249 : vector<16x16xf32>
    %cst_90 = arith.constant dense<0.000000e+00> : vector<16xf32>
    %251 = vector.multi_reduction <add>, %250, %cst_90 [1] : vector<16x16xf32> to vector<16xf32>
    %252 = vector.shape_cast %251 : vector<16xf32> to vector<16x1xf32>
    %253 = tpu.reciprocal %252 {approx = true} : vector<16x1xf32> -> vector<16x1xf32>
    %254 = vector.broadcast %253 : vector<16x1xf32> to vector<16x16xf32>
    %255 = arith.mulf %250, %254 : vector<16x16xf32>
    %256 = arith.truncf %255 : vector<16x16xf32> to vector<16x16xbf16>
    %cst_91 = arith.constant dense<0.000000e+00> : vector<16x32xf32>
    %257 = tpu.matmul %256, %242, %cst_91 {dimension_numbers = #tpu.dot_dimension_numbers<[1], [0], [0], [1], [0, 0, 1, 1], [], []>} : vector<16x16xbf16>, vector<16x32xbf16>, vector<16x32xf32> -> vector<16x32xf32>
    %258 = arith.truncf %257 : vector<16x32xf32> to vector<16x32xbf16>
    %c96_92 = arith.constant 96 : index
    %c0_93 = arith.constant 0 : index
    %259 = vector.load %arg9[%c96_92, %c0_93] : memref<128x128xbf16, #tpu.memory_space<vmem>>, vector<32x128xbf16>
    %cst_94 = arith.constant dense<0.000000e+00> : vector<16x128xf32>
    %260 = tpu.matmul %258, %259, %cst_94 {dimension_numbers = #tpu.dot_dimension_numbers<[1], [0], [0], [1], [0, 0, 1, 1], [], []>} : vector<16x32xbf16>, vector<32x128xbf16>, vector<16x128xf32> -> vector<16x128xf32>
    %261 = arith.addf %239, %260 : vector<16x128xf32>
    %c0_95 = arith.constant 0 : index
    %c0_96 = arith.constant 0 : index
    %262 = vector.load %arg10[%c0_95, %c0_96] : memref<1x128xf32, #tpu.memory_space<vmem>>, vector<1x128xf32>
    %263 = vector.broadcast %262 : vector<1x128xf32> to vector<16x128xf32>
    %264 = arith.addf %261, %263 : vector<16x128xf32>
    %265 = vector.extract_strided_slice %32 {offsets = [16, 0], sizes = [16, 128], strides = [1, 1]} : vector<32x128xf32> to vector<16x128xf32>
    %266 = arith.addf %264, %265 : vector<16x128xf32>
    %c0_97 = arith.constant 0 : index
    %c0_98 = arith.constant 0 : index
    %267 = vector.load %arg11[%c0_97, %c0_98] : memref<1x128xf32, #tpu.memory_space<vmem>>, vector<1x128xf32>
    %c0_99 = arith.constant 0 : index
    %c0_100 = arith.constant 0 : index
    %268 = vector.load %arg12[%c0_99, %c0_100] : memref<1x128xf32, #tpu.memory_space<vmem>>, vector<1x128xf32>
    %cst_101 = arith.constant dense<0.000000e+00> : vector<16xf32>
    %269 = vector.multi_reduction <add>, %266, %cst_101 [1] : vector<16x128xf32> to vector<16xf32>
    %270 = vector.shape_cast %269 : vector<16xf32> to vector<16x1xf32>
    %cst_102 = arith.constant 1.280000e+02 : f32
    %271 = vector.broadcast %cst_102 : f32 to vector<16x1xf32>
    %272 = arith.divf %270, %271 : vector<16x1xf32>
    %273 = arith.mulf %266, %266 : vector<16x128xf32>
    %cst_103 = arith.constant dense<0.000000e+00> : vector<16xf32>
    %274 = vector.multi_reduction <add>, %273, %cst_103 [1] : vector<16x128xf32> to vector<16xf32>
    %275 = vector.shape_cast %274 : vector<16xf32> to vector<16x1xf32>
    %cst_104 = arith.constant 1.280000e+02 : f32
    %276 = vector.broadcast %cst_104 : f32 to vector<16x1xf32>
    %277 = arith.divf %275, %276 : vector<16x1xf32>
    %278 = arith.mulf %272, %272 : vector<16x1xf32>
    %279 = arith.subf %277, %278 : vector<16x1xf32>
    %cst_105 = arith.constant 0.000000e+00 : f32
    %280 = vector.broadcast %cst_105 : f32 to vector<16x1xf32>
    %281 = arith.maximumf %279, %280 : vector<16x1xf32>
    %282 = vector.broadcast %272 : vector<16x1xf32> to vector<16x128xf32>
    %283 = arith.subf %266, %282 : vector<16x128xf32>
    %cst_106 = arith.constant 9.99999996E-13 : f32
    %284 = vector.broadcast %cst_106 : f32 to vector<16x1xf32>
    %285 = arith.addf %281, %284 : vector<16x1xf32>
    %286 = math.rsqrt %285 : vector<16x1xf32>
    %287 = vector.broadcast %286 : vector<16x1xf32> to vector<16x128xf32>
    %288 = arith.mulf %283, %287 : vector<16x128xf32>
    %289 = vector.broadcast %267 : vector<1x128xf32> to vector<16x128xf32>
    %290 = arith.mulf %288, %289 : vector<16x128xf32>
    %291 = vector.broadcast %268 : vector<1x128xf32> to vector<16x128xf32>
    %292 = arith.addf %290, %291 : vector<16x128xf32>
    %c16 = arith.constant 16 : index
    %c0_107 = arith.constant 0 : index
    %293 = vector.load %arg20[%c16, %c0_107] : memref<32x128xf32, #tpu.memory_space<vmem>>, vector<16x128xf32>
    tpu.vector_store %arg20[%c16, %c0_107], %292 {strides = array<i32>} : memref<32x128xf32, #tpu.memory_space<vmem>>, vector<16x128xf32>,
    %c0_108 = arith.constant 0 : index
    %c0_109 = arith.constant 0 : index
    %294 = vector.load %arg20[%c0_108, %c0_109] : memref<32x128xf32, #tpu.memory_space<vmem>>, vector<32x128xf32>
    %295 = arith.truncf %294 : vector<32x128xf32> to vector<32x128xbf16>
    %c0_110 = arith.constant 0 : index
    %c0_111 = arith.constant 0 : index
    %296 = vector.load %arg13[%c0_110, %c0_111] : memref<128x512xbf16, #tpu.memory_space<vmem>>, vector<128x512xbf16>
    %cst_112 = arith.constant dense<0.000000e+00> : vector<32x512xf32>
    %297 = tpu.matmul %295, %296, %cst_112 {dimension_numbers = #tpu.dot_dimension_numbers<[1], [0], [0], [1], [0, 0, 1, 1], [], []>} : vector<32x128xbf16>, vector<128x512xbf16>, vector<32x512xf32> -> vector<32x512xf32>
    %c0_113 = arith.constant 0 : index
    %c0_114 = arith.constant 0 : index
    %298 = vector.load %arg14[%c0_113, %c0_114] : memref<1x512xf32, #tpu.memory_space<vmem>>, vector<1x512xf32>
    %299 = vector.broadcast %298 : vector<1x512xf32> to vector<32x512xf32>
    %300 = arith.addf %297, %299 : vector<32x512xf32>
    %301 = arith.mulf %300, %300 : vector<32x512xf32>
    %302 = arith.mulf %300, %301 : vector<32x512xf32>
    %cst_115 = arith.constant 4.471500e-02 : f32
    %303 = vector.broadcast %cst_115 : f32 to vector<32x512xf32>
    %304 = arith.mulf %303, %302 : vector<32x512xf32>
    %305 = arith.addf %300, %304 : vector<32x512xf32>
    %cst_116 = arith.constant 0.797884583 : f32
    %306 = vector.broadcast %cst_116 : f32 to vector<32x512xf32>
    %307 = arith.mulf %306, %305 : vector<32x512xf32>
    %308 = math.tanh %307 : vector<32x512xf32>
    %cst_117 = arith.constant 1.000000e+00 : f32
    %309 = vector.broadcast %cst_117 : f32 to vector<32x512xf32>
    %310 = arith.addf %309, %308 : vector<32x512xf32>
    %cst_118 = arith.constant 5.000000e-01 : f32
    %311 = vector.broadcast %cst_118 : f32 to vector<32x512xf32>
    %312 = arith.mulf %311, %310 : vector<32x512xf32>
    %313 = arith.mulf %300, %312 : vector<32x512xf32>
    %314 = arith.truncf %313 : vector<32x512xf32> to vector<32x512xbf16>
    %c0_119 = arith.constant 0 : index
    %c0_120 = arith.constant 0 : index
    %315 = vector.load %arg15[%c0_119, %c0_120] : memref<512x128xbf16, #tpu.memory_space<vmem>>, vector<512x128xbf16>
    %cst_121 = arith.constant dense<0.000000e+00> : vector<32x128xf32>
    %316 = tpu.matmul %314, %315, %cst_121 {dimension_numbers = #tpu.dot_dimension_numbers<[1], [0], [0], [1], [0, 0, 1, 1], [], []>} : vector<32x512xbf16>, vector<512x128xbf16>, vector<32x128xf32> -> vector<32x128xf32>
    %c0_122 = arith.constant 0 : index
    %c0_123 = arith.constant 0 : index
    %317 = vector.load %arg16[%c0_122, %c0_123] : memref<1x128xf32, #tpu.memory_space<vmem>>, vector<1x128xf32>
    %318 = vector.broadcast %317 : vector<1x128xf32> to vector<32x128xf32>
    %319 = arith.addf %316, %318 : vector<32x128xf32>
    %320 = arith.addf %319, %294 : vector<32x128xf32>
    %c0_124 = arith.constant 0 : index
    %c0_125 = arith.constant 0 : index
    %321 = vector.load %arg17[%c0_124, %c0_125] : memref<1x128xf32, #tpu.memory_space<vmem>>, vector<1x128xf32>
    %c0_126 = arith.constant 0 : index
    %c0_127 = arith.constant 0 : index
    %322 = vector.load %arg18[%c0_126, %c0_127] : memref<1x128xf32, #tpu.memory_space<vmem>>, vector<1x128xf32>
    %cst_128 = arith.constant dense<0.000000e+00> : vector<32xf32>
    %323 = vector.multi_reduction <add>, %320, %cst_128 [1] : vector<32x128xf32> to vector<32xf32>
    %324 = vector.shape_cast %323 : vector<32xf32> to vector<32x1xf32>
    %cst_129 = arith.constant 1.280000e+02 : f32
    %325 = vector.broadcast %cst_129 : f32 to vector<32x1xf32>
    %326 = arith.divf %324, %325 : vector<32x1xf32>
    %327 = arith.mulf %320, %320 : vector<32x128xf32>
    %cst_130 = arith.constant dense<0.000000e+00> : vector<32xf32>
    %328 = vector.multi_reduction <add>, %327, %cst_130 [1] : vector<32x128xf32> to vector<32xf32>
    %329 = vector.shape_cast %328 : vector<32xf32> to vector<32x1xf32>
    %cst_131 = arith.constant 1.280000e+02 : f32
    %330 = vector.broadcast %cst_131 : f32 to vector<32x1xf32>
    %331 = arith.divf %329, %330 : vector<32x1xf32>
    %332 = arith.mulf %326, %326 : vector<32x1xf32>
    %333 = arith.subf %331, %332 : vector<32x1xf32>
    %cst_132 = arith.constant 0.000000e+00 : f32
    %334 = vector.broadcast %cst_132 : f32 to vector<32x1xf32>
    %335 = arith.maximumf %333, %334 : vector<32x1xf32>
    %336 = vector.broadcast %326 : vector<32x1xf32> to vector<32x128xf32>
    %337 = arith.subf %320, %336 : vector<32x128xf32>
    %cst_133 = arith.constant 9.99999996E-13 : f32
    %338 = vector.broadcast %cst_133 : f32 to vector<32x1xf32>
    %339 = arith.addf %335, %338 : vector<32x1xf32>
    %340 = math.rsqrt %339 : vector<32x1xf32>
    %341 = vector.broadcast %340 : vector<32x1xf32> to vector<32x128xf32>
    %342 = arith.mulf %337, %341 : vector<32x128xf32>
    %343 = vector.broadcast %321 : vector<1x128xf32> to vector<32x128xf32>
    %344 = arith.mulf %342, %343 : vector<32x128xf32>
    %345 = vector.broadcast %322 : vector<1x128xf32> to vector<32x128xf32>
    %346 = arith.addf %344, %345 : vector<32x128xf32>
    %347 = vector.shape_cast %346 : vector<32x128xf32> to vector<2x16x128xf32>
    %c0_134 = arith.constant 0 : index
    %c0_135 = arith.constant 0 : index
    %c0_136 = arith.constant 0 : index
    %348 = vector.load %arg19[%c0_134, %c0_135, %c0_136] : memref<2x16x128xf32, #tpu.memory_space<vmem>>, vector<2x16x128xf32>
    tpu.vector_store %arg19[%c0_134, %c0_135, %c0_136], %347 {strides = array<i32>} : memref<2x16x128xf32, #tpu.memory_space<vmem>>, vector<2x16x128xf32>,
    return
  }
  func.func @transform_0(%arg0: i32) -> (i32, i32, i32) {
    %c0_i32 = arith.constant 0 : i32
    %c0_i32_0 = arith.constant 0 : i32
    %c0_i32_1 = arith.constant 0 : i32
    return %arg0, %c0_i32, %c0_i32_0 : i32, i32, i32
  }
  func.func @transform_1(%arg0: i32) -> (i32, i32, i32) {
    %c0_i32 = arith.constant 0 : i32
    %c0_i32_0 = arith.constant 0 : i32
    %c0_i32_1 = arith.constant 0 : i32
    return %arg0, %c0_i32, %c0_i32_0 : i32, i32, i32
  }
  func.func @transform_2(%arg0: i32) -> (i32, i32, i32) {
    %c0_i32 = arith.constant 0 : i32
    %c0_i32_0 = arith.constant 0 : i32
    %c0_i32_1 = arith.constant 0 : i32
    %c0_i32_2 = arith.constant 0 : i32
    return %c0_i32, %c0_i32_0, %c0_i32_1 : i32, i32, i32
  }
  func.func @transform_3(%arg0: i32) -> (i32, i32, i32) {
    %c0_i32 = arith.constant 0 : i32
    %c0_i32_0 = arith.constant 0 : i32
    %c0_i32_1 = arith.constant 0 : i32
    return %arg0, %c0_i32, %c0_i32_0 : i32, i32, i32
  }
  func.func @transform_4(%arg0: i32) -> (i32, i32) {
    %c0_i32 = arith.constant 0 : i32
    %c0_i32_0 = arith.constant 0 : i32
    %c0_i32_1 = arith.constant 0 : i32
    return %c0_i32, %c0_i32_0 : i32, i32
  }
  func.func @transform_5(%arg0: i32) -> (i32, i32) {
    %c0_i32 = arith.constant 0 : i32
    %c0_i32_0 = arith.constant 0 : i32
    %c0_i32_1 = arith.constant 0 : i32
    return %c0_i32, %c0_i32_0 : i32, i32
  }
  func.func @transform_6(%arg0: i32) -> (i32, i32) {
    %c0_i32 = arith.constant 0 : i32
    %c0_i32_0 = arith.constant 0 : i32
    %c0_i32_1 = arith.constant 0 : i32
    return %c0_i32, %c0_i32_0 : i32, i32
  }
  func.func @transform_7(%arg0: i32) -> (i32, i32) {
    %c0_i32 = arith.constant 0 : i32
    %c0_i32_0 = arith.constant 0 : i32
    %c0_i32_1 = arith.constant 0 : i32
    return %c0_i32, %c0_i32_0 : i32, i32
  }
  func.func @transform_8(%arg0: i32) -> (i32, i32) {
    %c0_i32 = arith.constant 0 : i32
    %c0_i32_0 = arith.constant 0 : i32
    %c0_i32_1 = arith.constant 0 : i32
    return %c0_i32, %c0_i32_0 : i32, i32
  }
  func.func @transform_9(%arg0: i32) -> (i32, i32) {
    %c0_i32 = arith.constant 0 : i32
    %c0_i32_0 = arith.constant 0 : i32
    %c0_i32_1 = arith.constant 0 : i32
    return %c0_i32, %c0_i32_0 : i32, i32
  }
  func.func @transform_10(%arg0: i32) -> (i32, i32) {
    %c0_i32 = arith.constant 0 : i32
    %c0_i32_0 = arith.constant 0 : i32
    %c0_i32_1 = arith.constant 0 : i32
    return %c0_i32, %c0_i32_0 : i32, i32
  }
  func.func @transform_11(%arg0: i32) -> (i32, i32) {
    %c0_i32 = arith.constant 0 : i32
    %c0_i32_0 = arith.constant 0 : i32
    %c0_i32_1 = arith.constant 0 : i32
    return %c0_i32, %c0_i32_0 : i32, i32
  }
  func.func @transform_12(%arg0: i32) -> (i32, i32) {
    %c0_i32 = arith.constant 0 : i32
    %c0_i32_0 = arith.constant 0 : i32
    %c0_i32_1 = arith.constant 0 : i32
    return %c0_i32, %c0_i32_0 : i32, i32
  }
  func.func @transform_13(%arg0: i32) -> (i32, i32) {
    %c0_i32 = arith.constant 0 : i32
    %c0_i32_0 = arith.constant 0 : i32
    %c0_i32_1 = arith.constant 0 : i32
    return %c0_i32, %c0_i32_0 : i32, i32
  }
  func.func @transform_14(%arg0: i32) -> (i32, i32) {
    %c0_i32 = arith.constant 0 : i32
    %c0_i32_0 = arith.constant 0 : i32
    %c0_i32_1 = arith.constant 0 : i32
    return %c0_i32, %c0_i32_0 : i32, i32
  }
  func.func @transform_15(%arg0: i32) -> (i32, i32) {
    %c0_i32 = arith.constant 0 : i32
    %c0_i32_0 = arith.constant 0 : i32
    %c0_i32_1 = arith.constant 0 : i32
    return %c0_i32, %c0_i32_0 : i32, i32
  }
  func.func @transform_16(%arg0: i32) -> (i32, i32) {
    %c0_i32 = arith.constant 0 : i32
    %c0_i32_0 = arith.constant 0 : i32
    %c0_i32_1 = arith.constant 0 : i32
    return %c0_i32, %c0_i32_0 : i32, i32
  }
  func.func @transform_17(%arg0: i32) -> (i32, i32) {
    %c0_i32 = arith.constant 0 : i32
    %c0_i32_0 = arith.constant 0 : i32
    %c0_i32_1 = arith.constant 0 : i32
    return %c0_i32, %c0_i32_0 : i32, i32
  }
  func.func @transform_18(%arg0: i32) -> (i32, i32, i32) {
    %c0_i32 = arith.constant 0 : i32
    %c0_i32_0 = arith.constant 0 : i32
    %c0_i32_1 = arith.constant 0 : i32
    return %arg0, %c0_i32, %c0_i32_0 : i32, i32, i32
  }
}

module attributes {stable_mosaic.version = 11 : i64} {
  func.func @_encoder_kernel(%arg0: i32, %arg1: memref<1x8x128xf32, #tpu.memory_space<vmem>>, %arg2: memref<1x8x128xf32, #tpu.memory_space<vmem>>, %arg3: memref<1x8x128xf32, #tpu.memory_space<vmem>>, %arg4: memref<1x1x8xf32, #tpu.memory_space<vmem>>, %arg5: memref<1x128xf32, #tpu.memory_space<vmem>>, %arg6: memref<1x128xf32, #tpu.memory_space<vmem>>, %arg7: memref<128x384xbf16, #tpu.memory_space<vmem>>, %arg8: memref<1x384xf32, #tpu.memory_space<vmem>>, %arg9: memref<128x128xbf16, #tpu.memory_space<vmem>>, %arg10: memref<1x128xf32, #tpu.memory_space<vmem>>, %arg11: memref<1x128xf32, #tpu.memory_space<vmem>>, %arg12: memref<1x128xf32, #tpu.memory_space<vmem>>, %arg13: memref<128x512xbf16, #tpu.memory_space<vmem>>, %arg14: memref<1x512xf32, #tpu.memory_space<vmem>>, %arg15: memref<512x128xbf16, #tpu.memory_space<vmem>>, %arg16: memref<1x128xf32, #tpu.memory_space<vmem>>, %arg17: memref<1x128xf32, #tpu.memory_space<vmem>>, %arg18: memref<1x128xf32, #tpu.memory_space<vmem>>, %arg19: memref<1x8x128xf32, #tpu.memory_space<vmem>>, %arg20: memref<8x128xf32, #tpu.memory_space<vmem>>) attributes {dimension_semantics = [#tpu.dimension_semantics<parallel>], iteration_bounds = array<i64: 2>, scalar_prefetch = 0 : i64, scratch_operands = 1 : i64, tpu.core_type = #tpu.core_type<tc>, window_params = [{transform_indices = @transform_0, window_bounds = array<i64: 1, 8, 128>}, {transform_indices = @transform_1, window_bounds = array<i64: 1, 8, 128>}, {pipeline_mode = #tpu.pipeline_mode<synchronous>, transform_indices = @transform_2, window_bounds = array<i64: 1, 8, 128>}, {transform_indices = @transform_3, window_bounds = array<i64: 1, 1, 8>}, {pipeline_mode = #tpu.pipeline_mode<synchronous>, transform_indices = @transform_4, window_bounds = array<i64: 1, 128>}, {pipeline_mode = #tpu.pipeline_mode<synchronous>, transform_indices = @transform_5, window_bounds = array<i64: 1, 128>}, {pipeline_mode = #tpu.pipeline_mode<synchronous>, transform_indices = @transform_6, window_bounds = array<i64: 128, 384>}, {pipeline_mode = #tpu.pipeline_mode<synchronous>, transform_indices = @transform_7, window_bounds = array<i64: 1, 384>}, {pipeline_mode = #tpu.pipeline_mode<synchronous>, transform_indices = @transform_8, window_bounds = array<i64: 128, 128>}, {pipeline_mode = #tpu.pipeline_mode<synchronous>, transform_indices = @transform_9, window_bounds = array<i64: 1, 128>}, {pipeline_mode = #tpu.pipeline_mode<synchronous>, transform_indices = @transform_10, window_bounds = array<i64: 1, 128>}, {pipeline_mode = #tpu.pipeline_mode<synchronous>, transform_indices = @transform_11, window_bounds = array<i64: 1, 128>}, {pipeline_mode = #tpu.pipeline_mode<synchronous>, transform_indices = @transform_12, window_bounds = array<i64: 128, 512>}, {pipeline_mode = #tpu.pipeline_mode<synchronous>, transform_indices = @transform_13, window_bounds = array<i64: 1, 512>}, {pipeline_mode = #tpu.pipeline_mode<synchronous>, transform_indices = @transform_14, window_bounds = array<i64: 512, 128>}, {pipeline_mode = #tpu.pipeline_mode<synchronous>, transform_indices = @transform_15, window_bounds = array<i64: 1, 128>}, {pipeline_mode = #tpu.pipeline_mode<synchronous>, transform_indices = @transform_16, window_bounds = array<i64: 1, 128>}, {pipeline_mode = #tpu.pipeline_mode<synchronous>, transform_indices = @transform_17, window_bounds = array<i64: 1, 128>}, {transform_indices = @transform_18, window_bounds = array<i64: 1, 8, 128>}]} {
    %c0 = arith.constant 0 : index
    %c0_0 = arith.constant 0 : index
    %c0_1 = arith.constant 0 : index
    %0 = vector.load %arg1[%c0, %c0_0, %c0_1] : memref<1x8x128xf32, #tpu.memory_space<vmem>>, vector<1x8x128xf32>
    %c0_2 = arith.constant 0 : index
    %c0_3 = arith.constant 0 : index
    %c0_4 = arith.constant 0 : index
    %1 = vector.load %arg2[%c0_2, %c0_3, %c0_4] : memref<1x8x128xf32, #tpu.memory_space<vmem>>, vector<1x8x128xf32>
    %2 = arith.addf %0, %1 : vector<1x8x128xf32>
    %c0_5 = arith.constant 0 : index
    %c0_6 = arith.constant 0 : index
    %c0_7 = arith.constant 0 : index
    %3 = vector.load %arg3[%c0_5, %c0_6, %c0_7] : memref<1x8x128xf32, #tpu.memory_space<vmem>>, vector<1x8x128xf32>
    %4 = arith.addf %2, %3 : vector<1x8x128xf32>
    %5 = vector.shape_cast %4 : vector<1x8x128xf32> to vector<8x128xf32>
    %c0_8 = arith.constant 0 : index
    %c0_9 = arith.constant 0 : index
    %6 = vector.load %arg5[%c0_8, %c0_9] : memref<1x128xf32, #tpu.memory_space<vmem>>, vector<1x128xf32>
    %c0_10 = arith.constant 0 : index
    %c0_11 = arith.constant 0 : index
    %7 = vector.load %arg6[%c0_10, %c0_11] : memref<1x128xf32, #tpu.memory_space<vmem>>, vector<1x128xf32>
    %cst = arith.constant dense<0.000000e+00> : vector<8xf32>
    %8 = vector.multi_reduction <add>, %5, %cst [1] : vector<8x128xf32> to vector<8xf32>
    %9 = vector.shape_cast %8 : vector<8xf32> to vector<8x1xf32>
    %cst_12 = arith.constant 1.280000e+02 : f32
    %10 = vector.broadcast %cst_12 : f32 to vector<8x1xf32>
    %11 = arith.divf %9, %10 : vector<8x1xf32>
    %12 = arith.mulf %5, %5 : vector<8x128xf32>
    %cst_13 = arith.constant dense<0.000000e+00> : vector<8xf32>
    %13 = vector.multi_reduction <add>, %12, %cst_13 [1] : vector<8x128xf32> to vector<8xf32>
    %14 = vector.shape_cast %13 : vector<8xf32> to vector<8x1xf32>
    %cst_14 = arith.constant 1.280000e+02 : f32
    %15 = vector.broadcast %cst_14 : f32 to vector<8x1xf32>
    %16 = arith.divf %14, %15 : vector<8x1xf32>
    %17 = arith.mulf %11, %11 : vector<8x1xf32>
    %18 = arith.subf %16, %17 : vector<8x1xf32>
    %cst_15 = arith.constant 0.000000e+00 : f32
    %19 = vector.broadcast %cst_15 : f32 to vector<8x1xf32>
    %20 = arith.maximumf %18, %19 : vector<8x1xf32>
    %21 = vector.broadcast %11 : vector<8x1xf32> to vector<8x128xf32>
    %22 = arith.subf %5, %21 : vector<8x128xf32>
    %cst_16 = arith.constant 9.99999996E-13 : f32
    %23 = vector.broadcast %cst_16 : f32 to vector<8x1xf32>
    %24 = arith.addf %20, %23 : vector<8x1xf32>
    %25 = math.rsqrt %24 : vector<8x1xf32>
    %26 = vector.broadcast %25 : vector<8x1xf32> to vector<8x128xf32>
    %27 = arith.mulf %22, %26 : vector<8x128xf32>
    %28 = vector.broadcast %6 : vector<1x128xf32> to vector<8x128xf32>
    %29 = arith.mulf %27, %28 : vector<8x128xf32>
    %30 = vector.broadcast %7 : vector<1x128xf32> to vector<8x128xf32>
    %31 = arith.addf %29, %30 : vector<8x128xf32>
    %c0_17 = arith.constant 0 : index
    %c0_18 = arith.constant 0 : index
    %c0_19 = arith.constant 0 : index
    %32 = vector.load %arg4[%c0_17, %c0_18, %c0_19] : memref<1x1x8xf32, #tpu.memory_space<vmem>>, vector<1x1x8xf32>
    %33 = arith.truncf %31 : vector<8x128xf32> to vector<8x128xbf16>
    %c0_20 = arith.constant 0 : index
    %c0_21 = arith.constant 0 : index
    %34 = vector.load %arg7[%c0_20, %c0_21] : memref<128x384xbf16, #tpu.memory_space<vmem>>, vector<128x384xbf16>
    %cst_22 = arith.constant dense<0.000000e+00> : vector<8x384xf32>
    %35 = tpu.matmul %33, %34, %cst_22 {dimension_numbers = #tpu.dot_dimension_numbers<[1], [0], [0], [1], [0, 0, 1, 1], [], []>} : vector<8x128xbf16>, vector<128x384xbf16>, vector<8x384xf32> -> vector<8x384xf32>
    %c0_23 = arith.constant 0 : index
    %c0_24 = arith.constant 0 : index
    %36 = vector.load %arg8[%c0_23, %c0_24] : memref<1x384xf32, #tpu.memory_space<vmem>>, vector<1x384xf32>
    %37 = vector.broadcast %36 : vector<1x384xf32> to vector<8x384xf32>
    %38 = arith.addf %35, %37 : vector<8x384xf32>
    %39 = vector.extract_strided_slice %38 {offsets = [0, 0], sizes = [8, 128], strides = [1, 1]} : vector<8x384xf32> to vector<8x128xf32>
    %cst_25 = arith.constant 0.176776692 : f32
    %40 = vector.broadcast %cst_25 : f32 to vector<8x128xf32>
    %41 = arith.mulf %39, %40 : vector<8x128xf32>
    %42 = arith.truncf %41 : vector<8x128xf32> to vector<8x128xbf16>
    %43 = vector.extract_strided_slice %38 {offsets = [0, 128], sizes = [8, 128], strides = [1, 1]} : vector<8x384xf32> to vector<8x128xf32>
    %44 = arith.truncf %43 : vector<8x128xf32> to vector<8x128xbf16>
    %45 = vector.extract_strided_slice %38 {offsets = [0, 256], sizes = [8, 128], strides = [1, 1]} : vector<8x384xf32> to vector<8x128xf32>
    %46 = arith.truncf %45 : vector<8x128xf32> to vector<8x128xbf16>
    %47 = vector.shape_cast %32 : vector<1x1x8xf32> to vector<1x8xf32>
    %cst_26 = arith.constant 0.000000e+00 : f32
    %48 = vector.broadcast %cst_26 : f32 to vector<8x128xf32>
    %49 = vector.extract_strided_slice %42 {offsets = [0, 0], sizes = [8, 32], strides = [1, 1]} : vector<8x128xbf16> to vector<8x32xbf16>
    %50 = vector.extract_strided_slice %44 {offsets = [0, 0], sizes = [8, 32], strides = [1, 1]} : vector<8x128xbf16> to vector<8x32xbf16>
    %51 = vector.extract_strided_slice %46 {offsets = [0, 0], sizes = [8, 32], strides = [1, 1]} : vector<8x128xbf16> to vector<8x32xbf16>
    %cst_27 = arith.constant dense<0.000000e+00> : vector<8x8xf32>
    %52 = tpu.matmul %49, %50, %cst_27 {dimension_numbers = #tpu.dot_dimension_numbers<[1], [1], [0], [0], [0, 0, 1, 0], [], []>} : vector<8x32xbf16>, vector<8x32xbf16>, vector<8x8xf32> -> vector<8x8xf32>
    %53 = vector.broadcast %47 : vector<1x8xf32> to vector<8x8xf32>
    %54 = arith.addf %52, %53 : vector<8x8xf32>
    %cst_28 = arith.constant dense<0xFF800000> : vector<8xf32>
    %55 = vector.multi_reduction <maximumf>, %54, %cst_28 [1] : vector<8x8xf32> to vector<8xf32>
    %56 = vector.shape_cast %55 : vector<8xf32> to vector<8x1xf32>
    %57 = vector.broadcast %56 : vector<8x1xf32> to vector<8x8xf32>
    %58 = arith.subf %54, %57 : vector<8x8xf32>
    %59 = math.exp %58 : vector<8x8xf32>
    %cst_29 = arith.constant dense<0.000000e+00> : vector<8xf32>
    %60 = vector.multi_reduction <add>, %59, %cst_29 [1] : vector<8x8xf32> to vector<8xf32>
    %61 = vector.shape_cast %60 : vector<8xf32> to vector<8x1xf32>
    %62 = tpu.reciprocal %61 {approx = true} : vector<8x1xf32> -> vector<8x1xf32>
    %63 = vector.broadcast %62 : vector<8x1xf32> to vector<8x8xf32>
    %64 = arith.mulf %59, %63 : vector<8x8xf32>
    %65 = arith.truncf %64 : vector<8x8xf32> to vector<8x8xbf16>
    %cst_30 = arith.constant dense<0.000000e+00> : vector<8x32xf32>
    %66 = tpu.matmul %65, %51, %cst_30 {dimension_numbers = #tpu.dot_dimension_numbers<[1], [0], [0], [1], [0, 0, 1, 1], [], []>} : vector<8x8xbf16>, vector<8x32xbf16>, vector<8x32xf32> -> vector<8x32xf32>
    %67 = arith.truncf %66 : vector<8x32xf32> to vector<8x32xbf16>
    %c0_31 = arith.constant 0 : index
    %c0_32 = arith.constant 0 : index
    %68 = vector.load %arg9[%c0_31, %c0_32] : memref<128x128xbf16, #tpu.memory_space<vmem>>, vector<32x128xbf16>
    %cst_33 = arith.constant dense<0.000000e+00> : vector<8x128xf32>
    %69 = tpu.matmul %67, %68, %cst_33 {dimension_numbers = #tpu.dot_dimension_numbers<[1], [0], [0], [1], [0, 0, 1, 1], [], []>} : vector<8x32xbf16>, vector<32x128xbf16>, vector<8x128xf32> -> vector<8x128xf32>
    %70 = arith.addf %48, %69 : vector<8x128xf32>
    %71 = vector.extract_strided_slice %42 {offsets = [0, 32], sizes = [8, 32], strides = [1, 1]} : vector<8x128xbf16> to vector<8x32xbf16>
    %72 = vector.extract_strided_slice %44 {offsets = [0, 32], sizes = [8, 32], strides = [1, 1]} : vector<8x128xbf16> to vector<8x32xbf16>
    %73 = vector.extract_strided_slice %46 {offsets = [0, 32], sizes = [8, 32], strides = [1, 1]} : vector<8x128xbf16> to vector<8x32xbf16>
    %cst_34 = arith.constant dense<0.000000e+00> : vector<8x8xf32>
    %74 = tpu.matmul %71, %72, %cst_34 {dimension_numbers = #tpu.dot_dimension_numbers<[1], [1], [0], [0], [0, 0, 1, 0], [], []>} : vector<8x32xbf16>, vector<8x32xbf16>, vector<8x8xf32> -> vector<8x8xf32>
    %75 = vector.broadcast %47 : vector<1x8xf32> to vector<8x8xf32>
    %76 = arith.addf %74, %75 : vector<8x8xf32>
    %cst_35 = arith.constant dense<0xFF800000> : vector<8xf32>
    %77 = vector.multi_reduction <maximumf>, %76, %cst_35 [1] : vector<8x8xf32> to vector<8xf32>
    %78 = vector.shape_cast %77 : vector<8xf32> to vector<8x1xf32>
    %79 = vector.broadcast %78 : vector<8x1xf32> to vector<8x8xf32>
    %80 = arith.subf %76, %79 : vector<8x8xf32>
    %81 = math.exp %80 : vector<8x8xf32>
    %cst_36 = arith.constant dense<0.000000e+00> : vector<8xf32>
    %82 = vector.multi_reduction <add>, %81, %cst_36 [1] : vector<8x8xf32> to vector<8xf32>
    %83 = vector.shape_cast %82 : vector<8xf32> to vector<8x1xf32>
    %84 = tpu.reciprocal %83 {approx = true} : vector<8x1xf32> -> vector<8x1xf32>
    %85 = vector.broadcast %84 : vector<8x1xf32> to vector<8x8xf32>
    %86 = arith.mulf %81, %85 : vector<8x8xf32>
    %87 = arith.truncf %86 : vector<8x8xf32> to vector<8x8xbf16>
    %cst_37 = arith.constant dense<0.000000e+00> : vector<8x32xf32>
    %88 = tpu.matmul %87, %73, %cst_37 {dimension_numbers = #tpu.dot_dimension_numbers<[1], [0], [0], [1], [0, 0, 1, 1], [], []>} : vector<8x8xbf16>, vector<8x32xbf16>, vector<8x32xf32> -> vector<8x32xf32>
    %89 = arith.truncf %88 : vector<8x32xf32> to vector<8x32xbf16>
    %c32 = arith.constant 32 : index
    %c0_38 = arith.constant 0 : index
    %90 = vector.load %arg9[%c32, %c0_38] : memref<128x128xbf16, #tpu.memory_space<vmem>>, vector<32x128xbf16>
    %cst_39 = arith.constant dense<0.000000e+00> : vector<8x128xf32>
    %91 = tpu.matmul %89, %90, %cst_39 {dimension_numbers = #tpu.dot_dimension_numbers<[1], [0], [0], [1], [0, 0, 1, 1], [], []>} : vector<8x32xbf16>, vector<32x128xbf16>, vector<8x128xf32> -> vector<8x128xf32>
    %92 = arith.addf %70, %91 : vector<8x128xf32>
    %93 = vector.extract_strided_slice %42 {offsets = [0, 64], sizes = [8, 32], strides = [1, 1]} : vector<8x128xbf16> to vector<8x32xbf16>
    %94 = vector.extract_strided_slice %44 {offsets = [0, 64], sizes = [8, 32], strides = [1, 1]} : vector<8x128xbf16> to vector<8x32xbf16>
    %95 = vector.extract_strided_slice %46 {offsets = [0, 64], sizes = [8, 32], strides = [1, 1]} : vector<8x128xbf16> to vector<8x32xbf16>
    %cst_40 = arith.constant dense<0.000000e+00> : vector<8x8xf32>
    %96 = tpu.matmul %93, %94, %cst_40 {dimension_numbers = #tpu.dot_dimension_numbers<[1], [1], [0], [0], [0, 0, 1, 0], [], []>} : vector<8x32xbf16>, vector<8x32xbf16>, vector<8x8xf32> -> vector<8x8xf32>
    %97 = vector.broadcast %47 : vector<1x8xf32> to vector<8x8xf32>
    %98 = arith.addf %96, %97 : vector<8x8xf32>
    %cst_41 = arith.constant dense<0xFF800000> : vector<8xf32>
    %99 = vector.multi_reduction <maximumf>, %98, %cst_41 [1] : vector<8x8xf32> to vector<8xf32>
    %100 = vector.shape_cast %99 : vector<8xf32> to vector<8x1xf32>
    %101 = vector.broadcast %100 : vector<8x1xf32> to vector<8x8xf32>
    %102 = arith.subf %98, %101 : vector<8x8xf32>
    %103 = math.exp %102 : vector<8x8xf32>
    %cst_42 = arith.constant dense<0.000000e+00> : vector<8xf32>
    %104 = vector.multi_reduction <add>, %103, %cst_42 [1] : vector<8x8xf32> to vector<8xf32>
    %105 = vector.shape_cast %104 : vector<8xf32> to vector<8x1xf32>
    %106 = tpu.reciprocal %105 {approx = true} : vector<8x1xf32> -> vector<8x1xf32>
    %107 = vector.broadcast %106 : vector<8x1xf32> to vector<8x8xf32>
    %108 = arith.mulf %103, %107 : vector<8x8xf32>
    %109 = arith.truncf %108 : vector<8x8xf32> to vector<8x8xbf16>
    %cst_43 = arith.constant dense<0.000000e+00> : vector<8x32xf32>
    %110 = tpu.matmul %109, %95, %cst_43 {dimension_numbers = #tpu.dot_dimension_numbers<[1], [0], [0], [1], [0, 0, 1, 1], [], []>} : vector<8x8xbf16>, vector<8x32xbf16>, vector<8x32xf32> -> vector<8x32xf32>
    %111 = arith.truncf %110 : vector<8x32xf32> to vector<8x32xbf16>
    %c64 = arith.constant 64 : index
    %c0_44 = arith.constant 0 : index
    %112 = vector.load %arg9[%c64, %c0_44] : memref<128x128xbf16, #tpu.memory_space<vmem>>, vector<32x128xbf16>
    %cst_45 = arith.constant dense<0.000000e+00> : vector<8x128xf32>
    %113 = tpu.matmul %111, %112, %cst_45 {dimension_numbers = #tpu.dot_dimension_numbers<[1], [0], [0], [1], [0, 0, 1, 1], [], []>} : vector<8x32xbf16>, vector<32x128xbf16>, vector<8x128xf32> -> vector<8x128xf32>
    %114 = arith.addf %92, %113 : vector<8x128xf32>
    %115 = vector.extract_strided_slice %42 {offsets = [0, 96], sizes = [8, 32], strides = [1, 1]} : vector<8x128xbf16> to vector<8x32xbf16>
    %116 = vector.extract_strided_slice %44 {offsets = [0, 96], sizes = [8, 32], strides = [1, 1]} : vector<8x128xbf16> to vector<8x32xbf16>
    %117 = vector.extract_strided_slice %46 {offsets = [0, 96], sizes = [8, 32], strides = [1, 1]} : vector<8x128xbf16> to vector<8x32xbf16>
    %cst_46 = arith.constant dense<0.000000e+00> : vector<8x8xf32>
    %118 = tpu.matmul %115, %116, %cst_46 {dimension_numbers = #tpu.dot_dimension_numbers<[1], [1], [0], [0], [0, 0, 1, 0], [], []>} : vector<8x32xbf16>, vector<8x32xbf16>, vector<8x8xf32> -> vector<8x8xf32>
    %119 = vector.broadcast %47 : vector<1x8xf32> to vector<8x8xf32>
    %120 = arith.addf %118, %119 : vector<8x8xf32>
    %cst_47 = arith.constant dense<0xFF800000> : vector<8xf32>
    %121 = vector.multi_reduction <maximumf>, %120, %cst_47 [1] : vector<8x8xf32> to vector<8xf32>
    %122 = vector.shape_cast %121 : vector<8xf32> to vector<8x1xf32>
    %123 = vector.broadcast %122 : vector<8x1xf32> to vector<8x8xf32>
    %124 = arith.subf %120, %123 : vector<8x8xf32>
    %125 = math.exp %124 : vector<8x8xf32>
    %cst_48 = arith.constant dense<0.000000e+00> : vector<8xf32>
    %126 = vector.multi_reduction <add>, %125, %cst_48 [1] : vector<8x8xf32> to vector<8xf32>
    %127 = vector.shape_cast %126 : vector<8xf32> to vector<8x1xf32>
    %128 = tpu.reciprocal %127 {approx = true} : vector<8x1xf32> -> vector<8x1xf32>
    %129 = vector.broadcast %128 : vector<8x1xf32> to vector<8x8xf32>
    %130 = arith.mulf %125, %129 : vector<8x8xf32>
    %131 = arith.truncf %130 : vector<8x8xf32> to vector<8x8xbf16>
    %cst_49 = arith.constant dense<0.000000e+00> : vector<8x32xf32>
    %132 = tpu.matmul %131, %117, %cst_49 {dimension_numbers = #tpu.dot_dimension_numbers<[1], [0], [0], [1], [0, 0, 1, 1], [], []>} : vector<8x8xbf16>, vector<8x32xbf16>, vector<8x32xf32> -> vector<8x32xf32>
    %133 = arith.truncf %132 : vector<8x32xf32> to vector<8x32xbf16>
    %c96 = arith.constant 96 : index
    %c0_50 = arith.constant 0 : index
    %134 = vector.load %arg9[%c96, %c0_50] : memref<128x128xbf16, #tpu.memory_space<vmem>>, vector<32x128xbf16>
    %cst_51 = arith.constant dense<0.000000e+00> : vector<8x128xf32>
    %135 = tpu.matmul %133, %134, %cst_51 {dimension_numbers = #tpu.dot_dimension_numbers<[1], [0], [0], [1], [0, 0, 1, 1], [], []>} : vector<8x32xbf16>, vector<32x128xbf16>, vector<8x128xf32> -> vector<8x128xf32>
    %136 = arith.addf %114, %135 : vector<8x128xf32>
    %c0_52 = arith.constant 0 : index
    %c0_53 = arith.constant 0 : index
    %137 = vector.load %arg10[%c0_52, %c0_53] : memref<1x128xf32, #tpu.memory_space<vmem>>, vector<1x128xf32>
    %138 = vector.broadcast %137 : vector<1x128xf32> to vector<8x128xf32>
    %139 = arith.addf %136, %138 : vector<8x128xf32>
    %140 = arith.addf %139, %31 : vector<8x128xf32>
    %c0_54 = arith.constant 0 : index
    %c0_55 = arith.constant 0 : index
    %141 = vector.load %arg11[%c0_54, %c0_55] : memref<1x128xf32, #tpu.memory_space<vmem>>, vector<1x128xf32>
    %c0_56 = arith.constant 0 : index
    %c0_57 = arith.constant 0 : index
    %142 = vector.load %arg12[%c0_56, %c0_57] : memref<1x128xf32, #tpu.memory_space<vmem>>, vector<1x128xf32>
    %cst_58 = arith.constant dense<0.000000e+00> : vector<8xf32>
    %143 = vector.multi_reduction <add>, %140, %cst_58 [1] : vector<8x128xf32> to vector<8xf32>
    %144 = vector.shape_cast %143 : vector<8xf32> to vector<8x1xf32>
    %cst_59 = arith.constant 1.280000e+02 : f32
    %145 = vector.broadcast %cst_59 : f32 to vector<8x1xf32>
    %146 = arith.divf %144, %145 : vector<8x1xf32>
    %147 = arith.mulf %140, %140 : vector<8x128xf32>
    %cst_60 = arith.constant dense<0.000000e+00> : vector<8xf32>
    %148 = vector.multi_reduction <add>, %147, %cst_60 [1] : vector<8x128xf32> to vector<8xf32>
    %149 = vector.shape_cast %148 : vector<8xf32> to vector<8x1xf32>
    %cst_61 = arith.constant 1.280000e+02 : f32
    %150 = vector.broadcast %cst_61 : f32 to vector<8x1xf32>
    %151 = arith.divf %149, %150 : vector<8x1xf32>
    %152 = arith.mulf %146, %146 : vector<8x1xf32>
    %153 = arith.subf %151, %152 : vector<8x1xf32>
    %cst_62 = arith.constant 0.000000e+00 : f32
    %154 = vector.broadcast %cst_62 : f32 to vector<8x1xf32>
    %155 = arith.maximumf %153, %154 : vector<8x1xf32>
    %156 = vector.broadcast %146 : vector<8x1xf32> to vector<8x128xf32>
    %157 = arith.subf %140, %156 : vector<8x128xf32>
    %cst_63 = arith.constant 9.99999996E-13 : f32
    %158 = vector.broadcast %cst_63 : f32 to vector<8x1xf32>
    %159 = arith.addf %155, %158 : vector<8x1xf32>
    %160 = math.rsqrt %159 : vector<8x1xf32>
    %161 = vector.broadcast %160 : vector<8x1xf32> to vector<8x128xf32>
    %162 = arith.mulf %157, %161 : vector<8x128xf32>
    %163 = vector.broadcast %141 : vector<1x128xf32> to vector<8x128xf32>
    %164 = arith.mulf %162, %163 : vector<8x128xf32>
    %165 = vector.broadcast %142 : vector<1x128xf32> to vector<8x128xf32>
    %166 = arith.addf %164, %165 : vector<8x128xf32>
    %c0_64 = arith.constant 0 : index
    %c0_65 = arith.constant 0 : index
    %167 = vector.load %arg20[%c0_64, %c0_65] : memref<8x128xf32, #tpu.memory_space<vmem>>, vector<8x128xf32>
    tpu.vector_store %arg20[%c0_64, %c0_65], %166 {strides = array<i32>} : memref<8x128xf32, #tpu.memory_space<vmem>>, vector<8x128xf32>,
    %c0_66 = arith.constant 0 : index
    %c0_67 = arith.constant 0 : index
    %168 = vector.load %arg20[%c0_66, %c0_67] : memref<8x128xf32, #tpu.memory_space<vmem>>, vector<8x128xf32>
    %169 = arith.truncf %168 : vector<8x128xf32> to vector<8x128xbf16>
    %c0_68 = arith.constant 0 : index
    %c0_69 = arith.constant 0 : index
    %170 = vector.load %arg13[%c0_68, %c0_69] : memref<128x512xbf16, #tpu.memory_space<vmem>>, vector<128x512xbf16>
    %cst_70 = arith.constant dense<0.000000e+00> : vector<8x512xf32>
    %171 = tpu.matmul %169, %170, %cst_70 {dimension_numbers = #tpu.dot_dimension_numbers<[1], [0], [0], [1], [0, 0, 1, 1], [], []>} : vector<8x128xbf16>, vector<128x512xbf16>, vector<8x512xf32> -> vector<8x512xf32>
    %c0_71 = arith.constant 0 : index
    %c0_72 = arith.constant 0 : index
    %172 = vector.load %arg14[%c0_71, %c0_72] : memref<1x512xf32, #tpu.memory_space<vmem>>, vector<1x512xf32>
    %173 = vector.broadcast %172 : vector<1x512xf32> to vector<8x512xf32>
    %174 = arith.addf %171, %173 : vector<8x512xf32>
    %175 = arith.mulf %174, %174 : vector<8x512xf32>
    %176 = arith.mulf %174, %175 : vector<8x512xf32>
    %cst_73 = arith.constant 4.471500e-02 : f32
    %177 = vector.broadcast %cst_73 : f32 to vector<8x512xf32>
    %178 = arith.mulf %177, %176 : vector<8x512xf32>
    %179 = arith.addf %174, %178 : vector<8x512xf32>
    %cst_74 = arith.constant 0.797884583 : f32
    %180 = vector.broadcast %cst_74 : f32 to vector<8x512xf32>
    %181 = arith.mulf %180, %179 : vector<8x512xf32>
    %182 = math.tanh %181 : vector<8x512xf32>
    %cst_75 = arith.constant 1.000000e+00 : f32
    %183 = vector.broadcast %cst_75 : f32 to vector<8x512xf32>
    %184 = arith.addf %183, %182 : vector<8x512xf32>
    %cst_76 = arith.constant 5.000000e-01 : f32
    %185 = vector.broadcast %cst_76 : f32 to vector<8x512xf32>
    %186 = arith.mulf %185, %184 : vector<8x512xf32>
    %187 = arith.mulf %174, %186 : vector<8x512xf32>
    %188 = arith.truncf %187 : vector<8x512xf32> to vector<8x512xbf16>
    %c0_77 = arith.constant 0 : index
    %c0_78 = arith.constant 0 : index
    %189 = vector.load %arg15[%c0_77, %c0_78] : memref<512x128xbf16, #tpu.memory_space<vmem>>, vector<512x128xbf16>
    %cst_79 = arith.constant dense<0.000000e+00> : vector<8x128xf32>
    %190 = tpu.matmul %188, %189, %cst_79 {dimension_numbers = #tpu.dot_dimension_numbers<[1], [0], [0], [1], [0, 0, 1, 1], [], []>} : vector<8x512xbf16>, vector<512x128xbf16>, vector<8x128xf32> -> vector<8x128xf32>
    %c0_80 = arith.constant 0 : index
    %c0_81 = arith.constant 0 : index
    %191 = vector.load %arg16[%c0_80, %c0_81] : memref<1x128xf32, #tpu.memory_space<vmem>>, vector<1x128xf32>
    %192 = vector.broadcast %191 : vector<1x128xf32> to vector<8x128xf32>
    %193 = arith.addf %190, %192 : vector<8x128xf32>
    %194 = arith.addf %193, %168 : vector<8x128xf32>
    %c0_82 = arith.constant 0 : index
    %c0_83 = arith.constant 0 : index
    %195 = vector.load %arg17[%c0_82, %c0_83] : memref<1x128xf32, #tpu.memory_space<vmem>>, vector<1x128xf32>
    %c0_84 = arith.constant 0 : index
    %c0_85 = arith.constant 0 : index
    %196 = vector.load %arg18[%c0_84, %c0_85] : memref<1x128xf32, #tpu.memory_space<vmem>>, vector<1x128xf32>
    %cst_86 = arith.constant dense<0.000000e+00> : vector<8xf32>
    %197 = vector.multi_reduction <add>, %194, %cst_86 [1] : vector<8x128xf32> to vector<8xf32>
    %198 = vector.shape_cast %197 : vector<8xf32> to vector<8x1xf32>
    %cst_87 = arith.constant 1.280000e+02 : f32
    %199 = vector.broadcast %cst_87 : f32 to vector<8x1xf32>
    %200 = arith.divf %198, %199 : vector<8x1xf32>
    %201 = arith.mulf %194, %194 : vector<8x128xf32>
    %cst_88 = arith.constant dense<0.000000e+00> : vector<8xf32>
    %202 = vector.multi_reduction <add>, %201, %cst_88 [1] : vector<8x128xf32> to vector<8xf32>
    %203 = vector.shape_cast %202 : vector<8xf32> to vector<8x1xf32>
    %cst_89 = arith.constant 1.280000e+02 : f32
    %204 = vector.broadcast %cst_89 : f32 to vector<8x1xf32>
    %205 = arith.divf %203, %204 : vector<8x1xf32>
    %206 = arith.mulf %200, %200 : vector<8x1xf32>
    %207 = arith.subf %205, %206 : vector<8x1xf32>
    %cst_90 = arith.constant 0.000000e+00 : f32
    %208 = vector.broadcast %cst_90 : f32 to vector<8x1xf32>
    %209 = arith.maximumf %207, %208 : vector<8x1xf32>
    %210 = vector.broadcast %200 : vector<8x1xf32> to vector<8x128xf32>
    %211 = arith.subf %194, %210 : vector<8x128xf32>
    %cst_91 = arith.constant 9.99999996E-13 : f32
    %212 = vector.broadcast %cst_91 : f32 to vector<8x1xf32>
    %213 = arith.addf %209, %212 : vector<8x1xf32>
    %214 = math.rsqrt %213 : vector<8x1xf32>
    %215 = vector.broadcast %214 : vector<8x1xf32> to vector<8x128xf32>
    %216 = arith.mulf %211, %215 : vector<8x128xf32>
    %217 = vector.broadcast %195 : vector<1x128xf32> to vector<8x128xf32>
    %218 = arith.mulf %216, %217 : vector<8x128xf32>
    %219 = vector.broadcast %196 : vector<1x128xf32> to vector<8x128xf32>
    %220 = arith.addf %218, %219 : vector<8x128xf32>
    %221 = vector.shape_cast %220 : vector<8x128xf32> to vector<1x8x128xf32>
    %c0_92 = arith.constant 0 : index
    %c0_93 = arith.constant 0 : index
    %c0_94 = arith.constant 0 : index
    %222 = vector.load %arg19[%c0_92, %c0_93, %c0_94] : memref<1x8x128xf32, #tpu.memory_space<vmem>>, vector<1x8x128xf32>
    tpu.vector_store %arg19[%c0_92, %c0_93, %c0_94], %221 {strides = array<i32>} : memref<1x8x128xf32, #tpu.memory_space<vmem>>, vector<1x8x128xf32>,
    return
  }
  func.func @transform_0(%arg0: i32) -> (i32, i32, i32) {
    %c0_i32 = arith.constant 0 : i32
    %c0_i32_0 = arith.constant 0 : i32
    %c0_i32_1 = arith.constant 0 : i32
    return %arg0, %c0_i32, %c0_i32_0 : i32, i32, i32
  }
  func.func @transform_1(%arg0: i32) -> (i32, i32, i32) {
    %c0_i32 = arith.constant 0 : i32
    %c0_i32_0 = arith.constant 0 : i32
    %c0_i32_1 = arith.constant 0 : i32
    return %arg0, %c0_i32, %c0_i32_0 : i32, i32, i32
  }
  func.func @transform_2(%arg0: i32) -> (i32, i32, i32) {
    %c0_i32 = arith.constant 0 : i32
    %c0_i32_0 = arith.constant 0 : i32
    %c0_i32_1 = arith.constant 0 : i32
    %c0_i32_2 = arith.constant 0 : i32
    return %c0_i32, %c0_i32_0, %c0_i32_1 : i32, i32, i32
  }
  func.func @transform_3(%arg0: i32) -> (i32, i32, i32) {
    %c0_i32 = arith.constant 0 : i32
    %c0_i32_0 = arith.constant 0 : i32
    %c0_i32_1 = arith.constant 0 : i32
    return %arg0, %c0_i32, %c0_i32_0 : i32, i32, i32
  }
  func.func @transform_4(%arg0: i32) -> (i32, i32) {
    %c0_i32 = arith.constant 0 : i32
    %c0_i32_0 = arith.constant 0 : i32
    %c0_i32_1 = arith.constant 0 : i32
    return %c0_i32, %c0_i32_0 : i32, i32
  }
  func.func @transform_5(%arg0: i32) -> (i32, i32) {
    %c0_i32 = arith.constant 0 : i32
    %c0_i32_0 = arith.constant 0 : i32
    %c0_i32_1 = arith.constant 0 : i32
    return %c0_i32, %c0_i32_0 : i32, i32
  }
  func.func @transform_6(%arg0: i32) -> (i32, i32) {
    %c0_i32 = arith.constant 0 : i32
    %c0_i32_0 = arith.constant 0 : i32
    %c0_i32_1 = arith.constant 0 : i32
    return %c0_i32, %c0_i32_0 : i32, i32
  }
  func.func @transform_7(%arg0: i32) -> (i32, i32) {
    %c0_i32 = arith.constant 0 : i32
    %c0_i32_0 = arith.constant 0 : i32
    %c0_i32_1 = arith.constant 0 : i32
    return %c0_i32, %c0_i32_0 : i32, i32
  }
  func.func @transform_8(%arg0: i32) -> (i32, i32) {
    %c0_i32 = arith.constant 0 : i32
    %c0_i32_0 = arith.constant 0 : i32
    %c0_i32_1 = arith.constant 0 : i32
    return %c0_i32, %c0_i32_0 : i32, i32
  }
  func.func @transform_9(%arg0: i32) -> (i32, i32) {
    %c0_i32 = arith.constant 0 : i32
    %c0_i32_0 = arith.constant 0 : i32
    %c0_i32_1 = arith.constant 0 : i32
    return %c0_i32, %c0_i32_0 : i32, i32
  }
  func.func @transform_10(%arg0: i32) -> (i32, i32) {
    %c0_i32 = arith.constant 0 : i32
    %c0_i32_0 = arith.constant 0 : i32
    %c0_i32_1 = arith.constant 0 : i32
    return %c0_i32, %c0_i32_0 : i32, i32
  }
  func.func @transform_11(%arg0: i32) -> (i32, i32) {
    %c0_i32 = arith.constant 0 : i32
    %c0_i32_0 = arith.constant 0 : i32
    %c0_i32_1 = arith.constant 0 : i32
    return %c0_i32, %c0_i32_0 : i32, i32
  }
  func.func @transform_12(%arg0: i32) -> (i32, i32) {
    %c0_i32 = arith.constant 0 : i32
    %c0_i32_0 = arith.constant 0 : i32
    %c0_i32_1 = arith.constant 0 : i32
    return %c0_i32, %c0_i32_0 : i32, i32
  }
  func.func @transform_13(%arg0: i32) -> (i32, i32) {
    %c0_i32 = arith.constant 0 : i32
    %c0_i32_0 = arith.constant 0 : i32
    %c0_i32_1 = arith.constant 0 : i32
    return %c0_i32, %c0_i32_0 : i32, i32
  }
  func.func @transform_14(%arg0: i32) -> (i32, i32) {
    %c0_i32 = arith.constant 0 : i32
    %c0_i32_0 = arith.constant 0 : i32
    %c0_i32_1 = arith.constant 0 : i32
    return %c0_i32, %c0_i32_0 : i32, i32
  }
  func.func @transform_15(%arg0: i32) -> (i32, i32) {
    %c0_i32 = arith.constant 0 : i32
    %c0_i32_0 = arith.constant 0 : i32
    %c0_i32_1 = arith.constant 0 : i32
    return %c0_i32, %c0_i32_0 : i32, i32
  }
  func.func @transform_16(%arg0: i32) -> (i32, i32) {
    %c0_i32 = arith.constant 0 : i32
    %c0_i32_0 = arith.constant 0 : i32
    %c0_i32_1 = arith.constant 0 : i32
    return %c0_i32, %c0_i32_0 : i32, i32
  }
  func.func @transform_17(%arg0: i32) -> (i32, i32) {
    %c0_i32 = arith.constant 0 : i32
    %c0_i32_0 = arith.constant 0 : i32
    %c0_i32_1 = arith.constant 0 : i32
    return %c0_i32, %c0_i32_0 : i32, i32
  }
  func.func @transform_18(%arg0: i32) -> (i32, i32, i32) {
    %c0_i32 = arith.constant 0 : i32
    %c0_i32_0 = arith.constant 0 : i32
    %c0_i32_1 = arith.constant 0 : i32
    return %arg0, %c0_i32, %c0_i32_0 : i32, i32, i32
  }
}

module attributes {stable_mosaic.version = 11 : i64} {
  func.func @_cross_kernel(%arg0: i32, %arg1: memref<1x8x128xf32, #tpu.memory_space<vmem>>, %arg2: memref<2x16x128xf32, #tpu.memory_space<vmem>>, %arg3: memref<1x24x128xf32, #tpu.memory_space<vmem>>, %arg4: memref<2x128xf32, #tpu.memory_space<vmem>>, %arg5: memref<2x1x24xf32, #tpu.memory_space<vmem>>, %arg6: memref<1x128xf32, #tpu.memory_space<vmem>>, %arg7: memref<1x128xf32, #tpu.memory_space<vmem>>, %arg8: memref<128x384xbf16, #tpu.memory_space<vmem>>, %arg9: memref<1x384xf32, #tpu.memory_space<vmem>>, %arg10: memref<128x128xbf16, #tpu.memory_space<vmem>>, %arg11: memref<1x128xf32, #tpu.memory_space<vmem>>, %arg12: memref<1x128xf32, #tpu.memory_space<vmem>>, %arg13: memref<1x128xf32, #tpu.memory_space<vmem>>, %arg14: memref<128x512xbf16, #tpu.memory_space<vmem>>, %arg15: memref<1x512xf32, #tpu.memory_space<vmem>>, %arg16: memref<512x128xbf16, #tpu.memory_space<vmem>>, %arg17: memref<1x128xf32, #tpu.memory_space<vmem>>, %arg18: memref<1x128xf32, #tpu.memory_space<vmem>>, %arg19: memref<1x128xf32, #tpu.memory_space<vmem>>, %arg20: memref<256x128xbf16, #tpu.memory_space<vmem>>, %arg21: memref<1x128xf32, #tpu.memory_space<vmem>>, %arg22: memref<128x1xbf16, #tpu.memory_space<vmem>>, %arg23: memref<1x1xf32, #tpu.memory_space<vmem>>, %arg24: memref<1x2x1xf32, #tpu.memory_space<vmem>>, %arg25: memref<48x128xf32, #tpu.memory_space<vmem>>) attributes {dimension_semantics = [#tpu.dimension_semantics<parallel>], iteration_bounds = array<i64: 2>, scalar_prefetch = 0 : i64, scratch_operands = 1 : i64, tpu.core_type = #tpu.core_type<tc>, window_params = [{transform_indices = @transform_0, window_bounds = array<i64: 1, 8, 128>}, {transform_indices = @transform_1, window_bounds = array<i64: 2, 16, 128>}, {pipeline_mode = #tpu.pipeline_mode<synchronous>, transform_indices = @transform_2, window_bounds = array<i64: 1, 24, 128>}, {pipeline_mode = #tpu.pipeline_mode<synchronous>, transform_indices = @transform_3, window_bounds = array<i64: 2, 128>}, {transform_indices = @transform_4, window_bounds = array<i64: 2, 1, 24>}, {pipeline_mode = #tpu.pipeline_mode<synchronous>, transform_indices = @transform_5, window_bounds = array<i64: 1, 128>}, {pipeline_mode = #tpu.pipeline_mode<synchronous>, transform_indices = @transform_6, window_bounds = array<i64: 1, 128>}, {pipeline_mode = #tpu.pipeline_mode<synchronous>, transform_indices = @transform_7, window_bounds = array<i64: 128, 384>}, {pipeline_mode = #tpu.pipeline_mode<synchronous>, transform_indices = @transform_8, window_bounds = array<i64: 1, 384>}, {pipeline_mode = #tpu.pipeline_mode<synchronous>, transform_indices = @transform_9, window_bounds = array<i64: 128, 128>}, {pipeline_mode = #tpu.pipeline_mode<synchronous>, transform_indices = @transform_10, window_bounds = array<i64: 1, 128>}, {pipeline_mode = #tpu.pipeline_mode<synchronous>, transform_indices = @transform_11, window_bounds = array<i64: 1, 128>}, {pipeline_mode = #tpu.pipeline_mode<synchronous>, transform_indices = @transform_12, window_bounds = array<i64: 1, 128>}, {pipeline_mode = #tpu.pipeline_mode<synchronous>, transform_indices = @transform_13, window_bounds = array<i64: 128, 512>}, {pipeline_mode = #tpu.pipeline_mode<synchronous>, transform_indices = @transform_14, window_bounds = array<i64: 1, 512>}, {pipeline_mode = #tpu.pipeline_mode<synchronous>, transform_indices = @transform_15, window_bounds = array<i64: 512, 128>}, {pipeline_mode = #tpu.pipeline_mode<synchronous>, transform_indices = @transform_16, window_bounds = array<i64: 1, 128>}, {pipeline_mode = #tpu.pipeline_mode<synchronous>, transform_indices = @transform_17, window_bounds = array<i64: 1, 128>}, {pipeline_mode = #tpu.pipeline_mode<synchronous>, transform_indices = @transform_18, window_bounds = array<i64: 1, 128>}, {pipeline_mode = #tpu.pipeline_mode<synchronous>, transform_indices = @transform_19, window_bounds = array<i64: 256, 128>}, {pipeline_mode = #tpu.pipeline_mode<synchronous>, transform_indices = @transform_20, window_bounds = array<i64: 1, 128>}, {pipeline_mode = #tpu.pipeline_mode<synchronous>, transform_indices = @transform_21, window_bounds = array<i64: 128, 1>}, {pipeline_mode = #tpu.pipeline_mode<synchronous>, transform_indices = @transform_22, window_bounds = array<i64: 1, 1>}, {transform_indices = @transform_23, window_bounds = array<i64: 1, 2, 1>}]} {
    %c0 = arith.constant 0 : index
    %c0_0 = arith.constant 0 : index
    %c0_1 = arith.constant 0 : index
    %0 = vector.load %arg3[%c0, %c0_0, %c0_1] : memref<1x24x128xf32, #tpu.memory_space<vmem>>, vector<1x24x128xf32>
    %1 = vector.shape_cast %0 : vector<1x24x128xf32> to vector<24x128xf32>
    %c0_2 = arith.constant 0 : index
    %c0_3 = arith.constant 0 : index
    %2 = vector.load %arg4[%c0_2, %c0_3] : memref<2x128xf32, #tpu.memory_space<vmem>>, vector<2x128xf32>
    %c0_4 = arith.constant 0 : index
    %c0_5 = arith.constant 0 : index
    %c0_6 = arith.constant 0 : index
    %3 = vector.load %arg1[%c0_4, %c0_5, %c0_6] : memref<1x8x128xf32, #tpu.memory_space<vmem>>, vector<1x8x128xf32>
    %4 = vector.shape_cast %3 : vector<1x8x128xf32> to vector<8x128xf32>
    %5 = vector.extract_strided_slice %1 {offsets = [0, 0], sizes = [8, 128], strides = [1, 1]} : vector<24x128xf32> to vector<8x128xf32>
    %6 = arith.addf %4, %5 : vector<8x128xf32>
    %7 = vector.extract_strided_slice %2 {offsets = [0, 0], sizes = [1, 128], strides = [1, 1]} : vector<2x128xf32> to vector<1x128xf32>
    %8 = vector.broadcast %7 : vector<1x128xf32> to vector<8x128xf32>
    %9 = arith.addf %6, %8 : vector<8x128xf32>
    %c0_7 = arith.constant 0 : index
    %c0_8 = arith.constant 0 : index
    %c0_9 = arith.constant 0 : index
    %10 = vector.load %arg2[%c0_7, %c0_8, %c0_9] : memref<2x16x128xf32, #tpu.memory_space<vmem>>, vector<1x16x128xf32>
    %11 = vector.shape_cast %10 : vector<1x16x128xf32> to vector<16x128xf32>
    %12 = vector.extract_strided_slice %1 {offsets = [8, 0], sizes = [16, 128], strides = [1, 1]} : vector<24x128xf32> to vector<16x128xf32>
    %13 = arith.addf %11, %12 : vector<16x128xf32>
    %14 = vector.extract_strided_slice %2 {offsets = [1, 0], sizes = [1, 128], strides = [1, 1]} : vector<2x128xf32> to vector<1x128xf32>
    %15 = vector.broadcast %14 : vector<1x128xf32> to vector<16x128xf32>
    %16 = arith.addf %13, %15 : vector<16x128xf32>
    %c0_10 = arith.constant 0 : index
    %c0_11 = arith.constant 0 : index
    %17 = vector.load %arg6[%c0_10, %c0_11] : memref<1x128xf32, #tpu.memory_space<vmem>>, vector<1x128xf32>
    %c0_12 = arith.constant 0 : index
    %c0_13 = arith.constant 0 : index
    %18 = vector.load %arg7[%c0_12, %c0_13] : memref<1x128xf32, #tpu.memory_space<vmem>>, vector<1x128xf32>
    %cst = arith.constant dense<0.000000e+00> : vector<8xf32>
    %19 = vector.multi_reduction <add>, %9, %cst [1] : vector<8x128xf32> to vector<8xf32>
    %20 = vector.shape_cast %19 : vector<8xf32> to vector<8x1xf32>
    %cst_14 = arith.constant 1.280000e+02 : f32
    %21 = vector.broadcast %cst_14 : f32 to vector<8x1xf32>
    %22 = arith.divf %20, %21 : vector<8x1xf32>
    %23 = arith.mulf %9, %9 : vector<8x128xf32>
    %cst_15 = arith.constant dense<0.000000e+00> : vector<8xf32>
    %24 = vector.multi_reduction <add>, %23, %cst_15 [1] : vector<8x128xf32> to vector<8xf32>
    %25 = vector.shape_cast %24 : vector<8xf32> to vector<8x1xf32>
    %cst_16 = arith.constant 1.280000e+02 : f32
    %26 = vector.broadcast %cst_16 : f32 to vector<8x1xf32>
    %27 = arith.divf %25, %26 : vector<8x1xf32>
    %28 = arith.mulf %22, %22 : vector<8x1xf32>
    %29 = arith.subf %27, %28 : vector<8x1xf32>
    %cst_17 = arith.constant 0.000000e+00 : f32
    %30 = vector.broadcast %cst_17 : f32 to vector<8x1xf32>
    %31 = arith.maximumf %29, %30 : vector<8x1xf32>
    %32 = vector.broadcast %22 : vector<8x1xf32> to vector<8x128xf32>
    %33 = arith.subf %9, %32 : vector<8x128xf32>
    %cst_18 = arith.constant 9.99999996E-13 : f32
    %34 = vector.broadcast %cst_18 : f32 to vector<8x1xf32>
    %35 = arith.addf %31, %34 : vector<8x1xf32>
    %36 = math.rsqrt %35 : vector<8x1xf32>
    %37 = vector.broadcast %36 : vector<8x1xf32> to vector<8x128xf32>
    %38 = arith.mulf %33, %37 : vector<8x128xf32>
    %39 = vector.broadcast %17 : vector<1x128xf32> to vector<8x128xf32>
    %40 = arith.mulf %38, %39 : vector<8x128xf32>
    %41 = vector.broadcast %18 : vector<1x128xf32> to vector<8x128xf32>
    %42 = arith.addf %40, %41 : vector<8x128xf32>
    %c0_19 = arith.constant 0 : index
    %c0_20 = arith.constant 0 : index
    %43 = vector.load %arg25[%c0_19, %c0_20] : memref<48x128xf32, #tpu.memory_space<vmem>>, vector<8x128xf32>
    tpu.vector_store %arg25[%c0_19, %c0_20], %42 {strides = array<i32>} : memref<48x128xf32, #tpu.memory_space<vmem>>, vector<8x128xf32>,
    %c0_21 = arith.constant 0 : index
    %c0_22 = arith.constant 0 : index
    %44 = vector.load %arg6[%c0_21, %c0_22] : memref<1x128xf32, #tpu.memory_space<vmem>>, vector<1x128xf32>
    %c0_23 = arith.constant 0 : index
    %c0_24 = arith.constant 0 : index
    %45 = vector.load %arg7[%c0_23, %c0_24] : memref<1x128xf32, #tpu.memory_space<vmem>>, vector<1x128xf32>
    %cst_25 = arith.constant dense<0.000000e+00> : vector<16xf32>
    %46 = vector.multi_reduction <add>, %16, %cst_25 [1] : vector<16x128xf32> to vector<16xf32>
    %47 = vector.shape_cast %46 : vector<16xf32> to vector<16x1xf32>
    %cst_26 = arith.constant 1.280000e+02 : f32
    %48 = vector.broadcast %cst_26 : f32 to vector<16x1xf32>
    %49 = arith.divf %47, %48 : vector<16x1xf32>
    %50 = arith.mulf %16, %16 : vector<16x128xf32>
    %cst_27 = arith.constant dense<0.000000e+00> : vector<16xf32>
    %51 = vector.multi_reduction <add>, %50, %cst_27 [1] : vector<16x128xf32> to vector<16xf32>
    %52 = vector.shape_cast %51 : vector<16xf32> to vector<16x1xf32>
    %cst_28 = arith.constant 1.280000e+02 : f32
    %53 = vector.broadcast %cst_28 : f32 to vector<16x1xf32>
    %54 = arith.divf %52, %53 : vector<16x1xf32>
    %55 = arith.mulf %49, %49 : vector<16x1xf32>
    %56 = arith.subf %54, %55 : vector<16x1xf32>
    %cst_29 = arith.constant 0.000000e+00 : f32
    %57 = vector.broadcast %cst_29 : f32 to vector<16x1xf32>
    %58 = arith.maximumf %56, %57 : vector<16x1xf32>
    %59 = vector.broadcast %49 : vector<16x1xf32> to vector<16x128xf32>
    %60 = arith.subf %16, %59 : vector<16x128xf32>
    %cst_30 = arith.constant 9.99999996E-13 : f32
    %61 = vector.broadcast %cst_30 : f32 to vector<16x1xf32>
    %62 = arith.addf %58, %61 : vector<16x1xf32>
    %63 = math.rsqrt %62 : vector<16x1xf32>
    %64 = vector.broadcast %63 : vector<16x1xf32> to vector<16x128xf32>
    %65 = arith.mulf %60, %64 : vector<16x128xf32>
    %66 = vector.broadcast %44 : vector<1x128xf32> to vector<16x128xf32>
    %67 = arith.mulf %65, %66 : vector<16x128xf32>
    %68 = vector.broadcast %45 : vector<1x128xf32> to vector<16x128xf32>
    %69 = arith.addf %67, %68 : vector<16x128xf32>
    %c8 = arith.constant 8 : index
    %c0_31 = arith.constant 0 : index
    %70 = vector.load %arg25[%c8, %c0_31] : memref<48x128xf32, #tpu.memory_space<vmem>>, vector<16x128xf32>
    tpu.vector_store %arg25[%c8, %c0_31], %69 {strides = array<i32>} : memref<48x128xf32, #tpu.memory_space<vmem>>, vector<16x128xf32>,
    %c0_32 = arith.constant 0 : index
    %c0_33 = arith.constant 0 : index
    %c0_34 = arith.constant 0 : index
    %71 = vector.load %arg1[%c0_32, %c0_33, %c0_34] : memref<1x8x128xf32, #tpu.memory_space<vmem>>, vector<1x8x128xf32>
    %72 = vector.shape_cast %71 : vector<1x8x128xf32> to vector<8x128xf32>
    %73 = vector.extract_strided_slice %1 {offsets = [0, 0], sizes = [8, 128], strides = [1, 1]} : vector<24x128xf32> to vector<8x128xf32>
    %74 = arith.addf %72, %73 : vector<8x128xf32>
    %75 = vector.extract_strided_slice %2 {offsets = [0, 0], sizes = [1, 128], strides = [1, 1]} : vector<2x128xf32> to vector<1x128xf32>
    %76 = vector.broadcast %75 : vector<1x128xf32> to vector<8x128xf32>
    %77 = arith.addf %74, %76 : vector<8x128xf32>
    %c1 = arith.constant 1 : index
    %c0_35 = arith.constant 0 : index
    %c0_36 = arith.constant 0 : index
    %78 = vector.load %arg2[%c1, %c0_35, %c0_36] : memref<2x16x128xf32, #tpu.memory_space<vmem>>, vector<1x16x128xf32>
    %79 = vector.shape_cast %78 : vector<1x16x128xf32> to vector<16x128xf32>
    %80 = vector.extract_strided_slice %1 {offsets = [8, 0], sizes = [16, 128], strides = [1, 1]} : vector<24x128xf32> to vector<16x128xf32>
    %81 = arith.addf %79, %80 : vector<16x128xf32>
    %82 = vector.extract_strided_slice %2 {offsets = [1, 0], sizes = [1, 128], strides = [1, 1]} : vector<2x128xf32> to vector<1x128xf32>
    %83 = vector.broadcast %82 : vector<1x128xf32> to vector<16x128xf32>
    %84 = arith.addf %81, %83 : vector<16x128xf32>
    %c0_37 = arith.constant 0 : index
    %c0_38 = arith.constant 0 : index
    %85 = vector.load %arg6[%c0_37, %c0_38] : memref<1x128xf32, #tpu.memory_space<vmem>>, vector<1x128xf32>
    %c0_39 = arith.constant 0 : index
    %c0_40 = arith.constant 0 : index
    %86 = vector.load %arg7[%c0_39, %c0_40] : memref<1x128xf32, #tpu.memory_space<vmem>>, vector<1x128xf32>
    %cst_41 = arith.constant dense<0.000000e+00> : vector<8xf32>
    %87 = vector.multi_reduction <add>, %77, %cst_41 [1] : vector<8x128xf32> to vector<8xf32>
    %88 = vector.shape_cast %87 : vector<8xf32> to vector<8x1xf32>
    %cst_42 = arith.constant 1.280000e+02 : f32
    %89 = vector.broadcast %cst_42 : f32 to vector<8x1xf32>
    %90 = arith.divf %88, %89 : vector<8x1xf32>
    %91 = arith.mulf %77, %77 : vector<8x128xf32>
    %cst_43 = arith.constant dense<0.000000e+00> : vector<8xf32>
    %92 = vector.multi_reduction <add>, %91, %cst_43 [1] : vector<8x128xf32> to vector<8xf32>
    %93 = vector.shape_cast %92 : vector<8xf32> to vector<8x1xf32>
    %cst_44 = arith.constant 1.280000e+02 : f32
    %94 = vector.broadcast %cst_44 : f32 to vector<8x1xf32>
    %95 = arith.divf %93, %94 : vector<8x1xf32>
    %96 = arith.mulf %90, %90 : vector<8x1xf32>
    %97 = arith.subf %95, %96 : vector<8x1xf32>
    %cst_45 = arith.constant 0.000000e+00 : f32
    %98 = vector.broadcast %cst_45 : f32 to vector<8x1xf32>
    %99 = arith.maximumf %97, %98 : vector<8x1xf32>
    %100 = vector.broadcast %90 : vector<8x1xf32> to vector<8x128xf32>
    %101 = arith.subf %77, %100 : vector<8x128xf32>
    %cst_46 = arith.constant 9.99999996E-13 : f32
    %102 = vector.broadcast %cst_46 : f32 to vector<8x1xf32>
    %103 = arith.addf %99, %102 : vector<8x1xf32>
    %104 = math.rsqrt %103 : vector<8x1xf32>
    %105 = vector.broadcast %104 : vector<8x1xf32> to vector<8x128xf32>
    %106 = arith.mulf %101, %105 : vector<8x128xf32>
    %107 = vector.broadcast %85 : vector<1x128xf32> to vector<8x128xf32>
    %108 = arith.mulf %106, %107 : vector<8x128xf32>
    %109 = vector.broadcast %86 : vector<1x128xf32> to vector<8x128xf32>
    %110 = arith.addf %108, %109 : vector<8x128xf32>
    %c24 = arith.constant 24 : index
    %c0_47 = arith.constant 0 : index
    %111 = vector.load %arg25[%c24, %c0_47] : memref<48x128xf32, #tpu.memory_space<vmem>>, vector<8x128xf32>
    tpu.vector_store %arg25[%c24, %c0_47], %110 {strides = array<i32>} : memref<48x128xf32, #tpu.memory_space<vmem>>, vector<8x128xf32>,
    %c0_48 = arith.constant 0 : index
    %c0_49 = arith.constant 0 : index
    %112 = vector.load %arg6[%c0_48, %c0_49] : memref<1x128xf32, #tpu.memory_space<vmem>>, vector<1x128xf32>
    %c0_50 = arith.constant 0 : index
    %c0_51 = arith.constant 0 : index
    %113 = vector.load %arg7[%c0_50, %c0_51] : memref<1x128xf32, #tpu.memory_space<vmem>>, vector<1x128xf32>
    %cst_52 = arith.constant dense<0.000000e+00> : vector<16xf32>
    %114 = vector.multi_reduction <add>, %84, %cst_52 [1] : vector<16x128xf32> to vector<16xf32>
    %115 = vector.shape_cast %114 : vector<16xf32> to vector<16x1xf32>
    %cst_53 = arith.constant 1.280000e+02 : f32
    %116 = vector.broadcast %cst_53 : f32 to vector<16x1xf32>
    %117 = arith.divf %115, %116 : vector<16x1xf32>
    %118 = arith.mulf %84, %84 : vector<16x128xf32>
    %cst_54 = arith.constant dense<0.000000e+00> : vector<16xf32>
    %119 = vector.multi_reduction <add>, %118, %cst_54 [1] : vector<16x128xf32> to vector<16xf32>
    %120 = vector.shape_cast %119 : vector<16xf32> to vector<16x1xf32>
    %cst_55 = arith.constant 1.280000e+02 : f32
    %121 = vector.broadcast %cst_55 : f32 to vector<16x1xf32>
    %122 = arith.divf %120, %121 : vector<16x1xf32>
    %123 = arith.mulf %117, %117 : vector<16x1xf32>
    %124 = arith.subf %122, %123 : vector<16x1xf32>
    %cst_56 = arith.constant 0.000000e+00 : f32
    %125 = vector.broadcast %cst_56 : f32 to vector<16x1xf32>
    %126 = arith.maximumf %124, %125 : vector<16x1xf32>
    %127 = vector.broadcast %117 : vector<16x1xf32> to vector<16x128xf32>
    %128 = arith.subf %84, %127 : vector<16x128xf32>
    %cst_57 = arith.constant 9.99999996E-13 : f32
    %129 = vector.broadcast %cst_57 : f32 to vector<16x1xf32>
    %130 = arith.addf %126, %129 : vector<16x1xf32>
    %131 = math.rsqrt %130 : vector<16x1xf32>
    %132 = vector.broadcast %131 : vector<16x1xf32> to vector<16x128xf32>
    %133 = arith.mulf %128, %132 : vector<16x128xf32>
    %134 = vector.broadcast %112 : vector<1x128xf32> to vector<16x128xf32>
    %135 = arith.mulf %133, %134 : vector<16x128xf32>
    %136 = vector.broadcast %113 : vector<1x128xf32> to vector<16x128xf32>
    %137 = arith.addf %135, %136 : vector<16x128xf32>
    %c32 = arith.constant 32 : index
    %c0_58 = arith.constant 0 : index
    %138 = vector.load %arg25[%c32, %c0_58] : memref<48x128xf32, #tpu.memory_space<vmem>>, vector<16x128xf32>
    tpu.vector_store %arg25[%c32, %c0_58], %137 {strides = array<i32>} : memref<48x128xf32, #tpu.memory_space<vmem>>, vector<16x128xf32>,
    %c0_59 = arith.constant 0 : index
    %c0_60 = arith.constant 0 : index
    %139 = vector.load %arg25[%c0_59, %c0_60] : memref<48x128xf32, #tpu.memory_space<vmem>>, vector<48x128xf32>
    %c0_61 = arith.constant 0 : index
    %c0_62 = arith.constant 0 : index
    %c0_63 = arith.constant 0 : index
    %140 = vector.load %arg5[%c0_61, %c0_62, %c0_63] : memref<2x1x24xf32, #tpu.memory_space<vmem>>, vector<2x1x24xf32>
    %141 = arith.truncf %139 : vector<48x128xf32> to vector<48x128xbf16>
    %c0_64 = arith.constant 0 : index
    %c0_65 = arith.constant 0 : index
    %142 = vector.load %arg8[%c0_64, %c0_65] : memref<128x384xbf16, #tpu.memory_space<vmem>>, vector<128x384xbf16>
    %cst_66 = arith.constant dense<0.000000e+00> : vector<48x384xf32>
    %143 = tpu.matmul %141, %142, %cst_66 {dimension_numbers = #tpu.dot_dimension_numbers<[1], [0], [0], [1], [0, 0, 1, 1], [], []>} : vector<48x128xbf16>, vector<128x384xbf16>, vector<48x384xf32> -> vector<48x384xf32>
    %c0_67 = arith.constant 0 : index
    %c0_68 = arith.constant 0 : index
    %144 = vector.load %arg9[%c0_67, %c0_68] : memref<1x384xf32, #tpu.memory_space<vmem>>, vector<1x384xf32>
    %145 = vector.broadcast %144 : vector<1x384xf32> to vector<48x384xf32>
    %146 = arith.addf %143, %145 : vector<48x384xf32>
    %147 = vector.extract_strided_slice %146 {offsets = [0, 0], sizes = [48, 128], strides = [1, 1]} : vector<48x384xf32> to vector<48x128xf32>
    %cst_69 = arith.constant 0.176776692 : f32
    %148 = vector.broadcast %cst_69 : f32 to vector<48x128xf32>
    %149 = arith.mulf %147, %148 : vector<48x128xf32>
    %150 = arith.truncf %149 : vector<48x128xf32> to vector<48x128xbf16>
    %151 = vector.extract_strided_slice %146 {offsets = [0, 128], sizes = [48, 128], strides = [1, 1]} : vector<48x384xf32> to vector<48x128xf32>
    %152 = arith.truncf %151 : vector<48x128xf32> to vector<48x128xbf16>
    %153 = vector.extract_strided_slice %146 {offsets = [0, 256], sizes = [48, 128], strides = [1, 1]} : vector<48x384xf32> to vector<48x128xf32>
    %154 = arith.truncf %153 : vector<48x128xf32> to vector<48x128xbf16>
    %155 = vector.extract_strided_slice %140 {offsets = [0, 0, 0], sizes = [1, 1, 24], strides = [1, 1, 1]} : vector<2x1x24xf32> to vector<1x1x24xf32>
    %156 = vector.shape_cast %155 : vector<1x1x24xf32> to vector<1x24xf32>
    %cst_70 = arith.constant 0.000000e+00 : f32
    %157 = vector.broadcast %cst_70 : f32 to vector<24x128xf32>
    %158 = vector.extract_strided_slice %150 {offsets = [0, 0], sizes = [24, 32], strides = [1, 1]} : vector<48x128xbf16> to vector<24x32xbf16>
    %159 = vector.extract_strided_slice %152 {offsets = [0, 0], sizes = [24, 32], strides = [1, 1]} : vector<48x128xbf16> to vector<24x32xbf16>
    %160 = vector.extract_strided_slice %154 {offsets = [0, 0], sizes = [24, 32], strides = [1, 1]} : vector<48x128xbf16> to vector<24x32xbf16>
    %cst_71 = arith.constant dense<0.000000e+00> : vector<24x24xf32>
    %161 = tpu.matmul %158, %159, %cst_71 {dimension_numbers = #tpu.dot_dimension_numbers<[1], [1], [0], [0], [0, 0, 1, 0], [], []>} : vector<24x32xbf16>, vector<24x32xbf16>, vector<24x24xf32> -> vector<24x24xf32>
    %162 = vector.broadcast %156 : vector<1x24xf32> to vector<24x24xf32>
    %163 = arith.addf %161, %162 : vector<24x24xf32>
    %cst_72 = arith.constant dense<0xFF800000> : vector<24xf32>
    %164 = vector.multi_reduction <maximumf>, %163, %cst_72 [1] : vector<24x24xf32> to vector<24xf32>
    %165 = vector.shape_cast %164 : vector<24xf32> to vector<24x1xf32>
    %166 = vector.broadcast %165 : vector<24x1xf32> to vector<24x24xf32>
    %167 = arith.subf %163, %166 : vector<24x24xf32>
    %168 = math.exp %167 : vector<24x24xf32>
    %cst_73 = arith.constant dense<0.000000e+00> : vector<24xf32>
    %169 = vector.multi_reduction <add>, %168, %cst_73 [1] : vector<24x24xf32> to vector<24xf32>
    %170 = vector.shape_cast %169 : vector<24xf32> to vector<24x1xf32>
    %171 = tpu.reciprocal %170 {approx = true} : vector<24x1xf32> -> vector<24x1xf32>
    %172 = vector.broadcast %171 : vector<24x1xf32> to vector<24x24xf32>
    %173 = arith.mulf %168, %172 : vector<24x24xf32>
    %174 = arith.truncf %173 : vector<24x24xf32> to vector<24x24xbf16>
    %cst_74 = arith.constant dense<0.000000e+00> : vector<24x32xf32>
    %175 = tpu.matmul %174, %160, %cst_74 {dimension_numbers = #tpu.dot_dimension_numbers<[1], [0], [0], [1], [0, 0, 1, 1], [], []>} : vector<24x24xbf16>, vector<24x32xbf16>, vector<24x32xf32> -> vector<24x32xf32>
    %176 = arith.truncf %175 : vector<24x32xf32> to vector<24x32xbf16>
    %c0_75 = arith.constant 0 : index
    %c0_76 = arith.constant 0 : index
    %177 = vector.load %arg10[%c0_75, %c0_76] : memref<128x128xbf16, #tpu.memory_space<vmem>>, vector<32x128xbf16>
    %cst_77 = arith.constant dense<0.000000e+00> : vector<24x128xf32>
    %178 = tpu.matmul %176, %177, %cst_77 {dimension_numbers = #tpu.dot_dimension_numbers<[1], [0], [0], [1], [0, 0, 1, 1], [], []>} : vector<24x32xbf16>, vector<32x128xbf16>, vector<24x128xf32> -> vector<24x128xf32>
    %179 = arith.addf %157, %178 : vector<24x128xf32>
    %180 = vector.extract_strided_slice %150 {offsets = [0, 32], sizes = [24, 32], strides = [1, 1]} : vector<48x128xbf16> to vector<24x32xbf16>
    %181 = vector.extract_strided_slice %152 {offsets = [0, 32], sizes = [24, 32], strides = [1, 1]} : vector<48x128xbf16> to vector<24x32xbf16>
    %182 = vector.extract_strided_slice %154 {offsets = [0, 32], sizes = [24, 32], strides = [1, 1]} : vector<48x128xbf16> to vector<24x32xbf16>
    %cst_78 = arith.constant dense<0.000000e+00> : vector<24x24xf32>
    %183 = tpu.matmul %180, %181, %cst_78 {dimension_numbers = #tpu.dot_dimension_numbers<[1], [1], [0], [0], [0, 0, 1, 0], [], []>} : vector<24x32xbf16>, vector<24x32xbf16>, vector<24x24xf32> -> vector<24x24xf32>
    %184 = vector.broadcast %156 : vector<1x24xf32> to vector<24x24xf32>
    %185 = arith.addf %183, %184 : vector<24x24xf32>
    %cst_79 = arith.constant dense<0xFF800000> : vector<24xf32>
    %186 = vector.multi_reduction <maximumf>, %185, %cst_79 [1] : vector<24x24xf32> to vector<24xf32>
    %187 = vector.shape_cast %186 : vector<24xf32> to vector<24x1xf32>
    %188 = vector.broadcast %187 : vector<24x1xf32> to vector<24x24xf32>
    %189 = arith.subf %185, %188 : vector<24x24xf32>
    %190 = math.exp %189 : vector<24x24xf32>
    %cst_80 = arith.constant dense<0.000000e+00> : vector<24xf32>
    %191 = vector.multi_reduction <add>, %190, %cst_80 [1] : vector<24x24xf32> to vector<24xf32>
    %192 = vector.shape_cast %191 : vector<24xf32> to vector<24x1xf32>
    %193 = tpu.reciprocal %192 {approx = true} : vector<24x1xf32> -> vector<24x1xf32>
    %194 = vector.broadcast %193 : vector<24x1xf32> to vector<24x24xf32>
    %195 = arith.mulf %190, %194 : vector<24x24xf32>
    %196 = arith.truncf %195 : vector<24x24xf32> to vector<24x24xbf16>
    %cst_81 = arith.constant dense<0.000000e+00> : vector<24x32xf32>
    %197 = tpu.matmul %196, %182, %cst_81 {dimension_numbers = #tpu.dot_dimension_numbers<[1], [0], [0], [1], [0, 0, 1, 1], [], []>} : vector<24x24xbf16>, vector<24x32xbf16>, vector<24x32xf32> -> vector<24x32xf32>
    %198 = arith.truncf %197 : vector<24x32xf32> to vector<24x32xbf16>
    %c32_82 = arith.constant 32 : index
    %c0_83 = arith.constant 0 : index
    %199 = vector.load %arg10[%c32_82, %c0_83] : memref<128x128xbf16, #tpu.memory_space<vmem>>, vector<32x128xbf16>
    %cst_84 = arith.constant dense<0.000000e+00> : vector<24x128xf32>
    %200 = tpu.matmul %198, %199, %cst_84 {dimension_numbers = #tpu.dot_dimension_numbers<[1], [0], [0], [1], [0, 0, 1, 1], [], []>} : vector<24x32xbf16>, vector<32x128xbf16>, vector<24x128xf32> -> vector<24x128xf32>
    %201 = arith.addf %179, %200 : vector<24x128xf32>
    %202 = vector.extract_strided_slice %150 {offsets = [0, 64], sizes = [24, 32], strides = [1, 1]} : vector<48x128xbf16> to vector<24x32xbf16>
    %203 = vector.extract_strided_slice %152 {offsets = [0, 64], sizes = [24, 32], strides = [1, 1]} : vector<48x128xbf16> to vector<24x32xbf16>
    %204 = vector.extract_strided_slice %154 {offsets = [0, 64], sizes = [24, 32], strides = [1, 1]} : vector<48x128xbf16> to vector<24x32xbf16>
    %cst_85 = arith.constant dense<0.000000e+00> : vector<24x24xf32>
    %205 = tpu.matmul %202, %203, %cst_85 {dimension_numbers = #tpu.dot_dimension_numbers<[1], [1], [0], [0], [0, 0, 1, 0], [], []>} : vector<24x32xbf16>, vector<24x32xbf16>, vector<24x24xf32> -> vector<24x24xf32>
    %206 = vector.broadcast %156 : vector<1x24xf32> to vector<24x24xf32>
    %207 = arith.addf %205, %206 : vector<24x24xf32>
    %cst_86 = arith.constant dense<0xFF800000> : vector<24xf32>
    %208 = vector.multi_reduction <maximumf>, %207, %cst_86 [1] : vector<24x24xf32> to vector<24xf32>
    %209 = vector.shape_cast %208 : vector<24xf32> to vector<24x1xf32>
    %210 = vector.broadcast %209 : vector<24x1xf32> to vector<24x24xf32>
    %211 = arith.subf %207, %210 : vector<24x24xf32>
    %212 = math.exp %211 : vector<24x24xf32>
    %cst_87 = arith.constant dense<0.000000e+00> : vector<24xf32>
    %213 = vector.multi_reduction <add>, %212, %cst_87 [1] : vector<24x24xf32> to vector<24xf32>
    %214 = vector.shape_cast %213 : vector<24xf32> to vector<24x1xf32>
    %215 = tpu.reciprocal %214 {approx = true} : vector<24x1xf32> -> vector<24x1xf32>
    %216 = vector.broadcast %215 : vector<24x1xf32> to vector<24x24xf32>
    %217 = arith.mulf %212, %216 : vector<24x24xf32>
    %218 = arith.truncf %217 : vector<24x24xf32> to vector<24x24xbf16>
    %cst_88 = arith.constant dense<0.000000e+00> : vector<24x32xf32>
    %219 = tpu.matmul %218, %204, %cst_88 {dimension_numbers = #tpu.dot_dimension_numbers<[1], [0], [0], [1], [0, 0, 1, 1], [], []>} : vector<24x24xbf16>, vector<24x32xbf16>, vector<24x32xf32> -> vector<24x32xf32>
    %220 = arith.truncf %219 : vector<24x32xf32> to vector<24x32xbf16>
    %c64 = arith.constant 64 : index
    %c0_89 = arith.constant 0 : index
    %221 = vector.load %arg10[%c64, %c0_89] : memref<128x128xbf16, #tpu.memory_space<vmem>>, vector<32x128xbf16>
    %cst_90 = arith.constant dense<0.000000e+00> : vector<24x128xf32>
    %222 = tpu.matmul %220, %221, %cst_90 {dimension_numbers = #tpu.dot_dimension_numbers<[1], [0], [0], [1], [0, 0, 1, 1], [], []>} : vector<24x32xbf16>, vector<32x128xbf16>, vector<24x128xf32> -> vector<24x128xf32>
    %223 = arith.addf %201, %222 : vector<24x128xf32>
    %224 = vector.extract_strided_slice %150 {offsets = [0, 96], sizes = [24, 32], strides = [1, 1]} : vector<48x128xbf16> to vector<24x32xbf16>
    %225 = vector.extract_strided_slice %152 {offsets = [0, 96], sizes = [24, 32], strides = [1, 1]} : vector<48x128xbf16> to vector<24x32xbf16>
    %226 = vector.extract_strided_slice %154 {offsets = [0, 96], sizes = [24, 32], strides = [1, 1]} : vector<48x128xbf16> to vector<24x32xbf16>
    %cst_91 = arith.constant dense<0.000000e+00> : vector<24x24xf32>
    %227 = tpu.matmul %224, %225, %cst_91 {dimension_numbers = #tpu.dot_dimension_numbers<[1], [1], [0], [0], [0, 0, 1, 0], [], []>} : vector<24x32xbf16>, vector<24x32xbf16>, vector<24x24xf32> -> vector<24x24xf32>
    %228 = vector.broadcast %156 : vector<1x24xf32> to vector<24x24xf32>
    %229 = arith.addf %227, %228 : vector<24x24xf32>
    %cst_92 = arith.constant dense<0xFF800000> : vector<24xf32>
    %230 = vector.multi_reduction <maximumf>, %229, %cst_92 [1] : vector<24x24xf32> to vector<24xf32>
    %231 = vector.shape_cast %230 : vector<24xf32> to vector<24x1xf32>
    %232 = vector.broadcast %231 : vector<24x1xf32> to vector<24x24xf32>
    %233 = arith.subf %229, %232 : vector<24x24xf32>
    %234 = math.exp %233 : vector<24x24xf32>
    %cst_93 = arith.constant dense<0.000000e+00> : vector<24xf32>
    %235 = vector.multi_reduction <add>, %234, %cst_93 [1] : vector<24x24xf32> to vector<24xf32>
    %236 = vector.shape_cast %235 : vector<24xf32> to vector<24x1xf32>
    %237 = tpu.reciprocal %236 {approx = true} : vector<24x1xf32> -> vector<24x1xf32>
    %238 = vector.broadcast %237 : vector<24x1xf32> to vector<24x24xf32>
    %239 = arith.mulf %234, %238 : vector<24x24xf32>
    %240 = arith.truncf %239 : vector<24x24xf32> to vector<24x24xbf16>
    %cst_94 = arith.constant dense<0.000000e+00> : vector<24x32xf32>
    %241 = tpu.matmul %240, %226, %cst_94 {dimension_numbers = #tpu.dot_dimension_numbers<[1], [0], [0], [1], [0, 0, 1, 1], [], []>} : vector<24x24xbf16>, vector<24x32xbf16>, vector<24x32xf32> -> vector<24x32xf32>
    %242 = arith.truncf %241 : vector<24x32xf32> to vector<24x32xbf16>
    %c96 = arith.constant 96 : index
    %c0_95 = arith.constant 0 : index
    %243 = vector.load %arg10[%c96, %c0_95] : memref<128x128xbf16, #tpu.memory_space<vmem>>, vector<32x128xbf16>
    %cst_96 = arith.constant dense<0.000000e+00> : vector<24x128xf32>
    %244 = tpu.matmul %242, %243, %cst_96 {dimension_numbers = #tpu.dot_dimension_numbers<[1], [0], [0], [1], [0, 0, 1, 1], [], []>} : vector<24x32xbf16>, vector<32x128xbf16>, vector<24x128xf32> -> vector<24x128xf32>
    %245 = arith.addf %223, %244 : vector<24x128xf32>
    %c0_97 = arith.constant 0 : index
    %c0_98 = arith.constant 0 : index
    %246 = vector.load %arg11[%c0_97, %c0_98] : memref<1x128xf32, #tpu.memory_space<vmem>>, vector<1x128xf32>
    %247 = vector.broadcast %246 : vector<1x128xf32> to vector<24x128xf32>
    %248 = arith.addf %245, %247 : vector<24x128xf32>
    %249 = vector.extract_strided_slice %139 {offsets = [0, 0], sizes = [24, 128], strides = [1, 1]} : vector<48x128xf32> to vector<24x128xf32>
    %250 = arith.addf %248, %249 : vector<24x128xf32>
    %c0_99 = arith.constant 0 : index
    %c0_100 = arith.constant 0 : index
    %251 = vector.load %arg12[%c0_99, %c0_100] : memref<1x128xf32, #tpu.memory_space<vmem>>, vector<1x128xf32>
    %c0_101 = arith.constant 0 : index
    %c0_102 = arith.constant 0 : index
    %252 = vector.load %arg13[%c0_101, %c0_102] : memref<1x128xf32, #tpu.memory_space<vmem>>, vector<1x128xf32>
    %cst_103 = arith.constant dense<0.000000e+00> : vector<24xf32>
    %253 = vector.multi_reduction <add>, %250, %cst_103 [1] : vector<24x128xf32> to vector<24xf32>
    %254 = vector.shape_cast %253 : vector<24xf32> to vector<24x1xf32>
    %cst_104 = arith.constant 1.280000e+02 : f32
    %255 = vector.broadcast %cst_104 : f32 to vector<24x1xf32>
    %256 = arith.divf %254, %255 : vector<24x1xf32>
    %257 = arith.mulf %250, %250 : vector<24x128xf32>
    %cst_105 = arith.constant dense<0.000000e+00> : vector<24xf32>
    %258 = vector.multi_reduction <add>, %257, %cst_105 [1] : vector<24x128xf32> to vector<24xf32>
    %259 = vector.shape_cast %258 : vector<24xf32> to vector<24x1xf32>
    %cst_106 = arith.constant 1.280000e+02 : f32
    %260 = vector.broadcast %cst_106 : f32 to vector<24x1xf32>
    %261 = arith.divf %259, %260 : vector<24x1xf32>
    %262 = arith.mulf %256, %256 : vector<24x1xf32>
    %263 = arith.subf %261, %262 : vector<24x1xf32>
    %cst_107 = arith.constant 0.000000e+00 : f32
    %264 = vector.broadcast %cst_107 : f32 to vector<24x1xf32>
    %265 = arith.maximumf %263, %264 : vector<24x1xf32>
    %266 = vector.broadcast %256 : vector<24x1xf32> to vector<24x128xf32>
    %267 = arith.subf %250, %266 : vector<24x128xf32>
    %cst_108 = arith.constant 9.99999996E-13 : f32
    %268 = vector.broadcast %cst_108 : f32 to vector<24x1xf32>
    %269 = arith.addf %265, %268 : vector<24x1xf32>
    %270 = math.rsqrt %269 : vector<24x1xf32>
    %271 = vector.broadcast %270 : vector<24x1xf32> to vector<24x128xf32>
    %272 = arith.mulf %267, %271 : vector<24x128xf32>
    %273 = vector.broadcast %251 : vector<1x128xf32> to vector<24x128xf32>
    %274 = arith.mulf %272, %273 : vector<24x128xf32>
    %275 = vector.broadcast %252 : vector<1x128xf32> to vector<24x128xf32>
    %276 = arith.addf %274, %275 : vector<24x128xf32>
    %c0_109 = arith.constant 0 : index
    %c0_110 = arith.constant 0 : index
    %277 = vector.load %arg25[%c0_109, %c0_110] : memref<48x128xf32, #tpu.memory_space<vmem>>, vector<24x128xf32>
    tpu.vector_store %arg25[%c0_109, %c0_110], %276 {strides = array<i32>} : memref<48x128xf32, #tpu.memory_space<vmem>>, vector<24x128xf32>,
    %278 = vector.extract_strided_slice %140 {offsets = [1, 0, 0], sizes = [1, 1, 24], strides = [1, 1, 1]} : vector<2x1x24xf32> to vector<1x1x24xf32>
    %279 = vector.shape_cast %278 : vector<1x1x24xf32> to vector<1x24xf32>
    %cst_111 = arith.constant 0.000000e+00 : f32
    %280 = vector.broadcast %cst_111 : f32 to vector<24x128xf32>
    %281 = vector.extract_strided_slice %150 {offsets = [24, 0], sizes = [24, 32], strides = [1, 1]} : vector<48x128xbf16> to vector<24x32xbf16>
    %282 = vector.extract_strided_slice %152 {offsets = [24, 0], sizes = [24, 32], strides = [1, 1]} : vector<48x128xbf16> to vector<24x32xbf16>
    %283 = vector.extract_strided_slice %154 {offsets = [24, 0], sizes = [24, 32], strides = [1, 1]} : vector<48x128xbf16> to vector<24x32xbf16>
    %cst_112 = arith.constant dense<0.000000e+00> : vector<24x24xf32>
    %284 = tpu.matmul %281, %282, %cst_112 {dimension_numbers = #tpu.dot_dimension_numbers<[1], [1], [0], [0], [0, 0, 1, 0], [], []>} : vector<24x32xbf16>, vector<24x32xbf16>, vector<24x24xf32> -> vector<24x24xf32>
    %285 = vector.broadcast %279 : vector<1x24xf32> to vector<24x24xf32>
    %286 = arith.addf %284, %285 : vector<24x24xf32>
    %cst_113 = arith.constant dense<0xFF800000> : vector<24xf32>
    %287 = vector.multi_reduction <maximumf>, %286, %cst_113 [1] : vector<24x24xf32> to vector<24xf32>
    %288 = vector.shape_cast %287 : vector<24xf32> to vector<24x1xf32>
    %289 = vector.broadcast %288 : vector<24x1xf32> to vector<24x24xf32>
    %290 = arith.subf %286, %289 : vector<24x24xf32>
    %291 = math.exp %290 : vector<24x24xf32>
    %cst_114 = arith.constant dense<0.000000e+00> : vector<24xf32>
    %292 = vector.multi_reduction <add>, %291, %cst_114 [1] : vector<24x24xf32> to vector<24xf32>
    %293 = vector.shape_cast %292 : vector<24xf32> to vector<24x1xf32>
    %294 = tpu.reciprocal %293 {approx = true} : vector<24x1xf32> -> vector<24x1xf32>
    %295 = vector.broadcast %294 : vector<24x1xf32> to vector<24x24xf32>
    %296 = arith.mulf %291, %295 : vector<24x24xf32>
    %297 = arith.truncf %296 : vector<24x24xf32> to vector<24x24xbf16>
    %cst_115 = arith.constant dense<0.000000e+00> : vector<24x32xf32>
    %298 = tpu.matmul %297, %283, %cst_115 {dimension_numbers = #tpu.dot_dimension_numbers<[1], [0], [0], [1], [0, 0, 1, 1], [], []>} : vector<24x24xbf16>, vector<24x32xbf16>, vector<24x32xf32> -> vector<24x32xf32>
    %299 = arith.truncf %298 : vector<24x32xf32> to vector<24x32xbf16>
    %c0_116 = arith.constant 0 : index
    %c0_117 = arith.constant 0 : index
    %300 = vector.load %arg10[%c0_116, %c0_117] : memref<128x128xbf16, #tpu.memory_space<vmem>>, vector<32x128xbf16>
    %cst_118 = arith.constant dense<0.000000e+00> : vector<24x128xf32>
    %301 = tpu.matmul %299, %300, %cst_118 {dimension_numbers = #tpu.dot_dimension_numbers<[1], [0], [0], [1], [0, 0, 1, 1], [], []>} : vector<24x32xbf16>, vector<32x128xbf16>, vector<24x128xf32> -> vector<24x128xf32>
    %302 = arith.addf %280, %301 : vector<24x128xf32>
    %303 = vector.extract_strided_slice %150 {offsets = [24, 32], sizes = [24, 32], strides = [1, 1]} : vector<48x128xbf16> to vector<24x32xbf16>
    %304 = vector.extract_strided_slice %152 {offsets = [24, 32], sizes = [24, 32], strides = [1, 1]} : vector<48x128xbf16> to vector<24x32xbf16>
    %305 = vector.extract_strided_slice %154 {offsets = [24, 32], sizes = [24, 32], strides = [1, 1]} : vector<48x128xbf16> to vector<24x32xbf16>
    %cst_119 = arith.constant dense<0.000000e+00> : vector<24x24xf32>
    %306 = tpu.matmul %303, %304, %cst_119 {dimension_numbers = #tpu.dot_dimension_numbers<[1], [1], [0], [0], [0, 0, 1, 0], [], []>} : vector<24x32xbf16>, vector<24x32xbf16>, vector<24x24xf32> -> vector<24x24xf32>
    %307 = vector.broadcast %279 : vector<1x24xf32> to vector<24x24xf32>
    %308 = arith.addf %306, %307 : vector<24x24xf32>
    %cst_120 = arith.constant dense<0xFF800000> : vector<24xf32>
    %309 = vector.multi_reduction <maximumf>, %308, %cst_120 [1] : vector<24x24xf32> to vector<24xf32>
    %310 = vector.shape_cast %309 : vector<24xf32> to vector<24x1xf32>
    %311 = vector.broadcast %310 : vector<24x1xf32> to vector<24x24xf32>
    %312 = arith.subf %308, %311 : vector<24x24xf32>
    %313 = math.exp %312 : vector<24x24xf32>
    %cst_121 = arith.constant dense<0.000000e+00> : vector<24xf32>
    %314 = vector.multi_reduction <add>, %313, %cst_121 [1] : vector<24x24xf32> to vector<24xf32>
    %315 = vector.shape_cast %314 : vector<24xf32> to vector<24x1xf32>
    %316 = tpu.reciprocal %315 {approx = true} : vector<24x1xf32> -> vector<24x1xf32>
    %317 = vector.broadcast %316 : vector<24x1xf32> to vector<24x24xf32>
    %318 = arith.mulf %313, %317 : vector<24x24xf32>
    %319 = arith.truncf %318 : vector<24x24xf32> to vector<24x24xbf16>
    %cst_122 = arith.constant dense<0.000000e+00> : vector<24x32xf32>
    %320 = tpu.matmul %319, %305, %cst_122 {dimension_numbers = #tpu.dot_dimension_numbers<[1], [0], [0], [1], [0, 0, 1, 1], [], []>} : vector<24x24xbf16>, vector<24x32xbf16>, vector<24x32xf32> -> vector<24x32xf32>
    %321 = arith.truncf %320 : vector<24x32xf32> to vector<24x32xbf16>
    %c32_123 = arith.constant 32 : index
    %c0_124 = arith.constant 0 : index
    %322 = vector.load %arg10[%c32_123, %c0_124] : memref<128x128xbf16, #tpu.memory_space<vmem>>, vector<32x128xbf16>
    %cst_125 = arith.constant dense<0.000000e+00> : vector<24x128xf32>
    %323 = tpu.matmul %321, %322, %cst_125 {dimension_numbers = #tpu.dot_dimension_numbers<[1], [0], [0], [1], [0, 0, 1, 1], [], []>} : vector<24x32xbf16>, vector<32x128xbf16>, vector<24x128xf32> -> vector<24x128xf32>
    %324 = arith.addf %302, %323 : vector<24x128xf32>
    %325 = vector.extract_strided_slice %150 {offsets = [24, 64], sizes = [24, 32], strides = [1, 1]} : vector<48x128xbf16> to vector<24x32xbf16>
    %326 = vector.extract_strided_slice %152 {offsets = [24, 64], sizes = [24, 32], strides = [1, 1]} : vector<48x128xbf16> to vector<24x32xbf16>
    %327 = vector.extract_strided_slice %154 {offsets = [24, 64], sizes = [24, 32], strides = [1, 1]} : vector<48x128xbf16> to vector<24x32xbf16>
    %cst_126 = arith.constant dense<0.000000e+00> : vector<24x24xf32>
    %328 = tpu.matmul %325, %326, %cst_126 {dimension_numbers = #tpu.dot_dimension_numbers<[1], [1], [0], [0], [0, 0, 1, 0], [], []>} : vector<24x32xbf16>, vector<24x32xbf16>, vector<24x24xf32> -> vector<24x24xf32>
    %329 = vector.broadcast %279 : vector<1x24xf32> to vector<24x24xf32>
    %330 = arith.addf %328, %329 : vector<24x24xf32>
    %cst_127 = arith.constant dense<0xFF800000> : vector<24xf32>
    %331 = vector.multi_reduction <maximumf>, %330, %cst_127 [1] : vector<24x24xf32> to vector<24xf32>
    %332 = vector.shape_cast %331 : vector<24xf32> to vector<24x1xf32>
    %333 = vector.broadcast %332 : vector<24x1xf32> to vector<24x24xf32>
    %334 = arith.subf %330, %333 : vector<24x24xf32>
    %335 = math.exp %334 : vector<24x24xf32>
    %cst_128 = arith.constant dense<0.000000e+00> : vector<24xf32>
    %336 = vector.multi_reduction <add>, %335, %cst_128 [1] : vector<24x24xf32> to vector<24xf32>
    %337 = vector.shape_cast %336 : vector<24xf32> to vector<24x1xf32>
    %338 = tpu.reciprocal %337 {approx = true} : vector<24x1xf32> -> vector<24x1xf32>
    %339 = vector.broadcast %338 : vector<24x1xf32> to vector<24x24xf32>
    %340 = arith.mulf %335, %339 : vector<24x24xf32>
    %341 = arith.truncf %340 : vector<24x24xf32> to vector<24x24xbf16>
    %cst_129 = arith.constant dense<0.000000e+00> : vector<24x32xf32>
    %342 = tpu.matmul %341, %327, %cst_129 {dimension_numbers = #tpu.dot_dimension_numbers<[1], [0], [0], [1], [0, 0, 1, 1], [], []>} : vector<24x24xbf16>, vector<24x32xbf16>, vector<24x32xf32> -> vector<24x32xf32>
    %343 = arith.truncf %342 : vector<24x32xf32> to vector<24x32xbf16>
    %c64_130 = arith.constant 64 : index
    %c0_131 = arith.constant 0 : index
    %344 = vector.load %arg10[%c64_130, %c0_131] : memref<128x128xbf16, #tpu.memory_space<vmem>>, vector<32x128xbf16>
    %cst_132 = arith.constant dense<0.000000e+00> : vector<24x128xf32>
    %345 = tpu.matmul %343, %344, %cst_132 {dimension_numbers = #tpu.dot_dimension_numbers<[1], [0], [0], [1], [0, 0, 1, 1], [], []>} : vector<24x32xbf16>, vector<32x128xbf16>, vector<24x128xf32> -> vector<24x128xf32>
    %346 = arith.addf %324, %345 : vector<24x128xf32>
    %347 = vector.extract_strided_slice %150 {offsets = [24, 96], sizes = [24, 32], strides = [1, 1]} : vector<48x128xbf16> to vector<24x32xbf16>
    %348 = vector.extract_strided_slice %152 {offsets = [24, 96], sizes = [24, 32], strides = [1, 1]} : vector<48x128xbf16> to vector<24x32xbf16>
    %349 = vector.extract_strided_slice %154 {offsets = [24, 96], sizes = [24, 32], strides = [1, 1]} : vector<48x128xbf16> to vector<24x32xbf16>
    %cst_133 = arith.constant dense<0.000000e+00> : vector<24x24xf32>
    %350 = tpu.matmul %347, %348, %cst_133 {dimension_numbers = #tpu.dot_dimension_numbers<[1], [1], [0], [0], [0, 0, 1, 0], [], []>} : vector<24x32xbf16>, vector<24x32xbf16>, vector<24x24xf32> -> vector<24x24xf32>
    %351 = vector.broadcast %279 : vector<1x24xf32> to vector<24x24xf32>
    %352 = arith.addf %350, %351 : vector<24x24xf32>
    %cst_134 = arith.constant dense<0xFF800000> : vector<24xf32>
    %353 = vector.multi_reduction <maximumf>, %352, %cst_134 [1] : vector<24x24xf32> to vector<24xf32>
    %354 = vector.shape_cast %353 : vector<24xf32> to vector<24x1xf32>
    %355 = vector.broadcast %354 : vector<24x1xf32> to vector<24x24xf32>
    %356 = arith.subf %352, %355 : vector<24x24xf32>
    %357 = math.exp %356 : vector<24x24xf32>
    %cst_135 = arith.constant dense<0.000000e+00> : vector<24xf32>
    %358 = vector.multi_reduction <add>, %357, %cst_135 [1] : vector<24x24xf32> to vector<24xf32>
    %359 = vector.shape_cast %358 : vector<24xf32> to vector<24x1xf32>
    %360 = tpu.reciprocal %359 {approx = true} : vector<24x1xf32> -> vector<24x1xf32>
    %361 = vector.broadcast %360 : vector<24x1xf32> to vector<24x24xf32>
    %362 = arith.mulf %357, %361 : vector<24x24xf32>
    %363 = arith.truncf %362 : vector<24x24xf32> to vector<24x24xbf16>
    %cst_136 = arith.constant dense<0.000000e+00> : vector<24x32xf32>
    %364 = tpu.matmul %363, %349, %cst_136 {dimension_numbers = #tpu.dot_dimension_numbers<[1], [0], [0], [1], [0, 0, 1, 1], [], []>} : vector<24x24xbf16>, vector<24x32xbf16>, vector<24x32xf32> -> vector<24x32xf32>
    %365 = arith.truncf %364 : vector<24x32xf32> to vector<24x32xbf16>
    %c96_137 = arith.constant 96 : index
    %c0_138 = arith.constant 0 : index
    %366 = vector.load %arg10[%c96_137, %c0_138] : memref<128x128xbf16, #tpu.memory_space<vmem>>, vector<32x128xbf16>
    %cst_139 = arith.constant dense<0.000000e+00> : vector<24x128xf32>
    %367 = tpu.matmul %365, %366, %cst_139 {dimension_numbers = #tpu.dot_dimension_numbers<[1], [0], [0], [1], [0, 0, 1, 1], [], []>} : vector<24x32xbf16>, vector<32x128xbf16>, vector<24x128xf32> -> vector<24x128xf32>
    %368 = arith.addf %346, %367 : vector<24x128xf32>
    %c0_140 = arith.constant 0 : index
    %c0_141 = arith.constant 0 : index
    %369 = vector.load %arg11[%c0_140, %c0_141] : memref<1x128xf32, #tpu.memory_space<vmem>>, vector<1x128xf32>
    %370 = vector.broadcast %369 : vector<1x128xf32> to vector<24x128xf32>
    %371 = arith.addf %368, %370 : vector<24x128xf32>
    %372 = vector.extract_strided_slice %139 {offsets = [24, 0], sizes = [24, 128], strides = [1, 1]} : vector<48x128xf32> to vector<24x128xf32>
    %373 = arith.addf %371, %372 : vector<24x128xf32>
    %c0_142 = arith.constant 0 : index
    %c0_143 = arith.constant 0 : index
    %374 = vector.load %arg12[%c0_142, %c0_143] : memref<1x128xf32, #tpu.memory_space<vmem>>, vector<1x128xf32>
    %c0_144 = arith.constant 0 : index
    %c0_145 = arith.constant 0 : index
    %375 = vector.load %arg13[%c0_144, %c0_145] : memref<1x128xf32, #tpu.memory_space<vmem>>, vector<1x128xf32>
    %cst_146 = arith.constant dense<0.000000e+00> : vector<24xf32>
    %376 = vector.multi_reduction <add>, %373, %cst_146 [1] : vector<24x128xf32> to vector<24xf32>
    %377 = vector.shape_cast %376 : vector<24xf32> to vector<24x1xf32>
    %cst_147 = arith.constant 1.280000e+02 : f32
    %378 = vector.broadcast %cst_147 : f32 to vector<24x1xf32>
    %379 = arith.divf %377, %378 : vector<24x1xf32>
    %380 = arith.mulf %373, %373 : vector<24x128xf32>
    %cst_148 = arith.constant dense<0.000000e+00> : vector<24xf32>
    %381 = vector.multi_reduction <add>, %380, %cst_148 [1] : vector<24x128xf32> to vector<24xf32>
    %382 = vector.shape_cast %381 : vector<24xf32> to vector<24x1xf32>
    %cst_149 = arith.constant 1.280000e+02 : f32
    %383 = vector.broadcast %cst_149 : f32 to vector<24x1xf32>
    %384 = arith.divf %382, %383 : vector<24x1xf32>
    %385 = arith.mulf %379, %379 : vector<24x1xf32>
    %386 = arith.subf %384, %385 : vector<24x1xf32>
    %cst_150 = arith.constant 0.000000e+00 : f32
    %387 = vector.broadcast %cst_150 : f32 to vector<24x1xf32>
    %388 = arith.maximumf %386, %387 : vector<24x1xf32>
    %389 = vector.broadcast %379 : vector<24x1xf32> to vector<24x128xf32>
    %390 = arith.subf %373, %389 : vector<24x128xf32>
    %cst_151 = arith.constant 9.99999996E-13 : f32
    %391 = vector.broadcast %cst_151 : f32 to vector<24x1xf32>
    %392 = arith.addf %388, %391 : vector<24x1xf32>
    %393 = math.rsqrt %392 : vector<24x1xf32>
    %394 = vector.broadcast %393 : vector<24x1xf32> to vector<24x128xf32>
    %395 = arith.mulf %390, %394 : vector<24x128xf32>
    %396 = vector.broadcast %374 : vector<1x128xf32> to vector<24x128xf32>
    %397 = arith.mulf %395, %396 : vector<24x128xf32>
    %398 = vector.broadcast %375 : vector<1x128xf32> to vector<24x128xf32>
    %399 = arith.addf %397, %398 : vector<24x128xf32>
    %c24_152 = arith.constant 24 : index
    %c0_153 = arith.constant 0 : index
    %400 = vector.load %arg25[%c24_152, %c0_153] : memref<48x128xf32, #tpu.memory_space<vmem>>, vector<24x128xf32>
    tpu.vector_store %arg25[%c24_152, %c0_153], %399 {strides = array<i32>} : memref<48x128xf32, #tpu.memory_space<vmem>>, vector<24x128xf32>,
    %c0_154 = arith.constant 0 : index
    %c0_155 = arith.constant 0 : index
    %401 = vector.load %arg25[%c0_154, %c0_155] : memref<48x128xf32, #tpu.memory_space<vmem>>, vector<48x128xf32>
    %402 = arith.truncf %401 : vector<48x128xf32> to vector<48x128xbf16>
    %c0_156 = arith.constant 0 : index
    %c0_157 = arith.constant 0 : index
    %403 = vector.load %arg14[%c0_156, %c0_157] : memref<128x512xbf16, #tpu.memory_space<vmem>>, vector<128x512xbf16>
    %cst_158 = arith.constant dense<0.000000e+00> : vector<48x512xf32>
    %404 = tpu.matmul %402, %403, %cst_158 {dimension_numbers = #tpu.dot_dimension_numbers<[1], [0], [0], [1], [0, 0, 1, 1], [], []>} : vector<48x128xbf16>, vector<128x512xbf16>, vector<48x512xf32> -> vector<48x512xf32>
    %c0_159 = arith.constant 0 : index
    %c0_160 = arith.constant 0 : index
    %405 = vector.load %arg15[%c0_159, %c0_160] : memref<1x512xf32, #tpu.memory_space<vmem>>, vector<1x512xf32>
    %406 = vector.broadcast %405 : vector<1x512xf32> to vector<48x512xf32>
    %407 = arith.addf %404, %406 : vector<48x512xf32>
    %408 = arith.mulf %407, %407 : vector<48x512xf32>
    %409 = arith.mulf %407, %408 : vector<48x512xf32>
    %cst_161 = arith.constant 4.471500e-02 : f32
    %410 = vector.broadcast %cst_161 : f32 to vector<48x512xf32>
    %411 = arith.mulf %410, %409 : vector<48x512xf32>
    %412 = arith.addf %407, %411 : vector<48x512xf32>
    %cst_162 = arith.constant 0.797884583 : f32
    %413 = vector.broadcast %cst_162 : f32 to vector<48x512xf32>
    %414 = arith.mulf %413, %412 : vector<48x512xf32>
    %415 = math.tanh %414 : vector<48x512xf32>
    %cst_163 = arith.constant 1.000000e+00 : f32
    %416 = vector.broadcast %cst_163 : f32 to vector<48x512xf32>
    %417 = arith.addf %416, %415 : vector<48x512xf32>
    %cst_164 = arith.constant 5.000000e-01 : f32
    %418 = vector.broadcast %cst_164 : f32 to vector<48x512xf32>
    %419 = arith.mulf %418, %417 : vector<48x512xf32>
    %420 = arith.mulf %407, %419 : vector<48x512xf32>
    %421 = arith.truncf %420 : vector<48x512xf32> to vector<48x512xbf16>
    %c0_165 = arith.constant 0 : index
    %c0_166 = arith.constant 0 : index
    %422 = vector.load %arg16[%c0_165, %c0_166] : memref<512x128xbf16, #tpu.memory_space<vmem>>, vector<512x128xbf16>
    %cst_167 = arith.constant dense<0.000000e+00> : vector<48x128xf32>
    %423 = tpu.matmul %421, %422, %cst_167 {dimension_numbers = #tpu.dot_dimension_numbers<[1], [0], [0], [1], [0, 0, 1, 1], [], []>} : vector<48x512xbf16>, vector<512x128xbf16>, vector<48x128xf32> -> vector<48x128xf32>
    %c0_168 = arith.constant 0 : index
    %c0_169 = arith.constant 0 : index
    %424 = vector.load %arg17[%c0_168, %c0_169] : memref<1x128xf32, #tpu.memory_space<vmem>>, vector<1x128xf32>
    %425 = vector.broadcast %424 : vector<1x128xf32> to vector<48x128xf32>
    %426 = arith.addf %423, %425 : vector<48x128xf32>
    %427 = arith.addf %426, %401 : vector<48x128xf32>
    %c0_170 = arith.constant 0 : index
    %c0_171 = arith.constant 0 : index
    %428 = vector.load %arg18[%c0_170, %c0_171] : memref<1x128xf32, #tpu.memory_space<vmem>>, vector<1x128xf32>
    %c0_172 = arith.constant 0 : index
    %c0_173 = arith.constant 0 : index
    %429 = vector.load %arg19[%c0_172, %c0_173] : memref<1x128xf32, #tpu.memory_space<vmem>>, vector<1x128xf32>
    %cst_174 = arith.constant dense<0.000000e+00> : vector<48xf32>
    %430 = vector.multi_reduction <add>, %427, %cst_174 [1] : vector<48x128xf32> to vector<48xf32>
    %431 = vector.shape_cast %430 : vector<48xf32> to vector<48x1xf32>
    %cst_175 = arith.constant 1.280000e+02 : f32
    %432 = vector.broadcast %cst_175 : f32 to vector<48x1xf32>
    %433 = arith.divf %431, %432 : vector<48x1xf32>
    %434 = arith.mulf %427, %427 : vector<48x128xf32>
    %cst_176 = arith.constant dense<0.000000e+00> : vector<48xf32>
    %435 = vector.multi_reduction <add>, %434, %cst_176 [1] : vector<48x128xf32> to vector<48xf32>
    %436 = vector.shape_cast %435 : vector<48xf32> to vector<48x1xf32>
    %cst_177 = arith.constant 1.280000e+02 : f32
    %437 = vector.broadcast %cst_177 : f32 to vector<48x1xf32>
    %438 = arith.divf %436, %437 : vector<48x1xf32>
    %439 = arith.mulf %433, %433 : vector<48x1xf32>
    %440 = arith.subf %438, %439 : vector<48x1xf32>
    %cst_178 = arith.constant 0.000000e+00 : f32
    %441 = vector.broadcast %cst_178 : f32 to vector<48x1xf32>
    %442 = arith.maximumf %440, %441 : vector<48x1xf32>
    %443 = vector.broadcast %433 : vector<48x1xf32> to vector<48x128xf32>
    %444 = arith.subf %427, %443 : vector<48x128xf32>
    %cst_179 = arith.constant 9.99999996E-13 : f32
    %445 = vector.broadcast %cst_179 : f32 to vector<48x1xf32>
    %446 = arith.addf %442, %445 : vector<48x1xf32>
    %447 = math.rsqrt %446 : vector<48x1xf32>
    %448 = vector.broadcast %447 : vector<48x1xf32> to vector<48x128xf32>
    %449 = arith.mulf %444, %448 : vector<48x128xf32>
    %450 = vector.broadcast %428 : vector<1x128xf32> to vector<48x128xf32>
    %451 = arith.mulf %449, %450 : vector<48x128xf32>
    %452 = vector.broadcast %429 : vector<1x128xf32> to vector<48x128xf32>
    %453 = arith.addf %451, %452 : vector<48x128xf32>
    %454 = vector.shape_cast %453 : vector<48x128xf32> to vector<2x24x128xf32>
    %cst_180 = arith.constant dense<0.000000e+00> : vector<2x128xf32>
    %455 = vector.multi_reduction <add>, %454, %cst_180 [1] : vector<2x24x128xf32> to vector<2x128xf32>
    %cst_181 = arith.constant 2.400000e+01 : f32
    %456 = vector.broadcast %cst_181 : f32 to vector<2x128xf32>
    %457 = arith.divf %455, %456 : vector<2x128xf32>
    %cst_182 = arith.constant dense<0xFF800000> : vector<2x128xf32>
    %458 = vector.multi_reduction <maximumf>, %454, %cst_182 [1] : vector<2x24x128xf32> to vector<2x128xf32>
    %459 = arith.truncf %457 : vector<2x128xf32> to vector<2x128xbf16>
    %c0_183 = arith.constant 0 : index
    %c0_184 = arith.constant 0 : index
    %460 = vector.load %arg20[%c0_183, %c0_184] : memref<256x128xbf16, #tpu.memory_space<vmem>>, vector<128x128xbf16>
    %cst_185 = arith.constant dense<0.000000e+00> : vector<2x128xf32>
    %461 = tpu.matmul %459, %460, %cst_185 {dimension_numbers = #tpu.dot_dimension_numbers<[1], [0], [0], [1], [0, 0, 1, 1], [], []>} : vector<2x128xbf16>, vector<128x128xbf16>, vector<2x128xf32> -> vector<2x128xf32>
    %462 = arith.truncf %458 : vector<2x128xf32> to vector<2x128xbf16>
    %c128 = arith.constant 128 : index
    %c0_186 = arith.constant 0 : index
    %463 = vector.load %arg20[%c128, %c0_186] : memref<256x128xbf16, #tpu.memory_space<vmem>>, vector<128x128xbf16>
    %cst_187 = arith.constant dense<0.000000e+00> : vector<2x128xf32>
    %464 = tpu.matmul %462, %463, %cst_187 {dimension_numbers = #tpu.dot_dimension_numbers<[1], [0], [0], [1], [0, 0, 1, 1], [], []>} : vector<2x128xbf16>, vector<128x128xbf16>, vector<2x128xf32> -> vector<2x128xf32>
    %465 = arith.addf %461, %464 : vector<2x128xf32>
    %c0_188 = arith.constant 0 : index
    %c0_189 = arith.constant 0 : index
    %466 = vector.load %arg21[%c0_188, %c0_189] : memref<1x128xf32, #tpu.memory_space<vmem>>, vector<1x128xf32>
    %467 = vector.broadcast %466 : vector<1x128xf32> to vector<2x128xf32>
    %468 = arith.addf %465, %467 : vector<2x128xf32>
    %469 = arith.truncf %468 : vector<2x128xf32> to vector<2x128xbf16>
    %c0_190 = arith.constant 0 : index
    %c0_191 = arith.constant 0 : index
    %470 = vector.load %arg22[%c0_190, %c0_191] : memref<128x1xbf16, #tpu.memory_space<vmem>>, vector<128x1xbf16>
    %cst_192 = arith.constant dense<0.000000e+00> : vector<2x1xf32>
    %471 = tpu.matmul %469, %470, %cst_192 {dimension_numbers = #tpu.dot_dimension_numbers<[1], [0], [0], [1], [0, 0, 1, 1], [], []>} : vector<2x128xbf16>, vector<128x1xbf16>, vector<2x1xf32> -> vector<2x1xf32>
    %c0_193 = arith.constant 0 : index
    %c0_194 = arith.constant 0 : index
    %472 = vector.load %arg23[%c0_193, %c0_194] : memref<1x1xf32, #tpu.memory_space<vmem>>, vector<1x1xf32>
    %473 = vector.broadcast %472 : vector<1x1xf32> to vector<2x1xf32>
    %474 = arith.addf %471, %473 : vector<2x1xf32>
    %c0_195 = arith.constant 0 : index
    %c0_196 = arith.constant 0 : index
    %c0_197 = arith.constant 0 : index
    %475 = vector.load %arg24[%c0_195, %c0_196, %c0_197] : memref<1x2x1xf32, #tpu.memory_space<vmem>>, vector<1x2x1xf32>
    %476 = vector.shape_cast %475 : vector<1x2x1xf32> to vector<2x1xf32>
    %477 = vector.shape_cast %474 : vector<2x1xf32> to vector<1x2x1xf32>
    tpu.vector_store %arg24[%c0_195, %c0_196, %c0_197], %477 {strides = array<i32>} : memref<1x2x1xf32, #tpu.memory_space<vmem>>, vector<1x2x1xf32>,
    return
  }
  func.func @transform_0(%arg0: i32) -> (i32, i32, i32) {
    %c0_i32 = arith.constant 0 : i32
    %c0_i32_0 = arith.constant 0 : i32
    %c0_i32_1 = arith.constant 0 : i32
    return %arg0, %c0_i32, %c0_i32_0 : i32, i32, i32
  }
  func.func @transform_1(%arg0: i32) -> (i32, i32, i32) {
    %c0_i32 = arith.constant 0 : i32
    %c0_i32_0 = arith.constant 0 : i32
    %c0_i32_1 = arith.constant 0 : i32
    return %arg0, %c0_i32, %c0_i32_0 : i32, i32, i32
  }
  func.func @transform_2(%arg0: i32) -> (i32, i32, i32) {
    %c0_i32 = arith.constant 0 : i32
    %c0_i32_0 = arith.constant 0 : i32
    %c0_i32_1 = arith.constant 0 : i32
    %c0_i32_2 = arith.constant 0 : i32
    return %c0_i32, %c0_i32_0, %c0_i32_1 : i32, i32, i32
  }
  func.func @transform_3(%arg0: i32) -> (i32, i32) {
    %c0_i32 = arith.constant 0 : i32
    %c0_i32_0 = arith.constant 0 : i32
    %c0_i32_1 = arith.constant 0 : i32
    return %c0_i32, %c0_i32_0 : i32, i32
  }
  func.func @transform_4(%arg0: i32) -> (i32, i32, i32) {
    %c0_i32 = arith.constant 0 : i32
    %c0_i32_0 = arith.constant 0 : i32
    %c0_i32_1 = arith.constant 0 : i32
    return %arg0, %c0_i32, %c0_i32_0 : i32, i32, i32
  }
  func.func @transform_5(%arg0: i32) -> (i32, i32) {
    %c0_i32 = arith.constant 0 : i32
    %c0_i32_0 = arith.constant 0 : i32
    %c0_i32_1 = arith.constant 0 : i32
    return %c0_i32, %c0_i32_0 : i32, i32
  }
  func.func @transform_6(%arg0: i32) -> (i32, i32) {
    %c0_i32 = arith.constant 0 : i32
    %c0_i32_0 = arith.constant 0 : i32
    %c0_i32_1 = arith.constant 0 : i32
    return %c0_i32, %c0_i32_0 : i32, i32
  }
  func.func @transform_7(%arg0: i32) -> (i32, i32) {
    %c0_i32 = arith.constant 0 : i32
    %c0_i32_0 = arith.constant 0 : i32
    %c0_i32_1 = arith.constant 0 : i32
    return %c0_i32, %c0_i32_0 : i32, i32
  }
  func.func @transform_8(%arg0: i32) -> (i32, i32) {
    %c0_i32 = arith.constant 0 : i32
    %c0_i32_0 = arith.constant 0 : i32
    %c0_i32_1 = arith.constant 0 : i32
    return %c0_i32, %c0_i32_0 : i32, i32
  }
  func.func @transform_9(%arg0: i32) -> (i32, i32) {
    %c0_i32 = arith.constant 0 : i32
    %c0_i32_0 = arith.constant 0 : i32
    %c0_i32_1 = arith.constant 0 : i32
    return %c0_i32, %c0_i32_0 : i32, i32
  }
  func.func @transform_10(%arg0: i32) -> (i32, i32) {
    %c0_i32 = arith.constant 0 : i32
    %c0_i32_0 = arith.constant 0 : i32
    %c0_i32_1 = arith.constant 0 : i32
    return %c0_i32, %c0_i32_0 : i32, i32
  }
  func.func @transform_11(%arg0: i32) -> (i32, i32) {
    %c0_i32 = arith.constant 0 : i32
    %c0_i32_0 = arith.constant 0 : i32
    %c0_i32_1 = arith.constant 0 : i32
    return %c0_i32, %c0_i32_0 : i32, i32
  }
  func.func @transform_12(%arg0: i32) -> (i32, i32) {
    %c0_i32 = arith.constant 0 : i32
    %c0_i32_0 = arith.constant 0 : i32
    %c0_i32_1 = arith.constant 0 : i32
    return %c0_i32, %c0_i32_0 : i32, i32
  }
  func.func @transform_13(%arg0: i32) -> (i32, i32) {
    %c0_i32 = arith.constant 0 : i32
    %c0_i32_0 = arith.constant 0 : i32
    %c0_i32_1 = arith.constant 0 : i32
    return %c0_i32, %c0_i32_0 : i32, i32
  }
  func.func @transform_14(%arg0: i32) -> (i32, i32) {
    %c0_i32 = arith.constant 0 : i32
    %c0_i32_0 = arith.constant 0 : i32
    %c0_i32_1 = arith.constant 0 : i32
    return %c0_i32, %c0_i32_0 : i32, i32
  }
  func.func @transform_15(%arg0: i32) -> (i32, i32) {
    %c0_i32 = arith.constant 0 : i32
    %c0_i32_0 = arith.constant 0 : i32
    %c0_i32_1 = arith.constant 0 : i32
    return %c0_i32, %c0_i32_0 : i32, i32
  }
  func.func @transform_16(%arg0: i32) -> (i32, i32) {
    %c0_i32 = arith.constant 0 : i32
    %c0_i32_0 = arith.constant 0 : i32
    %c0_i32_1 = arith.constant 0 : i32
    return %c0_i32, %c0_i32_0 : i32, i32
  }
  func.func @transform_17(%arg0: i32) -> (i32, i32) {
    %c0_i32 = arith.constant 0 : i32
    %c0_i32_0 = arith.constant 0 : i32
    %c0_i32_1 = arith.constant 0 : i32
    return %c0_i32, %c0_i32_0 : i32, i32
  }
  func.func @transform_18(%arg0: i32) -> (i32, i32) {
    %c0_i32 = arith.constant 0 : i32
    %c0_i32_0 = arith.constant 0 : i32
    %c0_i32_1 = arith.constant 0 : i32
    return %c0_i32, %c0_i32_0 : i32, i32
  }
  func.func @transform_19(%arg0: i32) -> (i32, i32) {
    %c0_i32 = arith.constant 0 : i32
    %c0_i32_0 = arith.constant 0 : i32
    %c0_i32_1 = arith.constant 0 : i32
    return %c0_i32, %c0_i32_0 : i32, i32
  }
  func.func @transform_20(%arg0: i32) -> (i32, i32) {
    %c0_i32 = arith.constant 0 : i32
    %c0_i32_0 = arith.constant 0 : i32
    %c0_i32_1 = arith.constant 0 : i32
    return %c0_i32, %c0_i32_0 : i32, i32
  }
  func.func @transform_21(%arg0: i32) -> (i32, i32) {
    %c0_i32 = arith.constant 0 : i32
    %c0_i32_0 = arith.constant 0 : i32
    %c0_i32_1 = arith.constant 0 : i32
    return %c0_i32, %c0_i32_0 : i32, i32
  }
  func.func @transform_22(%arg0: i32) -> (i32, i32) {
    %c0_i32 = arith.constant 0 : i32
    %c0_i32_0 = arith.constant 0 : i32
    %c0_i32_1 = arith.constant 0 : i32
    return %c0_i32, %c0_i32_0 : i32, i32
  }
  func.func @transform_23(%arg0: i32) -> (i32, i32, i32) {
    %c0_i32 = arith.constant 0 : i32
    %c0_i32_0 = arith.constant 0 : i32
    %c0_i32_1 = arith.constant 0 : i32
    return %arg0, %c0_i32, %c0_i32_0 : i32, i32, i32
  }
}

</mosaic_0001>

<bundles_post_ra>
// kernel: biencoder_forward.3
= control target key start
LH: loop header
LB: loop body
LE: loop exit
PB: predicated region body
PF: predicated region fallthrough
CT: control target
= control target key end

     0   :  { %s2999_s27 = smov 0   ;;  %s3509_s0 = inlined_call_operand.vmem [shape: f32[2,8,128], index: 0, kind: input, shape index: {}]   ;;  %s3510_s1 = inlined_call_operand.vmem [shape: f32[2,8,128], index: 1, kind: input, shape index: {}]   ;;  %s3511_s2 = inlined_call_operand.vmem [shape: f32[1,8,128], index: 2, kind: input, shape index: {}]   ;;  %s3512_s3 = inlined_call_operand.vmem [shape: f32[2,1,8], index: 3, kind: input, shape index: {}]   ;;  %s3513_s4 = inlined_call_operand.vmem [shape: f32[1,128], index: 4, kind: input, shape index: {}]   ;;  %s3514_s5 = inlined_call_operand.vmem [shape: f32[1,128], index: 5, kind: input, shape index: {}]   ;;  %s3515_s6 = inlined_call_operand.vmem [shape: bf16[128,384], index: 6, kind: input, shape index: {}]   ;;  %s3516_s7 = inlined_call_operand.vmem [shape: f32[1,384], index: 7, kind: input, shape index: {}]   ;;  %s3517_s8 = inlined_call_operand.vmem [shape: bf16[128,128], index: 8, kind: input, shape index: {}]   ;;  %s3518_s9 = inlined_call_operand.vmem [shape: f32[1,128], index: 9, kind: input, shape index: {}]   ;;  %s3519_s10 = inlined_call_operand.vmem [shape: f32[1,128], index: 10, kind: input, shape index: {}]   ;;  %s3520_s11 = inlined_call_operand.vmem [shape: f32[1,128], index: 11, kind: input, shape index: {}]   ;;  %s3521_s12 = inlined_call_operand.vmem [shape: bf16[128,512], index: 12, kind: input, shape index: {}]   ;;  %s3522_s13 = inlined_call_operand.vmem [shape: f32[1,512], index: 13, kind: input, shape index: {}]   ;;  %s3523_s14 = inlined_call_operand.vmem [shape: bf16[512,128], index: 14, kind: input, shape index: {}]   ;;  %s3524_s15 = inlined_call_operand.vmem [shape: f32[1,128], index: 15, kind: input, shape index: {}]   ;;  %s3525_s16 = inlined_call_operand.vmem [shape: f32[1,128], index: 16, kind: input, shape index: {}]   ;;  %s3526_s17 = inlined_call_operand.vmem [shape: f32[1,128], index: 17, kind: input, shape index: {}]   ;;  %s3527_s18 = inlined_call_operand.vmem [shape: f32[2,8,128], index: 18, kind: output, shape index: {}]  }
   0x1   :  { %3528 = sst [smem:[#allocation3_spill]] %s3509_s0 }
   0x2   :  { %3529 = sst [smem:[#allocation4_spill]] %s3510_s1 }
   0x3   :  { %3530 = sst [smem:[#allocation5_spill]] %s3511_s2 }
   0x4 LB: > { %s2418_s28 = sadd.s32 4294967295, %s2896_s27   ;;  %p2422_p0 = scmp.ge.s32.totalorder %s2896_s27, 1  ;;  %s2896_s27 = sphi %s2999_s27, %s28_s27  }
   0x5   : > { %p528_p1 = scmp.lt.s32.totalorder %s2896_s27, 3 }
   0x7   : > { %p529_p2 = pnand %p2422_p0, %p528_p1 }
   0x8   : > { %p587_p3 = scmp.lt.s32.totalorder (!%p529_p2), %s2418_s28, 1  ;;  %v2740_v0 = vld [vmem:[%s3515_s6 + $0x4] ss:$12 sps:$4 sm:$0xff] (!%p529_p2)   ;;  %v2898_v1 = vmov (!%p529_p2), 0.0   ;;  %s3531_s20 = sld [smem:[#allocation5_spill]] (!%p529_p2)  ;;  %v2899_v28 = vmov (!%p529_p2), 0   ;;  %v675_v48 = vlaneseq (!%p529_p2) }
   0x9   : > { %532 = sbr.rel (%p529_p2) target bundleno = 3600 (0xe10), region = 92  ;;  %2626 = vmatprep.subr.bf16.mxu1 (!%p529_p2), %v2898_v1  ;;  %818 = vmatprep.subr.bf16.mxu0 (!%p529_p2), %v2740_v0  ;;  %s3532_s2 = sld [smem:[#allocation3_spill]] (!%p529_p2)  ;;  %v2742_v8 = vld [vmem:[%s3515_s6] ss:$12 sps:$4 sm:$0xff] (!%p529_p2)   ;;  %v2743_v9 = vld [vmem:[%s3515_s6 + $0x8] ss:$12 sps:$4 sm:$0xff] (!%p529_p2)  }
   0xa   : > { %s3533_s26 = sld [smem:[#allocation4_spill]] (!%p529_p2)  ;;  %819 = vmatpush1.bf16.msra.mxu0 (!%p529_p2), %v2742_v8  ;;  %2627 = vmatpush3.bf16.msra.mxu1 (!%p529_p2), %v2743_v9  ;;  %v2744_v10 = vld [vmem:[%s3515_s6 + $0x1c] ss:$12 sps:$4 sm:$0xff] (!%p529_p2)   ;;  %v2746_v11 = vld [vmem:[%s3515_s6 + $0x18] ss:$12 sps:$4 sm:$0xff] (!%p529_p2)   ;;  %vm2900_vm0 = vmmov (!%p529_p2), 0  }
   0xb   : > { %2628 = vmatprep.subr.bf16.mxu1 (!%p529_p2), %v2898_v1  ;;  %v2747_v12 = vld [vmem:[%s3515_s6 + $0x20] ss:$12 sps:$4 sm:$0xff] (!%p529_p2)   ;;  %820 = vmatprep.subr.bf16.mxu0 (!%p529_p2), %v2744_v10  ;;  %v2750_v14 = vld [vmem:[%s3515_s6 + $0x30] ss:$12 sps:$4 sm:$0xff] (!%p529_p2)   ;;  %v2751_v15 = vld [vmem:[%s3515_s6 + $0x38] ss:$12 sps:$4 sm:$0xff] (!%p529_p2)  }
   0xc   : > { %v2748_v13 = vld [vmem:[%s3515_s6 + $0x34] ss:$12 sps:$4 sm:$0xff] (!%p529_p2)   ;;  %v2752_v16 = vld [vmem:[%s3515_s6 + $0x4c] ss:$12 sps:$4 sm:$0xff] (!%p529_p2)   ;;  %v2755_v18 = vld [vmem:[%s3515_s6 + $0x50] ss:$12 sps:$4 sm:$0xff] (!%p529_p2)   ;;  %850 = vmatprep.mubr.bf16.mxu0 (!%p529_p2), %v2899_v28  ;;  %2642 = vmatprep.mubr.msk.bf16.mxu1 (!%p529_p2), %vm2900_vm0, %v2898_v1 }
   0xd   : > { %v2754_v17 = vld [vmem:[%s3515_s6 + $0x48] ss:$12 sps:$4 sm:$0xff] (!%p529_p2)   ;;  %v2756_v19 = vld [vmem:[%s3515_s6 + $0x64] ss:$12 sps:$4 sm:$0xff] (!%p529_p2)   ;;  %v2758_v20 = vld [vmem:[%s3515_s6 + $0x60] ss:$12 sps:$4 sm:$0xff] (!%p529_p2)  }
   0xe   : > { %v606_v2 = vld [vmem:[%s3531_s20] sm:$0xff] (!%p529_p2)  ;;  %821 = vmatpush1.bf16.msra.mxu0 (!%p529_p2), %v2746_v11  ;;  %2629 = vmatpush3.bf16.msra.mxu1 (!%p529_p2), %v2747_v12  ;;  %v2759_v21 = vld [vmem:[%s3515_s6 + $0x68] ss:$12 sps:$4 sm:$0xff] (!%p529_p2)   ;;  %v2766_v26 = vld [vmem:[%s3515_s6 + $0x90] ss:$12 sps:$4 sm:$0xff] (!%p529_p2)   ;;  %v3128_v49 = vshrl.u32 (!%p529_p2), %v675_v48, 7 }
   0xf   : > { %2630 = vmatprep.subr.bf16.mxu1 (!%p529_p2), %v2898_v1  ;;  %822 = vmatprep.subr.bf16.mxu0 (!%p529_p2), %v2748_v13  ;;  %v2760_v22 = vld [vmem:[%s3515_s6 + $0x7c] ss:$12 sps:$4 sm:$0xff] (!%p529_p2)   ;;  %v2762_v23 = vld [vmem:[%s3515_s6 + $0x78] ss:$12 sps:$4 sm:$0xff] (!%p529_p2)   ;;  %v2763_v24 = vld [vmem:[%s3515_s6 + $0x80] ss:$12 sps:$4 sm:$0xff] (!%p529_p2)  }
  0x10   : > { %s3535_s28 = smov (!%p587_p3, %s2418_s28), 1  ;;  %v2764_v25 = vld [vmem:[%s3515_s6 + $0x94] ss:$12 sps:$4 sm:$0xff]   ;;  %v2767_v27 = vld [vmem:[%s3515_s6 + $0x98] ss:$12 sps:$4 sm:$0xff]   ;;  %v677_v50 = vsub.s32 0, %v3128_v49 }
  0x11   : > { %s3014_s0 = sshll.u32 %s3535_s28, 3  ;;  %v2768_v29 = vld [vmem:[%s3515_s6 + $0xac] ss:$12 sps:$4 sm:$0xff]   ;;  %v2770_v30 = vld [vmem:[%s3515_s6 + $0xa8] ss:$12 sps:$4 sm:$0xff]   ;;  %v685_v51 = vsub.s32 2, %v3128_v49 }
  0x12   : > { %s590_s23 = scalar_lea.vmem %s3532_s2, %s3014_s0  ;;  %s594_s29 = scalar_lea.vmem %s3533_s26, %s3014_s0  ;;  %823 = vmatpush1.bf16.msra.mxu0 %v2750_v14  ;;  %2631 = vmatpush3.bf16.msra.mxu1 %v2751_v15  ;;  %v2771_v31 = vld [vmem:[%s3515_s6 + $0xb0] ss:$12 sps:$4 sm:$0xff]   ;;  %v2426_v42 = vld [vmem:[%s3513_s4] ss:$0 sm:$0xff]  ;;  %v681_v53 = vsub.s32 1, %v3128_v49  ;;  %vm972_vm1 = vcmask 1043456  }
  0x13   : > { %v603_v3 = vld [vmem:[%s590_s23] sm:$0xff]  ;;  %2632 = vmatprep.subr.bf16.mxu1 %v2898_v1  ;;  %824 = vmatprep.subr.bf16.mxu0 %v2752_v16  ;;  %vm909_vm2 = vcmask 261120   ;;  %s2901_s21 = smov 96   ;;  %s597_s23 = scalar_lea.vmem %s3512_s3, %s3535_s28  ;;  %vm956_vm3 = vcmask 64512  }
  0x14   : > { %v604_v4 = vld [vmem:[%s594_s29] sm:$0xff]  ;;  %s2902_s28 = smov 64   ;;  %s601_s19 = scalar_lea.vmem %s3527_s18, %s3014_s0 }
  0x15   : > { %v605_v5 = vadd.f32 %v604_v4, %v603_v3  ;;  %v2427_v44 = vld [vmem:[%s3514_s5] ss:$0 sm:$0xff] }
  0x16   : > { %825 = vmatpush1.bf16.msra.mxu0 %v2754_v17  ;;  %2633 = vmatpush3.bf16.msra.mxu1 %v2755_v18  ;;  %v673_v52 = vld [vmem:[%s3516_s7] sm:$0x7] }
  0x17   : > { %v3027_v6 = vadd.f32 %v606_v2, %v605_v5  ;;  %2634 = vmatprep.subr.bf16.mxu1 %v2898_v1  ;;  %826 = vmatprep.subr.bf16.mxu0 %v2756_v19  ;;  %v678_v54 = vrot.slane %v673_v52, %v677_v50  ;;  %v686_v55 = vrot.slane %v673_v52, %v685_v51  ;;  %v3171_v14 = vld [vmem:[%s597_s23] ss:$0 sm:$0xff] }
  0x18   : > { %v682_v56 = vrot.slane %v673_v52, %v681_v53 }
  0x19   : > { %610 = vadd.xlane.f32.xlu0 %v3027_v6  ;;  %v614_v7 = vmul.f32 %v3027_v6, %v3027_v6 }
  0x1a   : > { %827 = vmatpush1.bf16.msra.mxu0 %v2758_v20  ;;  %2635 = vmatpush3.bf16.msra.mxu1 %v2759_v21 }
  0x1b   : > { %828 = vmatprep.subr.bf16.mxu0 %v2760_v22  ;;  %2636 = vmatprep.subr.bf16.mxu1 %v2898_v1 }
  0x1d   : > { %615 = vadd.xlane.f32.xlu0 %v614_v7 }
  0x1e   : > { %829 = vmatpush1.bf16.msra.mxu0 %v2762_v23  ;;  %2637 = vmatpush3.bf16.msra.mxu1 %v2763_v24 }
  0x1f   : > { %830 = vmatprep.subr.bf16.mxu0 %v2764_v25  ;;  %2638 = vmatprep.subr.bf16.mxu1 %v2898_v1 }
  0x22   : > { %831 = vmatpush1.bf16.msra.mxu0 %v2766_v26  ;;  %2639 = vmatpush3.bf16.msra.mxu1 %v2767_v27 }
  0x23   : > { %832 = vmatprep.subr.bf16.mxu0 %v2768_v29  ;;  %2640 = vmatprep.subr.bf16.mxu1 %v2898_v1 }
  0x26   : > { %833 = vmatpush1.bf16.msra.mxu0 %v2770_v30  ;;  %2641 = vmatpush3.bf16.msra.mxu1 %v2771_v31 }
  0x27   : > { %2652 = vmatprep.subr.bf16.mxu1 %v2898_v1  ;;  %2646 = vmatprep.subr.bf16.mxu0 %v2898_v1 }
  0xa6   : > { %v611_v32 = vpop.xlane.xlu0 %610 }
  0xa7   : > { %v613_v33 = vmul.f32 0.0078125, %v611_v32 }
  0xa9   : > { %v618_v35 = vmul.f32 %v613_v33, %v613_v33  ;;  %v621_v40 = vsub.f32 %v3027_v6, %v613_v33 }
  0xaa   : > { %v616_v34 = vpop.xlane.xlu0 %615 }
  0xab   : > { %v617_v36 = vmul.f32 0.0078125, %v616_v34 }
  0xad   : > { %v619_v37 = vsub.f32 %v617_v36, %v618_v35 }
  0xaf   : > { %v620_v38 = vmax.f32 %v619_v37, 0.0 }
  0xb1   : > { %v622_v39 = vadd.f32 1e-12, %v620_v38 }
  0xb3   : > { %2860 = vrsqrt.f32 %v622_v39 }
  0xbd   : > { %v2861_v41 = vpop.eup %2860 }
  0xbe   : > { %v624_v43 = vmul.f32 %v2861_v41, %v621_v40 }
  0xc0   : > { %v631_v45 = vmul.f32 %v2426_v42, %v624_v43  ;;  %v2774_v42 = vld [vmem:[%s3517_s8 + $0x10] sm:$0xff]   ;;  %v2775_v43 = vld [vmem:[%s3517_s8 + $0x18] sm:$0xff]  }
  0xc2   : > { %v3120_v46 = vadd.f32 %v2427_v44, %v631_v45 }
  0xc4   : > { %v640_v47 = vpack.c.bf16 %v3120_v46, %v3120_v46 }
  0xc6   : > { %851 = vmatmul.mubr.bf16.vlgmr.msra.gmra.mrb[0].mxu0 %v640_v47  ;;  %2643 = vmatmul.mubr.bf16.vlgmr.msra.gmra.mrb[0].mxu1 %v640_v47 }
  0xc7   : > { %2648 = vmatprep.mubr.msk.bf16.mxu0 %vm2900_vm0, %v2898_v1  ;;  %2654 = vmatprep.mubr.msk.bf16.mxu1 %vm2900_vm0, %v2898_v1 }
 0x199   : > { %v852_v57 = vpop.f32.mrb[0].mxu0  ;;  %v893_v58 = vpop.f32.mrb[0].mxu1 }
 0x19a   : > { %v853_v59 = vadd.f32 %v852_v57, %v678_v54  ;;  %v894_v60 = vadd.f32 %v893_v58, %v686_v55  ;;  %v854_v61 = vpop.f32.mrb[1].mxu0  ;;  %v2644_v62 = vpop.f32.mrb[1].mxu1  ;;  %v2772_v54 = vld [vmem:[%s3517_s8] sm:$0xff]  }
 0x19b   : > { %v855_v63 = vadd.f32 %v854_v61, %v682_v56  ;;  %v856_v0 = vpop.f32.mrb[2].mxu0  ;;  %v896_v2 = vpop.f32.mrb[2].mxu1  ;;  %v2773_v56 = vld [vmem:[%s3517_s8 + $0x8] sm:$0xff]  }
 0x19c   : > { %v3142_v3 = vpack.c.bf16 %v894_v60, %v894_v60  ;;  %v857_v4 = vpop.f32.mrb[3].mxu0  ;;  %v2645_v5 = vpop.f32.mrb[3].mxu1  ;;  %v899_v6 = vmul.f32 0.17677669, %v853_v59 }
 0x19d   : > { %v3144_v7 = vpack.c.bf16 %v855_v63, %v855_v63 }
 0x19e   : > { %v974_v8 = vsel %vm972_vm1, %v3142_v3, 0  ;;  %v3153_v10 = vpack.c.bf16 %v899_v6, %v899_v6 }
 0x19f   : > { %2653 = vmatpush3.bf16.msra.mxu1 %v974_v8  ;;  %1025 = vrot.lane.b32.xlu1 %v3144_v7, %s2901_s21  ;;  %v914_v9 = vsel %vm909_vm2, %v3144_v7, 0 }
 0x1a0   : > { %2647 = vmatpush3.bf16.xpose.msra.mxu0 %v914_v9  ;;  %2664 = vmatprep.subr.bf16.mxu1 %v2898_v1 }
 0x1a1   : > { %2658 = vmatprep.subr.bf16.mxu0 %v2898_v1 }
 0x1a3   : > { %1022 = vrot.lane.b32.xlu1 %v3153_v10, %s2901_s21 }
 0x1a7   : > { %2649 = vmatmul.mubr.msk.bf16.vlgmr.msra.gmra.mrb[4].mxu0 %vm909_vm2, %v3153_v10 }
 0x1a8   : > { %2660 = vmatprep.mubr.msk.bf16.mxu0 %vm2900_vm0, %v2898_v1 }
 0x211   : > { %v1026_v11 = vpop.permute.xlu1 %1025 }
 0x212   : > { %v1031_v12 = vsel %vm909_vm2, %v1026_v11, 0 }
 0x213   : > { %2659 = vmatpush3.bf16.xpose.msra.mxu0 %v1031_v12 }
 0x214   : > { %2670 = vmatprep.subr.bf16.mxu0 %v2898_v1 }
 0x215   : > { %v1023_v13 = vpop.permute.xlu1 %1022 }
 0x21a   : > { %2661 = vmatmul.mubr.msk.bf16.vlgmr.msra.gmra.mrb[8].mxu0 %vm909_vm2, %v1023_v13 }
 0x21b   : > { %2674 = vmatprep.mubr.msk.bf16.mxu0 %vm2900_vm0, %v2898_v1  ;;  %2671 = vmatpush3.bf16.msra.mxu0 %v2774_v42 }
 0x21c   : > { %2672 = vmatprep.subr.bf16.mxu0 %v2898_v1 }
 0x21f   : > { %2673 = vmatpush3.bf16.msra.mxu0 %v2775_v43 }
 0x220   : > { %2686 = vmatprep.subr.bf16.mxu0 %v2898_v1 }
 0x27a   : > { %v950_v15 = vpop.f32.mrb[4].mxu0 }
 0x27b   : > { %v951_v16 = vadd.f32 %v3171_v14, %v950_v15  ;;  %v2650_v17 = vpop.f32.mrb[5].mxu0 }
 0x27c   : > { %v953_v18 = vpop.f32.mrb[6].mxu0 }
 0x27d   : > { %v2651_v19 = vpop.f32.mrb[7].mxu0  ;;  %v957_v20 = vsel %vm956_vm3, %v951_v16, -inf }
 0x27e   : > { %958 = vmax.xlane.f32.xlu0 %v957_v20 }
 0x2ed   : > { %v1067_v21 = vpop.f32.mrb[8].mxu0 }
 0x2ee   : > { %v1068_v22 = vadd.f32 %v3171_v14, %v1067_v21  ;;  %v2662_v23 = vpop.f32.mrb[9].mxu0 }
 0x2ef   : > { %v1070_v24 = vpop.f32.mrb[10].mxu0 }
 0x2f0   : > { %v2663_v25 = vpop.f32.mrb[11].mxu0  ;;  %v1073_v26 = vsel %vm956_vm3, %v1068_v22, -inf }
 0x2f1   : > { %1074 = vmax.xlane.f32.xlu1 %v1073_v26 }
 0x302   : > { %1249 = vrot.lane.b32.xlu1 %v3153_v10, %s2902_s28 }
 0x30b   : > { %v959_v27 = vpop.xlane.xlu0 %958 }
 0x30c   : > { %v960_v29 = vsub.f32 %v951_v16, %v959_v27 }
 0x30e   : > { %v961_v30 = vmul.f32 1.442695, %v960_v29 }
 0x310   : > { %2862 = vpow2.f32 %v961_v30 }
 0x31a   : > { %v2863_v31 = vpop.eup %2862 }
 0x31b   : > { %v963_v32 = vsel %vm956_vm3, %v2863_v31, 0.0 }
 0x31c   : > { %964 = vadd.xlane.f32.xlu0 %v963_v32 }
 0x37e   : > { %v1075_v33 = vpop.xlane.xlu1 %1074 }
 0x37f   : > { %v1076_v34 = vsub.f32 %v1068_v22, %v1075_v33 }
 0x381   : > { %v1077_v35 = vmul.f32 1.442695, %v1076_v34 }
 0x382   : > { %v1250_v8 = vpop.permute.xlu1 %1249 }
 0x383   : > { %2864 = vpow2.f32 %v1077_v35 }
 0x38d   : > { %v2865_v36 = vpop.eup %2864 }
 0x38e   : > { %v1079_v37 = vsel %vm956_vm3, %v2865_v36, 0.0 }
 0x38f   : > { %1080 = vadd.xlane.f32.xlu0 %v1079_v37 }
 0x3a5   : > { %1086 = vrot.lane.b32.xlu0 %v3142_v3, %s2901_s21  ;;  %s2903_s21 = smov 32  }
 0x3a9   : > { %v965_v38 = vpop.xlane.xlu0 %964  ;;  %1251 = vrot.lane.b32.xlu0 %v3144_v7, %s2902_s28 }
 0x3aa   : > { %2866 = vrcp.f32 %v965_v38 }
 0x3b4   : > { %v2867_v39 = vpop.eup %2866 }
 0x3b5   : > { %v967_v40 = vmul.f32 %v2867_v39, %v2863_v31 }
 0x3b7   : > { %v968_v41 = vpack.c.bf16 %v967_v40, %v967_v40  ;;  %v2777_v40 = vld [vmem:[%s3517_s8 + $0x28] sm:$0xff]  }
 0x3b9   : > { %2655 = vmatmul.mubr.msk.bf16.vlgmr.msra.gmra.mrb[4].mxu1 %vm956_vm3, %v968_v41 }
 0x3ba   : > { %2666 = vmatprep.mubr.msk.bf16.mxu1 %vm2900_vm0, %v2898_v1 }
 0x41c   : > { %v1081_v44 = vpop.xlane.xlu0 %1080 }
 0x41d   : > { %2868 = vrcp.f32 %v1081_v44 }
 0x420   : > { %v1087_v45 = vpop.permute.xlu0 %1086 }
 0x421   : > { %v1092_v47 = vsel %vm972_vm1, %v1087_v45, 0 }
 0x422   : > { %2665 = vmatpush3.bf16.msra.mxu1 %v1092_v47 }
 0x423   : > { %2678 = vmatprep.subr.bf16.mxu1 %v2898_v1 }
 0x424   : > { %v1252_v62 = vpop.permute.xlu0 %1251 }
 0x425   : > { %v1257_v5 = vsel %vm909_vm2, %v1252_v62, 0 }
 0x427   : > { %v2869_v48 = vpop.eup %2868 }
 0x428   : > { %v1083_v52 = vmul.f32 %v2869_v48, %v2865_v36 }
 0x42a   : > { %v1084_v55 = vpack.c.bf16 %v1083_v52, %v1083_v52 }
 0x42c   : > { %2667 = vmatmul.mubr.msk.bf16.vlgmr.msra.gmra.mrb[8].mxu1 %vm956_vm3, %v1084_v55 }
 0x42d   : > { %2679 = vmatpush3.bf16.msra.mxu1 %v2772_v54  ;;  %2682 = vmatprep.mubr.msk.bf16.mxu1 %vm2900_vm0, %v2898_v1 }
 0x42e   : > { %2680 = vmatprep.subr.bf16.mxu1 %v2898_v1 }
 0x431   : > { %2681 = vmatpush3.bf16.msra.mxu1 %v2773_v56 }
 0x432   : > { %2692 = vmatprep.subr.bf16.mxu1 %v2898_v1 }
 0x48c   : > { %v1010_v57 = vpop.f32.mrb[4].mxu1 }
 0x48d   : > { %v1016_v58 = vpack.c.bf16 %v1010_v57, %v1010_v57  ;;  %v2656_v59 = vpop.f32.mrb[5].mxu1 }
 0x48e   : > { %v1013_v60 = vpop.f32.mrb[6].mxu1 }
 0x48f   : > { %v2657_v61 = vpop.f32.mrb[7].mxu1  ;;  %2683 = vmatmul.mubr.msk.bf16.vlgmr.msra.gmra.mrb[12].mxu1 %vm909_vm2, %v1016_v58 }
 0x490   : > { %2694 = vmatprep.mubr.msk.bf16.mxu1 %vm2900_vm0, %v2898_v1 }
 0x4ff   : > { %v1128_v63 = vpop.f32.mrb[8].mxu1 }
 0x500   : > { %v1134_v0 = vpack.c.bf16 %v1128_v63, %v1128_v63  ;;  %v2668_v2 = vpop.f32.mrb[9].mxu1  ;;  %v2778_v63 = vld [vmem:[%s3517_s8 + $0x30] sm:$0xff]  }
 0x501   : > { %v1131_v4 = vpop.f32.mrb[10].mxu1 }
 0x502   : > { %v2669_v6 = vpop.f32.mrb[11].mxu1  ;;  %2675 = vmatmul.mubr.msk.bf16.vlgmr.msra.gmra.mrb[12].mxu0 %vm909_vm2, %v1134_v0 }
 0x503   : > { %2687 = vmatpush3.bf16.xpose.msra.mxu0 %v1257_v5  ;;  %2688 = vmatprep.mubr.msk.bf16.mxu0 %vm2900_vm0, %v2898_v1 }
 0x504   : > { %2698 = vmatprep.subr.bf16.mxu0 %v2898_v1 }
 0x50a   : > { %2689 = vmatmul.mubr.msk.bf16.vlgmr.msra.gmra.mrb[16].mxu0 %vm909_vm2, %v1250_v8 }
 0x50b   : > { %2702 = vmatprep.mubr.msk.bf16.mxu0 %vm2900_vm0, %v2898_v1 }
 0x562   : > { %v1243_v9 = vpop.f32.mrb[12].mxu1 }
 0x563   : > { %v2684_v11 = vpop.f32.mrb[13].mxu1 }
 0x564   : > { %v1246_v12 = vpop.f32.mrb[14].mxu1 }
 0x565   : > { %v2685_v13 = vpop.f32.mrb[15].mxu1  ;;  %v2779_v12 = vld [vmem:[%s3517_s8 + $0x38] sm:$0xff]  }
 0x5d5   : > { %v1188_v15 = vpop.f32.mrb[12].mxu0 }
 0x5d6   : > { %v3220_v16 = vadd.f32 %v1243_v9, %v1188_v15  ;;  %v2676_v17 = vpop.f32.mrb[13].mxu0 }
 0x5d7   : > { %v1191_v18 = vpop.f32.mrb[14].mxu0 }
 0x5d8   : > { %v2677_v19 = vpop.f32.mrb[15].mxu0  ;;  %v2780_v18 = vld [vmem:[%s3521_s12] ss:$16 sps:$4 sm:$0xff]  }
 0x5d9   : > { %v2782_v19 = vld [vmem:[%s3521_s12 + $0x4] ss:$16 sps:$4 sm:$0xff]  }
 0x5dd   : > { %v1293_v20 = vpop.f32.mrb[16].mxu0 }
 0x5de   : > { %v1294_v21 = vadd.f32 %v3171_v14, %v1293_v20  ;;  %v2690_v22 = vpop.f32.mrb[17].mxu0  ;;  %v2783_v20 = vld [vmem:[%s3521_s12 + $0x8] ss:$16 sps:$4 sm:$0xff]  }
 0x5df   : > { %v1296_v23 = vpop.f32.mrb[18].mxu0  ;;  %v2473_v22 = vld [vmem:[%s3518_s9] ss:$0 sm:$0xff] }
 0x5e0   : > { %v2691_v24 = vpop.f32.mrb[19].mxu0  ;;  %v1299_v25 = vsel %vm956_vm3, %v1294_v21, -inf }
 0x5e1   : > { %1300 = vmax.xlane.f32.xlu0 %v1299_v25 }
 0x5f7   : > { %1311 = vrot.lane.b32.xlu0 %v3142_v3, %s2902_s28 }
 0x5fb   : > { %1420 = vrot.lane.b32.xlu0 %v3153_v10, %s2903_s21  ;;  %v2776_v10 = vld [vmem:[%s3517_s8 + $0x20] sm:$0xff]  }
 0x5fc   : > { %2699 = vmatpush3.bf16.msra.mxu0 %v2776_v10  ;;  %v2794_v10 = vld [vmem:[%s3521_s12 + $0x44] ss:$16 sps:$4 sm:$0xff]  }
 0x5fd   : > { %2700 = vmatprep.subr.bf16.mxu0 %v2898_v1 }
 0x600   : > { %2701 = vmatpush3.bf16.msra.mxu0 %v2777_v40  ;;  %v2806_v40 = vld [vmem:[%s3521_s12 + $0x84] ss:$16 sps:$4 sm:$0xff]  }
 0x601   : > { %2712 = vmatprep.subr.bf16.mxu0 %v2898_v1 }
 0x66e   : > { %v1301_v26 = vpop.xlane.xlu0 %1300 }
 0x66f   : > { %v1302_v27 = vsub.f32 %v1294_v21, %v1301_v26  ;;  %v2785_v21 = vld [vmem:[%s3521_s12 + $0xc] ss:$16 sps:$4 sm:$0xff]  }
 0x671   : > { %v1303_v29 = vmul.f32 1.442695, %v1302_v27 }
 0x672   : > { %v1312_v30 = vpop.permute.xlu0 %1311 }
 0x673   : > { %2870 = vpow2.f32 %v1303_v29  ;;  %v1317_v31 = vsel %vm972_vm1, %v1312_v30, 0 }
 0x674   : > { %2693 = vmatpush3.bf16.msra.mxu1 %v1317_v31  ;;  %v2786_v31 = vld [vmem:[%s3521_s12 + $0x20] ss:$16 sps:$4 sm:$0xff]  }
 0x675   : > { %2706 = vmatprep.subr.bf16.mxu1 %v2898_v1 }
 0x67d   : > { %v2871_v32 = vpop.eup %2870 }
 0x67e   : > { %v1305_v33 = vsel %vm956_vm3, %v2871_v32, 0.0 }
 0x67f   : > { %1306 = vadd.xlane.f32.xlu1 %v1305_v33  ;;  %v2789_v33 = vld [vmem:[%s3521_s12 + $0x28] ss:$16 sps:$4 sm:$0xff]  }
 0x690   : > { %1422 = vrot.lane.b32.xlu1 %v3144_v7, %s2903_s21  ;;  %v1421_v7 = vpop.permute.xlu0 %1420 }
 0x70c   : > { %v1307_v34 = vpop.xlane.xlu1 %1306 }
 0x70d   : > { %2872 = vrcp.f32 %v1307_v34  ;;  %v2797_v34 = vld [vmem:[%s3521_s12 + $0x4c] ss:$16 sps:$4 sm:$0xff]  }
 0x710   : > { %v1423_v37 = vpop.permute.xlu1 %1422 }
 0x711   : > { %v1428_v39 = vsel %vm909_vm2, %v1423_v37, 0  ;;  %v2800_v37 = vld [vmem:[%s3521_s12 + $0x64] ss:$16 sps:$4 sm:$0xff]  }
 0x717   : > { %v2873_v35 = vpop.eup %2872 }
 0x718   : > { %v1309_v36 = vmul.f32 %v2873_v35, %v2871_v32  ;;  %v2788_v32 = vld [vmem:[%s3521_s12 + $0x24] ss:$16 sps:$4 sm:$0xff]   ;;  %v2792_v35 = vld [vmem:[%s3521_s12 + $0x40] ss:$16 sps:$4 sm:$0xff]  }
 0x71a   : > { %v1310_v38 = vpack.c.bf16 %v1309_v36, %v1309_v36  ;;  %v2795_v36 = vld [vmem:[%s3521_s12 + $0x48] ss:$16 sps:$4 sm:$0xff]  }
 0x71c   : > { %2695 = vmatmul.mubr.msk.bf16.vlgmr.msra.gmra.mrb[16].mxu1 %vm956_vm3, %v1310_v38  ;;  %v2803_v38 = vld [vmem:[%s3521_s12 + $0x6c] ss:$16 sps:$4 sm:$0xff]  }
 0x71d   : > { %2707 = vmatpush3.bf16.xpose.msra.mxu1 %v1428_v39  ;;  %2708 = vmatprep.mubr.msk.bf16.mxu1 %vm2900_vm0, %v2898_v1  ;;  %v2798_v39 = vld [vmem:[%s3521_s12 + $0x60] ss:$16 sps:$4 sm:$0xff]  }
 0x71e   : > { %2718 = vmatprep.subr.bf16.mxu1 %v2898_v1 }
 0x724   : > { %2709 = vmatmul.mubr.msk.bf16.vlgmr.msra.gmra.mrb[20].mxu1 %vm909_vm2, %v1421_v7  ;;  %v2801_v7 = vld [vmem:[%s3521_s12 + $0x68] ss:$16 sps:$4 sm:$0xff]  }
 0x725   : > { %2722 = vmatprep.mubr.msk.bf16.mxu1 %vm2900_vm0, %v2898_v1  ;;  %2719 = vmatpush3.bf16.msra.mxu1 %v2778_v63 }
 0x726   : > { %2720 = vmatprep.subr.bf16.mxu1 %v2898_v1 }
 0x729   : > { %2721 = vmatpush3.bf16.msra.mxu1 %v2779_v12 }
 0x72a   : > { %1888 = vmatprep.subr.bf16.mxu1 %v2785_v21  ;;  %v2834_v21 = vld [vmem:[%s3523_s14 + $0x8] sm:$0xff]  }
 0x7ef   : > { %v1353_v41 = vpop.f32.mrb[16].mxu1 }
 0x7f0   : > { %v1359_v42 = vpack.c.bf16 %v1353_v41, %v1353_v41  ;;  %v2696_v43 = vpop.f32.mrb[17].mxu1  ;;  %v2804_v41 = vld [vmem:[%s3521_s12 + $0x80] ss:$16 sps:$4 sm:$0xff]  }
 0x7f1   : > { %v1356_v44 = vpop.f32.mrb[18].mxu1  ;;  %v2807_v43 = vld [vmem:[%s3521_s12 + $0x88] ss:$16 sps:$4 sm:$0xff]  }
 0x7f2   : > { %v2697_v45 = vpop.f32.mrb[19].mxu1  ;;  %2703 = vmatmul.mubr.msk.bf16.vlgmr.msra.gmra.mrb[20].mxu0 %vm909_vm2, %v1359_v42  ;;  %v2809_v42 = vld [vmem:[%s3521_s12 + $0x8c] ss:$16 sps:$4 sm:$0xff]   ;;  %v2812_v44 = vld [vmem:[%s3521_s12 + $0xa4] ss:$16 sps:$4 sm:$0xff]  }
 0x7f3   : > { %2714 = vmatprep.mubr.msk.bf16.mxu0 %vm2900_vm0, %v2898_v1  ;;  %v2815_v45 = vld [vmem:[%s3521_s12 + $0xac] ss:$16 sps:$4 sm:$0xff]  }
 0x7f7   : > { %v1464_v47 = vpop.f32.mrb[20].mxu1 }
 0x7f8   : > { %v1465_v48 = vadd.f32 %v3171_v14, %v1464_v47  ;;  %v2710_v52 = vpop.f32.mrb[21].mxu1  ;;  %v2810_v47 = vld [vmem:[%s3521_s12 + $0xa0] ss:$16 sps:$4 sm:$0xff]  }
 0x7f9   : > { %v1467_v54 = vpop.f32.mrb[22].mxu1  ;;  %v2818_v52 = vld [vmem:[%s3521_s12 + $0xc4] ss:$16 sps:$4 sm:$0xff]  }
 0x7fa   : > { %v2711_v55 = vpop.f32.mrb[23].mxu1  ;;  %v1470_v56 = vsel %vm956_vm3, %v1465_v48, -inf  ;;  %v2821_v54 = vld [vmem:[%s3521_s12 + $0xcc] ss:$16 sps:$4 sm:$0xff]  }
 0x7fb   : > { %1471 = vmax.xlane.f32.xlu0 %v1470_v56  ;;  %v2816_v55 = vld [vmem:[%s3521_s12 + $0xc0] ss:$16 sps:$4 sm:$0xff]   ;;  %v2819_v56 = vld [vmem:[%s3521_s12 + $0xc8] ss:$16 sps:$4 sm:$0xff]  }
 0x811   : > { %1482 = vrot.lane.b32.xlu0 %v3142_v3, %s2903_s21 }
 0x888   : > { %v1472_v57 = vpop.xlane.xlu0 %1471 }
 0x889   : > { %v1473_v58 = vsub.f32 %v1465_v48, %v1472_v57  ;;  %v2813_v48 = vld [vmem:[%s3521_s12 + $0xa8] ss:$16 sps:$4 sm:$0xff]   ;;  %v2824_v57 = vld [vmem:[%s3521_s12 + $0xe4] ss:$16 sps:$4 sm:$0xff]  }
 0x88b   : > { %v1474_v59 = vmul.f32 1.442695, %v1473_v58  ;;  %v2827_v58 = vld [vmem:[%s3521_s12 + $0xec] ss:$16 sps:$4 sm:$0xff]  }
 0x88c   : > { %v1483_v60 = vpop.permute.xlu0 %1482 }
 0x88d   : > { %2874 = vpow2.f32 %v1474_v59  ;;  %v1488_v61 = vsel %vm972_vm1, %v1483_v60, 0  ;;  %v2822_v59 = vld [vmem:[%s3521_s12 + $0xe0] ss:$16 sps:$4 sm:$0xff]   ;;  %v2825_v60 = vld [vmem:[%s3521_s12 + $0xe8] ss:$16 sps:$4 sm:$0xff]  }
 0x88e   : > { %2713 = vmatpush3.bf16.msra.mxu0 %v1488_v61 }
 0x88f   : > { %1847 = vmatprep.subr.bf16.mxu0 %v2782_v19  ;;  %v2832_v19 = vld [vmem:[%s3523_s14 + $0x48] sm:$0xff]  }
 0x897   : > { %v2875_v62 = vpop.eup %2874 }
 0x898   : > { %v1476_v14 = vsel %vm956_vm3, %v2875_v62, 0.0 }
 0x899   : > { %1477 = vadd.xlane.f32.xlu1 %v1476_v14 }
 0x8c5   : > { %v1413_v3 = vpop.f32.mrb[20].mxu0 }
 0x8c6   : > { %v1419_v0 = vadd.f32 %v1413_v3, %v3220_v16  ;;  %v2704_v2 = vpop.f32.mrb[21].mxu0 }
 0x8c7   : > { %v1416_v4 = vpop.f32.mrb[22].mxu0 }
 0x8c8   : > { %v2705_v5 = vpop.f32.mrb[23].mxu0 }
 0x926   : > { %v1478_v6 = vpop.xlane.xlu1 %1477 }
 0x927   : > { %2876 = vrcp.f32 %v1478_v6 }
 0x931   : > { %v2877_v8 = vpop.eup %2876 }
 0x932   : > { %v1480_v9 = vmul.f32 %v2877_v8, %v2875_v62  ;;  %v2474_v8 = vld [vmem:[%s3519_s10] ss:$0 sm:$0xff] }
 0x934   : > { %v1481_v11 = vpack.c.bf16 %v1480_v9, %v1480_v9 }
 0x936   : > { %2715 = vmatmul.mubr.msk.bf16.vlgmr.msra.gmra.mrb[24].mxu0 %vm956_vm3, %v1481_v11  ;;  %v2475_v11 = vld [vmem:[%s3520_s11] ss:$0 sm:$0xff] }
 0x937   : > { %1879 = vmatprep.mubr.bf16.mxu0 %v2899_v28  ;;  %1848 = vmatpush1.bf16.msra.mxu0 %v2780_v18  ;;  %v2831_v18 = vld [vmem:[%s3523_s14 + $0x80] sm:$0xff]  }
 0x938   : > { %1849 = vmatprep.subr.bf16.mxu0 %v2788_v32  ;;  %v2845_v32 = vld [vmem:[%s3523_s14 + $0xe0] sm:$0xff]  }
 0x93b   : > { %1850 = vmatpush1.bf16.msra.mxu0 %v2786_v31  ;;  %v2844_v31 = vld [vmem:[%s3523_s14 + $0x60] sm:$0xff]  }
 0x93c   : > { %1851 = vmatprep.subr.bf16.mxu0 %v2794_v10  ;;  %v2848_v10 = vld [vmem:[%s3523_s14 + $0x68] sm:$0xff]  }
 0x93f   : > { %1852 = vmatpush1.bf16.msra.mxu0 %v2792_v35  ;;  %v2850_v35 = vld [vmem:[%s3523_s14 + $0x28] sm:$0xff]  }
 0x940   : > { %1853 = vmatprep.subr.bf16.mxu0 %v2800_v37  ;;  %v2852_v37 = vld [vmem:[%s3523_s14 + $0x70] sm:$0xff]  }
 0x943   : > { %1854 = vmatpush1.bf16.msra.mxu0 %v2798_v39  ;;  %v2854_v39 = vld [vmem:[%s3523_s14 + $0x30] sm:$0xff]  }
 0x944   : > { %1855 = vmatprep.subr.bf16.mxu0 %v2806_v40  ;;  %v2856_v40 = vld [vmem:[%s3523_s14 + $0x78] sm:$0xff]  }
 0x947   : > { %1856 = vmatpush1.bf16.msra.mxu0 %v2804_v41  ;;  %v2857_v41 = vld [vmem:[%s3523_s14 + $0xf8] sm:$0xff]  }
 0x948   : > { %1857 = vmatprep.subr.bf16.mxu0 %v2812_v44  ;;  %v1665_v44 = vld [vmem:[%s3522_s13] sm:$0xf] }
 0x94b   : > { %1858 = vmatpush1.bf16.msra.mxu0 %v2810_v47  ;;  %v1670_v47 = vrot.slane %v1665_v44, %v677_v50 }
 0x94c   : > { %1859 = vmatprep.subr.bf16.mxu0 %v2818_v52  ;;  %v1674_v52 = vrot.slane %v1665_v44, %v681_v53 }
 0x94f   : > { %1860 = vmatpush1.bf16.msra.mxu0 %v2816_v55 }
 0x950   : > { %1861 = vmatprep.subr.bf16.mxu0 %v2824_v57 }
 0x953   : > { %1862 = vmatpush1.bf16.msra.mxu0 %v2822_v59 }
 0xa09   : > { %v1524_v1 = vpop.f32.mrb[24].mxu0 }
 0xa0a   : > { %v1530_v13 = vpack.c.bf16 %v1524_v1, %v1524_v1  ;;  %v2716_v15 = vpop.f32.mrb[25].mxu0 }
 0xa0b   : > { %v1527_v16 = vpop.f32.mrb[26].mxu0  ;;  %v2828_v15 = vld [vmem:[%s3523_s14 + $0x40] sm:$0xff]  }
 0xa0c   : > { %v2717_v17 = vpop.f32.mrb[27].mxu0  ;;  %2723 = vmatmul.mubr.msk.bf16.vlgmr.msra.gmra.mrb[24].mxu1 %vm909_vm2, %v1530_v13  ;;  %v2829_v16 = vld [vmem:[%s3523_s14 + $0xc0] sm:$0xff]   ;;  %2582 = vmatprep.subr.bf16.mxu0 %v2828_v15 }
 0xa0d   : > { %1920 = vmatprep.mubr.bf16.mxu1 %v2899_v28  ;;  %1889 = vmatpush1.bf16.msra.mxu1 %v2783_v20  ;;  %v2830_v17 = vld [vmem:[%s3523_s14] sm:$0xff]   ;;  %v2833_v20 = vld [vmem:[%s3523_s14 + $0xc8] sm:$0xff]  }
 0xadf   : > { %v1584_v28 = vpop.f32.mrb[24].mxu1 }
 0xae0   : > { %v1590_v23 = vadd.f32 %v1584_v28, %v1419_v0  ;;  %v2724_v24 = vpop.f32.mrb[25].mxu1  ;;  %v2835_v28 = vld [vmem:[%s3523_s14 + $0x88] sm:$0xff]  }
 0xae1   : > { %v1587_v25 = vpop.f32.mrb[26].mxu1  ;;  %v2838_v24 = vld [vmem:[%s3523_s14 + $0x10] sm:$0xff]  }
 0xae2   : > { %v1598_v26 = vadd.f32 %v2473_v22, %v1590_v23  ;;  %v2725_v27 = vpop.f32.mrb[27].mxu1  ;;  %v2836_v22 = vld [vmem:[%s3523_s14 + $0x50] sm:$0xff]  }
 0xae3   : > { %v2837_v23 = vld [vmem:[%s3523_s14 + $0xd0] sm:$0xff]   ;;  %v2841_v27 = vld [vmem:[%s3523_s14 + $0xd8] sm:$0xff]  }
 0xae4   : > { %v3286_v29 = vadd.f32 %v1598_v26, %v3120_v46  ;;  %v2791_v46 = vld [vmem:[%s3521_s12 + $0x2c] ss:$16 sps:$4 sm:$0xff]   ;;  %v2839_v25 = vld [vmem:[%s3523_s14 + $0x90] sm:$0xff]  }
 0xae5   : > { %1890 = vmatprep.subr.bf16.mxu1 %v2791_v46  ;;  %v2840_v26 = vld [vmem:[%s3523_s14 + $0x58] sm:$0xff]   ;;  %v2847_v46 = vld [vmem:[%s3523_s14 + $0xa0] sm:$0xff]  }
 0xae6   : > { %1602 = vadd.xlane.f32.xlu1 %v3286_v29  ;;  %v1605_v30 = vmul.f32 %v3286_v29, %v3286_v29  ;;  %1891 = vmatpush1.bf16.msra.mxu1 %v2789_v33  ;;  %v2846_v33 = vld [vmem:[%s3523_s14 + $0x20] sm:$0xff]  }
 0xae7   : > { %1892 = vmatprep.subr.bf16.mxu1 %v2797_v34  ;;  %v2849_v34 = vld [vmem:[%s3523_s14 + $0xe8] sm:$0xff]  }
 0xaea   : > { %1606 = vadd.xlane.f32.xlu1 %v1605_v30  ;;  %1893 = vmatpush1.bf16.msra.mxu1 %v2795_v36  ;;  %v2843_v30 = vld [vmem:[%s3523_s14 + $0x98] sm:$0xff]   ;;  %v2851_v36 = vld [vmem:[%s3523_s14 + $0xa8] sm:$0xff]  }
 0xaeb   : > { %1894 = vmatprep.subr.bf16.mxu1 %v2803_v38  ;;  %v2853_v38 = vld [vmem:[%s3523_s14 + $0xf0] sm:$0xff]  }
 0xaee   : > { %1895 = vmatpush1.bf16.msra.mxu1 %v2801_v7  ;;  %v2855_v7 = vld [vmem:[%s3523_s14 + $0xb0] sm:$0xff]  }
 0xaef   : > { %1896 = vmatprep.subr.bf16.mxu1 %v2809_v42  ;;  %v2858_v42 = vld [vmem:[%s3523_s14 + $0x38] sm:$0xff]  }
 0xaf2   : > { %1897 = vmatpush1.bf16.msra.mxu1 %v2807_v43  ;;  %v2859_v43 = vld [vmem:[%s3523_s14 + $0xb8] sm:$0xff]  }
 0xaf3   : > { %1898 = vmatprep.subr.bf16.mxu1 %v2815_v45  ;;  %v1681_v45 = vsub.s32 3, %v3128_v49 }
 0xaf6   : > { %1899 = vmatpush1.bf16.msra.mxu1 %v2813_v48  ;;  %v1678_v48 = vrot.slane %v1665_v44, %v685_v51 }
 0xaf7   : > { %1900 = vmatprep.subr.bf16.mxu1 %v2821_v54  ;;  %v1682_v54 = vrot.slane %v1665_v44, %v1681_v45 }
 0xafa   : > { %1901 = vmatpush1.bf16.msra.mxu1 %v2819_v56 }
 0xafb   : > { %1902 = vmatprep.subr.bf16.mxu1 %v2827_v58 }
 0xafe   : > { %1903 = vmatpush1.bf16.msra.mxu1 %v2825_v60 }
 0xaff   : > { %2604 = vmatprep.subr.bf16.mxu1 %v2829_v16 }
 0xb73   : > { %v1603_v61 = vpop.xlane.xlu1 %1602 }
 0xb74   : > { %v1604_v62 = vmul.f32 0.0078125, %v1603_v61 }
 0xb76   : > { %v1609_v63 = vmul.f32 %v1604_v62, %v1604_v62  ;;  %v1612_v5 = vsub.f32 %v3286_v29, %v1604_v62  ;;  %v2842_v29 = vld [vmem:[%s3523_s14 + $0x18] sm:$0xff]  }
 0xb77   : > { %v1607_v14 = vpop.xlane.xlu1 %1606 }
 0xb78   : > { %v1608_v3 = vmul.f32 0.0078125, %v1607_v14 }
 0xb7a   : > { %v1610_v0 = vsub.f32 %v1608_v3, %v1609_v63 }
 0xb7c   : > { %v1611_v2 = vmax.f32 %v1610_v0, 0.0 }
 0xb7e   : > { %v1613_v4 = vadd.f32 1e-12, %v1611_v2 }
 0xb80   : > { %2878 = vrsqrt.f32 %v1613_v4 }
 0xb8a   : > { %v2879_v6 = vpop.eup %2878 }
 0xb8b   : > { %v1615_v9 = vmul.f32 %v2879_v6, %v1612_v5 }
 0xb8d   : > { %v1622_v12 = vmul.f32 %v2474_v8, %v1615_v9 }
 0xb8f   : > { %v3382_v1 = vadd.f32 %v2475_v11, %v1622_v12 }
 0xb91   : > { %v1632_v13 = vpack.c.bf16 %v3382_v1, %v3382_v1 }
 0xb93   : > { %1880 = vmatmul.mubr.bf16.vlgmr.msra.gmra.mrb[28].mxu0 %v1632_v13  ;;  %1921 = vmatmul.mubr.bf16.vlgmr.msra.gmra.mrb[28].mxu1 %v1632_v13 }
 0xb94   : > { %2583 = vmatpush3.bf16.msra.mxu0 %v2830_v17  ;;  %2605 = vmatpush3.bf16.msra.mxu1 %v2831_v18 }
 0xb95   : > { %2584 = vmatprep.subr.bf16.mxu0 %v2832_v19  ;;  %2606 = vmatprep.subr.bf16.mxu1 %v2833_v20 }
 0xb98   : > { %2585 = vmatpush3.bf16.msra.mxu0 %v2834_v21  ;;  %2607 = vmatpush3.bf16.msra.mxu1 %v2835_v28 }
 0xb99   : > { %2586 = vmatprep.subr.bf16.mxu0 %v2836_v22  ;;  %2608 = vmatprep.subr.bf16.mxu1 %v2837_v23 }
 0xb9c   : > { %2587 = vmatpush3.bf16.msra.mxu0 %v2838_v24  ;;  %2609 = vmatpush3.bf16.msra.mxu1 %v2839_v25 }
 0xb9d   : > { %2588 = vmatprep.subr.bf16.mxu0 %v2840_v26  ;;  %2610 = vmatprep.subr.bf16.mxu1 %v2841_v27 }
 0xba0   : > { %2589 = vmatpush3.bf16.msra.mxu0 %v2842_v29  ;;  %2611 = vmatpush3.bf16.msra.mxu1 %v2843_v30 }
 0xba1   : > { %2590 = vmatprep.subr.bf16.mxu0 %v2844_v31  ;;  %2612 = vmatprep.subr.bf16.mxu1 %v2845_v32 }
 0xba4   : > { %2591 = vmatpush3.bf16.msra.mxu0 %v2846_v33  ;;  %2613 = vmatpush3.bf16.msra.mxu1 %v2847_v46 }
 0xba5   : > { %2592 = vmatprep.subr.bf16.mxu0 %v2848_v10  ;;  %2614 = vmatprep.subr.bf16.mxu1 %v2849_v34 }
 0xba8   : > { %2593 = vmatpush3.bf16.msra.mxu0 %v2850_v35  ;;  %2615 = vmatpush3.bf16.msra.mxu1 %v2851_v36 }
 0xba9   : > { %2594 = vmatprep.subr.bf16.mxu0 %v2852_v37  ;;  %2616 = vmatprep.subr.bf16.mxu1 %v2853_v38 }
 0xbac   : > { %2595 = vmatpush3.bf16.msra.mxu0 %v2854_v39  ;;  %2617 = vmatpush3.bf16.msra.mxu1 %v2855_v7 }
 0xbad   : > { %2596 = vmatprep.subr.bf16.mxu0 %v2856_v40  ;;  %2618 = vmatprep.subr.bf16.mxu1 %v2857_v41  ;;  %v2508_v41 = vld [vmem:[%s3524_s15] ss:$0 sm:$0xff] }
 0xbb0   : > { %2597 = vmatpush3.bf16.msra.mxu0 %v2858_v42  ;;  %2619 = vmatpush3.bf16.msra.mxu1 %v2859_v43 }
 0xc66   : > { %v1881_v55 = vpop.f32.mrb[28].mxu0  ;;  %v1922_v56 = vpop.f32.mrb[28].mxu1 }
 0xc67   : > { %v1882_v57 = vadd.f32 %v1881_v55, %v1670_v47  ;;  %v1923_v58 = vadd.f32 %v1922_v56, %v1678_v48  ;;  %v1883_v59 = vpop.f32.mrb[29].mxu0  ;;  %v1924_v60 = vpop.f32.mrb[29].mxu1 }
 0xc68   : > { %v1884_v61 = vadd.f32 %v1883_v59, %v1674_v52  ;;  %v1925_v62 = vadd.f32 %v1924_v60, %v1682_v54  ;;  %v1885_v14 = vpop.f32.mrb[30].mxu0  ;;  %v1926_v63 = vpop.f32.mrb[30].mxu1 }
 0xc69   : > { %v1929_v3 = vmul.f32 %v1882_v57, %v1882_v57  ;;  %v1931_v0 = vmul.f32 %v1923_v58, %v1923_v58  ;;  %v1886_v50 = vpop.f32.mrb[31].mxu0  ;;  %v1927_v2 = vpop.f32.mrb[31].mxu1 }
 0xc6a   : > { %v1930_v4 = vmul.f32 %v1884_v61, %v1884_v61  ;;  %v1932_v51 = vmul.f32 %v1925_v62, %v1925_v62 }
 0xc6b   : > { %v1933_v5 = vmul.f32 %v1929_v3, %v1882_v57  ;;  %v1935_v49 = vmul.f32 %v1931_v0, %v1923_v58 }
 0xc6c   : > { %v1934_v53 = vmul.f32 %v1930_v4, %v1884_v61  ;;  %v1936_v6 = vmul.f32 %v1932_v51, %v1925_v62  ;;  %v2541_v4 = vld [vmem:[%s3525_s16] ss:$0 sm:$0xff] }
 0xc6d   : > { %v1937_v8 = vmul.f32 0.044715, %v1933_v5  ;;  %v1939_v9 = vmul.f32 0.044715, %v1935_v49  ;;  %v2542_v51 = vld [vmem:[%s3526_s17] ss:$0 sm:$0xff] }
 0xc6e   : > { %v1938_v11 = vmul.f32 0.044715, %v1934_v53  ;;  %v1940_v12 = vmul.f32 0.044715, %v1936_v6 }
 0xc6f   : > { %v1941_v13 = vadd.f32 %v1937_v8, %v1882_v57  ;;  %v1943_v15 = vadd.f32 %v1939_v9, %v1923_v58 }
 0xc70   : > { %v1942_v16 = vadd.f32 %v1938_v11, %v1884_v61  ;;  %v1944_v17 = vadd.f32 %v1940_v12, %v1925_v62 }
 0xc71   : > { %v1945_v18 = vmul.f32 0.7978846, %v1941_v13  ;;  %v1947_v19 = vmul.f32 0.7978846, %v1943_v15 }
 0xc72   : > { %v1946_v20 = vmul.f32 0.7978846, %v1942_v16  ;;  %v1948_v21 = vmul.f32 0.7978846, %v1944_v17 }
 0xc73   : > { %2880 = vtanh.f32 %v1945_v18 }
 0xc74   : > { %2882 = vtanh.f32 %v1947_v19 }
 0xc75   : > { %2884 = vtanh.f32 %v1946_v20 }
 0xc76   : > { %2886 = vtanh.f32 %v1948_v21 }
 0xc7d   : > { %v2881_v28 = vpop.eup %2880 }
 0xc7e   : > { %v2883_v22 = vpop.eup %2882  ;;  %v1953_v23 = vadd.f32 1.0, %v2881_v28 }
 0xc7f   : > { %v2885_v24 = vpop.eup %2884  ;;  %v1955_v25 = vadd.f32 1.0, %v2883_v22 }
 0xc80   : > { %v2887_v26 = vpop.eup %2886  ;;  %v1954_v27 = vadd.f32 1.0, %v2885_v24  ;;  %v1957_v29 = vmul.f32 0.5, %v1953_v23 }
 0xc81   : > { %v1956_v30 = vadd.f32 1.0, %v2887_v26  ;;  %v1959_v31 = vmul.f32 0.5, %v1955_v25 }
 0xc82   : > { %v1958_v32 = vmul.f32 0.5, %v1954_v27  ;;  %v1961_v46 = vmul.f32 %v1957_v29, %v1882_v57 }
 0xc83   : > { %v1960_v33 = vmul.f32 0.5, %v1956_v30  ;;  %v1963_v34 = vmul.f32 %v1959_v31, %v1923_v58 }
 0xc84   : > { %v1962_v10 = vmul.f32 %v1958_v32, %v1884_v61  ;;  %v1965_v38 = vpack.c.bf16 %v1961_v46, %v1961_v46 }
 0xc85   : > { %v1964_v35 = vmul.f32 %v1960_v33, %v1925_v62  ;;  %v1967_v39 = vpack.c.bf16 %v1963_v34, %v1963_v34 }
 0xc86   : > { %v1966_v36 = vpack.c.bf16 %v1962_v10, %v1962_v10 }
 0xc87   : > { %v1968_v37 = vpack.c.bf16 %v1964_v35, %v1964_v35 }
 0xc88   : > { %2264 = vmatprep.mubr.bf16.mxu0 %v1966_v36 }
 0xc89   : > { %2304 = vmatprep.mubr.bf16.mxu1 %v1968_v37  ;;  %2265 = vmatmul.mubr.bf16.vlgmr.msra.gmra.mrb[32].mxu0 %v1965_v38 }
 0xc8a   : > { %2305 = vmatmul.mubr.bf16.vlgmr.msra.gmra.mrb[32].mxu1 %v1967_v39 }
 0xd5c   : > { %v2598_v7 = vpop.f32.mrb[32].mxu0 }
 0xd5d   : > { %v2620_v40 = vpop.f32.mrb[32].mxu1  ;;  %v2599_v42 = vpop.f32.mrb[33].mxu0 }
 0xd5e   : > { %v2600_v43 = vadd.f32 %v2599_v42, %v2598_v7  ;;  %v2621_v44 = vpop.f32.mrb[33].mxu1  ;;  %v2601_v45 = vpop.f32.mrb[34].mxu0 }
 0xd5f   : > { %v2622_v47 = vadd.f32 %v2621_v44, %v2620_v40  ;;  %v2623_v48 = vpop.f32.mrb[34].mxu1  ;;  %v2602_v52 = vpop.f32.mrb[35].mxu0 }
 0xd60   : > { %v2267_v54 = vadd.f32 %v2600_v43, %v2508_v41  ;;  %v2624_v55 = vpop.f32.mrb[35].mxu1 }
 0xd62   : > { %v2307_v56 = vadd.f32 %v2622_v47, %v2267_v54 }
 0xd64   : > { %v2312_v57 = vadd.f32 %v2307_v56, %v3382_v1 }
 0xd66   : > { %2315 = vadd.xlane.f32.xlu0 %v2312_v57  ;;  %v2318_v58 = vmul.f32 %v2312_v57, %v2312_v57 }
 0xd68   : > { %2319 = vadd.xlane.f32.xlu1 %v2318_v58 }
 0xdf3   : > { %v2316_v59 = vpop.xlane.xlu0 %2315 }
 0xdf4   : > { %v2317_v60 = vmul.f32 0.0078125, %v2316_v59 }
 0xdf5   : > { %v2320_v61 = vpop.xlane.xlu1 %2319 }
 0xdf6   : > { %v2322_v62 = vmul.f32 %v2317_v60, %v2317_v60  ;;  %v2321_v14 = vmul.f32 0.0078125, %v2320_v61  ;;  %v2325_v50 = vsub.f32 %v2312_v57, %v2317_v60 }
 0xdf8   : > { %v2323_v63 = vsub.f32 %v2321_v14, %v2322_v62 }
 0xdfa   : > { %v2324_v3 = vmax.f32 %v2323_v63, 0.0 }
 0xdfc   : > { %v2326_v0 = vadd.f32 1e-12, %v2324_v3 }
 0xdfe   : > { %2888 = vrsqrt.f32 %v2326_v0 }
 0xe08   : > { %v2889_v2 = vpop.eup %2888 }
 0xe09   : > { %v2328_v1 = vmul.f32 %v2889_v2, %v2325_v50 }
 0xe0b   : > { %v2335_v5 = vmul.f32 %v2541_v4, %v2328_v1 }
 0xe0d   : > { %v2342_v49 = vadd.f32 %v2542_v51, %v2335_v5 }
 0xe0f   : > { %2343 = vst [vmem:[%s601_s19] sm:$0xff] %v2342_v49 }
 0xe10 PF: > { %s28_s27 = sadd.s32 1, %s2896_s27  }
 0xe11   : > { %p25_p4 = scmp.ge.s32.totalorder %s28_s27, 4  }
 0xe13   :  { %27 = sbr.rel (!%p25_p4) target bundleno = 4 (0x4), region = 128 }

// kernel: biencoder_forward.4
= control target key start
LH: loop header
LB: loop body
LE: loop exit
PB: predicated region body
PF: predicated region fallthrough
CT: control target
= control target key end

     0   :  { %s4445_s27 = smov 0   ;;  %s5379_s0 = inlined_call_operand.vmem [shape: f32[4,16,128], index: 0, kind: input, shape index: {}]   ;;  %s5380_s1 = inlined_call_operand.vmem [shape: f32[4,16,128], index: 1, kind: input, shape index: {}]   ;;  %s5381_s2 = inlined_call_operand.vmem [shape: f32[1,16,128], index: 2, kind: input, shape index: {}]   ;;  %s5382_s3 = inlined_call_operand.vmem [shape: f32[4,1,16], index: 3, kind: input, shape index: {}]   ;;  %s5383_s4 = inlined_call_operand.vmem [shape: f32[1,128], index: 4, kind: input, shape index: {}]   ;;  %s5384_s5 = inlined_call_operand.vmem [shape: f32[1,128], index: 5, kind: input, shape index: {}]   ;;  %s5385_s6 = inlined_call_operand.vmem [shape: bf16[128,384], index: 6, kind: input, shape index: {}]   ;;  %s5386_s7 = inlined_call_operand.vmem [shape: f32[1,384], index: 7, kind: input, shape index: {}]   ;;  %s5387_s8 = inlined_call_operand.vmem [shape: bf16[128,128], index: 8, kind: input, shape index: {}]   ;;  %s5388_s9 = inlined_call_operand.vmem [shape: f32[1,128], index: 9, kind: input, shape index: {}]   ;;  %s5389_s10 = inlined_call_operand.vmem [shape: f32[1,128], index: 10, kind: input, shape index: {}]   ;;  %s5390_s11 = inlined_call_operand.vmem [shape: f32[1,128], index: 11, kind: input, shape index: {}]   ;;  %s5391_s12 = inlined_call_operand.vmem [shape: bf16[128,512], index: 12, kind: input, shape index: {}]   ;;  %s5392_s13 = inlined_call_operand.vmem [shape: f32[1,512], index: 13, kind: input, shape index: {}]   ;;  %s5393_s14 = inlined_call_operand.vmem [shape: bf16[512,128], index: 14, kind: input, shape index: {}]   ;;  %s5394_s15 = inlined_call_operand.vmem [shape: f32[1,128], index: 15, kind: input, shape index: {}]   ;;  %s5395_s16 = inlined_call_operand.vmem [shape: f32[1,128], index: 16, kind: input, shape index: {}]   ;;  %s5396_s17 = inlined_call_operand.vmem [shape: f32[1,128], index: 17, kind: input, shape index: {}]   ;;  %s5397_s18 = inlined_call_operand.vmem [shape: f32[4,16,128], index: 18, kind: output, shape index: {}]  }
   0x1   :  { %5400 = sst [smem:[#allocation4_spill]] %s5379_s0 }
   0x2   :  { %5401 = sst [smem:[#allocation5_spill]] %s5380_s1 }
   0x3   :  { %5402 = sst [smem:[#allocation6_spill]] %s5381_s2 }
   0x4 LB: > { %5403 = sst [smem:[#allocation3_spill]] %s4342_s27  ;;  %s3611_s28 = sadd.s32 4294967295, %s4342_s27   ;;  %s4342_s27 = sphi %s4445_s27, %s28_s27  }
   0x5   : > { %p3615_p0 = scmp.ge.s32.totalorder %s4342_s27, 1  ;;  %p536_p1 = scmp.lt.s32.totalorder %s4342_s27, 3 }
   0x7   : > { %p537_p2 = pnand %p3615_p0, %p536_p1 }
   0x8   : > { %s3616_s29 = sshll.u32 (!%p537_p2), %s3611_s28, 1  ;;  %s5404_s1 = sld [smem:[#allocation6_spill]] (!%p537_p2)  ;;  %v4088_v12 = vld [vmem:[%s5385_s6 + $0x4] ss:$12 sps:$4 sm:$0xff] (!%p537_p2)   ;;  %v4090_v13 = vld [vmem:[%s5385_s6] ss:$12 sps:$4 sm:$0xff] (!%p537_p2)  }
   0x9   : > { %540 = sbr.rel (%p537_p2) target bundleno = 5480 (0x1568), region = 92  ;;  %p603_p3 = scmp.lt.s32.totalorder (!%p537_p2), %s3616_s29, 3  ;;  %907 = vmatprep.subr.bf16.mxu0 (!%p537_p2), %v4088_v12  ;;  %v4091_v14 = vld [vmem:[%s5385_s6 + $0x1c] ss:$12 sps:$4 sm:$0xff] (!%p537_p2)   ;;  %v4093_v15 = vld [vmem:[%s5385_s6 + $0x18] ss:$12 sps:$4 sm:$0xff] (!%p537_p2)  }
   0xa   : > { %s5405_s22 = sld [smem:[#allocation4_spill]] (!%p537_p2)  ;;  %s5406_s25 = sld [smem:[#allocation5_spill]] (!%p537_p2)  ;;  %908 = vmatpush1.bf16.msra.mxu0 (!%p537_p2), %v4090_v13  ;;  %v4094_v16 = vld [vmem:[%s5385_s6 + $0x34] ss:$12 sps:$4 sm:$0xff] (!%p537_p2)   ;;  %v4096_v17 = vld [vmem:[%s5385_s6 + $0x30] ss:$12 sps:$4 sm:$0xff] (!%p537_p2)  }
   0xb   : > { %909 = vmatprep.subr.bf16.mxu0 (!%p537_p2), %v4091_v14  ;;  %v4097_v18 = vld [vmem:[%s5385_s6 + $0x4c] ss:$12 sps:$4 sm:$0xff] (!%p537_p2)   ;;  %v4099_v19 = vld [vmem:[%s5385_s6 + $0x48] ss:$12 sps:$4 sm:$0xff] (!%p537_p2)   ;;  %v4100_v20 = vld [vmem:[%s5385_s6 + $0x64] ss:$12 sps:$4 sm:$0xff] (!%p537_p2)  }
   0xc   : > { %v4102_v21 = vld [vmem:[%s5385_s6 + $0x60] ss:$12 sps:$4 sm:$0xff] (!%p537_p2)   ;;  %v4103_v22 = vld [vmem:[%s5385_s6 + $0x7c] ss:$12 sps:$4 sm:$0xff] (!%p537_p2)   ;;  %v4105_v23 = vld [vmem:[%s5385_s6 + $0x78] ss:$12 sps:$4 sm:$0xff] (!%p537_p2)  }
   0xd   : > { %v4106_v24 = vld [vmem:[%s5385_s6 + $0x94] ss:$12 sps:$4 sm:$0xff] (!%p537_p2)   ;;  %v4344_v25 = vmov (!%p537_p2), 0   ;;  %v4108_v26 = vld [vmem:[%s5385_s6 + $0x90] ss:$12 sps:$4 sm:$0xff] (!%p537_p2)   ;;  %vm4346_vm0 = vmmov (!%p537_p2), 0  }
   0xe   : > { %v641_v0 = vld [vmem:[%s5404_s1] sm:$0xff] (!%p537_p2)  ;;  %v642_v1 = vld [vmem:[%s5404_s1 + $0x8] sm:$0xff] (!%p537_p2)  ;;  %910 = vmatpush1.bf16.msra.mxu0 (!%p537_p2), %v4093_v15  ;;  %939 = vmatprep.mubr.bf16.mxu0 (!%p537_p2), %v4344_v25  ;;  %v4115_v42 = vld [vmem:[%s5385_s6 + $0x50] ss:$12 sps:$4 sm:$0xff] (!%p537_p2)   ;;  %vm1025_vm1 = vcmask (!%p537_p2), 261120   ;;  %s4347_s27 = smov (!%p537_p2), 96  }
   0xf   : > { %911 = vmatprep.subr.bf16.mxu0 (!%p537_p2), %v4094_v16  ;;  %v4109_v27 = vld [vmem:[%s5385_s6 + $0xac] ss:$12 sps:$4 sm:$0xff] (!%p537_p2)   ;;  %v4111_v28 = vld [vmem:[%s5385_s6 + $0xa8] ss:$12 sps:$4 sm:$0xff] (!%p537_p2)   ;;  %v4119_v46 = vld [vmem:[%s5385_s6 + $0xb0] ss:$12 sps:$4 sm:$0xff] (!%p537_p2)  }
  0x10   : > { %s5409_s29 = smov (!%p603_p3, %s3616_s29), 3  ;;  %v4112_v34 = vld [vmem:[%s5385_s6 + $0x8] ss:$12 sps:$4 sm:$0xff]   ;;  %v4113_v35 = vld [vmem:[%s5385_s6 + $0x20] ss:$12 sps:$4 sm:$0xff]   ;;  %vm1073_vm2 = vcmask 130048  }
  0x11   : > { %s4456_s30 = sshll.u32 %s5409_s29, 4  ;;  %3894 = vmatprep.subr.bf16.mxu1 %v4112_v34  ;;  %v4114_v41 = vld [vmem:[%s5385_s6 + $0x38] ss:$12 sps:$4 sm:$0xff]   ;;  %v4116_v43 = vld [vmem:[%s5385_s6 + $0x68] ss:$12 sps:$4 sm:$0xff]   ;;  %s4654_s20 = scalar_lea.vmem %s5382_s3, %s5409_s29 }
  0x12   : > { %s4465_s2 = scalar_lea.vmem %s5405_s22, %s4456_s30  ;;  %s4471_s26 = scalar_lea.vmem %s5406_s25, %s4456_s30  ;;  %912 = vmatpush1.bf16.msra.mxu0 %v4096_v17  ;;  %3895 = vmatpush3.bf16.msra.mxu1 %v4112_v34  ;;  %v4117_v44 = vld [vmem:[%s5385_s6 + $0x80] ss:$12 sps:$4 sm:$0xff]   ;;  %v4118_v45 = vld [vmem:[%s5385_s6 + $0x98] ss:$12 sps:$4 sm:$0xff]  }
  0x13   : > { %v629_v2 = vld [vmem:[%s4465_s2] sm:$0xff]  ;;  %v630_v4 = vld [vmem:[%s4465_s2 + $0x8] sm:$0xff]  ;;  %913 = vmatprep.subr.bf16.mxu0 %v4097_v18  ;;  %v631_v29 = vld [vmem:[%s4465_s2 + $0x10] sm:$0xff]  ;;  %3896 = vmatprep.subr.bf16.mxu1 %v4113_v35  ;;  %s4348_s29 = smov 64   ;;  %s4349_s0 = smov 32  }
  0x14   : > { %v633_v3 = vld [vmem:[%s4471_s26] sm:$0xff]  ;;  %v634_v6 = vld [vmem:[%s4471_s26 + $0x8] sm:$0xff]  ;;  %v635_v30 = vld [vmem:[%s4471_s26 + $0x10] sm:$0xff]  ;;  %s5359_s21 = scalar_lea.vmem %s5397_s18, %s4456_s30 }
  0x15   : > { %v637_v5 = vadd.f32 %v633_v3, %v629_v2  ;;  %v638_v7 = vadd.f32 %v634_v6, %v630_v4  ;;  %v632_v31 = vld [vmem:[%s4465_s2 + $0x18] sm:$0xff]  ;;  %v639_v32 = vadd.f32 %v635_v30, %v631_v29  ;;  %v3626_v2 = vld [vmem:[%s5383_s4] ss:$0 sm:$0xff] }
  0x16   : > { %914 = vmatpush1.bf16.msra.mxu0 %v4099_v19  ;;  %v636_v33 = vld [vmem:[%s4471_s26 + $0x18] sm:$0xff]  ;;  %3897 = vmatpush3.bf16.msra.mxu1 %v4113_v35 }
  0x17   : > { %v4480_v8 = vadd.f32 %v641_v0, %v637_v5  ;;  %v4482_v9 = vadd.f32 %v642_v1, %v638_v7  ;;  %915 = vmatprep.subr.bf16.mxu0 %v4100_v20  ;;  %v640_v36 = vadd.f32 %v636_v33, %v632_v31  ;;  %v4549_v37 = vadd.f32 %v641_v0, %v639_v32  ;;  %v3627_v7 = vld [vmem:[%s5384_s5] ss:$0 sm:$0xff] }
  0x18   : > { %3898 = vmatprep.subr.bf16.mxu1 %v4114_v41 }
  0x19   : > { %649 = vadd.xlane.f32.xlu0 %v4480_v8  ;;  %v662_v10 = vmul.f32 %v4480_v8, %v4480_v8  ;;  %v663_v11 = vmul.f32 %v4482_v9, %v4482_v9  ;;  %v4551_v38 = vadd.f32 %v642_v1, %v640_v36  ;;  %v664_v39 = vmul.f32 %v4549_v37, %v4549_v37 }
  0x1a   : > { %916 = vmatpush1.bf16.msra.mxu0 %v4102_v21  ;;  %3899 = vmatpush3.bf16.msra.mxu1 %v4114_v41 }
  0x1b   : > { %666 = vadd.xlane.f32.xlu1 %v662_v10  ;;  %917 = vmatprep.subr.bf16.mxu0 %v4103_v22  ;;  %v665_v40 = vmul.f32 %v4551_v38, %v4551_v38 }
  0x1c   : > { %3900 = vmatprep.subr.bf16.mxu1 %v4115_v42 }
  0x1d   : > { %651 = vadd.xlane.f32.xlu0 %v4482_v9 }
  0x1e   : > { %918 = vmatpush1.bf16.msra.mxu0 %v4105_v23  ;;  %3901 = vmatpush3.bf16.msra.mxu1 %v4115_v42  ;;  %v4345_v42 = vmov 0.0  }
  0x1f   : > { %668 = vadd.xlane.f32.xlu1 %v663_v11  ;;  %919 = vmatprep.subr.bf16.mxu0 %v4106_v24 }
  0x20   : > { %3902 = vmatprep.subr.bf16.mxu1 %v4116_v43 }
  0x21   : > { %653 = vadd.xlane.f32.xlu0 %v4549_v37 }
  0x22   : > { %920 = vmatpush1.bf16.msra.mxu0 %v4108_v26  ;;  %3903 = vmatpush3.bf16.msra.mxu1 %v4116_v43 }
  0x23   : > { %921 = vmatprep.subr.bf16.mxu0 %v4109_v27  ;;  %655 = vadd.xlane.f32.xlu1 %v4551_v38 }
  0x24   : > { %3904 = vmatprep.subr.bf16.mxu1 %v4117_v44 }
  0x25   : > { %670 = vadd.xlane.f32.xlu0 %v664_v39 }
  0x26   : > { %922 = vmatpush1.bf16.msra.mxu0 %v4111_v28  ;;  %3905 = vmatpush3.bf16.msra.mxu1 %v4117_v44  ;;  %v762_v44 = vld [vmem:[%s5386_s7] sm:$0x7] }
  0x27   : > { %672 = vadd.xlane.f32.xlu1 %v665_v40  ;;  %3906 = vmatprep.subr.bf16.mxu1 %v4118_v45 }
  0x28   : > { %3920 = vmatprep.subr.bf16.mxu0 %v4345_v42 }
  0x2a   : > { %3907 = vmatpush3.bf16.msra.mxu1 %v4118_v45 }
  0x2b   : > { %3908 = vmatprep.subr.bf16.mxu1 %v4119_v46 }
  0x2e   : > { %3909 = vmatpush3.bf16.msra.mxu1 %v4119_v46 }
  0x2f   : > { %3914 = vmatprep.subr.bf16.mxu1 %v4345_v42 }
  0xa6   : > { %v650_v47 = vpop.xlane.xlu0 %649 }
  0xa7   : > { %v658_v48 = vmul.f32 0.0078125, %v650_v47 }
  0xa8   : > { %v667_v49 = vpop.xlane.xlu1 %666 }
  0xa9   : > { %v678_v50 = vmul.f32 %v658_v48, %v658_v48  ;;  %v674_v51 = vmul.f32 0.0078125, %v667_v49  ;;  %v690_v63 = vsub.f32 %v4480_v8, %v658_v48 }
  0xaa   : > { %v652_v52 = vpop.xlane.xlu0 %651 }
  0xab   : > { %v682_v53 = vsub.f32 %v674_v51, %v678_v50  ;;  %v659_v54 = vmul.f32 0.0078125, %v652_v52 }
  0xac   : > { %v669_v55 = vpop.xlane.xlu1 %668 }
  0xad   : > { %v686_v56 = vmax.f32 %v682_v53, 0.0  ;;  %v679_v57 = vmul.f32 %v659_v54, %v659_v54  ;;  %v675_v58 = vmul.f32 0.0078125, %v669_v55  ;;  %v691_v3 = vsub.f32 %v4482_v9, %v659_v54 }
  0xae   : > { %v654_v9 = vpop.xlane.xlu0 %653 }
  0xaf   : > { %v694_v59 = vadd.f32 1e-12, %v686_v56  ;;  %v683_v60 = vsub.f32 %v675_v58, %v679_v57  ;;  %v660_v14 = vmul.f32 0.0078125, %v654_v9 }
  0xb0   : > { %v656_v13 = vpop.xlane.xlu1 %655 }
  0xb1   : > { %4216 = vrsqrt.f32 %v694_v59  ;;  %v687_v61 = vmax.f32 %v683_v60, 0.0  ;;  %v661_v15 = vmul.f32 0.0078125, %v656_v13  ;;  %v680_v18 = vmul.f32 %v660_v14, %v660_v14 }
  0xb2   : > { %v671_v16 = vpop.xlane.xlu0 %670  ;;  %v692_v30 = vsub.f32 %v4549_v37, %v660_v14  ;;  %v764_v37 = vlaneseq }
  0xb3   : > { %v695_v62 = vadd.f32 1e-12, %v687_v61  ;;  %v676_v19 = vmul.f32 0.0078125, %v671_v16  ;;  %v681_v20 = vmul.f32 %v661_v15, %v661_v15  ;;  %v693_v31 = vsub.f32 %v4551_v38, %v661_v15 }
  0xb4   : > { %v673_v17 = vpop.xlane.xlu1 %672  ;;  %v4606_v38 = vshrl.u32 %v764_v37, 7 }
  0xb5   : > { %4218 = vrsqrt.f32 %v695_v62  ;;  %v677_v21 = vmul.f32 0.0078125, %v673_v17  ;;  %v684_v22 = vsub.f32 %v676_v19, %v680_v18 }
  0xb6   : > { %v766_v43 = vsub.s32 0, %v4606_v38  ;;  %v770_v45 = vsub.s32 1, %v4606_v38  ;;  %v774_v61 = vsub.s32 2, %v4606_v38 }
  0xb7   : > { %v685_v23 = vsub.f32 %v677_v21, %v681_v20  ;;  %v688_v24 = vmax.f32 %v684_v22, 0.0 }
  0xb8   : > { %v767_v46 = vrot.slane %v762_v44, %v766_v43  ;;  %v771_v48 = vrot.slane %v762_v44, %v770_v45  ;;  %v775_v62 = vrot.slane %v762_v44, %v774_v61 }
  0xb9   : > { %v689_v26 = vmax.f32 %v685_v23, 0.0  ;;  %v696_v27 = vadd.f32 1e-12, %v688_v24 }
  0xbb   : > { %v4217_v0 = vpop.eup %4216  ;;  %v697_v28 = vadd.f32 1e-12, %v689_v26  ;;  %4220 = vrsqrt.f32 %v696_v27  ;;  %v4657_v27 = vld [vmem:[%s4654_s20] ss:$0 sm:$0xff] }
  0xbc   : > { %v702_v1 = vmul.f32 %v4217_v0, %v690_v63 }
  0xbd   : > { %4222 = vrsqrt.f32 %v697_v28 }
  0xbe   : > { %v712_v6 = vmul.f32 %v3626_v2, %v702_v1 }
  0xbf   : > { %v4219_v4 = vpop.eup %4218 }
  0xc0   : > { %v703_v5 = vmul.f32 %v4219_v4, %v691_v3  ;;  %v4585_v11 = vadd.f32 %v3627_v7, %v712_v6 }
  0xc2   : > { %v713_v10 = vmul.f32 %v3626_v2, %v703_v5 }
  0xc4   : > { %v4587_v12 = vadd.f32 %v3627_v7, %v713_v10 }
  0xc5   : > { %v4221_v29 = vpop.eup %4220 }
  0xc6   : > { %v728_v8 = vpack.c.bf16 %v4587_v12, %v4585_v11  ;;  %v704_v33 = vmul.f32 %v4221_v29, %v692_v30 }
  0xc7   : > { %v4223_v32 = vpop.eup %4222 }
  0xc8   : > { %940 = vmatmul.mubr.bf16.vlgmr.msra.gmra.mrb[0].mxu0 %v728_v8  ;;  %3910 = vmatprep.mubr.bf16.mxu1 %v728_v8  ;;  %v705_v34 = vmul.f32 %v4223_v32, %v693_v31  ;;  %v714_v35 = vmul.f32 %v3626_v2, %v704_v33 }
  0xc9   : > { %949 = vmatprep.mubr.bf16.mxu0 %v4344_v25 }
  0xca   : > { %v715_v36 = vmul.f32 %v3626_v2, %v705_v34  ;;  %v4594_v39 = vadd.f32 %v3627_v7, %v714_v35 }
  0xcc   : > { %v4596_v40 = vadd.f32 %v3627_v7, %v715_v36 }
  0xce   : > { %v729_v41 = vpack.c.bf16 %v4596_v40, %v4594_v39 }
  0xd0   : > { %3911 = vmatmul.mubr.bf16.vlgmr.msra.gmra.mrb[0].mxu1 %v729_v41  ;;  %950 = vmatmul.mubr.bf16.gmra.mrb[4].mxu0 %v729_v41 }
  0xd1   : > { %3916 = vmatprep.mubr.msk.bf16.mxu1 %vm4346_vm0, %v4345_v42  ;;  %3922 = vmatprep.mubr.msk.bf16.mxu0 %vm4346_vm0, %v4345_v42 }
 0x19b   : > { %v941_v47 = vpop.f32.mrb[0].mxu0 }
 0x19c   : > { %v942_v49 = vadd.f32 %v941_v47, %v767_v46  ;;  %v943_v50 = vpop.f32.mrb[1].mxu0 }
 0x19d   : > { %v945_v51 = vpop.f32.mrb[2].mxu0  ;;  %v944_v54 = vadd.f32 %v943_v50, %v771_v48 }
 0x19e   : > { %v946_v52 = vadd.f32 %v945_v51, %v767_v46  ;;  %v947_v53 = vpop.f32.mrb[3].mxu0  ;;  %v1009_v56 = vmul.f32 0.17677669, %v942_v49 }
 0x19f   : > { %v948_v55 = vadd.f32 %v947_v53, %v771_v48 }
 0x1a0   : > { %v1010_v57 = vmul.f32 0.17677669, %v946_v52 }
 0x1a1   : > { %v4617_v58 = vpack.c.bf16 %v948_v55, %v944_v54 }
 0x1a2   : > { %v4619_v59 = vpack.c.bf16 %v1010_v57, %v1009_v56 }
 0x1a3   : > { %1150 = vrot.lane.b32.xlu0 %v4617_v58, %s4347_s27  ;;  %v1030_v60 = vsel %vm1025_vm1, %v4617_v58, 0  ;;  %v3912_v63 = vpop.f32.mrb[0].mxu1  ;;  %v951_v8 = vpop.f32.mrb[4].mxu0 }
 0x1a4   : > { %1147 = vrot.lane.b32.xlu1 %v4619_v59, %s4347_s27  ;;  %3915 = vmatpush3.bf16.xpose.msra.mxu1 %v1030_v60  ;;  %v1003_v0 = vadd.f32 %v3912_v63, %v775_v62  ;;  %v994_v1 = vpop.f32.mrb[1].mxu1  ;;  %v952_v9 = vadd.f32 %v951_v8, %v767_v46  ;;  %v953_v13 = vpop.f32.mrb[5].mxu0 }
 0x1a5   : > { %3926 = vmatprep.subr.bf16.mxu1 %v4345_v42  ;;  %v995_v2 = vadd.f32 %v994_v1, %v775_v62  ;;  %v3913_v3 = vpop.f32.mrb[2].mxu1  ;;  %v954_v14 = vadd.f32 %v953_v13, %v771_v48  ;;  %v955_v15 = vpop.f32.mrb[6].mxu0 }
 0x1a6   : > { %v1006_v4 = vadd.f32 %v3913_v3, %v775_v62  ;;  %v997_v5 = vpop.f32.mrb[3].mxu1  ;;  %v1011_v16 = vmul.f32 0.17677669, %v952_v9  ;;  %v956_v17 = vadd.f32 %v955_v15, %v767_v46  ;;  %v957_v18 = vpop.f32.mrb[7].mxu0 }
 0x1a7   : > { %v998_v6 = vadd.f32 %v997_v5, %v775_v62  ;;  %v958_v19 = vadd.f32 %v957_v18, %v771_v48 }
 0x1a8   : > { %v4635_v7 = vpack.c.bf16 %v1006_v4, %v1003_v0  ;;  %v1012_v20 = vmul.f32 0.17677669, %v956_v17 }
 0x1a9   : > { %v4637_v10 = vpack.c.bf16 %v998_v6, %v995_v2  ;;  %v4641_v21 = vpack.c.bf16 %v958_v19, %v954_v14 }
 0x1aa   : > { %v4643_v22 = vpack.c.bf16 %v1012_v20, %v1011_v16  ;;  %v4122_v20 = vld [vmem:[%s5387_s8 + $0x10] sm:$0xff]  }
 0x1ab   : > { %3917 = vmatmul.mubr.msk.bf16.vlgmr.msra.gmra.mrb[4].mxu1 %vm1025_vm1, %v4619_v59  ;;  %3921 = vmatpush3.bf16.msra.mxu0 %v4637_v10 }
 0x1ac   : > { %3928 = vmatprep.mubr.msk.bf16.mxu1 %vm4346_vm0, %v4345_v42  ;;  %3932 = vmatprep.subr.bf16.mxu0 %v4345_v42 }
 0x215   : > { %v1151_v23 = vpop.permute.xlu0 %1150 }
 0x216   : > { %v1156_v24 = vsel %vm1025_vm1, %v1151_v23, 0  ;;  %v1148_v26 = vpop.permute.xlu1 %1147  ;;  %v4123_v23 = vld [vmem:[%s5387_s8 + $0x18] sm:$0xff]  }
 0x217   : > { %3927 = vmatpush3.bf16.xpose.msra.mxu1 %v1156_v24 }
 0x218   : > { %3938 = vmatprep.subr.bf16.mxu1 %v4345_v42 }
 0x21e   : > { %3929 = vmatmul.mubr.msk.bf16.vlgmr.msra.gmra.mrb[8].mxu1 %vm1025_vm1, %v1148_v26 }
 0x21f   : > { %3942 = vmatprep.mubr.msk.bf16.mxu1 %vm4346_vm0, %v4345_v42  ;;  %3939 = vmatpush3.bf16.msra.mxu1 %v4122_v20 }
 0x220   : > { %3940 = vmatprep.subr.bf16.mxu1 %v4345_v42 }
 0x223   : > { %3941 = vmatpush3.bf16.msra.mxu1 %v4123_v23 }
 0x224   : > { %3954 = vmatprep.subr.bf16.mxu1 %v4345_v42 }
 0x27e   : > { %v1066_v28 = vpop.f32.mrb[4].mxu1 }
 0x27f   : > { %v1067_v29 = vadd.f32 %v4657_v27, %v1066_v28  ;;  %v3918_v30 = vpop.f32.mrb[5].mxu1 }
 0x280   : > { %v1069_v31 = vpop.f32.mrb[6].mxu1 }
 0x281   : > { %v1070_v32 = vadd.f32 %v4657_v27, %v1069_v31  ;;  %v3919_v33 = vpop.f32.mrb[7].mxu1  ;;  %v1074_v34 = vsel %vm1073_vm2, %v1067_v29, -inf }
 0x282   : > { %1075 = vmax.xlane.f32.xlu1 %v1074_v34  ;;  %v4120_v33 = vld [vmem:[%s5387_s8] sm:$0xff]  }
 0x283   : > { %v1077_v35 = vsel %vm1073_vm2, %v1070_v32, -inf }
 0x284   : > { %1078 = vmax.xlane.f32.xlu0 %v1077_v35  ;;  %v4121_v35 = vld [vmem:[%s5387_s8 + $0x8] sm:$0xff]  }
 0x2f1   : > { %v1192_v36 = vpop.f32.mrb[8].mxu1 }
 0x2f2   : > { %v1193_v41 = vadd.f32 %v4657_v27, %v1192_v36  ;;  %v3930_v37 = vpop.f32.mrb[9].mxu1 }
 0x2f3   : > { %v1195_v44 = vpop.f32.mrb[10].mxu1 }
 0x2f4   : > { %v1196_v46 = vadd.f32 %v4657_v27, %v1195_v44  ;;  %v3931_v47 = vpop.f32.mrb[11].mxu1  ;;  %v1199_v48 = vsel %vm1073_vm2, %v1193_v41, -inf }
 0x2f5   : > { %1200 = vmax.xlane.f32.xlu0 %v1199_v48 }
 0x2f6   : > { %v1202_v49 = vsel %vm1073_vm2, %v1196_v46, -inf }
 0x2f7   : > { %1203 = vmax.xlane.f32.xlu1 %v1202_v49 }
 0x30f   : > { %v1076_v50 = vpop.xlane.xlu1 %1075 }
 0x310   : > { %v1080_v51 = vsub.f32 %v1067_v29, %v1076_v50 }
 0x311   : > { %v1079_v52 = vpop.xlane.xlu0 %1078 }
 0x312   : > { %v1082_v53 = vmul.f32 1.442695, %v1080_v51  ;;  %v1081_v54 = vsub.f32 %v1070_v32, %v1079_v52 }
 0x314   : > { %4224 = vpow2.f32 %v1082_v53  ;;  %v1084_v55 = vmul.f32 1.442695, %v1081_v54 }
 0x316   : > { %4226 = vpow2.f32 %v1084_v55 }
 0x31e   : > { %v4225_v56 = vpop.eup %4224 }
 0x31f   : > { %v1086_v57 = vsel %vm1073_vm2, %v4225_v56, 0.0 }
 0x320   : > { %v4227_v60 = vpop.eup %4226  ;;  %1087 = vadd.xlane.f32.xlu0 %v1086_v57 }
 0x321   : > { %v1089_v62 = vsel %vm1073_vm2, %v4227_v60, 0.0 }
 0x322   : > { %1090 = vadd.xlane.f32.xlu1 %v1089_v62 }
 0x382   : > { %v1201_v63 = vpop.xlane.xlu0 %1200 }
 0x383   : > { %v1205_v0 = vsub.f32 %v1193_v41, %v1201_v63 }
 0x384   : > { %v1204_v1 = vpop.xlane.xlu1 %1203 }
 0x385   : > { %v1207_v2 = vmul.f32 1.442695, %v1205_v0  ;;  %v1206_v3 = vsub.f32 %v1196_v46, %v1204_v1 }
 0x387   : > { %4228 = vpow2.f32 %v1207_v2  ;;  %v1209_v4 = vmul.f32 1.442695, %v1206_v3 }
 0x389   : > { %4230 = vpow2.f32 %v1209_v4 }
 0x391   : > { %v4229_v5 = vpop.eup %4228 }
 0x392   : > { %v1211_v6 = vsel %vm1073_vm2, %v4229_v5, 0.0 }
 0x393   : > { %v4231_v8 = vpop.eup %4230  ;;  %1212 = vadd.xlane.f32.xlu0 %v1211_v6 }
 0x394   : > { %v1214_v9 = vsel %vm1073_vm2, %v4231_v8, 0.0 }
 0x395   : > { %1215 = vadd.xlane.f32.xlu1 %v1214_v9 }
 0x3a6   : > { %1389 = vrot.lane.b32.xlu1 %v4617_v58, %s4348_s29 }
 0x3a9   : > { %1223 = vrot.lane.b32.xlu0 %v4637_v10, %s4347_s27 }
 0x3aa   : > { %1387 = vrot.lane.b32.xlu1 %v4619_v59, %s4348_s29 }
 0x3ad   : > { %v1088_v13 = vpop.xlane.xlu0 %1087 }
 0x3ae   : > { %4232 = vrcp.f32 %v1088_v13 }
 0x3af   : > { %v1091_v14 = vpop.xlane.xlu1 %1090 }
 0x3b0   : > { %4234 = vrcp.f32 %v1091_v14 }
 0x3b8   : > { %v4233_v15 = vpop.eup %4232 }
 0x3b9   : > { %v1094_v17 = vmul.f32 %v4233_v15, %v4225_v56 }
 0x3ba   : > { %v4235_v16 = vpop.eup %4234 }
 0x3bb   : > { %v1095_v18 = vmul.f32 %v4235_v16, %v4227_v60 }
 0x3bd   : > { %v1096_v19 = vpack.c.bf16 %v1095_v18, %v1094_v17 }
 0x3bf   : > { %3923 = vmatmul.mubr.msk.bf16.vlgmr.msra.gmra.mrb[8].mxu0 %vm1073_vm2, %v1096_v19 }
 0x3c0   : > { %3934 = vmatprep.mubr.msk.bf16.mxu0 %vm4346_vm0, %v4345_v42 }
 0x420   : > { %v1213_v24 = vpop.xlane.xlu0 %1212 }
 0x421   : > { %4236 = vrcp.f32 %v1213_v24 }
 0x422   : > { %v1216_v26 = vpop.xlane.xlu1 %1215 }
 0x423   : > { %4238 = vrcp.f32 %v1216_v26 }
 0x424   : > { %v1224_v28 = vpop.permute.xlu0 %1223 }
 0x425   : > { %3933 = vmatpush3.bf16.msra.mxu0 %v1224_v28 }
 0x426   : > { %3946 = vmatprep.subr.bf16.mxu0 %v4345_v42  ;;  %v1390_v49 = vpop.permute.xlu1 %1389 }
 0x427   : > { %v1395_v53 = vsel %vm1025_vm1, %v1390_v49, 0 }
 0x42a   : > { %v1388_v54 = vpop.permute.xlu1 %1387 }
 0x42b   : > { %v4237_v29 = vpop.eup %4236 }
 0x42c   : > { %v1219_v31 = vmul.f32 %v4237_v29, %v4229_v5 }
 0x42d   : > { %v4239_v30 = vpop.eup %4238 }
 0x42e   : > { %v1220_v32 = vmul.f32 %v4239_v30, %v4231_v8 }
 0x430   : > { %v1221_v34 = vpack.c.bf16 %v1220_v32, %v1219_v31 }
 0x432   : > { %3935 = vmatmul.mubr.msk.bf16.vlgmr.msra.gmra.mrb[12].mxu0 %vm1073_vm2, %v1221_v34 }
 0x433   : > { %3947 = vmatpush3.bf16.msra.mxu0 %v4120_v33  ;;  %3950 = vmatprep.mubr.msk.bf16.mxu0 %vm4346_vm0, %v4345_v42 }
 0x434   : > { %3948 = vmatprep.subr.bf16.mxu0 %v4345_v42 }
 0x437   : > { %3949 = vmatpush3.bf16.msra.mxu0 %v4121_v35 }
 0x438   : > { %3960 = vmatprep.subr.bf16.mxu0 %v4345_v42 }
 0x492   : > { %v1134_v36 = vpop.f32.mrb[8].mxu0 }
 0x493   : > { %v3924_v41 = vpop.f32.mrb[9].mxu0 }
 0x494   : > { %v1137_v37 = vpop.f32.mrb[10].mxu0 }
 0x495   : > { %v1141_v44 = vpack.c.bf16 %v1137_v37, %v1134_v36  ;;  %v3925_v46 = vpop.f32.mrb[11].mxu0 }
 0x496   : > { %v4125_v46 = vld [vmem:[%s5387_s8 + $0x28] sm:$0xff]  }
 0x497   : > { %3951 = vmatmul.mubr.msk.bf16.vlgmr.msra.gmra.mrb[16].mxu0 %vm1025_vm1, %v1141_v44 }
 0x498   : > { %3962 = vmatprep.mubr.msk.bf16.mxu0 %vm4346_vm0, %v4345_v42 }
 0x505   : > { %v1263_v47 = vpop.f32.mrb[12].mxu0 }
 0x506   : > { %v3936_v48 = vpop.f32.mrb[13].mxu0 }
 0x507   : > { %v1266_v50 = vpop.f32.mrb[14].mxu0 }
 0x508   : > { %v1270_v51 = vpack.c.bf16 %v1266_v50, %v1263_v47  ;;  %v3937_v52 = vpop.f32.mrb[15].mxu0 }
 0x50a   : > { %3943 = vmatmul.mubr.msk.bf16.vlgmr.msra.gmra.mrb[12].mxu1 %vm1025_vm1, %v1270_v51 }
 0x50b   : > { %3955 = vmatpush3.bf16.xpose.msra.mxu1 %v1395_v53  ;;  %3956 = vmatprep.mubr.msk.bf16.mxu1 %vm4346_vm0, %v4345_v42 }
 0x50c   : > { %3966 = vmatprep.subr.bf16.mxu1 %v4345_v42 }
 0x512   : > { %3957 = vmatmul.mubr.msk.bf16.vlgmr.msra.gmra.mrb[16].mxu1 %vm1025_vm1, %v1388_v54 }
 0x513   : > { %3970 = vmatprep.mubr.msk.bf16.mxu1 %vm4346_vm0, %v4345_v42 }
 0x56a   : > { %v1380_v55 = vpop.f32.mrb[16].mxu0 }
 0x56b   : > { %v3952_v56 = vpop.f32.mrb[17].mxu0 }
 0x56c   : > { %v1383_v57 = vpop.f32.mrb[18].mxu0 }
 0x56d   : > { %v3953_v60 = vpop.f32.mrb[19].mxu0 }
 0x5dd   : > { %v1324_v62 = vpop.f32.mrb[12].mxu1 }
 0x5de   : > { %v4711_v63 = vadd.f32 %v1380_v55, %v1324_v62  ;;  %v3944_v0 = vpop.f32.mrb[13].mxu1 }
 0x5df   : > { %v1327_v1 = vpop.f32.mrb[14].mxu1 }
 0x5e0   : > { %v4713_v2 = vadd.f32 %v1383_v57, %v1327_v1  ;;  %v3945_v3 = vpop.f32.mrb[15].mxu1 }
 0x5e5   : > { %v1431_v4 = vpop.f32.mrb[16].mxu1 }
 0x5e6   : > { %v1432_v5 = vadd.f32 %v4657_v27, %v1431_v4  ;;  %v3958_v6 = vpop.f32.mrb[17].mxu1 }
 0x5e7   : > { %v1434_v8 = vpop.f32.mrb[18].mxu1 }
 0x5e8   : > { %v1435_v9 = vadd.f32 %v4657_v27, %v1434_v8  ;;  %v3959_v13 = vpop.f32.mrb[19].mxu1  ;;  %v1438_v14 = vsel %vm1073_vm2, %v1432_v5, -inf }
 0x5e9   : > { %1439 = vmax.xlane.f32.xlu1 %v1438_v14 }
 0x5ea   : > { %v1441_v15 = vsel %vm1073_vm2, %v1435_v9, -inf }
 0x5eb   : > { %1442 = vmax.xlane.f32.xlu0 %v1441_v15 }
 0x5fa   : > { %1461 = vrot.lane.b32.xlu1 %v4637_v10, %s4348_s29 }
 0x5fe   : > { %1571 = vrot.lane.b32.xlu1 %v4619_v59, %s4349_s0  ;;  %v4124_v59 = vld [vmem:[%s5387_s8 + $0x20] sm:$0xff]  }
 0x5ff   : > { %3967 = vmatpush3.bf16.msra.mxu1 %v4124_v59 }
 0x600   : > { %3968 = vmatprep.subr.bf16.mxu1 %v4345_v42 }
 0x603   : > { %3969 = vmatpush3.bf16.msra.mxu1 %v4125_v46 }
 0x604   : > { %3980 = vmatprep.subr.bf16.mxu1 %v4345_v42 }
 0x676   : > { %v1440_v16 = vpop.xlane.xlu1 %1439 }
 0x677   : > { %v1444_v17 = vsub.f32 %v1432_v5, %v1440_v16 }
 0x678   : > { %v1443_v18 = vpop.xlane.xlu0 %1442 }
 0x679   : > { %v1446_v19 = vmul.f32 1.442695, %v1444_v17  ;;  %v1445_v20 = vsub.f32 %v1435_v9, %v1443_v18  ;;  %v4126_v17 = vld [vmem:[%s5387_s8 + $0x30] sm:$0xff]  }
 0x67a   : > { %v1462_v23 = vpop.permute.xlu1 %1461 }
 0x67b   : > { %4240 = vpow2.f32 %v1446_v19  ;;  %v1448_v24 = vmul.f32 1.442695, %v1445_v20  ;;  %3961 = vmatpush3.bf16.msra.mxu0 %v1462_v23 }
 0x67c   : > { %3974 = vmatprep.subr.bf16.mxu0 %v4345_v42 }
 0x67d   : > { %4242 = vpow2.f32 %v1448_v24 }
 0x685   : > { %v4241_v26 = vpop.eup %4240 }
 0x686   : > { %v1450_v28 = vsel %vm1073_vm2, %v4241_v26, 0.0 }
 0x687   : > { %v4243_v29 = vpop.eup %4242  ;;  %1451 = vadd.xlane.f32.xlu0 %v1450_v28 }
 0x688   : > { %v1453_v30 = vsel %vm1073_vm2, %v4243_v29, 0.0 }
 0x68b   : > { %1454 = vadd.xlane.f32.xlu0 %v1453_v30 }
 0x6a1   : > { %1573 = vrot.lane.b32.xlu0 %v4617_v58, %s4349_s0  ;;  %v1572_v58 = vpop.permute.xlu1 %1571 }
 0x714   : > { %v1452_v31 = vpop.xlane.xlu0 %1451 }
 0x715   : > { %4244 = vrcp.f32 %v1452_v31 }
 0x718   : > { %v1455_v32 = vpop.xlane.xlu0 %1454 }
 0x719   : > { %4246 = vrcp.f32 %v1455_v32 }
 0x71c   : > { %v1574_v41 = vpop.permute.xlu0 %1573 }
 0x71d   : > { %v1579_v44 = vsel %vm1025_vm1, %v1574_v41, 0 }
 0x71f   : > { %v4245_v33 = vpop.eup %4244 }
 0x720   : > { %v1458_v35 = vmul.f32 %v4245_v33, %v4241_v26  ;;  %v4127_v33 = vld [vmem:[%s5387_s8 + $0x38] sm:$0xff]  }
 0x723   : > { %v4247_v34 = vpop.eup %4246 }
 0x724   : > { %v1459_v36 = vmul.f32 %v4247_v34, %v4243_v29 }
 0x726   : > { %v1460_v37 = vpack.c.bf16 %v1459_v36, %v1458_v35 }
 0x728   : > { %3963 = vmatmul.mubr.msk.bf16.vlgmr.msra.gmra.mrb[20].mxu0 %vm1073_vm2, %v1460_v37 }
 0x729   : > { %3975 = vmatpush3.bf16.xpose.msra.mxu0 %v1579_v44  ;;  %3976 = vmatprep.mubr.msk.bf16.mxu0 %vm4346_vm0, %v4345_v42  ;;  %v4792_v44 = vld [vmem:[%s4654_s20 + $0x1] ss:$0 sm:$0xff] }
 0x72a   : > { %3986 = vmatprep.subr.bf16.mxu0 %v4345_v42 }
 0x730   : > { %3977 = vmatmul.mubr.msk.bf16.vlgmr.msra.gmra.mrb[24].mxu0 %vm1025_vm1, %v1572_v58 }
 0x731   : > { %3990 = vmatprep.mubr.msk.bf16.mxu0 %vm4346_vm0, %v4345_v42  ;;  %3987 = vmatpush3.bf16.msra.mxu0 %v4126_v17 }
 0x732   : > { %3988 = vmatprep.subr.bf16.mxu0 %v4345_v42 }
 0x735   : > { %3989 = vmatpush3.bf16.msra.mxu0 %v4127_v33 }
 0x736   : > { %4000 = vmatprep.subr.bf16.mxu0 %v4345_v42 }
 0x7fb   : > { %v1501_v47 = vpop.f32.mrb[20].mxu0 }
 0x7fc   : > { %v3964_v48 = vpop.f32.mrb[21].mxu0 }
 0x7fd   : > { %v1504_v49 = vpop.f32.mrb[22].mxu0 }
 0x7fe   : > { %v1508_v50 = vpack.c.bf16 %v1504_v49, %v1501_v47  ;;  %v3965_v51 = vpop.f32.mrb[23].mxu0 }
 0x800   : > { %3971 = vmatmul.mubr.msk.bf16.vlgmr.msra.gmra.mrb[20].mxu1 %vm1025_vm1, %v1508_v50 }
 0x801   : > { %3982 = vmatprep.mubr.msk.bf16.mxu1 %vm4346_vm0, %v4345_v42 }
 0x803   : > { %v1615_v52 = vpop.f32.mrb[24].mxu0 }
 0x804   : > { %v1616_v53 = vadd.f32 %v4657_v27, %v1615_v52  ;;  %v3978_v54 = vpop.f32.mrb[25].mxu0 }
 0x805   : > { %v1618_v55 = vpop.f32.mrb[26].mxu0 }
 0x806   : > { %v1619_v56 = vadd.f32 %v4657_v27, %v1618_v55  ;;  %v3979_v57 = vpop.f32.mrb[27].mxu0  ;;  %v1622_v60 = vsel %vm1073_vm2, %v1616_v53, -inf }
 0x807   : > { %1623 = vmax.xlane.f32.xlu1 %v1622_v60 }
 0x808   : > { %v1625_v62 = vsel %vm1073_vm2, %v1619_v56, -inf }
 0x809   : > { %1626 = vmax.xlane.f32.xlu0 %v1625_v62 }
 0x894   : > { %v1624_v0 = vpop.xlane.xlu1 %1623 }
 0x895   : > { %v1628_v1 = vsub.f32 %v1616_v53, %v1624_v0 }
 0x896   : > { %v1627_v3 = vpop.xlane.xlu0 %1626 }
 0x897   : > { %v1630_v4 = vmul.f32 1.442695, %v1628_v1  ;;  %v1629_v5 = vsub.f32 %v1619_v56, %v1627_v3 }
 0x899   : > { %4248 = vpow2.f32 %v1630_v4  ;;  %v1632_v6 = vmul.f32 1.442695, %v1629_v5 }
 0x89b   : > { %4250 = vpow2.f32 %v1632_v6 }
 0x8a3   : > { %v4249_v8 = vpop.eup %4248 }
 0x8a4   : > { %v1634_v9 = vsel %vm1073_vm2, %v4249_v8, 0.0 }
 0x8a5   : > { %v4251_v13 = vpop.eup %4250  ;;  %1635 = vadd.xlane.f32.xlu0 %v1634_v9 }
 0x8a6   : > { %v1637_v27 = vsel %vm1073_vm2, %v4251_v13, 0.0 }
 0x8a7   : > { %1638 = vadd.xlane.f32.xlu1 %v1637_v27 }
 0x8b8   : > { %1943 = vrot.lane.b32.xlu1 %v4641_v21, %s4347_s27 }
 0x8bb   : > { %1645 = vrot.lane.b32.xlu0 %v4637_v10, %s4349_s0 }
 0x8bc   : > { %1940 = vrot.lane.b32.xlu1 %v4643_v22, %s4347_s27 }
 0x8d3   : > { %v1562_v14 = vpop.f32.mrb[20].mxu1 }
 0x8d4   : > { %v4760_v15 = vadd.f32 %v1562_v14, %v4711_v63  ;;  %v3972_v16 = vpop.f32.mrb[21].mxu1 }
 0x8d5   : > { %v1565_v18 = vpop.f32.mrb[22].mxu1 }
 0x8d6   : > { %v4766_v19 = vadd.f32 %v1565_v18, %v4713_v2  ;;  %v3973_v20 = vpop.f32.mrb[23].mxu1  ;;  %v1824_v2 = vsel %vm1025_vm1, %v4641_v21, 0 }
 0x932   : > { %v1636_v10 = vpop.xlane.xlu0 %1635 }
 0x933   : > { %4252 = vrcp.f32 %v1636_v10 }
 0x934   : > { %v1639_v23 = vpop.xlane.xlu1 %1638 }
 0x935   : > { %4254 = vrcp.f32 %v1639_v23 }
 0x936   : > { %v1646_v24 = vpop.permute.xlu0 %1645 }
 0x937   : > { %3981 = vmatpush3.bf16.msra.mxu1 %v1646_v24 }
 0x938   : > { %3994 = vmatprep.subr.bf16.mxu1 %v4345_v42  ;;  %v1944_v59 = vpop.permute.xlu1 %1943 }
 0x939   : > { %v1949_v31 = vsel %vm1025_vm1, %v1944_v59, 0 }
 0x93c   : > { %v1941_v32 = vpop.permute.xlu1 %1940 }
 0x93d   : > { %v4253_v63 = vpop.eup %4252 }
 0x93e   : > { %v1642_v28 = vmul.f32 %v4253_v63, %v4249_v8 }
 0x93f   : > { %v4255_v26 = vpop.eup %4254 }
 0x940   : > { %v1643_v29 = vmul.f32 %v4255_v26, %v4251_v13 }
 0x942   : > { %v1644_v30 = vpack.c.bf16 %v1643_v29, %v1642_v28 }
 0x944   : > { %3983 = vmatmul.mubr.msk.bf16.vlgmr.msra.gmra.mrb[24].mxu1 %vm1073_vm2, %v1644_v30 }
 0x945   : > { %3995 = vmatpush3.bf16.xpose.msra.mxu1 %v1824_v2  ;;  %3996 = vmatprep.mubr.msk.bf16.mxu1 %vm4346_vm0, %v4345_v42 }
 0x946   : > { %4006 = vmatprep.subr.bf16.mxu1 %v4345_v42 }
 0x94c   : > { %3997 = vmatmul.mubr.msk.bf16.vlgmr.msra.gmra.mrb[28].mxu1 %vm1025_vm1, %v4643_v22 }
 0x94d   : > { %4007 = vmatpush3.bf16.xpose.msra.mxu1 %v1949_v31  ;;  %4008 = vmatprep.mubr.msk.bf16.mxu1 %vm4346_vm0, %v4345_v42 }
 0x94e   : > { %4018 = vmatprep.subr.bf16.mxu1 %v4345_v42 }
 0x954   : > { %4009 = vmatmul.mubr.msk.bf16.vlgmr.msra.gmra.mrb[32].mxu1 %vm1025_vm1, %v1941_v32 }
 0x955   : > { %4022 = vmatprep.mubr.msk.bf16.mxu1 %vm4346_vm0, %v4345_v42 }
 0xa17   : > { %v1685_v34 = vpop.f32.mrb[24].mxu1 }
 0xa18   : > { %v3984_v35 = vpop.f32.mrb[25].mxu1 }
 0xa19   : > { %v1688_v36 = vpop.f32.mrb[26].mxu1 }
 0xa1a   : > { %v1692_v41 = vpack.c.bf16 %v1688_v36, %v1685_v34  ;;  %v3985_v37 = vpop.f32.mrb[27].mxu1 }
 0xa1c   : > { %3991 = vmatmul.mubr.msk.bf16.vlgmr.msra.gmra.mrb[28].mxu0 %vm1025_vm1, %v1692_v41 }
 0xa1d   : > { %4001 = vmatpush3.bf16.msra.mxu0 %v4635_v7  ;;  %4002 = vmatprep.mubr.msk.bf16.mxu0 %vm4346_vm0, %v4345_v42 }
 0xa1e   : > { %4012 = vmatprep.subr.bf16.mxu0 %v4345_v42 }
 0xa1f   : > { %v1860_v58 = vpop.f32.mrb[28].mxu1 }
 0xa20   : > { %v1861_v46 = vadd.f32 %v4792_v44, %v1860_v58  ;;  %v3998_v47 = vpop.f32.mrb[29].mxu1 }
 0xa21   : > { %v1863_v48 = vpop.f32.mrb[30].mxu1 }
 0xa22   : > { %v1864_v49 = vadd.f32 %v4792_v44, %v1863_v48  ;;  %v3999_v50 = vpop.f32.mrb[31].mxu1  ;;  %v1867_v51 = vsel %vm1073_vm2, %v1861_v46, -inf }
 0xa23   : > { %1868 = vmax.xlane.f32.xlu1 %v1867_v51  ;;  %v4128_v51 = vld [vmem:[%s5387_s8] sm:$0xff]  }
 0xa24   : > { %v1870_v52 = vsel %vm1073_vm2, %v1864_v49, -inf }
 0xa25   : > { %1871 = vmax.xlane.f32.xlu0 %v1870_v52 }
 0xa27   : > { %v1985_v53 = vpop.f32.mrb[32].mxu1 }
 0xa28   : > { %v1986_v54 = vadd.f32 %v4792_v44, %v1985_v53  ;;  %v4010_v55 = vpop.f32.mrb[33].mxu1  ;;  %v4129_v53 = vld [vmem:[%s5387_s8 + $0x10] sm:$0xff]  }
 0xa29   : > { %v1988_v56 = vpop.f32.mrb[34].mxu1  ;;  %4019 = vmatpush3.bf16.msra.mxu1 %v4129_v53  ;;  %v4131_v55 = vld [vmem:[%s5387_s8 + $0x18] sm:$0xff]  }
 0xa2a   : > { %v1989_v57 = vadd.f32 %v4792_v44, %v1988_v56  ;;  %v4011_v60 = vpop.f32.mrb[35].mxu1  ;;  %v1992_v62 = vsel %vm1073_vm2, %v1986_v54, -inf  ;;  %4020 = vmatprep.subr.bf16.mxu1 %v4345_v42 }
 0xa2b   : > { %1993 = vmax.xlane.f32.xlu0 %v1992_v62 }
 0xa2c   : > { %v1995_v0 = vsel %vm1073_vm2, %v1989_v57, -inf }
 0xa2d   : > { %4021 = vmatpush3.bf16.msra.mxu1 %v4131_v55 }
 0xa2e   : > { %4034 = vmatprep.subr.bf16.mxu1 %v4345_v42 }
 0xa2f   : > { %1996 = vmax.xlane.f32.xlu0 %v1995_v0 }
 0xab0   : > { %v1869_v1 = vpop.xlane.xlu1 %1868 }
 0xab1   : > { %v1873_v3 = vsub.f32 %v1861_v46, %v1869_v1 }
 0xab2   : > { %v1872_v4 = vpop.xlane.xlu0 %1871 }
 0xab3   : > { %v1875_v5 = vmul.f32 1.442695, %v1873_v3  ;;  %v1874_v6 = vsub.f32 %v1864_v49, %v1872_v4 }
 0xab5   : > { %4256 = vpow2.f32 %v1875_v5  ;;  %v1877_v8 = vmul.f32 1.442695, %v1874_v6 }
 0xab7   : > { %4258 = vpow2.f32 %v1877_v8 }
 0xab8   : > { %v1994_v9 = vpop.xlane.xlu0 %1993 }
 0xab9   : > { %v1998_v13 = vsub.f32 %v1986_v54, %v1994_v9  ;;  %v4130_v54 = vld [vmem:[%s5387_s8 + $0x8] sm:$0xff]  }
 0xabb   : > { %v2000_v27 = vmul.f32 1.442695, %v1998_v13 }
 0xabc   : > { %v1997_v14 = vpop.xlane.xlu0 %1996 }
 0xabd   : > { %4260 = vpow2.f32 %v2000_v27  ;;  %v1999_v16 = vsub.f32 %v1989_v57, %v1997_v14 }
 0xabf   : > { %v4257_v17 = vpop.eup %4256  ;;  %v2002_v18 = vmul.f32 1.442695, %v1999_v16 }
 0xac0   : > { %v1879_v20 = vsel %vm1073_vm2, %v4257_v17, 0.0 }
 0xac1   : > { %v4259_v10 = vpop.eup %4258  ;;  %4262 = vpow2.f32 %v2002_v18  ;;  %1880 = vadd.xlane.f32.xlu1 %v1879_v20 }
 0xac2   : > { %v1882_v23 = vsel %vm1073_vm2, %v4259_v10, 0.0 }
 0xac3   : > { %1883 = vadd.xlane.f32.xlu0 %v1882_v23 }
 0xac7   : > { %v4261_v24 = vpop.eup %4260 }
 0xac8   : > { %v2004_v63 = vsel %vm1073_vm2, %v4261_v24, 0.0 }
 0xac9   : > { %2005 = vadd.xlane.f32.xlu1 %v2004_v63 }
 0xacb   : > { %v4263_v26 = vpop.eup %4262 }
 0xacc   : > { %v2007_v28 = vsel %vm1073_vm2, %v4263_v26, 0.0 }
 0xacd   : > { %2008 = vadd.xlane.f32.xlu0 %v2007_v28 }
 0xada   : > { %2016 = vrot.lane.b32.xlu1 %v4635_v7, %s4347_s27 }
 0xade   : > { %2180 = vrot.lane.b32.xlu1 %v4643_v22, %s4348_s29 }
 0xae3   : > { %2182 = vrot.lane.b32.xlu0 %v4641_v21, %s4348_s29 }
 0xaef   : > { %v1746_v29 = vpop.f32.mrb[28].mxu0 }
 0xaf0   : > { %v4816_v30 = vadd.f32 %v1746_v29, %v4760_v15  ;;  %v3992_v2 = vpop.f32.mrb[29].mxu0 }
 0xaf1   : > { %v1749_v59 = vpop.f32.mrb[30].mxu0 }
 0xaf2   : > { %v4819_v31 = vadd.f32 %v1749_v59, %v4766_v19  ;;  %v3993_v32 = vpop.f32.mrb[31].mxu0 }
 0xb4e   : > { %v1881_v33 = vpop.xlane.xlu1 %1880 }
 0xb4f   : > { %4264 = vrcp.f32 %v1881_v33 }
 0xb50   : > { %v1884_v34 = vpop.xlane.xlu0 %1883 }
 0xb51   : > { %4266 = vrcp.f32 %v1884_v34 }
 0xb56   : > { %v2006_v35 = vpop.xlane.xlu1 %2005 }
 0xb57   : > { %4268 = vrcp.f32 %v2006_v35 }
 0xb59   : > { %v4265_v36 = vpop.eup %4264 }
 0xb5a   : > { %v2009_v41 = vpop.xlane.xlu0 %2008  ;;  %v1887_v58 = vmul.f32 %v4265_v36, %v4257_v17  ;;  %v2017_v47 = vpop.permute.xlu1 %2016 }
 0xb5b   : > { %v4267_v37 = vpop.eup %4266  ;;  %4270 = vrcp.f32 %v2009_v41 }
 0xb5c   : > { %v1888_v46 = vmul.f32 %v4267_v37, %v4259_v10 }
 0xb5e   : > { %v1889_v15 = vpack.c.bf16 %v1888_v46, %v1887_v58  ;;  %v2183_v4 = vpop.permute.xlu0 %2182  ;;  %v2181_v13 = vpop.permute.xlu1 %2180 }
 0xb5f   : > { %v2188_v9 = vsel %vm1025_vm1, %v2183_v4, 0 }
 0xb60   : > { %4003 = vmatmul.mubr.msk.bf16.vlgmr.msra.gmra.mrb[32].mxu0 %vm1073_vm2, %v1889_v15 }
 0xb61   : > { %4013 = vmatpush3.bf16.msra.mxu0 %v2017_v47  ;;  %4014 = vmatprep.mubr.msk.bf16.mxu0 %vm4346_vm0, %v4345_v42  ;;  %v4269_v19 = vpop.eup %4268 }
 0xb62   : > { %4026 = vmatprep.subr.bf16.mxu0 %v4345_v42  ;;  %v2012_v49 = vmul.f32 %v4269_v19, %v4261_v24 }
 0xb65   : > { %v4271_v48 = vpop.eup %4270 }
 0xb66   : > { %v2013_v50 = vmul.f32 %v4271_v48, %v4263_v26 }
 0xb68   : > { %v2014_v52 = vpack.c.bf16 %v2013_v50, %v2012_v49  ;;  %v4132_v49 = vld [vmem:[%s5387_s8 + $0x20] sm:$0xff]  }
 0xb6a   : > { %4015 = vmatmul.mubr.msk.bf16.vlgmr.msra.gmra.mrb[36].mxu0 %vm1073_vm2, %v2014_v52 }
 0xb6b   : > { %4027 = vmatpush3.bf16.msra.mxu0 %v4128_v51  ;;  %4030 = vmatprep.mubr.msk.bf16.mxu0 %vm4346_vm0, %v4345_v42 }
 0xb6c   : > { %4028 = vmatprep.subr.bf16.mxu0 %v4345_v42 }
 0xb6f   : > { %4029 = vmatpush3.bf16.msra.mxu0 %v4130_v54 }
 0xb70   : > { %4040 = vmatprep.subr.bf16.mxu0 %v4345_v42 }
 0xc33   : > { %v1927_v56 = vpop.f32.mrb[32].mxu0 }
 0xc34   : > { %v4004_v57 = vpop.f32.mrb[33].mxu0 }
 0xc35   : > { %v1930_v60 = vpop.f32.mrb[34].mxu0 }
 0xc36   : > { %v1934_v62 = vpack.c.bf16 %v1930_v60, %v1927_v56  ;;  %v4005_v0 = vpop.f32.mrb[35].mxu0 }
 0xc38   : > { %4031 = vmatmul.mubr.msk.bf16.vlgmr.msra.gmra.mrb[40].mxu0 %vm1025_vm1, %v1934_v62  ;;  %v4133_v62 = vld [vmem:[%s5387_s8 + $0x28] sm:$0xff]  }
 0xc39   : > { %4042 = vmatprep.mubr.msk.bf16.mxu0 %vm4346_vm0, %v4345_v42 }
 0xc3d   : > { %v2056_v1 = vpop.f32.mrb[36].mxu0 }
 0xc3e   : > { %v4016_v3 = vpop.f32.mrb[37].mxu0 }
 0xc3f   : > { %v2059_v5 = vpop.f32.mrb[38].mxu0 }
 0xc40   : > { %v2063_v6 = vpack.c.bf16 %v2059_v5, %v2056_v1  ;;  %v4017_v8 = vpop.f32.mrb[39].mxu0 }
 0xc42   : > { %4023 = vmatmul.mubr.msk.bf16.vlgmr.msra.gmra.mrb[36].mxu1 %vm1025_vm1, %v2063_v6 }
 0xc43   : > { %4035 = vmatpush3.bf16.xpose.msra.mxu1 %v2188_v9  ;;  %4036 = vmatprep.mubr.msk.bf16.mxu1 %vm4346_vm0, %v4345_v42 }
 0xc44   : > { %4046 = vmatprep.subr.bf16.mxu1 %v4345_v42 }
 0xc4a   : > { %4037 = vmatmul.mubr.msk.bf16.vlgmr.msra.gmra.mrb[40].mxu1 %vm1025_vm1, %v2181_v13 }
 0xc4b   : > { %4050 = vmatprep.mubr.msk.bf16.mxu1 %vm4346_vm0, %v4345_v42  ;;  %4047 = vmatpush3.bf16.msra.mxu1 %v4132_v49 }
 0xc4c   : > { %4048 = vmatprep.subr.bf16.mxu1 %v4345_v42 }
 0xc4f   : > { %4049 = vmatpush3.bf16.msra.mxu1 %v4133_v62 }
 0xc50   : > { %4060 = vmatprep.subr.bf16.mxu1 %v4345_v42 }
 0xd0b   : > { %v2173_v27 = vpop.f32.mrb[40].mxu0 }
 0xd0c   : > { %v4032_v14 = vpop.f32.mrb[41].mxu0 }
 0xd0d   : > { %v2176_v16 = vpop.f32.mrb[42].mxu0 }
 0xd0e   : > { %v4033_v17 = vpop.f32.mrb[43].mxu0 }
 0xd15   : > { %v2117_v18 = vpop.f32.mrb[36].mxu1 }
 0xd16   : > { %v4855_v20 = vadd.f32 %v2173_v27, %v2117_v18  ;;  %v4024_v10 = vpop.f32.mrb[37].mxu1 }
 0xd17   : > { %v2120_v23 = vpop.f32.mrb[38].mxu1 }
 0xd18   : > { %v4857_v24 = vadd.f32 %v2176_v16, %v2120_v23  ;;  %v4025_v63 = vpop.f32.mrb[39].mxu1 }
 0xd1d   : > { %v2224_v26 = vpop.f32.mrb[40].mxu1 }
 0xd1e   : > { %v2225_v28 = vadd.f32 %v4792_v44, %v2224_v26  ;;  %v4038_v29 = vpop.f32.mrb[41].mxu1 }
 0xd1f   : > { %v2227_v2 = vpop.f32.mrb[42].mxu1 }
 0xd20   : > { %v2228_v59 = vadd.f32 %v4792_v44, %v2227_v2  ;;  %v4039_v32 = vpop.f32.mrb[43].mxu1  ;;  %v2231_v33 = vsel %vm1073_vm2, %v2225_v28, -inf  ;;  %v4900_v2 = vld [vmem:[%s5388_s9] ss:$0 sm:$0xff] }
 0xd21   : > { %2232 = vmax.xlane.f32.xlu1 %v2231_v33 }
 0xd22   : > { %v2234_v34 = vsel %vm1073_vm2, %v2228_v59, -inf }
 0xd23   : > { %2235 = vmax.xlane.f32.xlu0 %v2234_v34  ;;  %v1763_v34 = vadd.f32 %v4900_v2, %v4819_v31 }
 0xdae   : > { %v2233_v35 = vpop.xlane.xlu1 %2232 }
 0xdaf   : > { %v2237_v36 = vsub.f32 %v2225_v28, %v2233_v35 }
 0xdb0   : > { %v2236_v41 = vpop.xlane.xlu0 %2235 }
 0xdb1   : > { %v2239_v37 = vmul.f32 1.442695, %v2237_v36  ;;  %v2238_v58 = vsub.f32 %v2228_v59, %v2236_v41  ;;  %v4913_v36 = vadd.f32 %v1763_v34, %v4587_v12  ;;  %v4157_v34 = vld [vmem:[%s5391_s12 + $0xe4] ss:$16 sps:$4 sm:$0xff]  }
 0xdb3   : > { %4272 = vpow2.f32 %v2239_v37  ;;  %v2241_v46 = vmul.f32 1.442695, %v2238_v58 }
 0xdb5   : > { %4274 = vpow2.f32 %v2241_v46 }
 0xdbd   : > { %v4273_v15 = vpop.eup %4272 }
 0xdbe   : > { %v2243_v47 = vsel %vm1073_vm2, %v4273_v15, 0.0 }
 0xdbf   : > { %v4275_v19 = vpop.eup %4274  ;;  %2244 = vadd.xlane.f32.xlu0 %v2243_v47  ;;  %v4158_v47 = vld [vmem:[%s5387_s8 + $0x30] sm:$0xff]  }
 0xdc0   : > { %v2246_v48 = vsel %vm1073_vm2, %v4275_v19, 0.0 }
 0xdc1   : > { %2247 = vadd.xlane.f32.xlu1 %v2246_v48 }
 0xdd2   : > { %2366 = vrot.lane.b32.xlu1 %v4641_v21, %s4349_s0 }
 0xdd5   : > { %2254 = vrot.lane.b32.xlu0 %v4635_v7, %s4348_s29 }
 0xdd6   : > { %2364 = vrot.lane.b32.xlu1 %v4643_v22, %s4349_s0 }
 0xe4c   : > { %v2245_v50 = vpop.xlane.xlu0 %2244 }
 0xe4d   : > { %4276 = vrcp.f32 %v2245_v50 }
 0xe4e   : > { %v2248_v51 = vpop.xlane.xlu1 %2247 }
 0xe4f   : > { %4278 = vrcp.f32 %v2248_v51 }
 0xe50   : > { %v2255_v52 = vpop.permute.xlu0 %2254 }
 0xe51   : > { %4041 = vmatpush3.bf16.msra.mxu0 %v2255_v52 }
 0xe52   : > { %4054 = vmatprep.subr.bf16.mxu0 %v4345_v42  ;;  %v2367_v22 = vpop.permute.xlu1 %2366 }
 0xe53   : > { %v2372_v57 = vsel %vm1025_vm1, %v2367_v22, 0 }
 0xe56   : > { %v2365_v60 = vpop.permute.xlu1 %2364 }
 0xe57   : > { %v4277_v21 = vpop.eup %4276 }
 0xe58   : > { %v2251_v54 = vmul.f32 %v4277_v21, %v4273_v15 }
 0xe59   : > { %v4279_v53 = vpop.eup %4278 }
 0xe5a   : > { %v2252_v55 = vmul.f32 %v4279_v53, %v4275_v19 }
 0xe5c   : > { %v2253_v56 = vpack.c.bf16 %v2252_v55, %v2251_v54 }
 0xe5e   : > { %4043 = vmatmul.mubr.msk.bf16.vlgmr.msra.gmra.mrb[44].mxu0 %vm1073_vm2, %v2253_v56  ;;  %v4134_v56 = vld [vmem:[%s5391_s12] ss:$16 sps:$4 sm:$0xff]  }
 0xe5f   : > { %4055 = vmatpush3.bf16.xpose.msra.mxu0 %v2372_v57  ;;  %4056 = vmatprep.mubr.msk.bf16.mxu0 %vm4346_vm0, %v4345_v42  ;;  %v4139_v57 = vld [vmem:[%s5391_s12 + $0x24] ss:$16 sps:$4 sm:$0xff]  }
 0xe60   : > { %4066 = vmatprep.subr.bf16.mxu0 %v4345_v42 }
 0xe66   : > { %4057 = vmatmul.mubr.msk.bf16.vlgmr.msra.gmra.mrb[48].mxu0 %vm1025_vm1, %v2365_v60 }
 0xe67   : > { %4070 = vmatprep.mubr.msk.bf16.mxu0 %vm4346_vm0, %v4345_v42  ;;  %4067 = vmatpush3.bf16.msra.mxu0 %v4158_v47 }
 0xe68   : > { %4068 = vmatprep.subr.bf16.mxu0 %v4345_v42 }
 0xf31   : > { %v2294_v0 = vpop.f32.mrb[44].mxu0 }
 0xf32   : > { %v4044_v1 = vpop.f32.mrb[45].mxu0 }
 0xf33   : > { %v2297_v3 = vpop.f32.mrb[46].mxu0 }
 0xf34   : > { %v2301_v4 = vpack.c.bf16 %v2297_v3, %v2294_v0  ;;  %v4045_v5 = vpop.f32.mrb[47].mxu0 }
 0xf35   : > { %v4142_v5 = vld [vmem:[%s5391_s12 + $0x44] ss:$16 sps:$4 sm:$0xff]  }
 0xf36   : > { %4051 = vmatmul.mubr.msk.bf16.vlgmr.msra.gmra.mrb[44].mxu1 %vm1025_vm1, %v2301_v4  ;;  %v4137_v4 = vld [vmem:[%s5391_s12 + $0x20] ss:$16 sps:$4 sm:$0xff]  }
 0xf37   : > { %4062 = vmatprep.mubr.msk.bf16.mxu1 %vm4346_vm0, %v4345_v42 }
 0xf39   : > { %v2408_v6 = vpop.f32.mrb[48].mxu0 }
 0xf3a   : > { %v2409_v8 = vadd.f32 %v4792_v44, %v2408_v6  ;;  %v4058_v9 = vpop.f32.mrb[49].mxu0 }
 0xf3b   : > { %v2411_v13 = vpop.f32.mrb[50].mxu0 }
 0xf3c   : > { %v2412_v27 = vadd.f32 %v4792_v44, %v2411_v13  ;;  %v4059_v14 = vpop.f32.mrb[51].mxu0  ;;  %v2415_v16 = vsel %vm1073_vm2, %v2409_v8, -inf  ;;  %v4140_v13 = vld [vmem:[%s5391_s12 + $0x40] ss:$16 sps:$4 sm:$0xff]  }
 0xf3d   : > { %2416 = vmax.xlane.f32.xlu1 %v2415_v16  ;;  %v4143_v16 = vld [vmem:[%s5391_s12 + $0x60] ss:$16 sps:$4 sm:$0xff]  }
 0xf3e   : > { %v2418_v17 = vsel %vm1073_vm2, %v2412_v27, -inf }
 0xf3f   : > { %2419 = vmax.xlane.f32.xlu0 %v2418_v17  ;;  %v4148_v17 = vld [vmem:[%s5391_s12 + $0x84] ss:$16 sps:$4 sm:$0xff]  }
 0xf4e   : > { %2438 = vrot.lane.b32.xlu1 %v4635_v7, %s4349_s0  ;;  %v1762_v7 = vadd.f32 %v4900_v2, %v4816_v30  ;;  %v1775_v30 = vmul.f32 %v4913_v36, %v4913_v36 }
 0xf50   : > { %v4909_v35 = vadd.f32 %v1762_v7, %v4585_v11  ;;  %v4136_v11 = vld [vmem:[%s5391_s12 + $0x4] ss:$16 sps:$4 sm:$0xff]   ;;  %v4152_v7 = vld [vmem:[%s5391_s12 + $0xc0] ss:$16 sps:$4 sm:$0xff]  }
 0xf52   : > { %v1774_v41 = vmul.f32 %v4909_v35, %v4909_v35 }
 0xfca   : > { %v2417_v18 = vpop.xlane.xlu1 %2416 }
 0xfcb   : > { %v2421_v10 = vsub.f32 %v2409_v8, %v2417_v18  ;;  %v4146_v18 = vld [vmem:[%s5391_s12 + $0x80] ss:$16 sps:$4 sm:$0xff]  }
 0xfcc   : > { %v2420_v23 = vpop.xlane.xlu0 %2419 }
 0xfcd   : > { %v2423_v63 = vmul.f32 1.442695, %v2421_v10  ;;  %v2422_v26 = vsub.f32 %v2412_v27, %v2420_v23  ;;  %v4145_v27 = vld [vmem:[%s5391_s12 + $0x64] ss:$16 sps:$4 sm:$0xff]  }
 0xfce   : > { %v2439_v28 = vpop.permute.xlu1 %2438  ;;  %v4151_v10 = vld [vmem:[%s5391_s12 + $0xa4] ss:$16 sps:$4 sm:$0xff]  }
 0xfcf   : > { %4280 = vpow2.f32 %v2423_v63  ;;  %v2425_v29 = vmul.f32 1.442695, %v2422_v26  ;;  %4061 = vmatpush3.bf16.msra.mxu1 %v2439_v28  ;;  %v4149_v63 = vld [vmem:[%s5391_s12 + $0xa0] ss:$16 sps:$4 sm:$0xff]  }
 0xfd0   : > { %2827 = vmatprep.subr.bf16.mxu1 %v4136_v11 }
 0xfd1   : > { %4282 = vpow2.f32 %v2425_v29  ;;  %v4154_v29 = vld [vmem:[%s5391_s12 + $0xc4] ss:$16 sps:$4 sm:$0xff]  }
 0xfd9   : > { %v4281_v44 = vpop.eup %4280 }
 0xfda   : > { %v2427_v59 = vsel %vm1073_vm2, %v4281_v44, 0.0 }
 0xfdb   : > { %v4283_v32 = vpop.eup %4282  ;;  %2428 = vadd.xlane.f32.xlu0 %v2427_v59 }
 0xfdc   : > { %v2430_v33 = vsel %vm1073_vm2, %v4283_v32, 0.0 }
 0xfdf   : > { %2431 = vadd.xlane.f32.xlu0 %v2430_v33  ;;  %v4979_v33 = vld [vmem:[%s5389_s10] ss:$0 sm:$0xff] }
 0xfe3   : > { %1768 = vadd.xlane.f32.xlu0 %v4909_v35 }
 0xfe7   : > { %1770 = vadd.xlane.f32.xlu0 %v4913_v36 }
 0xfeb   : > { %1776 = vadd.xlane.f32.xlu0 %v1774_v41  ;;  %v4155_v41 = vld [vmem:[%s5391_s12 + $0xe0] ss:$16 sps:$4 sm:$0xff]  }
 0xfef   : > { %1778 = vadd.xlane.f32.xlu0 %v1775_v30  ;;  %v4992_v30 = vld [vmem:[%s5390_s11] ss:$0 sm:$0xff] }
0x1009   : > { %v2355_v31 = vpop.f32.mrb[44].mxu1 }
0x100a   : > { %v4924_v37 = vadd.f32 %v2355_v31, %v4855_v20  ;;  %v4052_v12 = vpop.f32.mrb[45].mxu1 }
0x100b   : > { %v2358_v58 = vpop.f32.mrb[46].mxu1 }
0x100c   : > { %v4927_v46 = vadd.f32 %v2358_v58, %v4857_v24  ;;  %v4053_v15 = vpop.f32.mrb[47].mxu1  ;;  %v4159_v58 = vld [vmem:[%s5387_s8 + $0x38] sm:$0xff]  }
0x100d   : > { %4069 = vmatpush3.bf16.msra.mxu0 %v4159_v58  ;;  %v4162_v15 = vld [vmem:[%s5391_s12 + $0xc] ss:$16 sps:$4 sm:$0xff]  }
0x100e   : > { %2880 = vmatprep.subr.bf16.mxu0 %v4162_v15 }
0x1068   : > { %v2429_v19 = vpop.xlane.xlu0 %2428 }
0x1069   : > { %4284 = vrcp.f32 %v2429_v19 }
0x106c   : > { %v2432_v48 = vpop.xlane.xlu0 %2431 }
0x106d   : > { %4286 = vrcp.f32 %v2432_v48 }
0x1070   : > { %v1769_v49 = vpop.xlane.xlu0 %1768 }
0x1071   : > { %v1772_v51 = vmul.f32 0.0078125, %v1769_v49  ;;  %v4160_v49 = vld [vmem:[%s5391_s12 + $0x8] ss:$16 sps:$4 sm:$0xff]  }
0x1073   : > { %v4285_v50 = vpop.eup %4284  ;;  %v1782_v54 = vmul.f32 %v1772_v51, %v1772_v51  ;;  %v1788_v26 = vsub.f32 %v4909_v35, %v1772_v51  ;;  %v4165_v51 = vld [vmem:[%s5391_s12 + $0x2c] ss:$16 sps:$4 sm:$0xff]  }
0x1074   : > { %v1771_v20 = vpop.xlane.xlu0 %1770  ;;  %v2435_v21 = vmul.f32 %v4285_v50, %v4281_v44 }
0x1075   : > { %v1773_v55 = vmul.f32 0.0078125, %v1771_v20 }
0x1077   : > { %v4287_v52 = vpop.eup %4286  ;;  %v1783_v0 = vmul.f32 %v1773_v55, %v1773_v55  ;;  %v1789_v28 = vsub.f32 %v4913_v36, %v1773_v55  ;;  %v4174_v55 = vld [vmem:[%s5391_s12 + $0x8c] ss:$16 sps:$4 sm:$0xff]  }
0x1078   : > { %v2436_v24 = vmul.f32 %v4287_v52, %v4283_v32  ;;  %v1777_v53 = vpop.xlane.xlu0 %1776  ;;  %v4163_v52 = vld [vmem:[%s5391_s12 + $0x28] ss:$16 sps:$4 sm:$0xff]  }
0x1079   : > { %v1780_v22 = vmul.f32 0.0078125, %v1777_v53  ;;  %v4171_v53 = vld [vmem:[%s5391_s12 + $0x6c] ss:$16 sps:$4 sm:$0xff]  }
0x107a   : > { %v2437_v42 = vpack.c.bf16 %v2436_v24, %v2435_v21  ;;  %v4168_v21 = vld [vmem:[%s5391_s12 + $0x4c] ss:$16 sps:$4 sm:$0xff]   ;;  %v4166_v24 = vld [vmem:[%s5391_s12 + $0x48] ss:$16 sps:$4 sm:$0xff]  }
0x107b   : > { %v1784_v60 = vsub.f32 %v1780_v22, %v1782_v54  ;;  %v4169_v54 = vld [vmem:[%s5391_s12 + $0x68] ss:$16 sps:$4 sm:$0xff]  }
0x107c   : > { %4063 = vmatmul.mubr.msk.bf16.vlgmr.msra.gmra.mrb[48].mxu1 %vm1073_vm2, %v2437_v42  ;;  %v1779_v62 = vpop.xlane.xlu0 %1778  ;;  %v4172_v22 = vld [vmem:[%s5391_s12 + $0x88] ss:$16 sps:$4 sm:$0xff]  }
0x107d   : > { %v1786_v1 = vmax.f32 %v1784_v60, 0.0  ;;  %2828 = vmatpush1.bf16.msra.mxu1 %v4134_v56  ;;  %v1781_v3 = vmul.f32 0.0078125, %v1779_v62  ;;  %2859 = vmatprep.mubr.bf16.mxu1 %v4344_v25  ;;  %v4177_v56 = vld [vmem:[%s5391_s12 + $0xac] ss:$16 sps:$4 sm:$0xff]   ;;  %v4175_v42 = vld [vmem:[%s5391_s12 + $0xa8] ss:$16 sps:$4 sm:$0xff]  }
0x107e   : > { %2829 = vmatprep.subr.bf16.mxu1 %v4139_v57  ;;  %v4180_v57 = vld [vmem:[%s5391_s12 + $0xcc] ss:$16 sps:$4 sm:$0xff]   ;;  %v4178_v60 = vld [vmem:[%s5391_s12 + $0xc8] ss:$16 sps:$4 sm:$0xff]   ;;  %v5053_v62 = vld [vmem:[%s5392_s13] sm:$0xf] }
0x107f   : > { %v1790_v6 = vadd.f32 1e-12, %v1786_v1  ;;  %v1785_v8 = vsub.f32 %v1781_v3, %v1783_v0  ;;  %v4183_v0 = vld [vmem:[%s5391_s12 + $0xec] ss:$16 sps:$4 sm:$0xff]   ;;  %v5061_v1 = vrot.slane %v5053_v62, %v766_v43  ;;  %v5066_v3 = vrot.slane %v5053_v62, %v770_v45 }
0x1081   : > { %v1787_v9 = vmax.f32 %v1785_v8, 0.0  ;;  %2830 = vmatpush1.bf16.msra.mxu1 %v4137_v4  ;;  %4288 = vrsqrt.f32 %v1790_v6  ;;  %v4181_v4 = vld [vmem:[%s5391_s12 + $0xe8] ss:$16 sps:$4 sm:$0xff]  }
0x1082   : > { %2831 = vmatprep.subr.bf16.mxu1 %v4142_v5 }
0x1083   : > { %v1791_v14 = vadd.f32 1e-12, %v1787_v9 }
0x1085   : > { %4290 = vrsqrt.f32 %v1791_v14  ;;  %2832 = vmatpush1.bf16.msra.mxu1 %v4140_v13 }
0x1086   : > { %2833 = vmatprep.subr.bf16.mxu1 %v4145_v27 }
0x1089   : > { %2834 = vmatpush1.bf16.msra.mxu1 %v4143_v16 }
0x108a   : > { %2835 = vmatprep.subr.bf16.mxu1 %v4148_v17 }
0x108b   : > { %v4289_v23 = vpop.eup %4288 }
0x108c   : > { %v1794_v59 = vmul.f32 %v4289_v23, %v1788_v26 }
0x108d   : > { %2836 = vmatpush1.bf16.msra.mxu1 %v4146_v18 }
0x108e   : > { %2837 = vmatprep.subr.bf16.mxu1 %v4151_v10  ;;  %v1802_v36 = vmul.f32 %v4979_v33, %v1794_v59 }
0x108f   : > { %v4291_v44 = vpop.eup %4290 }
0x1090   : > { %v1795_v32 = vmul.f32 %v4291_v44, %v1789_v28  ;;  %v4998_v31 = vadd.f32 %v4992_v30, %v1802_v36 }
0x1091   : > { %2838 = vmatpush1.bf16.msra.mxu1 %v4149_v63 }
0x1092   : > { %2839 = vmatprep.subr.bf16.mxu1 %v4154_v29  ;;  %v1803_v35 = vmul.f32 %v4979_v33, %v1795_v32 }
0x1094   : > { %v4995_v11 = vadd.f32 %v4992_v30, %v1803_v35 }
0x1095   : > { %2840 = vmatpush1.bf16.msra.mxu1 %v4152_v7 }
0x1096   : > { %2841 = vmatprep.subr.bf16.mxu1 %v4157_v34  ;;  %v2611_v12 = vpack.c.bf16 %v4995_v11, %v4998_v31 }
0x1099   : > { %2842 = vmatpush1.bf16.msra.mxu1 %v4155_v41 }
0x109c   : > { %2860 = vmatmul.mubr.bf16.vlgmr.msra.gmra.mrb[52].mxu1 %v2611_v12 }
0x109d   : > { %2869 = vmatprep.mubr.bf16.mxu1 %v4344_v25 }
0x114f   : > { %v2478_v47 = vpop.f32.mrb[48].mxu1 }
0x1150   : > { %v4064_v19 = vpop.f32.mrb[49].mxu1 }
0x1151   : > { %v2481_v48 = vpop.f32.mrb[50].mxu1 }
0x1152   : > { %v2485_v20 = vpack.c.bf16 %v2481_v48, %v2478_v47  ;;  %v4065_v50 = vpop.f32.mrb[51].mxu1 }
0x1154   : > { %4071 = vmatmul.mubr.msk.bf16.vlgmr.msra.gmra.mrb[52].mxu0 %vm1025_vm1, %v2485_v20 }
0x1155   : > { %2881 = vmatpush1.bf16.msra.mxu0 %v4160_v49  ;;  %2912 = vmatprep.mubr.bf16.mxu0 %v4344_v25 }
0x1156   : > { %2882 = vmatprep.subr.bf16.mxu0 %v4165_v51 }
0x1159   : > { %2883 = vmatpush1.bf16.msra.mxu0 %v4163_v52 }
0x115a   : > { %2884 = vmatprep.subr.bf16.mxu0 %v4168_v21 }
0x115d   : > { %2885 = vmatpush1.bf16.msra.mxu0 %v4166_v24 }
0x115e   : > { %2886 = vmatprep.subr.bf16.mxu0 %v4171_v53 }
0x1161   : > { %2887 = vmatpush1.bf16.msra.mxu0 %v4169_v54 }
0x1162   : > { %2888 = vmatprep.subr.bf16.mxu0 %v4174_v55 }
0x1165   : > { %2889 = vmatpush1.bf16.msra.mxu0 %v4172_v22 }
0x1166   : > { %2890 = vmatprep.subr.bf16.mxu0 %v4177_v56 }
0x1169   : > { %2891 = vmatpush1.bf16.msra.mxu0 %v4175_v42 }
0x116a   : > { %2892 = vmatprep.subr.bf16.mxu0 %v4180_v57 }
0x116d   : > { %2893 = vmatpush1.bf16.msra.mxu0 %v4178_v60 }
0x116e   : > { %2894 = vmatprep.subr.bf16.mxu0 %v4183_v0 }
0x116f   : > { %v2861_v5 = vpop.f32.mrb[52].mxu1 }
0x1170   : > { %v2862_v6 = vadd.f32 %v2861_v5, %v5061_v1  ;;  %v2863_v8 = vpop.f32.mrb[53].mxu1 }
0x1171   : > { %v2864_v9 = vadd.f32 %v2863_v8, %v5066_v3  ;;  %v2865_v13 = vpop.f32.mrb[54].mxu1  ;;  %2895 = vmatpush1.bf16.msra.mxu0 %v4181_v4 }
0x1172   : > { %v2933_v43 = vmul.f32 %v2862_v6, %v2862_v6  ;;  %v2866_v27 = vadd.f32 %v2865_v13, %v5061_v1  ;;  %v2867_v14 = vpop.f32.mrb[55].mxu1 }
0x1173   : > { %v2934_v16 = vmul.f32 %v2864_v9, %v2864_v9  ;;  %v2868_v45 = vadd.f32 %v2867_v14, %v5066_v3 }
0x1174   : > { %v2949_v17 = vmul.f32 %v2933_v43, %v2862_v6  ;;  %v2937_v18 = vmul.f32 %v2866_v27, %v2866_v27  ;;  %2913 = vmatmul.mubr.bf16.vlgmr.msra.gmra.mrb[56].mxu0 %v2611_v12 }
0x1175   : > { %v2950_v10 = vmul.f32 %v2934_v16, %v2864_v9  ;;  %v2938_v23 = vmul.f32 %v2868_v45, %v2868_v45  ;;  %2922 = vmatprep.mubr.bf16.mxu0 %v4344_v25 }
0x1176   : > { %v2965_v63 = vmul.f32 0.044715, %v2949_v17  ;;  %v2953_v26 = vmul.f32 %v2937_v18, %v2866_v27  ;;  %v4185_v17 = vld [vmem:[%s5393_s14 + $0xc0] sm:$0xff]  }
0x1177   : > { %v2966_v28 = vmul.f32 0.044715, %v2950_v10  ;;  %v2954_v29 = vmul.f32 %v2938_v23, %v2868_v45  ;;  %v4187_v18 = vld [vmem:[%s5393_s14 + $0x80] sm:$0xff]   ;;  %3866 = vmatprep.subr.bf16.mxu0 %v4185_v17  ;;  %v4207_v17 = vld [vmem:[%s5393_s14 + $0xa8] sm:$0xff]  }
0x1178   : > { %v2981_v44 = vadd.f32 %v2965_v63, %v2862_v6  ;;  %v2969_v59 = vmul.f32 0.044715, %v2953_v26  ;;  %3867 = vmatpush3.bf16.msra.mxu0 %v4187_v18 }
0x1179   : > { %v2982_v32 = vadd.f32 %v2966_v28, %v2864_v9  ;;  %v2970_v7 = vmul.f32 0.044715, %v2954_v29 }
0x117a   : > { %v2997_v34 = vmul.f32 0.7978846, %v2981_v44  ;;  %v2985_v35 = vadd.f32 %v2969_v59, %v2866_v27  ;;  %v4188_v59 = vld [vmem:[%s5393_s14 + $0x48] sm:$0xff]  }
0x117b   : > { %v2998_v36 = vmul.f32 0.7978846, %v2982_v32  ;;  %v2986_v41 = vadd.f32 %v2970_v7, %v2868_v45  ;;  %v4189_v32 = vld [vmem:[%s5393_s14 + $0xc8] sm:$0xff]  }
0x117c   : > { %4292 = vtanh.f32 %v2997_v34  ;;  %v3001_v58 = vmul.f32 0.7978846, %v2985_v35  ;;  %v4190_v35 = vld [vmem:[%s5393_s14 + $0x8] sm:$0xff]   ;;  %3868 = vmatprep.subr.bf16.mxu0 %v4189_v32 }
0x117d   : > { %4294 = vtanh.f32 %v2998_v36  ;;  %v3002_v12 = vmul.f32 0.7978846, %v2986_v41  ;;  %v4191_v36 = vld [vmem:[%s5393_s14 + $0x88] sm:$0xff]  }
0x117e   : > { %4296 = vtanh.f32 %v3001_v58  ;;  %3869 = vmatpush3.bf16.msra.mxu0 %v4191_v36 }
0x117f   : > { %4298 = vtanh.f32 %v3002_v12  ;;  %v4192_v12 = vld [vmem:[%s5393_s14 + $0x50] sm:$0xff]  }
0x1186   : > { %v4293_v15 = vpop.eup %4292 }
0x1187   : > { %v4295_v25 = vpop.eup %4294  ;;  %v3029_v47 = vadd.f32 1.0, %v4293_v15  ;;  %v4193_v15 = vld [vmem:[%s5393_s14 + $0xd0] sm:$0xff]  }
0x1188   : > { %v4297_v19 = vpop.eup %4296  ;;  %v3030_v48 = vadd.f32 1.0, %v4295_v25  ;;  %3870 = vmatprep.subr.bf16.mxu0 %v4193_v15  ;;  %v4214_v15 = vld [vmem:[%s5393_s14 + $0x38] sm:$0xff]  }
0x1189   : > { %v4299_v49 = vpop.eup %4298  ;;  %v3045_v20 = vmul.f32 0.5, %v3029_v47  ;;  %v3033_v50 = vadd.f32 1.0, %v4297_v19  ;;  %v4194_v19 = vld [vmem:[%s5393_s14 + $0x10] sm:$0xff]  }
0x118a   : > { %v3034_v51 = vadd.f32 1.0, %v4299_v49  ;;  %v3046_v52 = vmul.f32 0.5, %v3030_v48  ;;  %v4195_v48 = vld [vmem:[%s5393_s14 + $0x90] sm:$0xff]  }
0x118b   : > { %v3049_v21 = vmul.f32 0.5, %v3033_v50  ;;  %v5076_v53 = vmul.f32 %v3045_v20, %v2862_v6  ;;  %v4196_v50 = vld [vmem:[%s5393_s14 + $0x58] sm:$0xff]   ;;  %3871 = vmatpush3.bf16.msra.mxu0 %v4195_v48 }
0x118c   : > { %v3050_v24 = vmul.f32 0.5, %v3034_v51  ;;  %v5080_v55 = vmul.f32 %v3046_v52, %v2864_v9  ;;  %v4197_v51 = vld [vmem:[%s5393_s14 + $0xd8] sm:$0xff]  }
0x118d   : > { %v5078_v54 = vmul.f32 %v3049_v21, %v2866_v27  ;;  %3872 = vmatprep.subr.bf16.mxu0 %v4197_v51 }
0x118e   : > { %v5082_v22 = vmul.f32 %v3050_v24, %v2868_v45  ;;  %v4184_v45 = vld [vmem:[%s5393_s14 + $0x40] sm:$0xff]  }
0x118f   : > { %v3077_v56 = vpack.c.bf16 %v5078_v54, %v5076_v53  ;;  %3838 = vmatprep.subr.bf16.mxu1 %v4184_v45  ;;  %v4206_v45 = vld [vmem:[%s5393_s14 + $0x28] sm:$0xff]  }
0x1190   : > { %v3078_v42 = vpack.c.bf16 %v5082_v22, %v5080_v55 }
0x1227   : > { %v2539_v57 = vpop.f32.mrb[52].mxu0 }
0x1228   : > { %v2546_v60 = vadd.f32 %v2539_v57, %v4924_v37  ;;  %v4072_v0 = vpop.f32.mrb[53].mxu0 }
0x1229   : > { %v2542_v4 = vpop.f32.mrb[54].mxu0 }
0x122a   : > { %v2555_v5 = vadd.f32 %v4900_v2, %v2546_v60  ;;  %v2547_v6 = vadd.f32 %v2542_v4, %v4927_v46  ;;  %v4073_v8 = vpop.f32.mrb[55].mxu0  ;;  %v4198_v4 = vld [vmem:[%s5393_s14 + $0x18] sm:$0xff]  }
0x122b   : > { %v4200_v8 = vld [vmem:[%s5393_s14 + $0x60] sm:$0xff]  }
0x122c   : > { %v2556_v9 = vadd.f32 %v4900_v2, %v2547_v6  ;;  %v5093_v13 = vadd.f32 %v2555_v5, %v4594_v39  ;;  %v2661_v2 = vsub.s32 3, %v4606_v38  ;;  %v5108_v39 = vrot.slane %v5053_v62, %v774_v61  ;;  %v4199_v5 = vld [vmem:[%s5393_s14 + $0x98] sm:$0xff]  }
0x122d   : > { %3873 = vmatpush3.bf16.msra.mxu0 %v4199_v5 }
0x122e   : > { %2561 = vadd.xlane.f32.xlu1 %v5093_v13  ;;  %v5097_v43 = vadd.f32 %v2556_v9, %v4596_v40  ;;  %v2567_v37 = vmul.f32 %v5093_v13, %v5093_v13  ;;  %v5111_v40 = vrot.slane %v5053_v62, %v2661_v2  ;;  %v4186_v62 = vld [vmem:[%s5393_s14] sm:$0xff]  }
0x122f   : > { %3839 = vmatpush3.bf16.msra.mxu1 %v4186_v62  ;;  %v4201_v9 = vld [vmem:[%s5393_s14 + $0xe0] sm:$0xff]  }
0x1230   : > { %2563 = vadd.xlane.f32.xlu0 %v5097_v43  ;;  %v2568_v46 = vmul.f32 %v5097_v43, %v5097_v43  ;;  %3840 = vmatprep.subr.bf16.mxu1 %v4188_v59  ;;  %v4203_v2 = vld [vmem:[%s5393_s14 + $0xa0] sm:$0xff]  }
0x1231   : > { %3874 = vmatprep.subr.bf16.mxu0 %v4201_v9 }
0x1232   : > { %3875 = vmatpush3.bf16.msra.mxu0 %v4203_v2 }
0x1233   : > { %3841 = vmatpush3.bf16.msra.mxu1 %v4190_v35 }
0x1234   : > { %2569 = vadd.xlane.f32.xlu0 %v2567_v37  ;;  %3842 = vmatprep.subr.bf16.mxu1 %v4192_v12 }
0x1237   : > { %3843 = vmatpush3.bf16.msra.mxu1 %v4194_v19 }
0x1238   : > { %2571 = vadd.xlane.f32.xlu0 %v2568_v46  ;;  %3844 = vmatprep.subr.bf16.mxu1 %v4196_v50  ;;  %v4202_v46 = vld [vmem:[%s5393_s14 + $0x20] sm:$0xff]  }
0x123b   : > { %3845 = vmatpush3.bf16.msra.mxu1 %v4198_v4 }
0x123c   : > { %3846 = vmatprep.subr.bf16.mxu1 %v4200_v8 }
0x123f   : > { %3847 = vmatpush3.bf16.msra.mxu1 %v4202_v46 }
0x1247   : > { %v2914_v27 = vpop.f32.mrb[56].mxu0 }
0x1248   : > { %v5114_v14 = vadd.f32 %v2914_v27, %v5108_v39  ;;  %v2916_v16 = vpop.f32.mrb[57].mxu0  ;;  %v4204_v27 = vld [vmem:[%s5393_s14 + $0x68] sm:$0xff]  }
0x1249   : > { %v5123_v38 = vadd.f32 %v2916_v16, %v5111_v40  ;;  %v2918_v61 = vpop.f32.mrb[58].mxu0  ;;  %v4205_v16 = vld [vmem:[%s5393_s14 + $0xe8] sm:$0xff]   ;;  %3848 = vmatprep.subr.bf16.mxu1 %v4204_v27 }
0x124a   : > { %v2935_v10 = vmul.f32 %v5114_v14, %v5114_v14  ;;  %v5134_v23 = vadd.f32 %v2918_v61, %v5108_v39  ;;  %v2920_v63 = vpop.f32.mrb[59].mxu0  ;;  %3876 = vmatprep.subr.bf16.mxu0 %v4205_v16  ;;  %3849 = vmatpush3.bf16.msra.mxu1 %v4206_v45 }
0x124b   : > { %v2936_v26 = vmul.f32 %v5123_v38, %v5123_v38  ;;  %v5139_v28 = vadd.f32 %v2920_v63, %v5111_v40  ;;  %3877 = vmatpush3.bf16.msra.mxu0 %v4207_v17  ;;  %v4208_v63 = vld [vmem:[%s5393_s14 + $0x70] sm:$0xff]  }
0x124c   : > { %v2951_v29 = vmul.f32 %v2935_v10, %v5114_v14  ;;  %v2939_v44 = vmul.f32 %v5134_v23, %v5134_v23  ;;  %3850 = vmatprep.subr.bf16.mxu1 %v4208_v63 }
0x124d   : > { %v2952_v7 = vmul.f32 %v2936_v26, %v5123_v38  ;;  %v2940_v34 = vmul.f32 %v5139_v28, %v5139_v28  ;;  %v4209_v26 = vld [vmem:[%s5393_s14 + $0xf0] sm:$0xff]  }
0x124e   : > { %v2967_v41 = vmul.f32 0.044715, %v2951_v29  ;;  %v2955_v58 = vmul.f32 %v2939_v44, %v5134_v23  ;;  %3878 = vmatprep.subr.bf16.mxu0 %v4209_v26 }
0x124f   : > { %v2968_v25 = vmul.f32 0.044715, %v2952_v7  ;;  %v2956_v47 = vmul.f32 %v2940_v34, %v5139_v28  ;;  %v4210_v7 = vld [vmem:[%s5393_s14 + $0x30] sm:$0xff]  }
0x1250   : > { %v2983_v49 = vadd.f32 %v2967_v41, %v5114_v14  ;;  %v2971_v20 = vmul.f32 0.044715, %v2955_v58  ;;  %v4211_v34 = vld [vmem:[%s5393_s14 + $0xb0] sm:$0xff]   ;;  %v4212_v41 = vld [vmem:[%s5393_s14 + $0x78] sm:$0xff]   ;;  %3851 = vmatpush3.bf16.msra.mxu1 %v4210_v7 }
0x1251   : > { %v2984_v52 = vadd.f32 %v2968_v25, %v5123_v38  ;;  %v2972_v21 = vmul.f32 0.044715, %v2956_v47  ;;  %v4213_v58 = vld [vmem:[%s5393_s14 + $0xf8] sm:$0xff]   ;;  %3879 = vmatpush3.bf16.msra.mxu0 %v4211_v34  ;;  %3852 = vmatprep.subr.bf16.mxu1 %v4212_v41 }
0x1252   : > { %v2999_v24 = vmul.f32 0.7978846, %v2983_v49  ;;  %v2987_v57 = vadd.f32 %v2971_v20, %v5134_v23  ;;  %v4215_v25 = vld [vmem:[%s5393_s14 + $0xb8] sm:$0xff]   ;;  %3880 = vmatprep.subr.bf16.mxu0 %v4213_v58 }
0x1253   : > { %v3000_v60 = vmul.f32 0.7978846, %v2984_v52  ;;  %v2988_v0 = vadd.f32 %v2972_v21, %v5139_v28 }
0x1254   : > { %4300 = vtanh.f32 %v2999_v24  ;;  %v3003_v6 = vmul.f32 0.7978846, %v2987_v57  ;;  %3853 = vmatpush3.bf16.msra.mxu1 %v4214_v15 }
0x1255   : > { %4302 = vtanh.f32 %v3000_v60  ;;  %v3004_v37 = vmul.f32 0.7978846, %v2988_v0  ;;  %3881 = vmatpush3.bf16.msra.mxu0 %v4215_v25 }
0x1256   : > { %4304 = vtanh.f32 %v3003_v6 }
0x1257   : > { %4306 = vtanh.f32 %v3004_v37 }
0x125e   : > { %v4301_v61 = vpop.eup %4300 }
0x125f   : > { %v4303_v62 = vpop.eup %4302  ;;  %v3031_v18 = vadd.f32 1.0, %v4301_v61 }
0x1260   : > { %v4305_v10 = vpop.eup %4304  ;;  %v3032_v29 = vadd.f32 1.0, %v4303_v62 }
0x1261   : > { %v4307_v44 = vpop.eup %4306  ;;  %v3047_v59 = vmul.f32 0.5, %v3031_v18  ;;  %v3035_v32 = vadd.f32 1.0, %v4305_v10 }
0x1262   : > { %v3036_v35 = vadd.f32 1.0, %v4307_v44  ;;  %v3048_v36 = vmul.f32 0.5, %v3032_v29 }
0x1263   : > { %v3051_v12 = vmul.f32 0.5, %v3035_v32  ;;  %v3063_v19 = vmul.f32 %v3047_v59, %v5114_v14 }
0x1264   : > { %v3052_v47 = vmul.f32 0.5, %v3036_v35  ;;  %v3064_v49 = vmul.f32 %v3048_v36, %v5123_v38 }
0x1265   : > { %v3067_v48 = vmul.f32 %v3051_v12, %v5134_v23 }
0x1266   : > { %v3068_v20 = vmul.f32 %v3052_v47, %v5139_v28 }
0x1267   : > { %v3079_v50 = vpack.c.bf16 %v3067_v48, %v3063_v19 }
0x1268   : > { %v3080_v51 = vpack.c.bf16 %v3068_v20, %v3064_v49 }
0x12bb   : > { %v2562_v52 = vpop.xlane.xlu1 %2561 }
0x12bc   : > { %v2565_v24 = vmul.f32 0.0078125, %v2562_v52 }
0x12bd   : > { %v2564_v21 = vpop.xlane.xlu0 %2563 }
0x12be   : > { %v2575_v60 = vmul.f32 %v2565_v24, %v2565_v24  ;;  %v2566_v0 = vmul.f32 0.0078125, %v2564_v21  ;;  %v2581_v46 = vsub.f32 %v5093_v13, %v2565_v24 }
0x12c0   : > { %v2576_v14 = vmul.f32 %v2566_v0, %v2566_v0  ;;  %v2582_v16 = vsub.f32 %v5097_v43, %v2566_v0 }
0x12c1   : > { %v2570_v57 = vpop.xlane.xlu0 %2569 }
0x12c2   : > { %v2573_v4 = vmul.f32 0.0078125, %v2570_v57 }
0x12c4   : > { %v2577_v5 = vsub.f32 %v2573_v4, %v2575_v60 }
0x12c5   : > { %v2572_v6 = vpop.xlane.xlu0 %2571 }
0x12c6   : > { %v2579_v8 = vmax.f32 %v2577_v5, 0.0  ;;  %v2574_v23 = vmul.f32 0.0078125, %v2572_v6 }
0x12c8   : > { %v2583_v9 = vadd.f32 1e-12, %v2579_v8  ;;  %v2578_v38 = vsub.f32 %v2574_v23, %v2576_v14 }
0x12ca   : > { %4308 = vrsqrt.f32 %v2583_v9  ;;  %v2580_v28 = vmax.f32 %v2578_v38, 0.0 }
0x12cc   : > { %v2584_v37 = vadd.f32 1e-12, %v2580_v28 }
0x12ce   : > { %4310 = vrsqrt.f32 %v2584_v37 }
0x12d4   : > { %v4309_v2 = vpop.eup %4308 }
0x12d5   : > { %v2587_v27 = vmul.f32 %v4309_v2, %v2581_v46 }
0x12d7   : > { %v2595_v61 = vmul.f32 %v4979_v33, %v2587_v27 }
0x12d8   : > { %v4311_v45 = vpop.eup %4310 }
0x12d9   : > { %v2588_v17 = vmul.f32 %v4311_v45, %v2582_v16  ;;  %v5246_v18 = vadd.f32 %v4992_v30, %v2595_v61 }
0x12db   : > { %v2596_v62 = vmul.f32 %v4979_v33, %v2588_v17 }
0x12dd   : > { %v5249_v10 = vadd.f32 %v4992_v30, %v2596_v62 }
0x12df   : > { %v2612_v63 = vpack.c.bf16 %v5249_v10, %v5246_v18 }
0x12e1   : > { %2870 = vmatmul.mubr.bf16.gmra.mrb[56].mxu1 %v2612_v63  ;;  %2923 = vmatmul.mubr.bf16.gmra.mrb[60].mxu0 %v2612_v63 }
0x12e2   : > { %3380 = vmatprep.mubr.bf16.mxu1 %v3078_v42  ;;  %3429 = vmatprep.mubr.bf16.mxu0 %v3080_v51 }
0x12e9   : > { %3381 = vmatmul.mubr.bf16.vlgmr.msra.gmra.mrb[60].mxu1 %v3077_v56  ;;  %3430 = vmatmul.mubr.bf16.vlgmr.msra.gmra.mrb[64].mxu0 %v3079_v50 }
0x13b4   : > { %v2871_v33 = vpop.f32.mrb[56].mxu1  ;;  %v2924_v13 = vpop.f32.mrb[60].mxu0 }
0x13b5   : > { %v5260_v30 = vadd.f32 %v2871_v33, %v5061_v1  ;;  %v5263_v43 = vadd.f32 %v2924_v13, %v5108_v39  ;;  %v2873_v26 = vpop.f32.mrb[57].mxu1  ;;  %v2926_v29 = vpop.f32.mrb[61].mxu0  ;;  %v5318_v33 = vld [vmem:[%s5394_s15] ss:$0 sm:$0xff] }
0x13b6   : > { %v5266_v44 = vadd.f32 %v2873_v26, %v5066_v3  ;;  %v5269_v55 = vadd.f32 %v2926_v29, %v5111_v40  ;;  %v2875_v22 = vpop.f32.mrb[58].mxu1  ;;  %v2928_v53 = vpop.f32.mrb[62].mxu0 }
0x13b7   : > { %v2941_v54 = vmul.f32 %v5260_v30, %v5260_v30  ;;  %v2943_v56 = vmul.f32 %v5263_v43, %v5263_v43  ;;  %v5276_v42 = vadd.f32 %v2875_v22, %v5061_v1  ;;  %v5279_v59 = vadd.f32 %v2928_v53, %v5108_v39  ;;  %v2877_v32 = vpop.f32.mrb[59].mxu1  ;;  %v2930_v7 = vpop.f32.mrb[63].mxu0 }
0x13b8   : > { %v2942_v34 = vmul.f32 %v5266_v44, %v5266_v44  ;;  %v2944_v35 = vmul.f32 %v5269_v55, %v5269_v55  ;;  %v5286_v36 = vadd.f32 %v2877_v32, %v5066_v3  ;;  %v5289_v41 = vadd.f32 %v2930_v7, %v5111_v40 }
0x13b9   : > { %v2957_v1 = vmul.f32 %v2941_v54, %v5260_v30  ;;  %v2959_v58 = vmul.f32 %v2943_v56, %v5263_v43  ;;  %v2945_v39 = vmul.f32 %v5276_v42, %v5276_v42  ;;  %v2947_v12 = vmul.f32 %v5279_v59, %v5279_v59 }
0x13ba   : > { %v2958_v15 = vmul.f32 %v2942_v34, %v5266_v44  ;;  %v2960_v25 = vmul.f32 %v2944_v35, %v5269_v55  ;;  %v2946_v3 = vmul.f32 %v5286_v36, %v5286_v36  ;;  %v2948_v40 = vmul.f32 %v5289_v41, %v5289_v41 }
0x13bb   : > { %v2973_v47 = vmul.f32 0.044715, %v2957_v1  ;;  %v2975_v19 = vmul.f32 0.044715, %v2959_v58  ;;  %v2961_v48 = vmul.f32 %v2945_v39, %v5276_v42  ;;  %v2963_v49 = vmul.f32 %v2947_v12, %v5279_v59 }
0x13bc   : > { %v2974_v20 = vmul.f32 0.044715, %v2958_v15  ;;  %v2976_v50 = vmul.f32 0.044715, %v2960_v25  ;;  %v2962_v51 = vmul.f32 %v2946_v3, %v5286_v36  ;;  %v2964_v52 = vmul.f32 %v2948_v40, %v5289_v41  ;;  %v3854_v21 = vpop.f32.mrb[60].mxu1  ;;  %v3882_v24 = vpop.f32.mrb[64].mxu0 }
0x13bd   : > { %v2989_v57 = vadd.f32 %v2973_v47, %v5260_v30  ;;  %v2991_v60 = vadd.f32 %v2975_v19, %v5263_v43  ;;  %v2977_v0 = vmul.f32 0.044715, %v2961_v48  ;;  %v2979_v4 = vmul.f32 0.044715, %v2963_v49  ;;  %v3855_v5 = vpop.f32.mrb[61].mxu1  ;;  %v3883_v6 = vpop.f32.mrb[65].mxu0 }
0x13be   : > { %v2990_v14 = vadd.f32 %v2974_v20, %v5266_v44  ;;  %v2992_v8 = vadd.f32 %v2976_v50, %v5269_v55  ;;  %v2978_v23 = vmul.f32 0.044715, %v2962_v51  ;;  %v2980_v9 = vmul.f32 0.044715, %v2964_v52  ;;  %v3857_v38 = vpop.f32.mrb[62].mxu1  ;;  %v3885_v28 = vpop.f32.mrb[66].mxu0 }
0x13bf   : > { %v3005_v37 = vmul.f32 0.7978846, %v2989_v57  ;;  %v3007_v46 = vmul.f32 0.7978846, %v2991_v60  ;;  %v2993_v2 = vadd.f32 %v2977_v0, %v5276_v42  ;;  %v2995_v27 = vadd.f32 %v2979_v4, %v5279_v59  ;;  %v3858_v16 = vpop.f32.mrb[63].mxu1  ;;  %v3886_v45 = vpop.f32.mrb[67].mxu0 }
0x13c0   : > { %v3006_v17 = vmul.f32 0.7978846, %v2990_v14  ;;  %v3008_v61 = vmul.f32 0.7978846, %v2992_v8  ;;  %v2994_v62 = vadd.f32 %v2978_v23, %v5286_v36  ;;  %v2996_v63 = vadd.f32 %v2980_v9, %v5289_v41 }
0x13c1   : > { %4312 = vtanh.f32 %v3005_v37  ;;  %v3009_v13 = vmul.f32 0.7978846, %v2993_v2  ;;  %v3856_v26 = vadd.f32 %v3855_v5, %v3854_v21  ;;  %v3011_v29 = vmul.f32 0.7978846, %v2995_v27 }
0x13c2   : > { %4314 = vtanh.f32 %v3007_v46  ;;  %v3010_v22 = vmul.f32 0.7978846, %v2994_v62  ;;  %v3884_v53 = vadd.f32 %v3883_v6, %v3882_v24  ;;  %v3859_v56 = vadd.f32 %v3858_v16, %v3857_v38 }
0x13c3   : > { %4316 = vtanh.f32 %v3006_v17  ;;  %v3383_v54 = vadd.f32 %v3856_v26, %v5318_v33  ;;  %v3887_v32 = vadd.f32 %v3886_v45, %v3885_v28  ;;  %v3012_v7 = vmul.f32 0.7978846, %v2996_v63 }
0x13c4   : > { %4318 = vtanh.f32 %v3008_v61  ;;  %v3386_v35 = vadd.f32 %v3859_v56, %v5318_v33 }
0x13c5   : > { %4320 = vtanh.f32 %v3009_v13  ;;  %v3432_v34 = vadd.f32 %v3884_v53, %v3383_v54 }
0x13c6   : > { %4322 = vtanh.f32 %v3011_v29  ;;  %v3435_v1 = vadd.f32 %v3887_v32, %v3386_v35 }
0x13c7   : > { %4324 = vtanh.f32 %v3010_v22  ;;  %v5323_v58 = vadd.f32 %v3432_v34, %v4998_v31  ;;  %v5346_v34 = vld [vmem:[%s5395_s16] ss:$0 sm:$0xff] }
0x13c8   : > { %4326 = vtanh.f32 %v3012_v7  ;;  %v5327_v12 = vadd.f32 %v3435_v1, %v4995_v11  ;;  %v5351_v1 = vld [vmem:[%s5396_s17] ss:$0 sm:$0xff] }
0x13c9   : > { %3452 = vadd.xlane.f32.xlu0 %v5323_v58  ;;  %v3464_v31 = vmul.f32 %v5323_v58, %v5323_v58 }
0x13ca   : > { %v3465_v4 = vmul.f32 %v5327_v12, %v5327_v12 }
0x13cb   : > { %v4313_v39 = vpop.eup %4312 }
0x13cc   : > { %v4315_v15 = vpop.eup %4314  ;;  %v3037_v25 = vadd.f32 1.0, %v4313_v39 }
0x13cd   : > { %v4317_v3 = vpop.eup %4316  ;;  %3454 = vadd.xlane.f32.xlu0 %v5327_v12  ;;  %v3039_v40 = vadd.f32 1.0, %v4315_v15 }
0x13ce   : > { %v4319_v47 = vpop.eup %4318  ;;  %v3038_v19 = vadd.f32 1.0, %v4317_v3  ;;  %v3053_v51 = vmul.f32 0.5, %v3037_v25 }
0x13cf   : > { %v4321_v48 = vpop.eup %4320  ;;  %v3040_v49 = vadd.f32 1.0, %v4319_v47  ;;  %v3055_v21 = vmul.f32 0.5, %v3039_v40 }
0x13d0   : > { %v4323_v20 = vpop.eup %4322  ;;  %v3041_v50 = vadd.f32 1.0, %v4321_v48  ;;  %v3054_v60 = vmul.f32 0.5, %v3038_v19  ;;  %v3069_v23 = vmul.f32 %v3053_v51, %v5260_v30 }
0x13d1   : > { %v4325_v52 = vpop.eup %4324  ;;  %3468 = vadd.xlane.f32.xlu0 %v3464_v31  ;;  %v3043_v11 = vadd.f32 1.0, %v4323_v20  ;;  %v3056_v6 = vmul.f32 0.5, %v3040_v49  ;;  %v3071_v28 = vmul.f32 %v3055_v21, %v5263_v43 }
0x13d2   : > { %v4327_v24 = vpop.eup %4326  ;;  %v3042_v57 = vadd.f32 1.0, %v4325_v52  ;;  %v3057_v0 = vmul.f32 0.5, %v3041_v50  ;;  %v3070_v46 = vmul.f32 %v3054_v60, %v5266_v44 }
0x13d3   : > { %v3044_v5 = vadd.f32 1.0, %v4327_v24  ;;  %v3059_v14 = vmul.f32 0.5, %v3043_v11  ;;  %v3072_v16 = vmul.f32 %v3056_v6, %v5269_v55 }
0x13d4   : > { %v3058_v8 = vmul.f32 0.5, %v3042_v57  ;;  %v3073_v9 = vmul.f32 %v3057_v0, %v5276_v42 }
0x13d5   : > { %3470 = vadd.xlane.f32.xlu0 %v3465_v4  ;;  %v3060_v38 = vmul.f32 0.5, %v3044_v5  ;;  %v3075_v37 = vmul.f32 %v3059_v14, %v5279_v59 }
0x13d6   : > { %v3074_v2 = vmul.f32 %v3058_v8, %v5286_v36  ;;  %v3081_v27 = vpack.c.bf16 %v3073_v9, %v3069_v23 }
0x13d7   : > { %v3076_v45 = vmul.f32 %v3060_v38, %v5289_v41  ;;  %v3083_v17 = vpack.c.bf16 %v3075_v37, %v3071_v28 }
0x13d8   : > { %v3082_v61 = vpack.c.bf16 %v3074_v2, %v3070_v46 }
0x13d9   : > { %v3084_v30 = vpack.c.bf16 %v3076_v45, %v3072_v16 }
0x13da   : > { %3388 = vmatprep.mubr.bf16.mxu1 %v3082_v61 }
0x13db   : > { %3437 = vmatprep.mubr.bf16.mxu0 %v3084_v30  ;;  %3389 = vmatmul.mubr.bf16.gmra.mrb[64].mxu1 %v3081_v27 }
0x13dc   : > { %3438 = vmatmul.mubr.bf16.gmra.mrb[68].mxu0 %v3083_v17 }
0x1456   : > { %v3453_v42 = vpop.xlane.xlu0 %3452 }
0x1457   : > { %v3460_v62 = vmul.f32 0.0078125, %v3453_v42 }
0x1459   : > { %v3480_v63 = vmul.f32 %v3460_v62, %v3460_v62  ;;  %v3492_v32 = vsub.f32 %v5323_v58, %v3460_v62 }
0x145a   : > { %v3455_v43 = vpop.xlane.xlu0 %3454 }
0x145b   : > { %v3461_v44 = vmul.f32 0.0078125, %v3455_v43 }
0x145d   : > { %v3481_v29 = vmul.f32 %v3461_v44, %v3461_v44  ;;  %v3493_v39 = vsub.f32 %v5327_v12, %v3461_v44 }
0x145e   : > { %v3469_v59 = vpop.xlane.xlu0 %3468 }
0x145f   : > { %v3476_v13 = vmul.f32 0.0078125, %v3469_v59 }
0x1461   : > { %v3484_v36 = vsub.f32 %v3476_v13, %v3480_v63 }
0x1462   : > { %v3471_v26 = vpop.xlane.xlu0 %3470 }
0x1463   : > { %v3488_v55 = vmax.f32 %v3484_v36, 0.0  ;;  %v3477_v41 = vmul.f32 0.0078125, %v3471_v26 }
0x1465   : > { %v3496_v22 = vadd.f32 1e-12, %v3488_v55  ;;  %v3485_v53 = vsub.f32 %v3477_v41, %v3481_v29 }
0x1467   : > { %4328 = vrsqrt.f32 %v3496_v22  ;;  %v3489_v54 = vmax.f32 %v3485_v53, 0.0 }
0x1469   : > { %v3497_v56 = vadd.f32 1e-12, %v3489_v54 }
0x146b   : > { %4330 = vrsqrt.f32 %v3497_v56 }
0x1471   : > { %v4329_v7 = vpop.eup %4328 }
0x1472   : > { %v3504_v35 = vmul.f32 %v4329_v7, %v3492_v32 }
0x1474   : > { %v3514_v15 = vmul.f32 %v5346_v34, %v3504_v35 }
0x1475   : > { %v4331_v25 = vpop.eup %4330 }
0x1476   : > { %v3524_v58 = vadd.f32 %v5351_v1, %v3514_v15  ;;  %v3505_v3 = vmul.f32 %v4331_v25, %v3493_v39 }
0x1478   : > { %3528 = vst [vmem:[%s5359_s21] sm:$0xff] %v3524_v58  ;;  %v3515_v40 = vmul.f32 %v5346_v34, %v3505_v3 }
0x147a   : > { %v3525_v47 = vadd.f32 %v5351_v1, %v3515_v40 }
0x147c   : > { %3529 = vst [vmem:[%s5359_s21 + $0x8] sm:$0xff] %v3525_v47 }
0x14ae   : > { %v3860_v12 = vpop.f32.mrb[64].mxu1 }
0x14af   : > { %v3888_v19 = vpop.f32.mrb[68].mxu0  ;;  %v3861_v48 = vpop.f32.mrb[65].mxu1 }
0x14b0   : > { %v3862_v31 = vadd.f32 %v3861_v48, %v3860_v12  ;;  %v3889_v49 = vpop.f32.mrb[69].mxu0  ;;  %v3863_v20 = vpop.f32.mrb[66].mxu1 }
0x14b1   : > { %v3890_v50 = vadd.f32 %v3889_v49, %v3888_v19  ;;  %v3891_v51 = vpop.f32.mrb[70].mxu0  ;;  %v3864_v52 = vpop.f32.mrb[67].mxu1 }
0x14b2   : > { %v3391_v11 = vadd.f32 %v3862_v31, %v5318_v33  ;;  %v3865_v21 = vadd.f32 %v3864_v52, %v3863_v20  ;;  %v3892_v24 = vpop.f32.mrb[71].mxu0 }
0x14b3   : > { %v3893_v57 = vadd.f32 %v3892_v24, %v3891_v51 }
0x14b4   : > { %v3440_v60 = vadd.f32 %v3890_v50, %v3391_v11  ;;  %v3394_v0 = vadd.f32 %v3865_v21, %v5318_v33 }
0x14b6   : > { %v3443_v4 = vadd.f32 %v3893_v57, %v3394_v0  ;;  %v3448_v5 = vadd.f32 %v3440_v60, %v5246_v18 }
0x14b8   : > { %3456 = vadd.xlane.f32.xlu0 %v3448_v5  ;;  %v3466_v6 = vmul.f32 %v3448_v5, %v3448_v5  ;;  %v3449_v14 = vadd.f32 %v3443_v4, %v5249_v10 }
0x14ba   : > { %3472 = vadd.xlane.f32.xlu1 %v3466_v6  ;;  %v3467_v8 = vmul.f32 %v3449_v14, %v3449_v14 }
0x14bc   : > { %3458 = vadd.xlane.f32.xlu0 %v3449_v14 }
0x14c0   : > { %3474 = vadd.xlane.f32.xlu0 %v3467_v8 }
0x1545   : > { %v3457_v23 = vpop.xlane.xlu0 %3456 }
0x1546   : > { %v3462_v9 = vmul.f32 0.0078125, %v3457_v23 }
0x1547   : > { %v3473_v38 = vpop.xlane.xlu1 %3472 }
0x1548   : > { %v3482_v28 = vmul.f32 %v3462_v9, %v3462_v9  ;;  %v3478_v37 = vmul.f32 0.0078125, %v3473_v38  ;;  %v3494_v42 = vsub.f32 %v3448_v5, %v3462_v9 }
0x1549   : > { %v3459_v46 = vpop.xlane.xlu0 %3458 }
0x154a   : > { %v3486_v2 = vsub.f32 %v3478_v37, %v3482_v28  ;;  %v3463_v27 = vmul.f32 0.0078125, %v3459_v46 }
0x154c   : > { %v3490_v33 = vmax.f32 %v3486_v2, 0.0  ;;  %v3483_v45 = vmul.f32 %v3463_v27, %v3463_v27  ;;  %v3495_v44 = vsub.f32 %v3449_v14, %v3463_v27 }
0x154d   : > { %v3475_v16 = vpop.xlane.xlu0 %3474 }
0x154e   : > { %v3498_v18 = vadd.f32 1e-12, %v3490_v33  ;;  %v3479_v17 = vmul.f32 0.0078125, %v3475_v16 }
0x1550   : > { %4332 = vrsqrt.f32 %v3498_v18  ;;  %v3487_v10 = vsub.f32 %v3479_v17, %v3483_v45 }
0x1552   : > { %v3491_v61 = vmax.f32 %v3487_v10, 0.0 }
0x1554   : > { %v3499_v30 = vadd.f32 1e-12, %v3491_v61 }
0x1556   : > { %4334 = vrsqrt.f32 %v3499_v30 }
0x155a   : > { %v4333_v43 = vpop.eup %4332 }
0x155b   : > { %v3506_v62 = vmul.f32 %v4333_v43, %v3494_v42 }
0x155d   : > { %v3516_v59 = vmul.f32 %v5346_v34, %v3506_v62 }
0x155f   : > { %v3526_v63 = vadd.f32 %v5351_v1, %v3516_v59 }
0x1560   : > { %v4335_v13 = vpop.eup %4334 }
0x1561   : > { %3530 = vst [vmem:[%s5359_s21 + $0x10] sm:$0xff] %v3526_v63  ;;  %v3507_v36 = vmul.f32 %v4335_v13, %v3495_v44 }
0x1563   : > { %v3517_v26 = vmul.f32 %v5346_v34, %v3507_v36 }
0x1565   : > { %v3527_v29 = vadd.f32 %v5351_v1, %v3517_v26 }
0x1567   : > { %3531 = vst [vmem:[%s5359_s21 + $0x18] sm:$0xff] %v3527_v29 }
0x1568 PF: > { %s5407_s30 = sld [smem:[#allocation3_spill]] }
0x156e   : > { %s28_s27 = sadd.s32 1, %s5407_s30  }
0x156f   : > { %p25_p4 = scmp.ge.s32.totalorder %s28_s27, 4  }
0x1571   :  { %27 = sbr.rel (!%p25_p4) target bundleno = 4 (0x4), region = 128 }

// kernel: biencoder_forward.5
= control target key start
LH: loop header
LB: loop body
LE: loop exit
PB: predicated region body
PF: predicated region fallthrough
CT: control target
= control target key end

     0   :  { %s6069_s24 = smov 0   ;;  %s7411_s0 = inlined_call_operand.vmem [shape: f32[2,8,128], index: 0, kind: input, shape index: {}]   ;;  %s7412_s1 = inlined_call_operand.vmem [shape: f32[4,16,128], index: 1, kind: input, shape index: {}]   ;;  %s7413_s2 = inlined_call_operand.vmem [shape: f32[1,24,128], index: 2, kind: input, shape index: {}]   ;;  %s7414_s3 = inlined_call_operand.vmem [shape: f32[2,128], index: 3, kind: input, shape index: {}]   ;;  %s7415_s4 = inlined_call_operand.vmem [shape: f32[4,1,24], index: 4, kind: input, shape index: {}]   ;;  %s7416_s5 = inlined_call_operand.vmem [shape: f32[1,128], index: 5, kind: input, shape index: {}]   ;;  %s7417_s6 = inlined_call_operand.vmem [shape: f32[1,128], index: 6, kind: input, shape index: {}]   ;;  %s7418_s7 = inlined_call_operand.vmem [shape: bf16[128,384], index: 7, kind: input, shape index: {}]   ;;  %s7419_s8 = inlined_call_operand.vmem [shape: f32[1,384], index: 8, kind: input, shape index: {}]   ;;  %s7420_s9 = inlined_call_operand.vmem [shape: bf16[128,128], index: 9, kind: input, shape index: {}]   ;;  %s7421_s10 = inlined_call_operand.vmem [shape: f32[1,128], index: 10, kind: input, shape index: {}]   ;;  %s7422_s11 = inlined_call_operand.vmem [shape: f32[1,128], index: 11, kind: input, shape index: {}]   ;;  %s7423_s12 = inlined_call_operand.vmem [shape: f32[1,128], index: 12, kind: input, shape index: {}]   ;;  %s7424_s13 = inlined_call_operand.vmem [shape: bf16[128,512], index: 13, kind: input, shape index: {}]   ;;  %s7425_s14 = inlined_call_operand.vmem [shape: f32[1,512], index: 14, kind: input, shape index: {}]   ;;  %s7426_s15 = inlined_call_operand.vmem [shape: bf16[512,128], index: 15, kind: input, shape index: {}]   ;;  %s7427_s16 = inlined_call_operand.vmem [shape: f32[1,128], index: 16, kind: input, shape index: {}]   ;;  %s7428_s17 = inlined_call_operand.vmem [shape: f32[1,128], index: 17, kind: input, shape index: {}]   ;;  %s7429_s18 = inlined_call_operand.vmem [shape: f32[1,128], index: 18, kind: input, shape index: {}]   ;;  %s7430_s19 = inlined_call_operand.vmem [shape: bf16[256,128], index: 19, kind: input, shape index: {}]   ;;  %s7431_s20 = inlined_call_operand.vmem [shape: f32[1,128], index: 20, kind: input, shape index: {}]   ;;  %s7432_s21 = inlined_call_operand.vmem [shape: bf16[128,1], index: 21, kind: input, shape index: {}]   ;;  %s7433_s22 = inlined_call_operand.<no memory space> [shape: f32[1,1], index: 22, kind: input, shape index: {}]   ;;  %s7434_s23 = inlined_call_operand.vmem [shape: f32[2,2,1], index: 23, kind: output, shape index: {}]  }
   0x1   :  { %7437 = sst [smem:[#allocation4_spill]] %s7411_s0  ;;  %v28_v0 = vstv %s7433_s22 }
   0x2   :  { %7438 = sst [smem:[#allocation5_spill]] %s7412_s1  ;;  %29 = vst [vmem:[#allocation3] sm:$0x1] %v28_v0 }
   0x3   :  { %7439 = sst [smem:[#allocation6_spill]] %s7413_s2 }
   0x4   :  { %7440 = sst [smem:[#allocation7_spill]] %s7414_s3 }
   0x5   :  { %7441 = sst [smem:[#allocation8_spill]] %s7415_s4 }
   0x6   :  { %7442 = sst [smem:[#allocation9_spill]] %s7416_s5 }
   0x7   :  { %7443 = sst [smem:[#allocation10_spill]] %s7417_s6 }
   0x8   :  { %7444 = sst [smem:[#allocation11_spill]] %s7418_s7 }
   0x9 LB: > { %s4867_s25 = sadd.s32 4294967295, %s5938_s24   ;;  %p4871_p0 = scmp.ge.s32.totalorder %s5938_s24, 1  ;;  %s5938_s24 = sphi %s6069_s24, %s35_s24  }
   0xa   : > { %p660_p1 = scmp.lt.s32.totalorder %s5938_s24, 3 }
   0xc   : > { %p661_p2 = pnand %p4871_p0, %p660_p1 }
   0xd   : > { %p732_p3 = scmp.lt.s32.totalorder (!%p661_p2), %s4867_s25, 1  ;;  %v759_v1 = vlaneseq (!%p661_p2)  ;;  %s7445_s1 = sld [smem:[#allocation7_spill]] (!%p661_p2)  ;;  %v5940_v32 = vmov (!%p661_p2), 0.0   ;;  %v5941_v56 = vmov (!%p661_p2), 0   ;;  %vm5942_vm0 = vmmov (!%p661_p2), 0  }
   0xe   : > { %664 = sbr.rel (%p661_p2) target bundleno = 6035 (0x1793), region = 112  ;;  %s4873_s26 = sshll.u32 (!%p661_p2), %s4867_s25, 1  ;;  %5282 = vmatprep.subr.bf16.mxu1 (!%p661_p2), %v5940_v32  ;;  %1163 = vmatprep.mubr.bf16.mxu0 (!%p661_p2), %v5941_v56  ;;  %vm1272_vm1 = vcmask (!%p661_p2), 261120   ;;  %vm1375_vm2 = vcmask (!%p661_p2), 1043456   ;;  %vm1333_vm3 = vcmask (!%p661_p2), 195584   ;;  %vm4484_vm4 = vcmask (!%p661_p2), 1041409  }
   0xf   : > { %v6082_v3 = vshrl.u32 (!%p661_p2), %v759_v1, 7  ;;  %p737_p4 = scmp.lt.s32.totalorder (!%p661_p2), %s4873_s26, 3  ;;  %s7446_s7 = sld [smem:[#allocation6_spill]] (!%p661_p2)  ;;  %5298 = vmatprep.mubr.msk.bf16.mxu1 (!%p661_p2), %vm5942_vm0, %v5940_v32  ;;  %vm4791_vm5 = vcmask (!%p661_p2), 1024  }
  0x10   : > { %s7447_s3 = sld [smem:[#allocation4_spill]] (!%p661_p2)  ;;  %s7448_s27 = sld [smem:[#allocation5_spill]] (!%p661_p2) }
  0x11   : > { %v6089_v5 = vsub.s32 (!%p661_p2), 0, %v6082_v3  ;;  %v6095_v6 = vsub.s32 (!%p661_p2), 1, %v6082_v3  ;;  %s7452_s30 = sld [smem:[#allocation8_spill]] (!%p661_p2) }
  0x13   : > { %v756_v2 = vld [vmem:[%s7445_s1] sm:$0x3] (!%p661_p2) }
  0x14   : > { %v762_v8 = vrot.slane (!%p661_p2), %v756_v2, %v6089_v5  ;;  %v771_v13 = vrot.slane (!%p661_p2), %v756_v2, %v6095_v6 }
  0x15   : > { %s7454_s25 = smov (!%p732_p3, %s4867_s25), 1  ;;  %v753_v4 = vld [vmem:[%s7446_s7] sm:$0xff]  ;;  %s7456_s26 = smov (!%p737_p4, %s4873_s26), 3  ;;  %v754_v9 = vld [vmem:[%s7446_s7 + $0x8] sm:$0xff]  ;;  %v755_v10 = vld [vmem:[%s7446_s7 + $0x10] sm:$0xff] }
  0x16   : > { %s4872_s2 = sshll.u32 %s7454_s25, 3  ;;  %s5079_s1 = sshll.u32 %s7456_s26, 4 }
  0x17   : > { %s735_s0 = scalar_lea.vmem %s7447_s3, %s4872_s2  ;;  %s741_s28 = scalar_lea.vmem %s7448_s27, %s5079_s1 }
  0x18   : > { %v757_v7 = vld [vmem:[%s735_s0] sm:$0xff]  ;;  %v765_v15 = vld [vmem:[%s741_s28 + $0x8] sm:$0xff]  ;;  %v4882_v20 = vld [vmem:[%s741_s28 + $0x10] sm:$0xff]  ;;  %s7449_s0 = sld [smem:[#allocation11_spill]]  ;;  %s7450_s1 = sld [smem:[#allocation9_spill]] }
  0x19   : > { %v758_v11 = vadd.f32 %v757_v7, %v753_v4  ;;  %v764_v14 = vld [vmem:[%s741_s28] sm:$0xff]  ;;  %v767_v18 = vadd.f32 %v765_v15, %v755_v10  ;;  %v4883_v23 = vld [vmem:[%s741_s28 + $0x18] sm:$0xff]  ;;  %v860_v25 = vadd.f32 %v4882_v20, %v754_v9  ;;  %s7451_s27 = sld [smem:[#allocation10_spill]]  ;;  %s6324_s5 = scalar_lea.vmem %s7452_s30, %s7456_s26 }
  0x1a   : > { %v766_v17 = vadd.f32 %v764_v14, %v754_v9  ;;  %v861_v26 = vadd.f32 %v4883_v23, %v755_v10  ;;  %s5943_s26 = smov 96   ;;  %s5945_s28 = smov 32  }
  0x1b   : > { %v6107_v12 = vadd.f32 %v762_v8, %v758_v11  ;;  %v6121_v22 = vadd.f32 %v771_v13, %v767_v18  ;;  %v6127_v27 = vadd.f32 %v860_v25, %v771_v13 }
  0x1c   : > { %v6116_v19 = vadd.f32 %v771_v13, %v766_v17  ;;  %v6132_v29 = vadd.f32 %v861_v26, %v771_v13 }
  0x1d   : > { %776 = vadd.xlane.f32.xlu0 %v6107_v12  ;;  %v780_v16 = vmul.f32 %v6107_v12, %v6107_v12  ;;  %v815_v24 = vmul.f32 %v6121_v22, %v6121_v22  ;;  %v903_v33 = vmul.f32 %v6127_v27, %v6127_v27 }
  0x1e   : > { %v814_v21 = vmul.f32 %v6116_v19, %v6116_v19  ;;  %v5600_v28 = vld [vmem:[%s7449_s0 + $0x4] ss:$12 sps:$4 sm:$0xff]   ;;  %v5602_v30 = vld [vmem:[%s7449_s0] ss:$12 sps:$4 sm:$0xff]   ;;  %v5603_v31 = vld [vmem:[%s7449_s0 + $0x8] ss:$12 sps:$4 sm:$0xff]   ;;  %v904_v35 = vmul.f32 %v6132_v29, %v6132_v29 }
  0x1f   : > { %781 = vadd.xlane.f32.xlu1 %v780_v16  ;;  %1131 = vmatprep.subr.bf16.mxu0 %v5600_v28  ;;  %v5604_v34 = vld [vmem:[%s7449_s0 + $0x1c] ss:$12 sps:$4 sm:$0xff]   ;;  %v5606_v36 = vld [vmem:[%s7449_s0 + $0x18] ss:$12 sps:$4 sm:$0xff]   ;;  %v5607_v37 = vld [vmem:[%s7449_s0 + $0x20] ss:$12 sps:$4 sm:$0xff]  }
  0x20   : > { %1132 = vmatpush1.bf16.msra.mxu0 %v5602_v30  ;;  %5283 = vmatpush3.bf16.msra.mxu1 %v5603_v31  ;;  %v5608_v38 = vld [vmem:[%s7449_s0 + $0x34] ss:$12 sps:$4 sm:$0xff]   ;;  %v5610_v39 = vld [vmem:[%s7449_s0 + $0x30] ss:$12 sps:$4 sm:$0xff]   ;;  %v5611_v40 = vld [vmem:[%s7449_s0 + $0x38] ss:$12 sps:$4 sm:$0xff]  }
  0x21   : > { %808 = vadd.xlane.f32.xlu0 %v6116_v19  ;;  %5284 = vmatprep.subr.bf16.mxu1 %v5940_v32  ;;  %v5612_v41 = vld [vmem:[%s7449_s0 + $0x4c] ss:$12 sps:$4 sm:$0xff]   ;;  %v5614_v42 = vld [vmem:[%s7449_s0 + $0x48] ss:$12 sps:$4 sm:$0xff]   ;;  %v5615_v43 = vld [vmem:[%s7449_s0 + $0x50] ss:$12 sps:$4 sm:$0xff]  }
  0x22   : > { %1133 = vmatprep.subr.bf16.mxu0 %v5604_v34  ;;  %v5616_v44 = vld [vmem:[%s7449_s0 + $0x64] ss:$12 sps:$4 sm:$0xff]   ;;  %v5618_v45 = vld [vmem:[%s7449_s0 + $0x60] ss:$12 sps:$4 sm:$0xff]   ;;  %v5619_v46 = vld [vmem:[%s7449_s0 + $0x68] ss:$12 sps:$4 sm:$0xff]  }
  0x23   : > { %816 = vadd.xlane.f32.xlu1 %v814_v21  ;;  %v5620_v47 = vld [vmem:[%s7449_s0 + $0x7c] ss:$12 sps:$4 sm:$0xff]   ;;  %v5622_v48 = vld [vmem:[%s7449_s0 + $0x78] ss:$12 sps:$4 sm:$0xff]   ;;  %v5623_v49 = vld [vmem:[%s7449_s0 + $0x80] ss:$12 sps:$4 sm:$0xff]  }
  0x24   : > { %1134 = vmatpush1.bf16.msra.mxu0 %v5606_v36  ;;  %5285 = vmatpush3.bf16.msra.mxu1 %v5607_v37  ;;  %v5624_v50 = vld [vmem:[%s7449_s0 + $0x94] ss:$12 sps:$4 sm:$0xff]   ;;  %v5626_v51 = vld [vmem:[%s7449_s0 + $0x90] ss:$12 sps:$4 sm:$0xff]   ;;  %v5627_v52 = vld [vmem:[%s7449_s0 + $0x98] ss:$12 sps:$4 sm:$0xff]  }
  0x25   : > { %810 = vadd.xlane.f32.xlu0 %v6121_v22  ;;  %5286 = vmatprep.subr.bf16.mxu1 %v5940_v32  ;;  %v5628_v53 = vld [vmem:[%s7449_s0 + $0xac] ss:$12 sps:$4 sm:$0xff]   ;;  %v5630_v54 = vld [vmem:[%s7449_s0 + $0xa8] ss:$12 sps:$4 sm:$0xff]   ;;  %v5631_v55 = vld [vmem:[%s7449_s0 + $0xb0] ss:$12 sps:$4 sm:$0xff]  }
  0x26   : > { %1135 = vmatprep.subr.bf16.mxu0 %v5608_v38 }
  0x27   : > { %866 = vadd.xlane.f32.xlu1 %v6107_v12 }
  0x28   : > { %1136 = vmatpush1.bf16.msra.mxu0 %v5610_v39  ;;  %5287 = vmatpush3.bf16.msra.mxu1 %v5611_v40 }
  0x29   : > { %818 = vadd.xlane.f32.xlu0 %v815_v24  ;;  %5288 = vmatprep.subr.bf16.mxu1 %v5940_v32 }
  0x2a   : > { %1137 = vmatprep.subr.bf16.mxu0 %v5612_v41 }
  0x2b   : > { %870 = vadd.xlane.f32.xlu1 %v780_v16 }
  0x2c   : > { %1138 = vmatpush1.bf16.msra.mxu0 %v5614_v42  ;;  %5289 = vmatpush3.bf16.msra.mxu1 %v5615_v43 }
  0x2d   : > { %897 = vadd.xlane.f32.xlu0 %v6127_v27  ;;  %5290 = vmatprep.subr.bf16.mxu1 %v5940_v32 }
  0x2e   : > { %1139 = vmatprep.subr.bf16.mxu0 %v5616_v44 }
  0x2f   : > { %899 = vadd.xlane.f32.xlu1 %v6132_v29 }
  0x30   : > { %1140 = vmatpush1.bf16.msra.mxu0 %v5618_v45  ;;  %5291 = vmatpush3.bf16.msra.mxu1 %v5619_v46 }
  0x31   : > { %905 = vadd.xlane.f32.xlu0 %v903_v33  ;;  %5292 = vmatprep.subr.bf16.mxu1 %v5940_v32 }
  0x32   : > { %1141 = vmatprep.subr.bf16.mxu0 %v5620_v47 }
  0x33   : > { %907 = vadd.xlane.f32.xlu1 %v904_v35 }
  0x34   : > { %1142 = vmatpush1.bf16.msra.mxu0 %v5622_v48  ;;  %5293 = vmatpush3.bf16.msra.mxu1 %v5623_v49  ;;  %v4878_v48 = vld [vmem:[%s7450_s1] ss:$0 sm:$0xff] }
  0x35   : > { %5294 = vmatprep.subr.bf16.mxu1 %v5940_v32  ;;  %1143 = vmatprep.subr.bf16.mxu0 %v5624_v50 }
  0x38   : > { %1144 = vmatpush1.bf16.msra.mxu0 %v5626_v51  ;;  %5295 = vmatpush3.bf16.msra.mxu1 %v5627_v52 }
  0x39   : > { %5296 = vmatprep.subr.bf16.mxu1 %v5940_v32  ;;  %1145 = vmatprep.subr.bf16.mxu0 %v5628_v53 }
  0x3c   : > { %1146 = vmatpush1.bf16.msra.mxu0 %v5630_v54  ;;  %5297 = vmatpush3.bf16.msra.mxu1 %v5631_v55 }
  0xaa   : > { %v777_v57 = vpop.xlane.xlu0 %776 }
  0xab   : > { %v779_v58 = vmul.f32 0.0078125, %v777_v57 }
  0xac   : > { %v782_v59 = vpop.xlane.xlu1 %781 }
  0xad   : > { %v784_v60 = vmul.f32 %v779_v58, %v779_v58  ;;  %v783_v61 = vmul.f32 0.0078125, %v782_v59  ;;  %v787_v37 = vsub.f32 %v6107_v12, %v779_v58  ;;  %v4879_v58 = vld [vmem:[%s7451_s27] ss:$0 sm:$0xff]  ;;  %s5944_s27 = smov 64  }
  0xae   : > { %v809_v62 = vpop.xlane.xlu0 %808 }
  0xaf   : > { %v785_v63 = vsub.f32 %v783_v61, %v784_v60  ;;  %v812_v0 = vmul.f32 0.0078125, %v809_v62 }
  0xb0   : > { %v817_v1 = vpop.xlane.xlu1 %816 }
  0xb1   : > { %v786_v2 = vmax.f32 %v785_v63, 0.0  ;;  %v822_v4 = vmul.f32 %v812_v0, %v812_v0  ;;  %v820_v7 = vmul.f32 0.0078125, %v817_v1  ;;  %v828_v49 = vsub.f32 %v6116_v19, %v812_v0 }
  0xb2   : > { %v811_v8 = vpop.xlane.xlu0 %810 }
  0xb3   : > { %v788_v9 = vadd.f32 1e-12, %v786_v2  ;;  %v824_v10 = vsub.f32 %v820_v7, %v822_v4  ;;  %v813_v11 = vmul.f32 0.0078125, %v811_v8 }
  0xb4   : > { %v867_v13 = vpop.xlane.xlu1 %866 }
  0xb5   : > { %5752 = vrsqrt.f32 %v788_v9  ;;  %v826_v14 = vmax.f32 %v824_v10, 0.0  ;;  %v823_v15 = vmul.f32 %v813_v11, %v813_v11  ;;  %v868_v16 = vmul.f32 0.0078125, %v867_v13 }
  0xb6   : > { %v819_v17 = vpop.xlane.xlu0 %818  ;;  %v829_v61 = vsub.f32 %v6121_v22, %v813_v11 }
  0xb7   : > { %v830_v18 = vadd.f32 1e-12, %v826_v14  ;;  %v821_v20 = vmul.f32 0.0078125, %v819_v17  ;;  %v873_v23 = vmul.f32 %v868_v16, %v868_v16  ;;  %v876_v0 = vsub.f32 %v6107_v12, %v868_v16 }
  0xb8   : > { %v871_v21 = vpop.xlane.xlu1 %870 }
  0xb9   : > { %5754 = vrsqrt.f32 %v830_v18  ;;  %v825_v24 = vsub.f32 %v821_v20, %v823_v15  ;;  %v872_v25 = vmul.f32 0.0078125, %v871_v21 }
  0xba   : > { %v898_v26 = vpop.xlane.xlu0 %897 }
  0xbb   : > { %v827_v28 = vmax.f32 %v825_v24, 0.0  ;;  %v874_v30 = vsub.f32 %v872_v25, %v873_v23  ;;  %v901_v31 = vmul.f32 0.0078125, %v898_v26  ;;  %v986_v23 = vld [vmem:[%s7419_s8] sm:$0x7]  ;;  %v998_v24 = vsub.s32 2, %v6082_v3 }
  0xbc   : > { %v900_v33 = vpop.xlane.xlu1 %899  ;;  %v991_v25 = vrot.slane %v986_v23, %v6089_v5  ;;  %v6262_v26 = vrot.slane %v986_v23, %v6095_v6 }
  0xbd   : > { %v831_v34 = vadd.f32 1e-12, %v827_v28  ;;  %v875_v35 = vmax.f32 %v874_v30, 0.0  ;;  %v911_v36 = vmul.f32 %v901_v31, %v901_v31  ;;  %v902_v38 = vmul.f32 0.0078125, %v900_v33 }
  0xbe   : > { %v906_v39 = vpop.xlane.xlu0 %905  ;;  %v917_v22 = vsub.f32 %v6127_v27, %v901_v31  ;;  %v999_v28 = vrot.slane %v986_v23, %v998_v24 }
  0xbf   : > { %v5753_v40 = vpop.eup %5752  ;;  %5756 = vrsqrt.f32 %v831_v34  ;;  %v877_v41 = vadd.f32 1e-12, %v875_v35  ;;  %v909_v42 = vmul.f32 0.0078125, %v906_v39  ;;  %v912_v43 = vmul.f32 %v902_v38, %v902_v38 }
  0xc0   : > { %v908_v44 = vpop.xlane.xlu1 %907  ;;  %v790_v45 = vmul.f32 %v5753_v40, %v787_v37  ;;  %v918_v10 = vsub.f32 %v6132_v29, %v902_v38 }
  0xc1   : > { %5758 = vrsqrt.f32 %v877_v41  ;;  %v913_v46 = vsub.f32 %v909_v42, %v911_v36  ;;  %v910_v47 = vmul.f32 0.0078125, %v908_v44 }
  0xc2   : > { %v797_v53 = vmul.f32 %v4878_v48, %v790_v45 }
  0xc3   : > { %v5755_v50 = vpop.eup %5754  ;;  %v915_v51 = vmax.f32 %v913_v46, 0.0  ;;  %v914_v52 = vsub.f32 %v910_v47, %v912_v43 }
  0xc4   : > { %v834_v54 = vmul.f32 %v5755_v50, %v828_v49  ;;  %v6229_v62 = vadd.f32 %v4879_v58, %v797_v53 }
  0xc5   : > { %v919_v55 = vadd.f32 1e-12, %v915_v51  ;;  %v916_v57 = vmax.f32 %v914_v52, 0.0 }
  0xc6   : > { %v842_v59 = vmul.f32 %v4878_v48, %v834_v54 }
  0xc7   : > { %5760 = vrsqrt.f32 %v919_v55  ;;  %v920_v60 = vadd.f32 1e-12, %v916_v57 }
  0xc8   : > { %v6231_v63 = vadd.f32 %v4879_v58, %v842_v59 }
  0xc9   : > { %v5757_v19 = vpop.eup %5756  ;;  %5762 = vrsqrt.f32 %v920_v60 }
  0xca   : > { %v951_v1 = vpack.c.bf16 %v6231_v63, %v6229_v62  ;;  %v835_v2 = vmul.f32 %v5757_v19, %v829_v61 }
  0xcb   : > { %v5759_v4 = vpop.eup %5758 }
  0xcc   : > { %1164 = vmatmul.mubr.bf16.vlgmr.msra.gmra.mrb[0].mxu0 %v951_v1  ;;  %5299 = vmatmul.mubr.bf16.vlgmr.msra.gmra.mrb[0].mxu1 %v951_v1  ;;  %v843_v7 = vmul.f32 %v4878_v48, %v835_v2  ;;  %v879_v8 = vmul.f32 %v5759_v4, %v876_v0 }
  0xcd   : > { %1173 = vmatprep.mubr.bf16.mxu0 %v5941_v56  ;;  %5302 = vmatprep.mubr.msk.bf16.mxu1 %vm5942_vm0, %v5940_v32 }
  0xce   : > { %v886_v9 = vmul.f32 %v4878_v48, %v879_v8  ;;  %v6241_v12 = vadd.f32 %v4879_v58, %v843_v7 }
  0xd0   : > { %v6243_v11 = vadd.f32 %v4879_v58, %v886_v9 }
  0xd1   : > { %v5761_v13 = vpop.eup %5760 }
  0xd2   : > { %v952_v14 = vpack.c.bf16 %v6243_v11, %v6241_v12  ;;  %v923_v15 = vmul.f32 %v5761_v13, %v917_v22 }
  0xd3   : > { %v5763_v16 = vpop.eup %5762 }
  0xd4   : > { %1174 = vmatmul.mubr.bf16.gmra.mrb[4].mxu0 %v952_v14  ;;  %5303 = vmatmul.mubr.bf16.gmra.mrb[4].mxu1 %v952_v14  ;;  %v924_v17 = vmul.f32 %v5763_v16, %v918_v10  ;;  %v931_v18 = vmul.f32 %v4878_v48, %v923_v15 }
  0xd5   : > { %1183 = vmatprep.mubr.bf16.mxu0 %v5941_v56  ;;  %5306 = vmatprep.mubr.msk.bf16.mxu1 %vm5942_vm0, %v5940_v32 }
  0xd6   : > { %v932_v27 = vmul.f32 %v4878_v48, %v924_v17  ;;  %v6250_v29 = vadd.f32 %v4879_v58, %v931_v18 }
  0xd8   : > { %v6252_v20 = vadd.f32 %v4879_v58, %v932_v27 }
  0xda   : > { %v953_v21 = vpack.c.bf16 %v6252_v20, %v6250_v29 }
  0xdc   : > { %1184 = vmatmul.mubr.bf16.gmra.mrb[8].mxu0 %v953_v21  ;;  %5307 = vmatmul.mubr.bf16.gmra.mrb[8].mxu1 %v953_v21 }
 0x19f   : > { %v1165_v30 = vpop.f32.mrb[0].mxu0  ;;  %v1228_v31 = vpop.f32.mrb[0].mxu1 }
 0x1a0   : > { %v1166_v33 = vadd.f32 %v1165_v30, %v991_v25  ;;  %v1167_v34 = vpop.f32.mrb[1].mxu0  ;;  %v5300_v35 = vpop.f32.mrb[1].mxu1  ;;  %v1229_v39 = vadd.f32 %v1228_v31, %v999_v28 }
 0x1a1   : > { %v1168_v36 = vadd.f32 %v1167_v34, %v6262_v26  ;;  %v1169_v37 = vpop.f32.mrb[2].mxu0  ;;  %v1231_v38 = vpop.f32.mrb[2].mxu1 }
 0x1a2   : > { %v1170_v40 = vadd.f32 %v1169_v37, %v991_v25  ;;  %v1232_v41 = vadd.f32 %v1231_v38, %v999_v28  ;;  %v1171_v42 = vpop.f32.mrb[3].mxu0  ;;  %v5301_v43 = vpop.f32.mrb[3].mxu1  ;;  %v1251_v45 = vmul.f32 0.17677669, %v1166_v33 }
 0x1a3   : > { %v1172_v44 = vadd.f32 %v1171_v42, %v6262_v26 }
 0x1a4   : > { %v1252_v46 = vmul.f32 0.17677669, %v1170_v40  ;;  %v6268_v47 = vpack.c.bf16 %v1232_v41, %v1229_v39 }
 0x1a5   : > { %v6270_v48 = vpack.c.bf16 %v1172_v44, %v1168_v36 }
 0x1a6   : > { %v6272_v49 = vpack.c.bf16 %v1252_v46, %v1251_v45 }
 0x1a7   : > { %v1175_v50 = vpop.f32.mrb[4].mxu0  ;;  %v1236_v51 = vpop.f32.mrb[4].mxu1  ;;  %5562 = vmatprep.subr.msk.bf16.mxu0 %vm1272_vm1, %v6270_v48  ;;  %v1280_v52 = vsel %vm1272_vm1, %v6270_v48, 0 }
 0x1a8   : > { %v1176_v53 = vadd.f32 %v1175_v50, %v991_v25  ;;  %v1177_v54 = vpop.f32.mrb[5].mxu0  ;;  %v5304_v55 = vpop.f32.mrb[5].mxu1  ;;  %5311 = vmatpush3.bf16.xpose.msra.mxu0 %v1280_v52  ;;  %5314 = vmatprep.mubr.msk.bf16.mxu0 %vm1272_vm1, %v6272_v49  ;;  %v1237_v60 = vadd.f32 %v1236_v51, %v999_v28 }
 0x1a9   : > { %v1178_v57 = vadd.f32 %v1177_v54, %v6262_v26  ;;  %v1179_v58 = vpop.f32.mrb[6].mxu0  ;;  %v1239_v59 = vpop.f32.mrb[6].mxu1 }
 0x1aa   : > { %v1180_v61 = vadd.f32 %v1179_v58, %v991_v25  ;;  %v1240_v19 = vadd.f32 %v1239_v59, %v999_v28  ;;  %v1181_v0 = vpop.f32.mrb[7].mxu0  ;;  %v5305_v1 = vpop.f32.mrb[7].mxu1  ;;  %v1253_v4 = vmul.f32 0.17677669, %v1176_v53 }
 0x1ab   : > { %v1182_v2 = vadd.f32 %v1181_v0, %v6262_v26 }
 0x1ac   : > { %v1254_v7 = vmul.f32 0.17677669, %v1180_v61  ;;  %v6282_v8 = vpack.c.bf16 %v1240_v19, %v1237_v60 }
 0x1ad   : > { %v6284_v22 = vpack.c.bf16 %v1182_v2, %v1178_v57 }
 0x1ae   : > { %v6286_v9 = vpack.c.bf16 %v1254_v7, %v1253_v4 }
 0x1af   : > { %v1185_v10 = vpop.f32.mrb[8].mxu0  ;;  %v1244_v13 = vpop.f32.mrb[8].mxu1  ;;  %5563 = vmatprep.subr.msk.bf16.mxu0 %vm1272_vm1, %v6284_v22  ;;  %v1283_v14 = vsel %vm1272_vm1, %v6284_v22, 0 }
 0x1b0   : > { %v1186_v15 = vadd.f32 %v1185_v10, %v991_v25  ;;  %v6292_v16 = vadd.f32 %v1244_v13, %v999_v28  ;;  %v1187_v17 = vpop.f32.mrb[9].mxu0  ;;  %v5308_v18 = vpop.f32.mrb[9].mxu1  ;;  %5313 = vmatpush3.bf16.xpose.msra.mxu0 %v1283_v14 }
 0x1b1   : > { %v6295_v27 = vadd.f32 %v1187_v17, %v6262_v26  ;;  %v1189_v21 = vpop.f32.mrb[10].mxu0  ;;  %v1247_v23 = vpop.f32.mrb[10].mxu1  ;;  %5318 = vmatprep.subr.bf16.mxu0 %v6268_v47 }
 0x1b2   : > { %v6298_v30 = vmul.f32 0.17677669, %v1186_v15  ;;  %v1190_v31 = vadd.f32 %v1189_v21, %v991_v25  ;;  %v6300_v33 = vadd.f32 %v1247_v23, %v999_v28  ;;  %v1191_v34 = vpop.f32.mrb[11].mxu0  ;;  %v5309_v35 = vpop.f32.mrb[11].mxu1  ;;  %v1377_v25 = vsel %vm1375_vm2, %v6282_v8, 0 }
 0x1b3   : > { %v6303_v36 = vadd.f32 %v1191_v34, %v6262_v26  ;;  %v6327_v26 = vld [vmem:[%s6324_s5] ss:$0 sm:$0xff] }
 0x1b4   : > { %v6305_v37 = vmul.f32 0.17677669, %v1190_v31  ;;  %v1265_v38 = vpack.c.bf16 %v6300_v33, %v6292_v16 }
 0x1b5   : > { %v1262_v39 = vpack.c.bf16 %v6303_v36, %v6295_v27  ;;  %v2308_v27 = vrot.slane %v6286_v9, 4 }
 0x1b6   : > { %v1259_v40 = vpack.c.bf16 %v6305_v37, %v6298_v30 }
 0x1b7   : > { %5315 = vmatmul.mubr.msk.bf16.vlgmr.msra.gmra.mrb[12].mxu0 %vm1272_vm1, %v6286_v9 }
 0x1b8   : > { %5319 = vmatpush3.bf16.msra.mxu0 %v6268_v47 }
 0x1b9   : > { %5564 = vmatprep.subr.msk.bf16.mxu0 %vm1375_vm2, %v6282_v8 }
 0x1bc   : > { %5321 = vmatpush3.bf16.msra.mxu0 %v1377_v25 }
 0x28a   : > { %v5316_v28 = vpop.f32.mrb[12].mxu0 }
 0x28b   : > { %v1319_v41 = vpop.f32.mrb[13].mxu0  ;;  %v1328_v45 = vadd.f32 %v5316_v28, %v6327_v26 }
 0x28c   : > { %v1320_v42 = vadd.f32 %v6327_v26, %v1319_v41  ;;  %v5317_v43 = vpop.f32.mrb[14].mxu0 }
 0x28d   : > { %v1322_v44 = vpop.f32.mrb[15].mxu0  ;;  %v1340_v52 = vsel %vm1333_vm3, %v1328_v45, -inf }
 0x28e   : > { %v1323_v46 = vadd.f32 %v6327_v26, %v1322_v44  ;;  %v1334_v50 = vsel %vm1333_vm3, %v1320_v42, -inf  ;;  %v5632_v44 = vld [vmem:[%s7420_s9] sm:$0xff]  }
 0x28f   : > { %1335 = vmax.xlane.f32.xlu0 %v1334_v50  ;;  %v5633_v50 = vld [vmem:[%s7420_s9 + $0x8] sm:$0xff]  }
 0x290   : > { %v1337_v51 = vsel %vm1333_vm3, %v1323_v46, -inf }
 0x291   : > { %1338 = vmax.xlane.f32.xlu1 %v1337_v51 }
 0x293   : > { %1341 = vmax.xlane.f32.xlu0 %v1340_v52 }
 0x31c   : > { %v1336_v53 = vpop.xlane.xlu0 %1335 }
 0x31d   : > { %v1343_v54 = vsub.f32 %v1320_v42, %v1336_v53 }
 0x31e   : > { %v1339_v55 = vpop.xlane.xlu1 %1338 }
 0x31f   : > { %v1346_v57 = vmul.f32 1.442695, %v1343_v54  ;;  %v1344_v58 = vsub.f32 %v1323_v46, %v1339_v55 }
 0x320   : > { %v1342_v59 = vpop.xlane.xlu0 %1341 }
 0x321   : > { %5764 = vpow2.f32 %v1346_v57  ;;  %v1348_v60 = vmul.f32 1.442695, %v1344_v58  ;;  %v1345_v61 = vsub.f32 %v1328_v45, %v1342_v59 }
 0x323   : > { %5766 = vpow2.f32 %v1348_v60  ;;  %v1350_v19 = vmul.f32 1.442695, %v1345_v61 }
 0x325   : > { %5768 = vpow2.f32 %v1350_v19 }
 0x32b   : > { %v5765_v0 = vpop.eup %5764 }
 0x32c   : > { %v1352_v1 = vsel %vm1333_vm3, %v5765_v0, 0.0 }
 0x32d   : > { %v5767_v2 = vpop.eup %5766  ;;  %1353 = vadd.xlane.f32.xlu1 %v1352_v1 }
 0x32e   : > { %v1355_v4 = vsel %vm1333_vm3, %v5767_v2, 0.0 }
 0x32f   : > { %v5769_v7 = vpop.eup %5768  ;;  %1356 = vadd.xlane.f32.xlu0 %v1355_v4 }
 0x330   : > { %v1358_v10 = vsel %vm1333_vm3, %v5769_v7, 0.0 }
 0x331   : > { %1359 = vadd.xlane.f32.xlu1 %v1358_v10 }
 0x342   : > { %1443 = vrot.lane.b32.xlu1 %v6284_v22, %s5943_s26 }
 0x345   : > { %1441 = vrot.lane.b32.xlu0 %v6270_v48, %s5943_s26 }
 0x346   : > { %1435 = vrot.lane.b32.xlu1 %v6272_v49, %s5943_s26 }
 0x34a   : > { %1437 = vrot.lane.b32.xlu1 %v6286_v9, %s5943_s26 }
 0x3ba   : > { %v1354_v13 = vpop.xlane.xlu1 %1353 }
 0x3bb   : > { %5770 = vrcp.f32 %v1354_v13 }
 0x3bc   : > { %v1357_v14 = vpop.xlane.xlu0 %1356 }
 0x3bd   : > { %5772 = vrcp.f32 %v1357_v14 }
 0x3be   : > { %v1360_v15 = vpop.xlane.xlu1 %1359 }
 0x3bf   : > { %5774 = vrcp.f32 %v1360_v15 }
 0x3c0   : > { %v1442_v17 = vpop.permute.xlu0 %1441 }
 0x3c1   : > { %5565 = vmatprep.subr.msk.bf16.mxu0 %vm1272_vm1, %v1442_v17  ;;  %v1452_v43 = vsel %vm1272_vm1, %v1442_v17, 0 }
 0x3c2   : > { %v1444_v23 = vpop.permute.xlu1 %1443 }
 0x3c3   : > { %v1455_v45 = vsel %vm1272_vm1, %v1444_v23, 0 }
 0x3c5   : > { %v5771_v18 = vpop.eup %5770 }
 0x3c6   : > { %v1364_v31 = vmul.f32 %v5771_v18, %v5765_v0  ;;  %v1436_v42 = vpop.permute.xlu1 %1435 }
 0x3c7   : > { %v5773_v21 = vpop.eup %5772 }
 0x3c8   : > { %v1365_v34 = vmul.f32 %v5773_v21, %v5767_v2 }
 0x3c9   : > { %v5775_v35 = vpop.eup %5774 }
 0x3ca   : > { %v1367_v25 = vpack.c.bf16 %v1365_v34, %v1364_v31  ;;  %v1366_v28 = vmul.f32 %v5775_v35, %v5769_v7  ;;  %v1438_v46 = vpop.permute.xlu1 %1437 }
 0x3cc   : > { %5322 = vmatprep.mubr.msk.bf16.mxu0 %vm1333_vm3, %v1367_v25  ;;  %v1368_v41 = vpack.c.bf16 %v1366_v28, %v1366_v28 }
 0x3ce   : > { %5323 = vmatmul.mubr.msk.bf16.vlgmr.msra.gmra.mrb[16].mxu0 %vm1333_vm3, %v1368_v41 }
 0x3cf   : > { %5327 = vmatpush3.bf16.xpose.msra.mxu0 %v1452_v43  ;;  %5330 = vmatprep.mubr.msk.bf16.mxu0 %vm1272_vm1, %v1436_v42 }
 0x3d0   : > { %5566 = vmatprep.subr.msk.bf16.mxu0 %vm1272_vm1, %v1444_v23 }
 0x3d7   : > { %5329 = vmatpush3.bf16.xpose.msra.mxu0 %v1455_v45 }
 0x3d8   : > { %5350 = vmatprep.subr.bf16.mxu0 %v5632_v44 }
 0x3de   : > { %5331 = vmatmul.mubr.msk.bf16.vlgmr.msra.gmra.mrb[20].mxu0 %vm1272_vm1, %v1438_v46 }
 0x3df   : > { %5351 = vmatpush3.bf16.msra.mxu0 %v5632_v44 }
 0x3e0   : > { %5352 = vmatprep.subr.bf16.mxu0 %v5633_v50 }
 0x3e3   : > { %5353 = vmatpush3.bf16.msra.mxu0 %v5633_v50 }
 0x4a1   : > { %v5324_v51 = vpop.f32.mrb[16].mxu0 }
 0x4a2   : > { %v1413_v52 = vpop.f32.mrb[17].mxu0  ;;  %v1428_v57 = vpack.c.bf16 %v5324_v51, %v5324_v51 }
 0x4a3   : > { %v5325_v53 = vpop.f32.mrb[18].mxu0 }
 0x4a4   : > { %v1416_v54 = vpop.f32.mrb[19].mxu0 }
 0x4a5   : > { %v1427_v55 = vpack.c.bf16 %v1416_v54, %v1413_v52 }
 0x4a7   : > { %5354 = vmatprep.mubr.msk.bf16.mxu0 %vm1272_vm1, %v1427_v55 }
 0x4a8   : > { %5355 = vmatmul.mubr.msk.bf16.vlgmr.msra.gmra.mrb[24].mxu0 %vm1272_vm1, %v1428_v57 }
 0x4b1   : > { %v5332_v58 = vpop.f32.mrb[20].mxu0 }
 0x4b2   : > { %v1491_v59 = vpop.f32.mrb[21].mxu0  ;;  %v1500_v0 = vadd.f32 %v5332_v58, %v6327_v26 }
 0x4b3   : > { %v1492_v60 = vadd.f32 %v6327_v26, %v1491_v59  ;;  %v5333_v61 = vpop.f32.mrb[22].mxu0 }
 0x4b4   : > { %v1494_v19 = vpop.f32.mrb[23].mxu0  ;;  %v1511_v7 = vsel %vm1333_vm3, %v1500_v0, -inf }
 0x4b5   : > { %v1495_v1 = vadd.f32 %v6327_v26, %v1494_v19  ;;  %v1505_v2 = vsel %vm1333_vm3, %v1492_v60, -inf }
 0x4b6   : > { %1506 = vmax.xlane.f32.xlu0 %v1505_v2 }
 0x4b7   : > { %v1508_v4 = vsel %vm1333_vm3, %v1495_v1, -inf }
 0x4b8   : > { %1509 = vmax.xlane.f32.xlu1 %v1508_v4 }
 0x4ba   : > { %1512 = vmax.xlane.f32.xlu0 %v1511_v7 }
 0x543   : > { %v1507_v10 = vpop.xlane.xlu0 %1506 }
 0x544   : > { %v1514_v13 = vsub.f32 %v1492_v60, %v1507_v10 }
 0x545   : > { %v1510_v14 = vpop.xlane.xlu1 %1509 }
 0x546   : > { %v1517_v15 = vmul.f32 1.442695, %v1514_v13  ;;  %v1515_v17 = vsub.f32 %v1495_v1, %v1510_v14  ;;  %v5635_v1 = vld [vmem:[%s7420_s9 + $0x18] sm:$0xff]  }
 0x547   : > { %v1513_v18 = vpop.xlane.xlu0 %1512 }
 0x548   : > { %5776 = vpow2.f32 %v1517_v15  ;;  %v1519_v21 = vmul.f32 1.442695, %v1515_v17  ;;  %v1516_v23 = vsub.f32 %v1500_v0, %v1513_v18 }
 0x54a   : > { %5778 = vpow2.f32 %v1519_v21  ;;  %v1521_v31 = vmul.f32 1.442695, %v1516_v23 }
 0x54c   : > { %5780 = vpow2.f32 %v1521_v31 }
 0x552   : > { %v5777_v34 = vpop.eup %5776 }
 0x553   : > { %v1523_v35 = vsel %vm1333_vm3, %v5777_v34, 0.0 }
 0x554   : > { %v5779_v25 = vpop.eup %5778  ;;  %1524 = vadd.xlane.f32.xlu0 %v1523_v35 }
 0x555   : > { %v1526_v41 = vsel %vm1333_vm3, %v5779_v25, 0.0 }
 0x556   : > { %v5781_v28 = vpop.eup %5780 }
 0x557   : > { %v1529_v42 = vsel %vm1333_vm3, %v5781_v28, 0.0 }
 0x558   : > { %1527 = vadd.xlane.f32.xlu0 %v1526_v41  ;;  %1530 = vadd.xlane.f32.xlu1 %v1529_v42  ;;  %v6422_v41 = vrot.slane %v1262_v39, 4  ;;  %v2312_v42 = vrot.slane %v6284_v22, 4 }
 0x569   : > { %1544 = vrot.lane.b32.xlu1 %v6282_v8, %s5943_s26 }
 0x56d   : > { %1746 = vrot.lane.b32.xlu1 %v6270_v48, %s5944_s27 }
 0x56e   : > { %1542 = vrot.lane.b32.xlu0 %v6268_v47, %s5943_s26 }
 0x571   : > { %1748 = vrot.lane.b32.xlu1 %v6284_v22, %s5944_s27 }
 0x572   : > { %1742 = vrot.lane.b32.xlu0 %v6272_v49, %s5944_s27 }
 0x575   : > { %1744 = vrot.lane.b32.xlu1 %v6286_v9, %s5944_s27 }
 0x576   : > { %1986 = vrot.lane.b32.xlu0 %v6270_v48, %s5945_s28 }
 0x579   : > { %1988 = vrot.lane.b32.xlu1 %v6284_v22, %s5945_s28 }
 0x57a   : > { %1982 = vrot.lane.b32.xlu0 %v6272_v49, %s5945_s28  ;;  %v5634_v49 = vld [vmem:[%s7420_s9 + $0x10] sm:$0xff]  }
 0x57b   : > { %v6389_v43 = vpop.f32.mrb[24].mxu0 }
 0x57c   : > { %v6391_v44 = vpop.f32.mrb[25].mxu0 }
 0x57d   : > { %1984 = vrot.lane.b32.xlu1 %v6286_v9, %s5945_s28  ;;  %v5357_v45 = vpop.f32.mrb[26].mxu0  ;;  %v2325_v9 = vsel %vm1272_vm1, %v6422_v41, 0 }
 0x57e   : > { %v6395_v46 = vpop.f32.mrb[27].mxu0 }
 0x5e1   : > { %v1525_v50 = vpop.xlane.xlu0 %1524 }
 0x5e2   : > { %5782 = vrcp.f32 %v1525_v50  ;;  %v6428_v50 = vsel %vm1375_vm2, %v2312_v42, %v6422_v41 }
 0x5e3   : > { %v2322_v22 = vsel %vm1272_vm1, %v6428_v50, 0 }
 0x5e5   : > { %v1531_v51 = vpop.xlane.xlu1 %1530  ;;  %v1528_v48 = vpop.xlane.xlu0 %1527 }
 0x5e6   : > { %5784 = vrcp.f32 %v1531_v51  ;;  %v6435_v51 = vrot.slane %v1259_v40, 4 }
 0x5e7   : > { %5786 = vrcp.f32 %v1528_v48 }
 0x5e8   : > { %v6443_v39 = vsel %vm1375_vm2, %v2308_v27, %v6435_v51 }
 0x5e9   : > { %v1543_v52 = vpop.permute.xlu0 %1542  ;;  %v1545_v53 = vpop.permute.xlu1 %1544 }
 0x5ea   : > { %5334 = vmatprep.subr.bf16.mxu1 %v1543_v52  ;;  %v1554_v54 = vsel %vm1375_vm2, %v1545_v53, 0 }
 0x5eb   : > { %5335 = vmatpush3.bf16.msra.mxu1 %v1543_v52 }
 0x5ec   : > { %5567 = vmatprep.subr.msk.bf16.mxu1 %vm1375_vm2, %v1545_v53  ;;  %v5783_v55 = vpop.eup %5782 }
 0x5ed   : > { %v1535_v60 = vmul.f32 %v5783_v55, %v5777_v34  ;;  %v1747_v2 = vpop.permute.xlu1 %1746  ;;  %v1743_v18 = vpop.permute.xlu0 %1742 }
 0x5ee   : > { %v1757_v17 = vsel %vm1272_vm1, %v1747_v2, 0 }
 0x5ef   : > { %5337 = vmatpush3.bf16.msra.mxu1 %v1554_v54 }
 0x5f0   : > { %v5785_v57 = vpop.eup %5784  ;;  %5342 = vmatprep.subr.bf16.mxu1 %v5634_v49 }
 0x5f1   : > { %v5787_v58 = vpop.eup %5786  ;;  %v1537_v59 = vmul.f32 %v5785_v57, %v5781_v28  ;;  %v1749_v21 = vpop.permute.xlu1 %1748 }
 0x5f2   : > { %v1536_v61 = vmul.f32 %v5787_v58, %v5779_v25  ;;  %v1760_v23 = vsel %vm1272_vm1, %v1749_v21, 0  ;;  %v1987_v31 = vpop.permute.xlu0 %1986 }
 0x5f3   : > { %v1539_v19 = vpack.c.bf16 %v1537_v59, %v1537_v59  ;;  %v1997_v35 = vsel %vm1272_vm1, %v1987_v31, 0 }
 0x5f4   : > { %v1538_v0 = vpack.c.bf16 %v1536_v61, %v1535_v60 }
 0x5f5   : > { %v1745_v34 = vpop.permute.xlu1 %1744 }
 0x5f6   : > { %5338 = vmatprep.mubr.msk.bf16.mxu1 %vm1333_vm3, %v1538_v0  ;;  %v1983_v25 = vpop.permute.xlu0 %1982 }
 0x5f7   : > { %5339 = vmatmul.mubr.msk.bf16.vlgmr.msra.gmra.mrb[12].mxu1 %vm1333_vm3, %v1539_v19 }
 0x5f8   : > { %5343 = vmatpush3.bf16.msra.mxu1 %v5634_v49 }
 0x5f9   : > { %5344 = vmatprep.subr.bf16.mxu1 %v5635_v1  ;;  %v1989_v28 = vpop.permute.xlu1 %1988 }
 0x5fa   : > { %v2000_v45 = vsel %vm1272_vm1, %v1989_v28, 0 }
 0x5fc   : > { %5345 = vmatpush3.bf16.msra.mxu1 %v5635_v1 }
 0x5fd   : > { %5568 = vmatprep.subr.msk.bf16.mxu1 %vm1272_vm1, %v1747_v2  ;;  %v1985_v36 = vpop.permute.xlu1 %1984 }
 0x6ca   : > { %v5340_v4 = vpop.f32.mrb[12].mxu1 }
 0x6cb   : > { %v1590_v7 = vpop.f32.mrb[13].mxu1  ;;  %v1605_v15 = vpack.c.bf16 %v5340_v4, %v5340_v4 }
 0x6cc   : > { %v5341_v10 = vpop.f32.mrb[14].mxu1 }
 0x6cd   : > { %v1593_v13 = vpop.f32.mrb[15].mxu1 }
 0x6ce   : > { %v1604_v14 = vpack.c.bf16 %v1593_v13, %v1590_v7 }
 0x6d0   : > { %5346 = vmatprep.mubr.msk.bf16.mxu1 %vm1272_vm1, %v1604_v14 }
 0x6d1   : > { %5347 = vmatmul.mubr.msk.bf16.vlgmr.msra.gmra.mrb[16].mxu1 %vm1272_vm1, %v1605_v15 }
 0x6d2   : > { %5359 = vmatpush3.bf16.xpose.msra.mxu1 %v1757_v17  ;;  %5362 = vmatprep.mubr.msk.bf16.mxu1 %vm1272_vm1, %v1743_v18 }
 0x6d3   : > { %5569 = vmatprep.subr.msk.bf16.mxu1 %vm1272_vm1, %v1749_v21 }
 0x6da   : > { %5361 = vmatpush3.bf16.xpose.msra.mxu1 %v1760_v23 }
 0x6db   : > { %5571 = vmatprep.subr.msk.bf16.mxu1 %vm1272_vm1, %v1987_v31 }
 0x6e1   : > { %5363 = vmatmul.mubr.msk.bf16.vlgmr.msra.gmra.mrb[20].mxu1 %vm1272_vm1, %v1745_v34 }
 0x6e2   : > { %5383 = vmatpush3.bf16.xpose.msra.mxu1 %v1997_v35  ;;  %5386 = vmatprep.mubr.msk.bf16.mxu1 %vm1272_vm1, %v1983_v25 }
 0x6e3   : > { %5572 = vmatprep.subr.msk.bf16.mxu1 %vm1272_vm1, %v1989_v28 }
 0x6ea   : > { %5385 = vmatpush3.bf16.xpose.msra.mxu1 %v2000_v45 }
 0x6eb   : > { %5574 = vmatprep.subr.msk.bf16.mxu1 %vm1272_vm1, %v6428_v50 }
 0x6f1   : > { %5387 = vmatmul.mubr.msk.bf16.vlgmr.msra.gmra.mrb[24].mxu1 %vm1272_vm1, %v1985_v36 }
 0x6f2   : > { %5407 = vmatpush3.bf16.xpose.msra.mxu1 %v2322_v22  ;;  %5410 = vmatprep.mubr.msk.bf16.mxu1 %vm1272_vm1, %v6443_v39 }
 0x6f3   : > { %5575 = vmatprep.subr.msk.bf16.mxu1 %vm1272_vm1, %v6422_v41 }
 0x6fa   : > { %5409 = vmatpush3.bf16.xpose.msra.mxu1 %v2325_v9 }
 0x701   : > { %5411 = vmatmul.mubr.msk.bf16.vlgmr.msra.gmra.mrb[28].mxu1 %vm1272_vm1, %v6435_v51 }
 0x7a4   : > { %v5348_v30 = vpop.f32.mrb[16].mxu1 }
 0x7a5   : > { %v6454_v37 = vadd.f32 %v6389_v43, %v5348_v30  ;;  %v1662_v40 = vpop.f32.mrb[17].mxu1 }
 0x7a6   : > { %v6457_v48 = vadd.f32 %v6391_v44, %v1662_v40  ;;  %v5349_v52 = vpop.f32.mrb[18].mxu1 }
 0x7a7   : > { %v1665_v53 = vpop.f32.mrb[19].mxu1 }
 0x7a8   : > { %v6460_v49 = vadd.f32 %v6395_v46, %v1665_v53 }
 0x7b4   : > { %v5364_v54 = vpop.f32.mrb[20].mxu1 }
 0x7b5   : > { %v1796_v55 = vpop.f32.mrb[21].mxu1  ;;  %v1805_v60 = vadd.f32 %v5364_v54, %v6327_v26 }
 0x7b6   : > { %v1797_v57 = vadd.f32 %v6327_v26, %v1796_v55  ;;  %v5365_v58 = vpop.f32.mrb[22].mxu1 }
 0x7b7   : > { %v1799_v59 = vpop.f32.mrb[23].mxu1  ;;  %v1816_v19 = vsel %vm1333_vm3, %v1805_v60, -inf }
 0x7b8   : > { %v1800_v43 = vadd.f32 %v6327_v26, %v1799_v59  ;;  %v1810_v61 = vsel %vm1333_vm3, %v1797_v57, -inf }
 0x7b9   : > { %1811 = vmax.xlane.f32.xlu0 %v1810_v61 }
 0x7ba   : > { %v1813_v44 = vsel %vm1333_vm3, %v1800_v43, -inf }
 0x7bb   : > { %1814 = vmax.xlane.f32.xlu1 %v1813_v44 }
 0x7bd   : > { %1817 = vmax.xlane.f32.xlu0 %v1816_v19 }
 0x7c4   : > { %v5388_v46 = vpop.f32.mrb[24].mxu1 }
 0x7c5   : > { %v2036_v0 = vpop.f32.mrb[25].mxu1  ;;  %v2045_v30 = vadd.f32 %v5388_v46, %v6327_v26 }
 0x7c6   : > { %v5389_v1 = vpop.f32.mrb[26].mxu1  ;;  %v2037_v22 = vadd.f32 %v6327_v26, %v2036_v0 }
 0x7c7   : > { %v2039_v2 = vpop.f32.mrb[27].mxu1  ;;  %v2056_v53 = vsel %vm1333_vm3, %v2045_v30, -inf }
 0x7c8   : > { %v2040_v9 = vadd.f32 %v6327_v26, %v2039_v2  ;;  %v2050_v52 = vsel %vm1333_vm3, %v2037_v22, -inf  ;;  %v5636_v26 = vld [vmem:[%s7420_s9 + $0x20] sm:$0xff]  }
 0x7ca   : > { %v2053_v40 = vsel %vm1333_vm3, %v2040_v9, -inf }
 0x7d4   : > { %v6468_v4 = vpop.f32.mrb[28].mxu1 }
 0x7d5   : > { %v6470_v7 = vpop.f32.mrb[29].mxu1 }
 0x7d6   : > { %v5413_v10 = vpop.f32.mrb[30].mxu1 }
 0x7d7   : > { %v6472_v13 = vpop.f32.mrb[31].mxu1 }
 0x846   : > { %v1812_v14 = vpop.xlane.xlu0 %1811 }
 0x847   : > { %v1819_v15 = vsub.f32 %v1797_v57, %v1812_v14 }
 0x848   : > { %v1815_v17 = vpop.xlane.xlu1 %1814 }
 0x849   : > { %v1822_v18 = vmul.f32 1.442695, %v1819_v15  ;;  %v1820_v21 = vsub.f32 %v1800_v43, %v1815_v17 }
 0x84a   : > { %v1818_v23 = vpop.xlane.xlu0 %1817 }
 0x84b   : > { %5788 = vpow2.f32 %v1822_v18  ;;  %v1824_v31 = vmul.f32 1.442695, %v1820_v21  ;;  %v1821_v34 = vsub.f32 %v1805_v60, %v1818_v23 }
 0x84d   : > { %5790 = vpow2.f32 %v1824_v31  ;;  %v1826_v35 = vmul.f32 1.442695, %v1821_v34 }
 0x84f   : > { %5792 = vpow2.f32 %v1826_v35 }
 0x855   : > { %v5789_v25 = vpop.eup %5788 }
 0x856   : > { %v1828_v28 = vsel %vm1333_vm3, %v5789_v25, 0.0 }
 0x857   : > { %v5791_v42 = vpop.eup %5790  ;;  %1829 = vadd.xlane.f32.xlu0 %v1828_v28 }
 0x858   : > { %v1831_v27 = vsel %vm1333_vm3, %v5791_v42, 0.0 }
 0x859   : > { %v5793_v45 = vpop.eup %5792 }
 0x85a   : > { %v1834_v36 = vsel %vm1333_vm3, %v5793_v45, 0.0 }
 0x85b   : > { %1832 = vadd.xlane.f32.xlu0 %v1831_v27  ;;  %1835 = vadd.xlane.f32.xlu1 %v1834_v36  ;;  %v5637_v36 = vld [vmem:[%s7420_s9 + $0x28] sm:$0xff]  }
 0x86c   : > { %1847 = vrot.lane.b32.xlu1 %v6282_v8, %s5944_s27 }
 0x871   : > { %1845 = vrot.lane.b32.xlu0 %v6268_v47, %s5944_s27 }
 0x890   : > { %2054 = vmax.xlane.f32.xlu0 %v2053_v40  ;;  %2051 = vmax.xlane.f32.xlu1 %v2050_v52 }
 0x894   : > { %2057 = vmax.xlane.f32.xlu0 %v2056_v53 }
 0x8e4   : > { %v1830_v54 = vpop.xlane.xlu0 %1829 }
 0x8e5   : > { %5794 = vrcp.f32 %v1830_v54 }
 0x8e8   : > { %v1836_v55 = vpop.xlane.xlu1 %1835  ;;  %v1833_v57 = vpop.xlane.xlu0 %1832 }
 0x8e9   : > { %5796 = vrcp.f32 %v1836_v55 }
 0x8ea   : > { %5798 = vrcp.f32 %v1833_v57 }
 0x8ec   : > { %v1846_v58 = vpop.permute.xlu0 %1845  ;;  %v1848_v59 = vpop.permute.xlu1 %1847 }
 0x8ed   : > { %5366 = vmatprep.subr.bf16.mxu0 %v1846_v58  ;;  %v1857_v60 = vsel %vm1375_vm2, %v1848_v59, 0 }
 0x8ee   : > { %5367 = vmatpush3.bf16.msra.mxu0 %v1846_v58 }
 0x8ef   : > { %5570 = vmatprep.subr.msk.bf16.mxu0 %vm1375_vm2, %v1848_v59  ;;  %v5795_v43 = vpop.eup %5794 }
 0x8f0   : > { %v1840_v46 = vmul.f32 %v5795_v43, %v5789_v25 }
 0x8f2   : > { %5369 = vmatpush3.bf16.msra.mxu0 %v1857_v60 }
 0x8f3   : > { %v5797_v61 = vpop.eup %5796  ;;  %5374 = vmatprep.subr.bf16.mxu0 %v5636_v26 }
 0x8f4   : > { %v5799_v44 = vpop.eup %5798  ;;  %v1842_v19 = vmul.f32 %v5797_v61, %v5793_v45 }
 0x8f5   : > { %v1841_v0 = vmul.f32 %v5799_v44, %v5791_v42 }
 0x8f6   : > { %v1844_v1 = vpack.c.bf16 %v1842_v19, %v1842_v19 }
 0x8f7   : > { %v1843_v2 = vpack.c.bf16 %v1841_v0, %v1840_v46 }
 0x8f9   : > { %5370 = vmatprep.mubr.msk.bf16.mxu0 %vm1333_vm3, %v1843_v2 }
 0x8fa   : > { %5371 = vmatmul.mubr.msk.bf16.vlgmr.msra.gmra.mrb[28].mxu0 %vm1333_vm3, %v1844_v1 }
 0x8fb   : > { %5375 = vmatpush3.bf16.msra.mxu0 %v5636_v26 }
 0x8fc   : > { %5376 = vmatprep.subr.bf16.mxu0 %v5637_v36 }
 0x8ff   : > { %5377 = vmatpush3.bf16.msra.mxu0 %v5637_v36 }
 0x91d   : > { %v2052_v10 = vpop.xlane.xlu1 %2051  ;;  %v2055_v14 = vpop.xlane.xlu0 %2054 }
 0x91e   : > { %v2060_v15 = vsub.f32 %v2040_v9, %v2055_v14  ;;  %v2059_v17 = vsub.f32 %v2037_v22, %v2052_v10  ;;  %v6505_v22 = vld [vmem:[%s6324_s5 + $0x1] ss:$0 sm:$0xff]  ;;  %v5638_v10 = vld [vmem:[%s7420_s9 + $0x30] sm:$0xff]  }
 0x91f   : > { %v2365_v9 = vadd.f32 %v6505_v22, %v6472_v13  ;;  %v2362_v52 = vadd.f32 %v6505_v22, %v6470_v7 }
 0x920   : > { %v2064_v18 = vmul.f32 1.442695, %v2060_v15  ;;  %v2062_v31 = vmul.f32 1.442695, %v2059_v17  ;;  %v5639_v17 = vld [vmem:[%s7420_s9 + $0x38] sm:$0xff]  }
 0x921   : > { %v2058_v21 = vpop.xlane.xlu0 %2057  ;;  %v2378_v40 = vsel %vm1333_vm3, %v2365_v9, -inf }
 0x922   : > { %v2061_v23 = vsub.f32 %v2045_v30, %v2058_v21  ;;  %5800 = vpow2.f32 %v2064_v18  ;;  %v2370_v30 = vadd.f32 %v6468_v4, %v6505_v22  ;;  %v6531_v18 = vrot.slane %v1265_v38, 4 }
 0x923   : > { %v2411_v21 = vrot.slane %v6282_v8, 4 }
 0x924   : > { %v2066_v34 = vmul.f32 1.442695, %v2061_v23  ;;  %v2381_v53 = vsel %vm1333_vm3, %v2370_v30, -inf }
 0x925   : > { %v6536_v23 = vsel %vm1375_vm2, %v2411_v21, %v6531_v18 }
 0x926   : > { %5802 = vpow2.f32 %v2066_v34 }
 0x927   : > { %5804 = vpow2.f32 %v2062_v31 }
 0x92c   : > { %v5801_v35 = vpop.eup %5800 }
 0x92d   : > { %v2071_v25 = vsel %vm1333_vm3, %v5801_v35, 0.0 }
 0x92e   : > { %2072 = vadd.xlane.f32.xlu0 %v2071_v25 }
 0x930   : > { %v5803_v28 = vpop.eup %5802 }
 0x931   : > { %v2074_v42 = vsel %vm1333_vm3, %v5803_v28, 0.0  ;;  %v5805_v45 = vpop.eup %5804 }
 0x932   : > { %2075 = vadd.xlane.f32.xlu1 %v2074_v42  ;;  %v2068_v27 = vsel %vm1333_vm3, %v5805_v45, 0.0 }
 0x936   : > { %2069 = vadd.xlane.f32.xlu1 %v2068_v27 }
 0x944   : > { %2085 = vrot.lane.b32.xlu0 %v6268_v47, %s5945_s28  ;;  %v2375_v47 = vsel %vm1333_vm3, %v2362_v52, -inf }
 0x947   : > { %2087 = vrot.lane.b32.xlu1 %v6282_v8, %s5945_s28 }
 0x963   : > { %2379 = vmax.xlane.f32.xlu0 %v2378_v40 }
 0x967   : > { %2382 = vmax.xlane.f32.xlu0 %v2381_v53 }
 0x96b   : > { %2376 = vmax.xlane.f32.xlu1 %v2375_v47 }
 0x9bb   : > { %v2073_v54 = vpop.xlane.xlu0 %2072 }
 0x9bc   : > { %5806 = vrcp.f32 %v2073_v54 }
 0x9bf   : > { %v2076_v55 = vpop.xlane.xlu1 %2075  ;;  %v2086_v57 = vpop.permute.xlu0 %2085 }
 0x9c0   : > { %5390 = vmatprep.subr.bf16.mxu0 %v2086_v57 }
 0x9c3   : > { %v2070_v13 = vpop.xlane.xlu1 %2069 }
 0x9c4   : > { %5808 = vrcp.f32 %v2070_v13 }
 0x9c5   : > { %5810 = vrcp.f32 %v2076_v55 }
 0x9c6   : > { %v5807_v4 = vpop.eup %5806 }
 0x9c7   : > { %v2081_v43 = vmul.f32 %v5807_v4, %v5801_v35  ;;  %v2088_v1 = vpop.permute.xlu1 %2087 }
 0x9c8   : > { %v2097_v14 = vsel %vm1375_vm2, %v2088_v1, 0 }
 0x9cd   : > { %v5372_v58 = vpop.f32.mrb[28].mxu0 }
 0x9ce   : > { %v5809_v59 = vpop.eup %5808  ;;  %v1893_v26 = vpop.f32.mrb[29].mxu0  ;;  %v1908_v46 = vpack.c.bf16 %v5372_v58, %v5372_v58 }
 0x9cf   : > { %v5373_v60 = vpop.f32.mrb[30].mxu0  ;;  %v2080_v7 = vmul.f32 %v5809_v59, %v5805_v45  ;;  %v5811_v0 = vpop.eup %5810 }
 0x9d0   : > { %v1896_v61 = vpop.f32.mrb[31].mxu0  ;;  %v2082_v2 = vmul.f32 %v5811_v0, %v5803_v28 }
 0x9d1   : > { %v1907_v44 = vpack.c.bf16 %v1896_v61, %v1893_v26  ;;  %v2083_v19 = vpack.c.bf16 %v2081_v43, %v2080_v7 }
 0x9d2   : > { %v2084_v15 = vpack.c.bf16 %v2082_v2, %v2082_v2  ;;  %v2422_v2 = vsel %vm1375_vm2, %v6531_v18, 0 }
 0x9d3   : > { %5378 = vmatprep.mubr.msk.bf16.mxu0 %vm1272_vm1, %v1907_v44 }
 0x9d4   : > { %5379 = vmatmul.mubr.msk.bf16.vlgmr.msra.gmra.mrb[32].mxu0 %vm1272_vm1, %v1908_v46 }
 0x9d5   : > { %5391 = vmatpush3.bf16.msra.mxu0 %v2086_v57  ;;  %5394 = vmatprep.mubr.msk.bf16.mxu0 %vm1333_vm3, %v2083_v19 }
 0x9d6   : > { %5573 = vmatprep.subr.msk.bf16.mxu0 %vm1375_vm2, %v2088_v1 }
 0x9d9   : > { %5393 = vmatpush3.bf16.msra.mxu0 %v2097_v14 }
 0x9da   : > { %5398 = vmatprep.subr.bf16.mxu0 %v5638_v10 }
 0x9dc   : > { %5395 = vmatmul.mubr.msk.bf16.vlgmr.msra.gmra.mrb[36].mxu0 %vm1333_vm3, %v2084_v15 }
 0x9dd   : > { %5399 = vmatpush3.bf16.msra.mxu0 %v5638_v10 }
 0x9de   : > { %5400 = vmatprep.subr.bf16.mxu0 %v5639_v17 }
 0x9e1   : > { %5401 = vmatpush3.bf16.msra.mxu0 %v5639_v17 }
 0x9e2   : > { %5414 = vmatprep.subr.bf16.mxu0 %v6536_v23 }
 0x9f0   : > { %v2380_v31 = vpop.xlane.xlu0 %2379 }
 0x9f1   : > { %v2385_v34 = vsub.f32 %v2365_v9, %v2380_v31 }
 0x9f3   : > { %v2389_v35 = vmul.f32 1.442695, %v2385_v34  ;;  %v5640_v34 = vld [vmem:[%s7420_s9] sm:$0xff]  }
 0x9f4   : > { %v2383_v25 = vpop.xlane.xlu0 %2382 }
 0x9f5   : > { %5812 = vpow2.f32 %v2389_v35  ;;  %v2386_v28 = vsub.f32 %v2370_v30, %v2383_v25  ;;  %v5641_v35 = vld [vmem:[%s7420_s9 + $0x8] sm:$0xff]  }
 0x9f7   : > { %v2391_v38 = vmul.f32 1.442695, %v2386_v28 }
 0x9f8   : > { %v2377_v16 = vpop.xlane.xlu1 %2376 }
 0x9f9   : > { %v2384_v33 = vsub.f32 %v2362_v52, %v2377_v16 }
 0x9fb   : > { %v2387_v42 = vmul.f32 1.442695, %v2384_v33 }
 0x9fd   : > { %5814 = vpow2.f32 %v2387_v42 }
 0x9fe   : > { %5816 = vpow2.f32 %v2391_v38 }
 0x9ff   : > { %v5813_v8 = vpop.eup %5812 }
 0xa00   : > { %v2396_v45 = vsel %vm1333_vm3, %v5813_v8, 0.0 }
 0xa01   : > { %2397 = vadd.xlane.f32.xlu0 %v2396_v45 }
 0xa07   : > { %v5815_v27 = vpop.eup %5814 }
 0xa08   : > { %v2393_v36 = vsel %vm1333_vm3, %v5815_v27, 0.0  ;;  %v5817_v40 = vpop.eup %5816 }
 0xa09   : > { %2394 = vadd.xlane.f32.xlu1 %v2393_v36  ;;  %v2399_v9 = vsel %vm1333_vm3, %v5817_v40, 0.0 }
 0xa0d   : > { %2400 = vadd.xlane.f32.xlu1 %v2399_v9 }
 0xa17   : > { %2482 = vrot.lane.b32.xlu0 %v6428_v50, %s5943_s26 }
 0xa1e   : > { %2484 = vrot.lane.b32.xlu1 %v6422_v41, %s5943_s26 }
 0xa22   : > { %2478 = vrot.lane.b32.xlu1 %v6443_v39, %s5943_s26 }
 0xa26   : > { %2480 = vrot.lane.b32.xlu1 %v6435_v51, %s5943_s26 }
 0xa8e   : > { %v2398_v52 = vpop.xlane.xlu0 %2397 }
 0xa92   : > { %v2483_v10 = vpop.permute.xlu0 %2482 }
 0xa93   : > { %v2493_v17 = vsel %vm1272_vm1, %v2483_v10, 0 }
 0xa96   : > { %v2395_v30 = vpop.xlane.xlu1 %2394 }
 0xa97   : > { %5818 = vrcp.f32 %v2395_v30 }
 0xa98   : > { %5820 = vrcp.f32 %v2398_v52 }
 0xa9a   : > { %v2401_v47 = vpop.xlane.xlu1 %2400 }
 0xa9b   : > { %5822 = vrcp.f32 %v2401_v47 }
 0xaa1   : > { %v5819_v59 = vpop.eup %5818 }
 0xaa2   : > { %v5821_v60 = vpop.eup %5820  ;;  %v2405_v61 = vmul.f32 %v5819_v59, %v5815_v27 }
 0xaa3   : > { %v2406_v46 = vmul.f32 %v5821_v60, %v5813_v8 }
 0xaa5   : > { %v5823_v1 = vpop.eup %5822 }
 0xaa7   : > { %v5380_v53 = vpop.f32.mrb[32].mxu0 }
 0xaa8   : > { %v1981_v54 = vadd.f32 %v5380_v53, %v6454_v37  ;;  %v1965_v55 = vpop.f32.mrb[33].mxu0  ;;  %v2408_v37 = vpack.c.bf16 %v2406_v46, %v2405_v61 }
 0xaa9   : > { %v1979_v57 = vadd.f32 %v1965_v55, %v6457_v48  ;;  %v5381_v13 = vpop.f32.mrb[34].mxu0  ;;  %v2407_v48 = vmul.f32 %v5823_v1, %v5817_v40 }
 0xaaa   : > { %v1968_v4 = vpop.f32.mrb[35].mxu0 }
 0xaab   : > { %v1980_v58 = vadd.f32 %v1968_v4, %v6460_v49  ;;  %v2485_v49 = vpop.permute.xlu1 %2484  ;;  %v2409_v14 = vpack.c.bf16 %v2407_v48, %v2407_v48 }
 0xaac   : > { %v2496_v21 = vsel %vm1272_vm1, %v2485_v49, 0 }
 0xaaf   : > { %v5396_v26 = vpop.f32.mrb[36].mxu0  ;;  %v2479_v15 = vpop.permute.xlu1 %2478 }
 0xab0   : > { %v2133_v7 = vpop.f32.mrb[37].mxu0  ;;  %v2148_v0 = vpack.c.bf16 %v5396_v26, %v5396_v26 }
 0xab1   : > { %v5397_v43 = vpop.f32.mrb[38].mxu0 }
 0xab2   : > { %v2136_v44 = vpop.f32.mrb[39].mxu0 }
 0xab3   : > { %v2147_v19 = vpack.c.bf16 %v2136_v44, %v2133_v7  ;;  %v2481_v31 = vpop.permute.xlu1 %2480 }
 0xab5   : > { %5402 = vmatprep.mubr.msk.bf16.mxu0 %vm1272_vm1, %v2147_v19 }
 0xab6   : > { %5403 = vmatmul.mubr.msk.bf16.vlgmr.msra.gmra.mrb[40].mxu0 %vm1272_vm1, %v2148_v0 }
 0xab7   : > { %5415 = vmatpush3.bf16.msra.mxu0 %v6536_v23  ;;  %5418 = vmatprep.mubr.msk.bf16.mxu0 %vm1333_vm3, %v2408_v37 }
 0xab8   : > { %5576 = vmatprep.subr.msk.bf16.mxu0 %vm1375_vm2, %v6531_v18 }
 0xabb   : > { %5417 = vmatpush3.bf16.msra.mxu0 %v2422_v2 }
 0xabc   : > { %5577 = vmatprep.subr.msk.bf16.mxu0 %vm1272_vm1, %v2483_v10 }
 0xabe   : > { %5419 = vmatmul.mubr.msk.bf16.vlgmr.msra.gmra.mrb[44].mxu0 %vm1333_vm3, %v2409_v14 }
 0xabf   : > { %5426 = vmatprep.mubr.msk.bf16.mxu0 %vm1272_vm1, %v2479_v15 }
 0xac4   : > { %5423 = vmatpush3.bf16.xpose.msra.mxu0 %v2493_v17 }
 0xac5   : > { %5578 = vmatprep.subr.msk.bf16.mxu0 %vm1272_vm1, %v2485_v49 }
 0xacc   : > { %5425 = vmatpush3.bf16.xpose.msra.mxu0 %v2496_v21 }
 0xacd   : > { %5446 = vmatprep.subr.bf16.mxu0 %v5640_v34 }
 0xad3   : > { %5427 = vmatmul.mubr.msk.bf16.vlgmr.msra.gmra.mrb[48].mxu0 %vm1272_vm1, %v2481_v31 }
 0xad4   : > { %5447 = vmatpush3.bf16.msra.mxu0 %v5640_v34 }
 0xad5   : > { %5448 = vmatprep.subr.bf16.mxu0 %v5641_v35 }
 0xad8   : > { %5449 = vmatpush3.bf16.msra.mxu0 %v5641_v35 }
 0xb89   : > { %v5404_v25 = vpop.f32.mrb[40].mxu0 }
 0xb8a   : > { %v6574_v28 = vadd.f32 %v5404_v25, %v1981_v54  ;;  %v2205_v16 = vpop.f32.mrb[41].mxu0 }
 0xb8b   : > { %v6576_v33 = vadd.f32 %v2205_v16, %v1979_v57  ;;  %v5405_v38 = vpop.f32.mrb[42].mxu0 }
 0xb8c   : > { %v2208_v42 = vpop.f32.mrb[43].mxu0 }
 0xb8d   : > { %v6578_v8 = vadd.f32 %v2208_v42, %v1980_v58 }
 0xb91   : > { %v5420_v45 = vpop.f32.mrb[44].mxu0 }
 0xb92   : > { %v2458_v27 = vpop.f32.mrb[45].mxu0  ;;  %v2473_v30 = vpack.c.bf16 %v5420_v45, %v5420_v45 }
 0xb93   : > { %v5421_v36 = vpop.f32.mrb[46].mxu0 }
 0xb94   : > { %v2461_v40 = vpop.f32.mrb[47].mxu0 }
 0xb95   : > { %v2472_v9 = vpack.c.bf16 %v2461_v40, %v2458_v27 }
 0xb97   : > { %5450 = vmatprep.mubr.msk.bf16.mxu0 %vm1272_vm1, %v2472_v9  ;;  %v5643_v9 = vld [vmem:[%s7420_s9 + $0x18] sm:$0xff]  }
 0xb98   : > { %5451 = vmatmul.mubr.msk.bf16.vlgmr.msra.gmra.mrb[52].mxu0 %vm1272_vm1, %v2473_v30 }
 0xba6   : > { %v5428_v52 = vpop.f32.mrb[48].mxu0 }
 0xba7   : > { %v2532_v53 = vpop.f32.mrb[49].mxu0  ;;  %v2541_v57 = vadd.f32 %v5428_v52, %v6505_v22 }
 0xba8   : > { %v2533_v47 = vadd.f32 %v6505_v22, %v2532_v53  ;;  %v5429_v54 = vpop.f32.mrb[50].mxu0 }
 0xba9   : > { %v2535_v55 = vpop.f32.mrb[51].mxu0  ;;  %v2552_v59 = vsel %vm1333_vm3, %v2541_v57, -inf }
 0xbaa   : > { %v2536_v13 = vadd.f32 %v6505_v22, %v2535_v55  ;;  %v2546_v4 = vsel %vm1333_vm3, %v2533_v47, -inf }
 0xbab   : > { %2547 = vmax.xlane.f32.xlu0 %v2546_v4 }
 0xbac   : > { %v2549_v58 = vsel %vm1333_vm3, %v2536_v13, -inf }
 0xbad   : > { %2550 = vmax.xlane.f32.xlu1 %v2549_v58 }
 0xbaf   : > { %2553 = vmax.xlane.f32.xlu0 %v2552_v59 }
 0xc38   : > { %v2548_v26 = vpop.xlane.xlu0 %2547 }
 0xc39   : > { %v2555_v60 = vsub.f32 %v2533_v47, %v2548_v26 }
 0xc3a   : > { %v2551_v7 = vpop.xlane.xlu1 %2550 }
 0xc3b   : > { %v2558_v43 = vmul.f32 1.442695, %v2555_v60  ;;  %v2556_v61 = vsub.f32 %v2536_v13, %v2551_v7 }
 0xc3c   : > { %v2554_v44 = vpop.xlane.xlu0 %2553 }
 0xc3d   : > { %5824 = vpow2.f32 %v2558_v43  ;;  %v2560_v19 = vmul.f32 1.442695, %v2556_v61  ;;  %v2557_v46 = vsub.f32 %v2541_v57, %v2554_v44 }
 0xc3f   : > { %5826 = vpow2.f32 %v2560_v19  ;;  %v2562_v0 = vmul.f32 1.442695, %v2557_v46 }
 0xc41   : > { %5828 = vpow2.f32 %v2562_v0 }
 0xc47   : > { %v5825_v1 = vpop.eup %5824 }
 0xc48   : > { %v2564_v37 = vsel %vm1333_vm3, %v5825_v1, 0.0 }
 0xc49   : > { %v5827_v48 = vpop.eup %5826  ;;  %2565 = vadd.xlane.f32.xlu0 %v2564_v37 }
 0xc4a   : > { %v2567_v2 = vsel %vm1333_vm3, %v5827_v48, 0.0 }
 0xc4b   : > { %v5829_v49 = vpop.eup %5828 }
 0xc4c   : > { %v2570_v10 = vsel %vm1333_vm3, %v5829_v49, 0.0 }
 0xc4d   : > { %2568 = vadd.xlane.f32.xlu0 %v2567_v2  ;;  %2571 = vadd.xlane.f32.xlu1 %v2570_v10 }
 0xc5e   : > { %2583 = vrot.lane.b32.xlu1 %v6531_v18, %s5943_s26 }
 0xc62   : > { %2785 = vrot.lane.b32.xlu1 %v6428_v50, %s5944_s27 }
 0xc63   : > { %2581 = vrot.lane.b32.xlu0 %v6536_v23, %s5943_s26  ;;  %s4877_s26 = sshll.u32 %s7454_s25, 1 }
 0xc64   : > { %s751_s29 = scalar_lea.vmem %s7434_s23, %s4877_s26 }
 0xc66   : > { %2787 = vrot.lane.b32.xlu1 %v6422_v41, %s5944_s27 }
 0xc67   : > { %2781 = vrot.lane.b32.xlu0 %v6443_v39, %s5944_s27 }
 0xc6a   : > { %2783 = vrot.lane.b32.xlu1 %v6435_v51, %s5944_s27 }
 0xc6b   : > { %3025 = vrot.lane.b32.xlu0 %v6428_v50, %s5945_s28  ;;  %v6605_v14 = vpop.f32.mrb[52].mxu0 }
 0xc6c   : > { %v6607_v15 = vpop.f32.mrb[53].mxu0 }
 0xc6d   : > { %v5453_v17 = vpop.f32.mrb[54].mxu0 }
 0xc6e   : > { %3027 = vrot.lane.b32.xlu1 %v6422_v41, %s5945_s28  ;;  %v6611_v21 = vpop.f32.mrb[55].mxu0  ;;  %v5642_v41 = vld [vmem:[%s7420_s9 + $0x10] sm:$0xff]  }
 0xc6f   : > { %3021 = vrot.lane.b32.xlu0 %v6443_v39, %s5945_s28 }
 0xc72   : > { %3023 = vrot.lane.b32.xlu1 %v6435_v51, %s5945_s28 }
 0xcd6   : > { %v2566_v31 = vpop.xlane.xlu0 %2565 }
 0xcd7   : > { %5830 = vrcp.f32 %v2566_v31 }
 0xcda   : > { %v2572_v34 = vpop.xlane.xlu1 %2571  ;;  %v2569_v50 = vpop.xlane.xlu0 %2568 }
 0xcdb   : > { %5832 = vrcp.f32 %v2572_v34 }
 0xcdc   : > { %5834 = vrcp.f32 %v2569_v50 }
 0xcde   : > { %v2582_v35 = vpop.permute.xlu0 %2581  ;;  %v2584_v25 = vpop.permute.xlu1 %2583 }
 0xcdf   : > { %5430 = vmatprep.subr.bf16.mxu1 %v2582_v35  ;;  %v2593_v39 = vsel %vm1375_vm2, %v2584_v25, 0 }
 0xce0   : > { %5431 = vmatpush3.bf16.msra.mxu1 %v2582_v35 }
 0xce1   : > { %5579 = vmatprep.subr.msk.bf16.mxu1 %vm1375_vm2, %v2584_v25  ;;  %v5831_v16 = vpop.eup %5830 }
 0xce2   : > { %v2576_v45 = vmul.f32 %v5831_v16, %v5825_v1  ;;  %v2786_v30 = vpop.permute.xlu1 %2785  ;;  %v2782_v4 = vpop.permute.xlu0 %2781 }
 0xce3   : > { %v2796_v13 = vsel %vm1272_vm1, %v2786_v30, 0 }
 0xce4   : > { %5433 = vmatpush3.bf16.msra.mxu1 %v2593_v39 }
 0xce5   : > { %v5833_v51 = vpop.eup %5832  ;;  %5438 = vmatprep.subr.bf16.mxu1 %v5642_v41 }
 0xce6   : > { %v5835_v38 = vpop.eup %5834  ;;  %v2578_v42 = vmul.f32 %v5833_v51, %v5829_v49  ;;  %v2788_v58 = vpop.permute.xlu1 %2787 }
 0xce7   : > { %v2577_v27 = vmul.f32 %v5835_v38, %v5827_v48  ;;  %v2799_v59 = vsel %vm1272_vm1, %v2788_v58, 0  ;;  %v3026_v26 = vpop.permute.xlu0 %3025 }
 0xce8   : > { %v2580_v36 = vpack.c.bf16 %v2578_v42, %v2578_v42  ;;  %v3036_v7 = vsel %vm1272_vm1, %v3026_v26, 0 }
 0xce9   : > { %v2579_v40 = vpack.c.bf16 %v2577_v27, %v2576_v45 }
 0xcea   : > { %v2784_v60 = vpop.permute.xlu1 %2783 }
 0xceb   : > { %5434 = vmatprep.mubr.msk.bf16.mxu1 %vm1333_vm3, %v2579_v40  ;;  %v3022_v43 = vpop.permute.xlu0 %3021 }
 0xcec   : > { %5435 = vmatmul.mubr.msk.bf16.vlgmr.msra.gmra.mrb[32].mxu1 %vm1333_vm3, %v2580_v36 }
 0xced   : > { %5439 = vmatpush3.bf16.msra.mxu1 %v5642_v41 }
 0xcee   : > { %5440 = vmatprep.subr.bf16.mxu1 %v5643_v9  ;;  %v3028_v61 = vpop.permute.xlu1 %3027 }
 0xcef   : > { %v3039_v44 = vsel %vm1272_vm1, %v3028_v61, 0 }
 0xcf1   : > { %5441 = vmatpush3.bf16.msra.mxu1 %v5643_v9 }
 0xcf2   : > { %5580 = vmatprep.subr.msk.bf16.mxu1 %vm1272_vm1, %v2786_v30  ;;  %v3024_v19 = vpop.permute.xlu1 %3023 }
 0xdbf   : > { %v5436_v52 = vpop.f32.mrb[32].mxu1 }
 0xdc0   : > { %v2629_v53 = vpop.f32.mrb[33].mxu1  ;;  %v2644_v57 = vpack.c.bf16 %v5436_v52, %v5436_v52 }
 0xdc1   : > { %v5437_v47 = vpop.f32.mrb[34].mxu1 }
 0xdc2   : > { %v2632_v54 = vpop.f32.mrb[35].mxu1 }
 0xdc3   : > { %v2643_v55 = vpack.c.bf16 %v2632_v54, %v2629_v53 }
 0xdc5   : > { %5442 = vmatprep.mubr.msk.bf16.mxu1 %vm1272_vm1, %v2643_v55 }
 0xdc6   : > { %5443 = vmatmul.mubr.msk.bf16.vlgmr.msra.gmra.mrb[36].mxu1 %vm1272_vm1, %v2644_v57 }
 0xdc7   : > { %5455 = vmatpush3.bf16.xpose.msra.mxu1 %v2796_v13  ;;  %5458 = vmatprep.mubr.msk.bf16.mxu1 %vm1272_vm1, %v2782_v4 }
 0xdc8   : > { %5581 = vmatprep.subr.msk.bf16.mxu1 %vm1272_vm1, %v2788_v58 }
 0xdcf   : > { %5457 = vmatpush3.bf16.xpose.msra.mxu1 %v2799_v59 }
 0xdd0   : > { %5583 = vmatprep.subr.msk.bf16.mxu1 %vm1272_vm1, %v3026_v26 }
 0xdd6   : > { %5459 = vmatmul.mubr.msk.bf16.vlgmr.msra.gmra.mrb[40].mxu1 %vm1272_vm1, %v2784_v60 }
 0xdd7   : > { %5479 = vmatpush3.bf16.xpose.msra.mxu1 %v3036_v7  ;;  %5482 = vmatprep.mubr.msk.bf16.mxu1 %vm1272_vm1, %v3022_v43 }
 0xdd8   : > { %5584 = vmatprep.subr.msk.bf16.mxu1 %vm1272_vm1, %v3028_v61 }
 0xddf   : > { %5481 = vmatpush3.bf16.xpose.msra.mxu1 %v3039_v44 }
 0xde6   : > { %5483 = vmatmul.mubr.msk.bf16.vlgmr.msra.gmra.mrb[44].mxu1 %vm1272_vm1, %v3024_v19 }
 0xde7   : > { %3594 = vmatprep.mubr.bf16.mxu1 %v5941_v56 }
 0xe99   : > { %v5444_v46 = vpop.f32.mrb[36].mxu1 }
 0xe9a   : > { %v6643_v0 = vadd.f32 %v6605_v14, %v5444_v46  ;;  %v2701_v1 = vpop.f32.mrb[37].mxu1 }
 0xe9b   : > { %v6646_v37 = vadd.f32 %v6607_v15, %v2701_v1  ;;  %v5445_v48 = vpop.f32.mrb[38].mxu1 }
 0xe9c   : > { %v2704_v49 = vpop.f32.mrb[39].mxu1 }
 0xe9d   : > { %v6649_v2 = vadd.f32 %v6611_v21, %v2704_v49 }
 0xea9   : > { %v5460_v10 = vpop.f32.mrb[40].mxu1 }
 0xeaa   : > { %v2835_v17 = vpop.f32.mrb[41].mxu1  ;;  %v2844_v35 = vadd.f32 %v5460_v10, %v6505_v22 }
 0xeab   : > { %v2836_v31 = vadd.f32 %v6505_v22, %v2835_v17  ;;  %v5461_v34 = vpop.f32.mrb[42].mxu1 }
 0xeac   : > { %v2838_v50 = vpop.f32.mrb[43].mxu1  ;;  %v2855_v41 = vsel %vm1333_vm3, %v2844_v35, -inf }
 0xead   : > { %v2839_v14 = vadd.f32 %v6505_v22, %v2838_v50  ;;  %v2849_v25 = vsel %vm1333_vm3, %v2836_v31, -inf }
 0xeae   : > { %2850 = vmax.xlane.f32.xlu0 %v2849_v25 }
 0xeaf   : > { %v2852_v15 = vsel %vm1333_vm3, %v2839_v14, -inf }
 0xeb0   : > { %2853 = vmax.xlane.f32.xlu1 %v2852_v15 }
 0xeb2   : > { %2856 = vmax.xlane.f32.xlu0 %v2855_v41 }
 0xeb9   : > { %v5484_v21 = vpop.f32.mrb[44].mxu1 }
 0xeba   : > { %v3075_v39 = vpop.f32.mrb[45].mxu1  ;;  %v3084_v59 = vadd.f32 %v5484_v21, %v6505_v22 }
 0xebb   : > { %v5485_v16 = vpop.f32.mrb[46].mxu1  ;;  %v3076_v4 = vadd.f32 %v6505_v22, %v3075_v39 }
 0xebc   : > { %v3078_v51 = vpop.f32.mrb[47].mxu1  ;;  %v3095_v7 = vsel %vm1333_vm3, %v3084_v59, -inf }
 0xebd   : > { %v3079_v58 = vadd.f32 %v6505_v22, %v3078_v51  ;;  %v3089_v60 = vsel %vm1333_vm3, %v3076_v4, -inf  ;;  %v5644_v22 = vld [vmem:[%s7420_s9 + $0x20] sm:$0xff]  }
 0xebf   : > { %v3092_v26 = vsel %vm1333_vm3, %v3079_v58, -inf }
 0xf3b   : > { %v2851_v38 = vpop.xlane.xlu0 %2850 }
 0xf3c   : > { %v2858_v42 = vsub.f32 %v2836_v31, %v2851_v38 }
 0xf3d   : > { %v2854_v45 = vpop.xlane.xlu1 %2853 }
 0xf3e   : > { %v2861_v27 = vmul.f32 1.442695, %v2858_v42  ;;  %v2859_v36 = vsub.f32 %v2839_v14, %v2854_v45 }
 0xf3f   : > { %v2857_v40 = vpop.xlane.xlu0 %2856 }
 0xf40   : > { %5836 = vpow2.f32 %v2861_v27  ;;  %v2863_v9 = vmul.f32 1.442695, %v2859_v36  ;;  %v2860_v30 = vsub.f32 %v2844_v35, %v2857_v40 }
 0xf42   : > { %5838 = vpow2.f32 %v2863_v9  ;;  %v2865_v52 = vmul.f32 1.442695, %v2860_v30  ;;  %v5645_v30 = vld [vmem:[%s7420_s9 + $0x28] sm:$0xff]  }
 0xf44   : > { %5840 = vpow2.f32 %v2865_v52  ;;  %v6699_v52 = vld [vmem:[%s7421_s10] ss:$0 sm:$0xff] }
 0xf4a   : > { %v5837_v53 = vpop.eup %5836 }
 0xf4b   : > { %v2867_v47 = vsel %vm1333_vm3, %v5837_v53, 0.0 }
 0xf4c   : > { %v5839_v54 = vpop.eup %5838  ;;  %2868 = vadd.xlane.f32.xlu0 %v2867_v47  ;;  %v2230_v47 = vadd.f32 %v6699_v52, %v6578_v8  ;;  %v5651_v8 = vld [vmem:[%s7424_s13 + $0x24] ss:$16 sps:$4 sm:$0xff]  }
 0xf4d   : > { %v2870_v57 = vsel %vm1333_vm3, %v5839_v54, 0.0 }
 0xf4e   : > { %v5841_v55 = vpop.eup %5840 }
 0xf4f   : > { %v2873_v13 = vsel %vm1333_vm3, %v5841_v55, 0.0 }
 0xf50   : > { %2871 = vadd.xlane.f32.xlu0 %v2870_v57  ;;  %2874 = vadd.xlane.f32.xlu1 %v2873_v13  ;;  %v5649_v57 = vld [vmem:[%s7424_s13 + $0x20] ss:$16 sps:$4 sm:$0xff]   ;;  %v5654_v13 = vld [vmem:[%s7424_s13 + $0x44] ss:$16 sps:$4 sm:$0xff]  }
 0xf61   : > { %2886 = vrot.lane.b32.xlu1 %v6531_v18, %s5944_s27 }
 0xf66   : > { %2884 = vrot.lane.b32.xlu0 %v6536_v23, %s5944_s27 }
 0xf85   : > { %3093 = vmax.xlane.f32.xlu0 %v3092_v26  ;;  %3090 = vmax.xlane.f32.xlu1 %v3089_v60  ;;  %v5660_v26 = vld [vmem:[%s7424_s13 + $0x84] ss:$16 sps:$4 sm:$0xff]   ;;  %v5658_v60 = vld [vmem:[%s7424_s13 + $0x80] ss:$16 sps:$4 sm:$0xff]  }
 0xf89   : > { %3096 = vmax.xlane.f32.xlu0 %v3095_v7  ;;  %v5663_v7 = vld [vmem:[%s7424_s13 + $0xa4] ss:$16 sps:$4 sm:$0xff]  }
 0xfd9   : > { %v2869_v43 = vpop.xlane.xlu0 %2868 }
 0xfda   : > { %5842 = vrcp.f32 %v2869_v43  ;;  %v5661_v43 = vld [vmem:[%s7424_s13 + $0xa0] ss:$16 sps:$4 sm:$0xff]  }
 0xfdd   : > { %v2875_v61 = vpop.xlane.xlu1 %2874  ;;  %v2872_v44 = vpop.xlane.xlu0 %2871 }
 0xfde   : > { %5844 = vrcp.f32 %v2875_v61  ;;  %v5666_v61 = vld [vmem:[%s7424_s13 + $0xc4] ss:$16 sps:$4 sm:$0xff]  }
 0xfdf   : > { %5846 = vrcp.f32 %v2872_v44  ;;  %v5664_v44 = vld [vmem:[%s7424_s13 + $0xc0] ss:$16 sps:$4 sm:$0xff]  }
 0xfe1   : > { %v2885_v19 = vpop.permute.xlu0 %2884  ;;  %v2887_v46 = vpop.permute.xlu1 %2886 }
 0xfe2   : > { %5462 = vmatprep.subr.bf16.mxu0 %v2885_v19  ;;  %v2896_v1 = vsel %vm1375_vm2, %v2887_v46, 0 }
 0xfe3   : > { %5463 = vmatpush3.bf16.msra.mxu0 %v2885_v19  ;;  %v5669_v19 = vld [vmem:[%s7424_s13 + $0xe4] ss:$16 sps:$4 sm:$0xff]  }
 0xfe4   : > { %5582 = vmatprep.subr.msk.bf16.mxu0 %vm1375_vm2, %v2887_v46  ;;  %v5843_v48 = vpop.eup %5842  ;;  %v5667_v46 = vld [vmem:[%s7424_s13 + $0xe0] ss:$16 sps:$4 sm:$0xff]  }
 0xfe5   : > { %v2879_v31 = vmul.f32 %v5843_v48, %v5837_v53  ;;  %v2229_v53 = vadd.f32 %v6699_v52, %v6576_v33 }
 0xfe7   : > { %5465 = vmatpush3.bf16.msra.mxu0 %v2896_v1 }
 0xfe8   : > { %v5845_v49 = vpop.eup %5844  ;;  %5470 = vmatprep.subr.bf16.mxu0 %v5644_v22 }
 0xfe9   : > { %v5847_v10 = vpop.eup %5846  ;;  %v2881_v17 = vmul.f32 %v5845_v49, %v5841_v55  ;;  %v6709_v55 = vadd.f32 %v2230_v47, %v6231_v63 }
 0xfea   : > { %v2880_v34 = vmul.f32 %v5847_v10, %v5839_v54  ;;  %v6706_v54 = vadd.f32 %v2229_v53, %v6229_v62 }
 0xfeb   : > { %v2883_v50 = vpack.c.bf16 %v2881_v17, %v2881_v17  ;;  %v2247_v62 = vmul.f32 %v6709_v55, %v6709_v55 }
 0xfec   : > { %v2882_v35 = vpack.c.bf16 %v2880_v34, %v2879_v31 }
 0xfee   : > { %5466 = vmatprep.mubr.msk.bf16.mxu0 %vm1333_vm3, %v2882_v35 }
 0xfef   : > { %5467 = vmatmul.mubr.msk.bf16.vlgmr.msra.gmra.mrb[56].mxu0 %vm1333_vm3, %v2883_v50 }
 0xff0   : > { %5471 = vmatpush3.bf16.msra.mxu0 %v5644_v22 }
 0xff1   : > { %5472 = vmatprep.subr.bf16.mxu0 %v5645_v30 }
 0xff4   : > { %5473 = vmatpush3.bf16.msra.mxu0 %v5645_v30 }
0x1012   : > { %v3091_v14 = vpop.xlane.xlu1 %3090  ;;  %v3094_v25 = vpop.xlane.xlu0 %3093 }
0x1013   : > { %v3099_v15 = vsub.f32 %v3079_v58, %v3094_v25  ;;  %v3098_v41 = vsub.f32 %v3076_v4, %v3091_v14  ;;  %v5652_v4 = vld [vmem:[%s7424_s13 + $0x40] ss:$16 sps:$4 sm:$0xff]   ;;  %v5657_v58 = vld [vmem:[%s7424_s13 + $0x64] ss:$16 sps:$4 sm:$0xff]  }
0x1015   : > { %v3103_v21 = vmul.f32 1.442695, %v3099_v15  ;;  %v3101_v51 = vmul.f32 1.442695, %v3098_v41 }
0x1016   : > { %v3097_v39 = vpop.xlane.xlu0 %3096 }
0x1017   : > { %v3100_v16 = vsub.f32 %v3084_v59, %v3097_v39  ;;  %5848 = vpow2.f32 %v3103_v21  ;;  %v5655_v59 = vld [vmem:[%s7424_s13 + $0x60] ss:$16 sps:$4 sm:$0xff]  }
0x1019   : > { %v3105_v38 = vmul.f32 1.442695, %v3100_v16 }
0x101b   : > { %5850 = vpow2.f32 %v3105_v38 }
0x101c   : > { %5852 = vpow2.f32 %v3101_v51 }
0x1021   : > { %v6677_v42 = vpop.eup %5848 }
0x1022   : > { %v3110_v45 = vsel %vm1333_vm3, %v6677_v42, 0.0 }
0x1023   : > { %3111 = vadd.xlane.f32.xlu0 %v3110_v45 }
0x1025   : > { %v6681_v27 = vpop.eup %5850 }
0x1026   : > { %v3113_v36 = vsel %vm1333_vm3, %v6681_v27, 0.0  ;;  %v6685_v40 = vpop.eup %5852 }
0x1027   : > { %3114 = vadd.xlane.f32.xlu1 %v3113_v36  ;;  %v3107_v9 = vsel %vm1333_vm3, %v6685_v40, 0.0 }
0x102b   : > { %3108 = vadd.xlane.f32.xlu1 %v3107_v9 }
0x1039   : > { %3124 = vrot.lane.b32.xlu0 %v6536_v23, %s5945_s28  ;;  %v2246_v23 = vmul.f32 %v6706_v54, %v6706_v54 }
0x103c   : > { %3126 = vrot.lane.b32.xlu1 %v6531_v18, %s5945_s28  ;;  %v2231_v18 = vadd.f32 %v6699_v52, %v6574_v28  ;;  %v5646_v28 = vld [vmem:[%s7424_s13] ss:$16 sps:$4 sm:$0xff]  }
0x103e   : > { %v6717_v33 = vadd.f32 %v2231_v18, %v6241_v12  ;;  %v5648_v12 = vld [vmem:[%s7424_s13 + $0x4] ss:$16 sps:$4 sm:$0xff]  }
0x103f   : > { %3562 = vmatprep.subr.bf16.mxu1 %v5648_v12 }
0x1040   : > { %v2248_v63 = vmul.f32 %v6717_v33, %v6717_v33  ;;  %3563 = vmatpush1.bf16.msra.mxu1 %v5646_v28 }
0x1041   : > { %3564 = vmatprep.subr.bf16.mxu1 %v5651_v8 }
0x1044   : > { %3565 = vmatpush1.bf16.msra.mxu1 %v5649_v57 }
0x1045   : > { %3566 = vmatprep.subr.bf16.mxu1 %v5654_v13 }
0x1048   : > { %3567 = vmatpush1.bf16.msra.mxu1 %v5652_v4 }
0x1049   : > { %3568 = vmatprep.subr.bf16.mxu1 %v5657_v58  ;;  %v6786_v58 = vld [vmem:[%s7422_s11] ss:$0 sm:$0xff] }
0x104c   : > { %3569 = vmatpush1.bf16.msra.mxu1 %v5655_v59 }
0x104d   : > { %3570 = vmatprep.subr.bf16.mxu1 %v5660_v26 }
0x1050   : > { %3571 = vmatpush1.bf16.msra.mxu1 %v5658_v60 }
0x1051   : > { %3572 = vmatprep.subr.bf16.mxu1 %v5663_v7 }
0x1054   : > { %3573 = vmatpush1.bf16.msra.mxu1 %v5661_v43 }
0x1055   : > { %3574 = vmatprep.subr.bf16.mxu1 %v5666_v61  ;;  %v6793_v61 = vld [vmem:[%s7423_s12] ss:$0 sm:$0xff] }
0x1058   : > { %2239 = vadd.xlane.f32.xlu0 %v6709_v55  ;;  %3575 = vmatpush1.bf16.msra.mxu1 %v5664_v44 }
0x1059   : > { %3576 = vmatprep.subr.bf16.mxu1 %v5669_v19 }
0x105c   : > { %2249 = vadd.xlane.f32.xlu0 %v2246_v23  ;;  %3577 = vmatpush1.bf16.msra.mxu1 %v5667_v46  ;;  %v5670_v46 = vld [vmem:[%s7420_s9 + $0x30] sm:$0xff]  }
0x1060   : > { %2237 = vadd.xlane.f32.xlu1 %v6706_v54  ;;  %2241 = vadd.xlane.f32.xlu0 %v6717_v33 }
0x1064   : > { %2251 = vadd.xlane.f32.xlu1 %v2247_v62  ;;  %2253 = vadd.xlane.f32.xlu0 %v2248_v63 }
0x10b0   : > { %v3112_v22 = vpop.xlane.xlu0 %3111 }
0x10b1   : > { %5854 = vrcp.f32 %v3112_v22  ;;  %v5671_v22 = vld [vmem:[%s7420_s9 + $0x38] sm:$0xff]  }
0x10b4   : > { %v3115_v1 = vpop.xlane.xlu1 %3114  ;;  %v3125_v48 = vpop.permute.xlu0 %3124 }
0x10b5   : > { %5486 = vmatprep.subr.bf16.mxu0 %v3125_v48 }
0x10b8   : > { %v3109_v49 = vpop.xlane.xlu1 %3108 }
0x10b9   : > { %5856 = vrcp.f32 %v3109_v49 }
0x10ba   : > { %5858 = vrcp.f32 %v3115_v1  ;;  %v5674_v1 = vld [vmem:[%s7424_s13 + $0xc] ss:$16 sps:$4 sm:$0xff]  }
0x10bb   : > { %v5855_v10 = vpop.eup %5854 }
0x10bc   : > { %v3120_v14 = vmul.f32 %v5855_v10, %v6677_v42  ;;  %v3127_v16 = vpop.permute.xlu1 %3126 }
0x10bd   : > { %v3136_v38 = vsel %vm1375_vm2, %v3127_v16, 0 }
0x10c2   : > { %v5468_v17 = vpop.f32.mrb[56].mxu0 }
0x10c3   : > { %v5857_v31 = vpop.eup %5856  ;;  %v2932_v34 = vpop.f32.mrb[57].mxu0  ;;  %v2947_v21 = vpack.c.bf16 %v5468_v17, %v5468_v17 }
0x10c4   : > { %v5469_v50 = vpop.f32.mrb[58].mxu0  ;;  %v3119_v35 = vmul.f32 %v5857_v31, %v6685_v40  ;;  %v5859_v39 = vpop.eup %5858 }
0x10c5   : > { %v2935_v25 = vpop.f32.mrb[59].mxu0  ;;  %v3121_v51 = vmul.f32 %v5859_v39, %v6681_v27  ;;  %v5680_v39 = vld [vmem:[%s7424_s13 + $0x4c] ss:$16 sps:$4 sm:$0xff]  }
0x10c6   : > { %v2946_v15 = vpack.c.bf16 %v2935_v25, %v2932_v34  ;;  %v3122_v41 = vpack.c.bf16 %v3120_v14, %v3119_v35 }
0x10c7   : > { %v3123_v42 = vpack.c.bf16 %v3121_v51, %v3121_v51  ;;  %v5683_v51 = vld [vmem:[%s7424_s13 + $0x6c] ss:$16 sps:$4 sm:$0xff]  }
0x10c8   : > { %5474 = vmatprep.mubr.msk.bf16.mxu0 %vm1272_vm1, %v2946_v15 }
0x10c9   : > { %5475 = vmatmul.mubr.msk.bf16.vlgmr.msra.gmra.mrb[60].mxu0 %vm1272_vm1, %v2947_v21  ;;  %v5672_v21 = vld [vmem:[%s7424_s13 + $0x8] ss:$16 sps:$4 sm:$0xff]  }
0x10ca   : > { %5487 = vmatpush3.bf16.msra.mxu0 %v3125_v48  ;;  %5490 = vmatprep.mubr.msk.bf16.mxu0 %vm1333_vm3, %v3122_v41 }
0x10cb   : > { %5585 = vmatprep.subr.msk.bf16.mxu0 %vm1375_vm2, %v3127_v16  ;;  %v5678_v16 = vld [vmem:[%s7424_s13 + $0x48] ss:$16 sps:$4 sm:$0xff]  }
0x10ce   : > { %5489 = vmatpush3.bf16.msra.mxu0 %v3136_v38  ;;  %v5681_v38 = vld [vmem:[%s7424_s13 + $0x68] ss:$16 sps:$4 sm:$0xff]  }
0x10cf   : > { %5494 = vmatprep.subr.bf16.mxu0 %v5670_v46 }
0x10d1   : > { %5491 = vmatmul.mubr.msk.bf16.vlgmr.msra.gmra.mrb[64].mxu0 %vm1333_vm3, %v3123_v42  ;;  %v5686_v42 = vld [vmem:[%s7424_s13 + $0x8c] ss:$16 sps:$4 sm:$0xff]  }
0x10d2   : > { %5495 = vmatpush3.bf16.msra.mxu0 %v5670_v46 }
0x10d3   : > { %5496 = vmatprep.subr.bf16.mxu0 %v5671_v22 }
0x10d6   : > { %5497 = vmatpush3.bf16.msra.mxu0 %v5671_v22 }
0x10d7   : > { %3625 = vmatprep.subr.bf16.mxu0 %v5674_v1 }
0x10e5   : > { %v2240_v45 = vpop.xlane.xlu0 %2239 }
0x10e6   : > { %v2244_v9 = vmul.f32 0.0078125, %v2240_v45  ;;  %v5684_v45 = vld [vmem:[%s7424_s13 + $0x88] ss:$16 sps:$4 sm:$0xff]  }
0x10e8   : > { %v2259_v23 = vmul.f32 %v2244_v9, %v2244_v9  ;;  %v2268_v59 = vsub.f32 %v6709_v55, %v2244_v9  ;;  %v5692_v9 = vld [vmem:[%s7424_s13 + $0xcc] ss:$16 sps:$4 sm:$0xff]  }
0x10e9   : > { %v2250_v36 = vpop.xlane.xlu0 %2249 }
0x10ea   : > { %v2255_v53 = vmul.f32 0.0078125, %v2250_v36  ;;  %v5689_v36 = vld [vmem:[%s7424_s13 + $0xac] ss:$16 sps:$4 sm:$0xff]  }
0x10ed   : > { %v2238_v40 = vpop.xlane.xlu1 %2237 }
0x10ee   : > { %v2243_v30 = vmul.f32 0.0078125, %v2238_v40  ;;  %v5687_v40 = vld [vmem:[%s7424_s13 + $0xa8] ss:$16 sps:$4 sm:$0xff]  }
0x10f0   : > { %v2258_v47 = vmul.f32 %v2243_v30, %v2243_v30  ;;  %v2267_v13 = vsub.f32 %v6706_v54, %v2243_v30  ;;  %v5690_v30 = vld [vmem:[%s7424_s13 + $0xc8] ss:$16 sps:$4 sm:$0xff]  }
0x10f1   : > { %v2252_v18 = vpop.xlane.xlu1 %2251 }
0x10f2   : > { %v2261_v62 = vsub.f32 %v2255_v53, %v2258_v47  ;;  %v2256_v63 = vmul.f32 0.0078125, %v2252_v18  ;;  %v5695_v53 = vld [vmem:[%s7424_s13 + $0xec] ss:$16 sps:$4 sm:$0xff]   ;;  %v5693_v47 = vld [vmem:[%s7424_s13 + $0xe8] ss:$16 sps:$4 sm:$0xff]  }
0x10f3   : > { %v6875_v18 = vld [vmem:[%s7425_s14] sm:$0xf] }
0x10f4   : > { %v2264_v27 = vmax.f32 %v2261_v62, 0.0  ;;  %v2262_v28 = vsub.f32 %v2256_v63, %v2259_v23  ;;  %v6879_v23 = vrot.slane %v6875_v18, %v6089_v5  ;;  %v6883_v62 = vrot.slane %v6875_v18, %v6095_v6 }
0x10f6   : > { %v2270_v12 = vadd.f32 1e-12, %v2264_v27  ;;  %v2265_v8 = vmax.f32 %v2262_v28, 0.0 }
0x10f8   : > { %5860 = vrsqrt.f32 %v2270_v12  ;;  %v2271_v57 = vadd.f32 1e-12, %v2265_v8 }
0x10fa   : > { %5862 = vrsqrt.f32 %v2271_v57 }
0x1102   : > { %v5861_v4 = vpop.eup %5860 }
0x1103   : > { %v2276_v26 = vmul.f32 %v5861_v4, %v2267_v13 }
0x1104   : > { %v5863_v60 = vpop.eup %5862 }
0x1105   : > { %v2285_v7 = vmul.f32 %v6786_v58, %v2276_v26  ;;  %v2277_v43 = vmul.f32 %v5863_v60, %v2268_v59 }
0x1107   : > { %v2286_v54 = vmul.f32 %v6786_v58, %v2277_v43  ;;  %v6797_v44 = vadd.f32 %v6793_v61, %v2285_v7 }
0x1109   : > { %v6800_v19 = vadd.f32 %v6793_v61, %v2286_v54 }
0x110b   : > { %v3345_v55 = vpack.c.bf16 %v6800_v19, %v6797_v44 }
0x110d   : > { %3595 = vmatmul.mubr.bf16.vlgmr.msra.gmra.mrb[48].mxu1 %v3345_v55 }
0x110e   : > { %3604 = vmatprep.mubr.bf16.mxu1 %v5941_v56 }
0x119c   : > { %v5476_v48 = vpop.f32.mrb[60].mxu0 }
0x119d   : > { %v6815_v49 = vadd.f32 %v5476_v48, %v6643_v0  ;;  %v3004_v10 = vpop.f32.mrb[61].mxu0 }
0x119e   : > { %v6818_v17 = vadd.f32 %v3004_v10, %v6646_v37  ;;  %v5477_v31 = vpop.f32.mrb[62].mxu0  ;;  %v5677_v37 = vld [vmem:[%s7424_s13 + $0x2c] ss:$16 sps:$4 sm:$0xff]  }
0x119f   : > { %v3007_v34 = vpop.f32.mrb[63].mxu0 }
0x11a0   : > { %v6821_v50 = vadd.f32 %v3007_v34, %v6649_v2  ;;  %v5675_v2 = vld [vmem:[%s7424_s13 + $0x28] ss:$16 sps:$4 sm:$0xff]  }
0x11a4   : > { %v5492_v35 = vpop.f32.mrb[64].mxu0 }
0x11a5   : > { %v3172_v14 = vpop.f32.mrb[65].mxu0  ;;  %v3187_v0 = vpack.c.bf16 %v5492_v35, %v5492_v35 }
0x11a6   : > { %v5493_v25 = vpop.f32.mrb[66].mxu0 }
0x11a7   : > { %v3175_v15 = vpop.f32.mrb[67].mxu0 }
0x11a8   : > { %v3186_v41 = vpack.c.bf16 %v3175_v15, %v3172_v14 }
0x11aa   : > { %5498 = vmatprep.mubr.msk.bf16.mxu0 %vm1272_vm1, %v3186_v41 }
0x11ab   : > { %5499 = vmatmul.mubr.msk.bf16.vlgmr.msra.gmra.mrb[68].mxu0 %vm1272_vm1, %v3187_v0 }
0x11ac   : > { %3626 = vmatpush1.bf16.msra.mxu0 %v5672_v21  ;;  %3657 = vmatprep.mubr.bf16.mxu0 %v5941_v56 }
0x11ad   : > { %3627 = vmatprep.subr.bf16.mxu0 %v5677_v37 }
0x11b0   : > { %3628 = vmatpush1.bf16.msra.mxu0 %v5675_v2 }
0x11b1   : > { %3629 = vmatprep.subr.bf16.mxu0 %v5680_v39 }
0x11b4   : > { %3630 = vmatpush1.bf16.msra.mxu0 %v5678_v16 }
0x11b5   : > { %3631 = vmatprep.subr.bf16.mxu0 %v5683_v51 }
0x11b8   : > { %3632 = vmatpush1.bf16.msra.mxu0 %v5681_v38 }
0x11b9   : > { %3633 = vmatprep.subr.bf16.mxu0 %v5686_v42 }
0x11bc   : > { %3634 = vmatpush1.bf16.msra.mxu0 %v5684_v45 }
0x11bd   : > { %3635 = vmatprep.subr.bf16.mxu0 %v5689_v36 }
0x11c0   : > { %3636 = vmatpush1.bf16.msra.mxu0 %v5687_v40 }
0x11c1   : > { %3637 = vmatprep.subr.bf16.mxu0 %v5692_v9 }
0x11c4   : > { %3638 = vmatpush1.bf16.msra.mxu0 %v5690_v30 }
0x11c5   : > { %3639 = vmatprep.subr.bf16.mxu0 %v5695_v53 }
0x11c8   : > { %3640 = vmatpush1.bf16.msra.mxu0 %v5693_v47 }
0x11cb   : > { %3658 = vmatmul.mubr.bf16.vlgmr.msra.gmra.mrb[72].mxu0 %v3345_v55 }
0x11cc   : > { %3667 = vmatprep.mubr.bf16.mxu0 %v5941_v56 }
0x11e0   : > { %v3596_v63 = vpop.f32.mrb[48].mxu1 }
0x11e1   : > { %v3597_v27 = vadd.f32 %v3596_v63, %v6879_v23  ;;  %v3598_v28 = vpop.f32.mrb[49].mxu1 }
0x11e2   : > { %v3599_v12 = vadd.f32 %v3598_v28, %v6883_v62  ;;  %v3600_v8 = vpop.f32.mrb[50].mxu1 }
0x11e3   : > { %v3688_v57 = vmul.f32 %v3597_v27, %v3597_v27  ;;  %v3601_v13 = vadd.f32 %v3600_v8, %v6879_v23  ;;  %v3602_v4 = vpop.f32.mrb[51].mxu1 }
0x11e4   : > { %v3689_v59 = vmul.f32 %v3599_v12, %v3599_v12  ;;  %v3603_v26 = vadd.f32 %v3602_v4, %v6883_v62 }
0x11e5   : > { %v3712_v5 = vmul.f32 %v3688_v57, %v3597_v27  ;;  %v3692_v60 = vmul.f32 %v3601_v13, %v3601_v13 }
0x11e6   : > { %v3713_v7 = vmul.f32 %v3689_v59, %v3599_v12  ;;  %v3693_v43 = vmul.f32 %v3603_v26, %v3603_v26 }
0x11e7   : > { %v3736_v6 = vmul.f32 0.044715, %v3712_v5  ;;  %v3716_v54 = vmul.f32 %v3692_v60, %v3601_v13 }
0x11e8   : > { %v3737_v55 = vmul.f32 0.044715, %v3713_v7  ;;  %v3717_v46 = vmul.f32 %v3693_v43, %v3603_v26  ;;  %v6929_v7 = vrot.slane %v6875_v18, %v998_v24 }
0x11e9   : > { %v3760_v22 = vadd.f32 %v3736_v6, %v3597_v27  ;;  %v3740_v1 = vmul.f32 0.044715, %v3716_v54 }
0x11ea   : > { %v3761_v48 = vadd.f32 %v3737_v55, %v3599_v12  ;;  %v3741_v10 = vmul.f32 0.044715, %v3717_v46 }
0x11eb   : > { %v3784_v31 = vmul.f32 0.7978846, %v3760_v22  ;;  %v3764_v34 = vadd.f32 %v3740_v1, %v3601_v13 }
0x11ec   : > { %v3785_v35 = vmul.f32 0.7978846, %v3761_v48  ;;  %v3765_v14 = vadd.f32 %v3741_v10, %v3603_v26  ;;  %v5696_v48 = vld [vmem:[%s7426_s15 + $0x40] sm:$0xff]  }
0x11ed   : > { %5864 = vtanh.f32 %v3784_v31  ;;  %v3788_v25 = vmul.f32 0.7978846, %v3764_v34  ;;  %v5697_v10 = vld [vmem:[%s7426_s15 + $0xc0] sm:$0xff]   ;;  %5187 = vmatprep.subr.bf16.mxu1 %v5696_v48 }
0x11ee   : > { %5866 = vtanh.f32 %v3785_v35  ;;  %v3789_v15 = vmul.f32 0.7978846, %v3765_v14  ;;  %v5698_v35 = vld [vmem:[%s7426_s15] sm:$0xff]   ;;  %5221 = vmatprep.subr.bf16.mxu0 %v5697_v10  ;;  %v5718_v10 = vld [vmem:[%s7426_s15 + $0x28] sm:$0xff]  }
0x11ef   : > { %5868 = vtanh.f32 %v3788_v25  ;;  %v5699_v14 = vld [vmem:[%s7426_s15 + $0x80] sm:$0xff]   ;;  %5188 = vmatpush3.bf16.msra.mxu1 %v5698_v35 }
0x11f0   : > { %5870 = vtanh.f32 %v3789_v15  ;;  %5222 = vmatpush3.bf16.msra.mxu0 %v5699_v14 }
0x11f7   : > { %v5865_v41 = vpop.eup %5864 }
0x11f8   : > { %v5867_v21 = vpop.eup %5866  ;;  %v3832_v0 = vadd.f32 1.0, %v5865_v41 }
0x11f9   : > { %v5869_v37 = vpop.eup %5868  ;;  %v3833_v2 = vadd.f32 1.0, %v5867_v21 }
0x11fa   : > { %v5871_v39 = vpop.eup %5870  ;;  %v3856_v16 = vmul.f32 0.5, %v3832_v0  ;;  %v3836_v51 = vadd.f32 1.0, %v5869_v37 }
0x11fb   : > { %v3837_v38 = vadd.f32 1.0, %v5871_v39  ;;  %v3857_v42 = vmul.f32 0.5, %v3833_v2  ;;  %v5700_v2 = vld [vmem:[%s7426_s15 + $0x48] sm:$0xff]  }
0x11fc   : > { %v3860_v45 = vmul.f32 0.5, %v3836_v51  ;;  %v6889_v40 = vmul.f32 %v3856_v16, %v3597_v27  ;;  %v5701_v39 = vld [vmem:[%s7426_s15 + $0xc8] sm:$0xff]   ;;  %5189 = vmatprep.subr.bf16.mxu1 %v5700_v2 }
0x11fd   : > { %v3861_v36 = vmul.f32 0.5, %v3837_v38  ;;  %v6893_v30 = vmul.f32 %v3857_v42, %v3599_v12  ;;  %v5702_v38 = vld [vmem:[%s7426_s15 + $0x8] sm:$0xff]   ;;  %5223 = vmatprep.subr.bf16.mxu0 %v5701_v39  ;;  %v5720_v39 = vld [vmem:[%s7426_s15 + $0x70] sm:$0xff]  }
0x11fe   : > { %v6891_v9 = vmul.f32 %v3860_v45, %v3601_v13  ;;  %v5703_v42 = vld [vmem:[%s7426_s15 + $0x88] sm:$0xff]   ;;  %5190 = vmatpush3.bf16.msra.mxu1 %v5702_v38  ;;  %v5723_v38 = vld [vmem:[%s7426_s15 + $0xb0] sm:$0xff]  }
0x11ff   : > { %v6895_v53 = vmul.f32 %v3861_v36, %v3603_v26  ;;  %5224 = vmatpush3.bf16.msra.mxu0 %v5703_v42 }
0x1200   : > { %v3904_v47 = vpack.c.bf16 %v6891_v9, %v6889_v40 }
0x1201   : > { %v3905_v63 = vpack.c.bf16 %v6895_v53, %v6893_v30 }
0x127e   : > { %v5500_v28 = vpop.f32.mrb[68].mxu0 }
0x127f   : > { %v3260_v8 = vadd.f32 %v5500_v28, %v6815_v49  ;;  %v3244_v57 = vpop.f32.mrb[69].mxu0  ;;  %v5704_v28 = vld [vmem:[%s7426_s15 + $0x50] sm:$0xff]  }
0x1280   : > { %v3258_v4 = vadd.f32 %v3244_v57, %v6818_v17  ;;  %v5501_v27 = vpop.f32.mrb[70].mxu0  ;;  %5191 = vmatprep.subr.bf16.mxu1 %v5704_v28  ;;  %v5724_v28 = vld [vmem:[%s7426_s15 + $0x78] sm:$0xff]  }
0x1281   : > { %v3247_v59 = vpop.f32.mrb[71].mxu0  ;;  %v3270_v49 = vadd.f32 %v6699_v52, %v3260_v8  ;;  %v5705_v8 = vld [vmem:[%s7426_s15 + $0xd0] sm:$0xff]  }
0x1282   : > { %v3268_v13 = vadd.f32 %v6699_v52, %v3258_v4  ;;  %v3259_v12 = vadd.f32 %v3247_v59, %v6821_v50  ;;  %v5706_v27 = vld [vmem:[%s7426_s15 + $0x10] sm:$0xff]   ;;  %5225 = vmatprep.subr.bf16.mxu0 %v5705_v8  ;;  %v5725_v8 = vld [vmem:[%s7426_s15 + $0xf8] sm:$0xff]  }
0x1283   : > { %v5707_v59 = vld [vmem:[%s7426_s15 + $0x90] sm:$0xff]   ;;  %5192 = vmatpush3.bf16.msra.mxu1 %v5706_v27 }
0x1284   : > { %v3269_v26 = vadd.f32 %v6699_v52, %v3259_v12  ;;  %v6907_v5 = vadd.f32 %v3268_v13, %v6243_v11  ;;  %v6920_v11 = vadd.f32 %v3270_v49, %v6252_v20  ;;  %v3396_v52 = vsub.s32 3, %v6082_v3  ;;  %v5709_v49 = vld [vmem:[%s7426_s15 + $0xd8] sm:$0xff]   ;;  %5226 = vmatpush3.bf16.msra.mxu0 %v5707_v59 }
0x1285   : > { %5227 = vmatprep.subr.bf16.mxu0 %v5709_v49 }
0x1286   : > { %3276 = vadd.xlane.f32.xlu1 %v6907_v5  ;;  %v6911_v60 = vadd.f32 %v3269_v26, %v6250_v29  ;;  %v3285_v17 = vmul.f32 %v6907_v5, %v6907_v5  ;;  %v3287_v29 = vmul.f32 %v6920_v11, %v6920_v11  ;;  %v6932_v43 = vrot.slane %v6875_v18, %v3396_v52  ;;  %v5708_v26 = vld [vmem:[%s7426_s15 + $0x58] sm:$0xff]  }
0x1287   : > { %v5711_v52 = vld [vmem:[%s7426_s15 + $0x98] sm:$0xff]   ;;  %5193 = vmatprep.subr.bf16.mxu1 %v5708_v26 }
0x1288   : > { %3278 = vadd.xlane.f32.xlu0 %v6911_v60  ;;  %v3286_v50 = vmul.f32 %v6911_v60, %v6911_v60  ;;  %5228 = vmatpush3.bf16.msra.mxu0 %v5711_v52 }
0x128a   : > { %3288 = vadd.xlane.f32.xlu1 %v3285_v17 }
0x128c   : > { %3290 = vadd.xlane.f32.xlu0 %v3286_v50 }
0x128e   : > { %3280 = vadd.xlane.f32.xlu1 %v6920_v11 }
0x1292   : > { %3292 = vadd.xlane.f32.xlu1 %v3287_v29  ;;  %v5710_v29 = vld [vmem:[%s7426_s15 + $0x18] sm:$0xff]  }
0x1293   : > { %5194 = vmatpush3.bf16.msra.mxu1 %v5710_v29 }
0x129e   : > { %v3659_v6 = vpop.f32.mrb[72].mxu0 }
0x129f   : > { %v6935_v20 = vadd.f32 %v3659_v6, %v6929_v7  ;;  %v3661_v54 = vpop.f32.mrb[73].mxu0  ;;  %v5712_v6 = vld [vmem:[%s7426_s15 + $0x60] sm:$0xff]  }
0x12a0   : > { %v6938_v55 = vadd.f32 %v3661_v54, %v6932_v43  ;;  %v3663_v46 = vpop.f32.mrb[74].mxu0  ;;  %v5713_v54 = vld [vmem:[%s7426_s15 + $0xe0] sm:$0xff]   ;;  %5195 = vmatprep.subr.bf16.mxu1 %v5712_v6 }
0x12a1   : > { %v3690_v22 = vmul.f32 %v6935_v20, %v6935_v20  ;;  %v6943_v3 = vadd.f32 %v3663_v46, %v6929_v7  ;;  %v3665_v24 = vpop.f32.mrb[75].mxu0  ;;  %v5714_v46 = vld [vmem:[%s7426_s15 + $0x20] sm:$0xff]   ;;  %5229 = vmatprep.subr.bf16.mxu0 %v5713_v54 }
0x12a2   : > { %v3691_v18 = vmul.f32 %v6938_v55, %v6938_v55  ;;  %v6948_v1 = vadd.f32 %v3665_v24, %v6932_v43  ;;  %v5716_v24 = vld [vmem:[%s7426_s15 + $0x68] sm:$0xff]   ;;  %5196 = vmatpush3.bf16.msra.mxu1 %v5714_v46 }
0x12a3   : > { %v3714_v31 = vmul.f32 %v3690_v22, %v6935_v20  ;;  %v3694_v34 = vmul.f32 %v6943_v3, %v6943_v3  ;;  %v5715_v22 = vld [vmem:[%s7426_s15 + $0xa0] sm:$0xff]   ;;  %5197 = vmatprep.subr.bf16.mxu1 %v5716_v24 }
0x12a4   : > { %v3715_v25 = vmul.f32 %v3691_v18, %v6938_v55  ;;  %v3695_v15 = vmul.f32 %v6948_v1, %v6948_v1  ;;  %v5717_v18 = vld [vmem:[%s7426_s15 + $0xe8] sm:$0xff]   ;;  %5230 = vmatpush3.bf16.msra.mxu0 %v5715_v22 }
0x12a5   : > { %v3738_v41 = vmul.f32 0.044715, %v3714_v31  ;;  %v3718_v21 = vmul.f32 %v3694_v34, %v6943_v3  ;;  %v5719_v31 = vld [vmem:[%s7426_s15 + $0xa8] sm:$0xff]   ;;  %5231 = vmatprep.subr.bf16.mxu0 %v5717_v18 }
0x12a6   : > { %v3739_v0 = vmul.f32 0.044715, %v3715_v25  ;;  %v3719_v37 = vmul.f32 %v3695_v15, %v6948_v1  ;;  %5198 = vmatpush3.bf16.msra.mxu1 %v5718_v10 }
0x12a7   : > { %v3762_v16 = vadd.f32 %v3738_v41, %v6935_v20  ;;  %v3742_v51 = vmul.f32 0.044715, %v3718_v21  ;;  %5199 = vmatprep.subr.bf16.mxu1 %v5720_v39 }
0x12a8   : > { %v3763_v45 = vadd.f32 %v3739_v0, %v6938_v55  ;;  %v3743_v36 = vmul.f32 0.044715, %v3719_v37  ;;  %5232 = vmatpush3.bf16.msra.mxu0 %v5719_v31 }
0x12a9   : > { %v3786_v57 = vmul.f32 0.7978846, %v3762_v16  ;;  %v3766_v4 = vadd.f32 %v3742_v51, %v6943_v3  ;;  %v5721_v16 = vld [vmem:[%s7426_s15 + $0xf0] sm:$0xff]  }
0x12aa   : > { %v3787_v13 = vmul.f32 0.7978846, %v3763_v45  ;;  %v3767_v12 = vadd.f32 %v3743_v36, %v6948_v1  ;;  %v5722_v51 = vld [vmem:[%s7426_s15 + $0x30] sm:$0xff]   ;;  %5233 = vmatprep.subr.bf16.mxu0 %v5721_v16 }
0x12ab   : > { %5872 = vtanh.f32 %v3786_v57  ;;  %v3790_v17 = vmul.f32 0.7978846, %v3766_v4  ;;  %5200 = vmatpush3.bf16.msra.mxu1 %v5722_v51  ;;  %v5727_v4 = vld [vmem:[%s7426_s15 + $0xb8] sm:$0xff]  }
0x12ac   : > { %5874 = vtanh.f32 %v3787_v13  ;;  %v3791_v50 = vmul.f32 0.7978846, %v3767_v12  ;;  %5234 = vmatpush3.bf16.msra.mxu0 %v5723_v38  ;;  %5201 = vmatprep.subr.bf16.mxu1 %v5724_v28 }
0x12ad   : > { %5876 = vtanh.f32 %v3790_v17  ;;  %5235 = vmatprep.subr.bf16.mxu0 %v5725_v8 }
0x12ae   : > { %5878 = vtanh.f32 %v3791_v50 }
0x12b0   : > { %5236 = vmatpush3.bf16.msra.mxu0 %v5727_v4 }
0x12b1   : > { %5522 = vmatprep.subr.bf16.mxu0 %v5940_v32 }
0x12b5   : > { %v5873_v48 = vpop.eup %5872 }
0x12b6   : > { %v5875_v34 = vpop.eup %5874  ;;  %v3834_v35 = vadd.f32 1.0, %v5873_v48 }
0x12b7   : > { %v5877_v14 = vpop.eup %5876  ;;  %v3835_v25 = vadd.f32 1.0, %v5875_v34 }
0x12b8   : > { %v5879_v15 = vpop.eup %5878  ;;  %v3858_v41 = vmul.f32 0.5, %v3834_v35  ;;  %v3838_v21 = vadd.f32 1.0, %v5877_v14 }
0x12b9   : > { %v3839_v0 = vadd.f32 1.0, %v5879_v15  ;;  %v3859_v37 = vmul.f32 0.5, %v3835_v25 }
0x12ba   : > { %v3862_v2 = vmul.f32 0.5, %v3838_v21  ;;  %v7047_v45 = vmul.f32 %v3858_v41, %v6935_v20 }
0x12bb   : > { %v3863_v42 = vmul.f32 0.5, %v3839_v0  ;;  %v7059_v57 = vmul.f32 %v3859_v37, %v6938_v55 }
0x12bc   : > { %v7050_v36 = vmul.f32 %v3862_v2, %v6943_v3  ;;  %v5726_v3 = vld [vmem:[%s7426_s15 + $0x38] sm:$0xff]  }
0x12bd   : > { %v7062_v20 = vmul.f32 %v3863_v42, %v6948_v1  ;;  %5202 = vmatpush3.bf16.msra.mxu1 %v5726_v3  ;;  %v2242_v1 = vpop.xlane.xlu0 %2241 }
0x12be   : > { %v3906_v27 = vpack.c.bf16 %v7050_v36, %v7047_v45  ;;  %5502 = vmatprep.subr.bf16.mxu1 %v5940_v32  ;;  %v2245_v13 = vmul.f32 0.0078125, %v2242_v1 }
0x12bf   : > { %v3907_v55 = vpack.c.bf16 %v7062_v20, %v7059_v57 }
0x12c0   : > { %v2260_v26 = vmul.f32 %v2245_v13, %v2245_v13  ;;  %v2269_v38 = vsub.f32 %v6717_v33, %v2245_v13 }
0x12c1   : > { %v2254_v59 = vpop.xlane.xlu0 %2253 }
0x12c2   : > { %v2257_v12 = vmul.f32 0.0078125, %v2254_v59 }
0x12c4   : > { %v2263_v49 = vsub.f32 %v2257_v12, %v2260_v26 }
0x12c6   : > { %v2266_v17 = vmax.f32 %v2263_v49, 0.0 }
0x12c8   : > { %v2272_v6 = vadd.f32 1e-12, %v2266_v17 }
0x12ca   : > { %5880 = vrsqrt.f32 %v2272_v6 }
0x12d4   : > { %v5881_v16 = vpop.eup %5880 }
0x12d5   : > { %v2278_v28 = vmul.f32 %v5881_v16, %v2269_v38 }
0x12d7   : > { %v2287_v4 = vmul.f32 %v6786_v58, %v2278_v28 }
0x12d9   : > { %v7082_v49 = vadd.f32 %v6793_v61, %v2287_v4 }
0x1313   : > { %v3277_v50 = vpop.xlane.xlu1 %3276 }
0x1314   : > { %v3282_v29 = vmul.f32 0.0078125, %v3277_v50 }
0x1315   : > { %v3279_v52 = vpop.xlane.xlu0 %3278 }
0x1316   : > { %v3283_v54 = vmul.f32 0.0078125, %v3279_v52  ;;  %v3297_v22 = vmul.f32 %v3282_v29, %v3282_v29  ;;  %v3306_v8 = vsub.f32 %v6907_v5, %v3282_v29 }
0x1317   : > { %v3289_v46 = vpop.xlane.xlu1 %3288 }
0x1318   : > { %v3294_v24 = vmul.f32 0.0078125, %v3289_v46  ;;  %v3298_v48 = vmul.f32 %v3283_v54, %v3283_v54  ;;  %v3307_v12 = vsub.f32 %v6911_v60, %v3283_v54 }
0x1319   : > { %v3291_v18 = vpop.xlane.xlu0 %3290 }
0x131a   : > { %v3300_v10 = vsub.f32 %v3294_v24, %v3297_v22  ;;  %v3295_v31 = vmul.f32 0.0078125, %v3291_v18 }
0x131b   : > { %v3281_v34 = vpop.xlane.xlu1 %3280 }
0x131c   : > { %v3303_v35 = vmax.f32 %v3300_v10, 0.0  ;;  %v3301_v14 = vsub.f32 %v3295_v31, %v3298_v48  ;;  %v3284_v25 = vmul.f32 0.0078125, %v3281_v34 }
0x131e   : > { %v3309_v15 = vadd.f32 1e-12, %v3303_v35  ;;  %v3304_v41 = vmax.f32 %v3301_v14, 0.0  ;;  %v3299_v37 = vmul.f32 %v3284_v25, %v3284_v25  ;;  %v3308_v13 = vsub.f32 %v6920_v11, %v3284_v25 }
0x131f   : > { %v3293_v21 = vpop.xlane.xlu1 %3292 }
0x1320   : > { %5882 = vrsqrt.f32 %v3309_v15  ;;  %v3310_v0 = vadd.f32 1e-12, %v3304_v41  ;;  %v3296_v2 = vmul.f32 0.0078125, %v3293_v21 }
0x1322   : > { %5884 = vrsqrt.f32 %v3310_v0  ;;  %v3302_v39 = vsub.f32 %v3296_v2, %v3299_v37 }
0x1324   : > { %v3305_v51 = vmax.f32 %v3302_v39, 0.0 }
0x1326   : > { %v3311_v42 = vadd.f32 1e-12, %v3305_v51 }
0x1328   : > { %5886 = vrsqrt.f32 %v3311_v42 }
0x132a   : > { %v5883_v3 = vpop.eup %5882 }
0x132b   : > { %v3315_v1 = vmul.f32 %v5883_v3, %v3306_v8 }
0x132c   : > { %v5885_v59 = vpop.eup %5884 }
0x132d   : > { %v3324_v26 = vmul.f32 %v6786_v58, %v3315_v1  ;;  %v3316_v33 = vmul.f32 %v5885_v59, %v3307_v12 }
0x132f   : > { %v7085_v17 = vadd.f32 %v6793_v61, %v3324_v26  ;;  %v3325_v60 = vmul.f32 %v6786_v58, %v3316_v33 }
0x1331   : > { %v3346_v5 = vpack.c.bf16 %v7085_v17, %v7082_v49  ;;  %v7095_v6 = vadd.f32 %v6793_v61, %v3325_v60 }
0x1332   : > { %v5887_v50 = vpop.eup %5886 }
0x1333   : > { %3605 = vmatmul.mubr.bf16.gmra.mrb[52].mxu1 %v3346_v5  ;;  %3668 = vmatmul.mubr.bf16.gmra.mrb[76].mxu0 %v3346_v5  ;;  %v3317_v29 = vmul.f32 %v5887_v50, %v3308_v13 }
0x1334   : > { %3614 = vmatprep.mubr.bf16.mxu1 %v5941_v56  ;;  %3677 = vmatprep.mubr.bf16.mxu0 %v5941_v56 }
0x1335   : > { %v3326_v52 = vmul.f32 %v6786_v58, %v3317_v29 }
0x1337   : > { %v7098_v11 = vadd.f32 %v6793_v61, %v3326_v52 }
0x1339   : > { %v3347_v54 = vpack.c.bf16 %v7098_v11, %v7095_v6 }
0x133b   : > { %3615 = vmatmul.mubr.bf16.gmra.mrb[56].mxu1 %v3347_v54  ;;  %3678 = vmatmul.mubr.bf16.gmra.mrb[80].mxu0 %v3347_v54 }
0x133c   : > { %4211 = vmatprep.mubr.bf16.mxu1 %v3905_v63  ;;  %4268 = vmatprep.mubr.bf16.mxu0 %v3907_v55 }
0x1343   : > { %4212 = vmatmul.mubr.bf16.vlgmr.msra.gmra.mrb[60].mxu1 %v3904_v47  ;;  %4269 = vmatmul.mubr.bf16.vlgmr.msra.gmra.mrb[84].mxu0 %v3906_v27 }
0x1406   : > { %v3606_v56 = vpop.f32.mrb[52].mxu1  ;;  %v3669_v58 = vpop.f32.mrb[76].mxu0 }
0x1407   : > { %v7115_v61 = vadd.f32 %v3606_v56, %v6879_v23  ;;  %v7118_v30 = vadd.f32 %v3669_v58, %v6929_v7  ;;  %v3608_v53 = vpop.f32.mrb[53].mxu1  ;;  %v3671_v63 = vpop.f32.mrb[77].mxu0 }
0x1408   : > { %v7121_v57 = vadd.f32 %v3608_v53, %v6883_v62  ;;  %v7124_v40 = vadd.f32 %v3671_v63, %v6932_v43  ;;  %v3610_v9 = vpop.f32.mrb[54].mxu1  ;;  %v3673_v47 = vpop.f32.mrb[78].mxu0 }
0x1409   : > { %v3696_v45 = vmul.f32 %v7115_v61, %v7115_v61  ;;  %v3698_v36 = vmul.f32 %v7118_v30, %v7118_v30  ;;  %v7131_v20 = vadd.f32 %v3610_v9, %v6879_v23  ;;  %v7134_v27 = vadd.f32 %v3673_v47, %v6929_v7  ;;  %v3612_v55 = vpop.f32.mrb[55].mxu1  ;;  %v3675_v46 = vpop.f32.mrb[79].mxu0 }
0x140a   : > { %v3697_v22 = vmul.f32 %v7121_v57, %v7121_v57  ;;  %v3699_v24 = vmul.f32 %v7124_v40, %v7124_v40  ;;  %v7141_v18 = vadd.f32 %v3612_v55, %v6883_v62  ;;  %v7144_v48 = vadd.f32 %v3675_v46, %v6932_v43 }
0x140b   : > { %v3720_v10 = vmul.f32 %v3696_v45, %v7115_v61  ;;  %v3722_v31 = vmul.f32 %v3698_v36, %v7118_v30  ;;  %v3700_v34 = vmul.f32 %v7131_v20, %v7131_v20  ;;  %v3702_v35 = vmul.f32 %v7134_v27, %v7134_v27 }
0x140c   : > { %v3721_v14 = vmul.f32 %v3697_v22, %v7121_v57  ;;  %v3723_v25 = vmul.f32 %v3699_v24, %v7124_v40  ;;  %v3701_v15 = vmul.f32 %v7141_v18, %v7141_v18  ;;  %v3703_v41 = vmul.f32 %v7144_v48, %v7144_v48 }
0x140d   : > { %v3744_v21 = vmul.f32 0.044715, %v3720_v10  ;;  %v3746_v0 = vmul.f32 0.044715, %v3722_v31  ;;  %v3724_v37 = vmul.f32 %v3700_v34, %v7131_v20  ;;  %v3726_v2 = vmul.f32 %v3702_v35, %v7134_v27 }
0x140e   : > { %v3745_v39 = vmul.f32 0.044715, %v3721_v14  ;;  %v3747_v16 = vmul.f32 0.044715, %v3723_v25  ;;  %v3725_v51 = vmul.f32 %v3701_v15, %v7141_v18  ;;  %v3727_v38 = vmul.f32 %v3703_v41, %v7144_v48  ;;  %v3616_v42 = vpop.f32.mrb[56].mxu1  ;;  %v3679_v28 = vpop.f32.mrb[80].mxu0 }
0x140f   : > { %v3768_v8 = vadd.f32 %v3744_v21, %v7115_v61  ;;  %v3770_v3 = vadd.f32 %v3746_v0, %v7118_v30  ;;  %v3748_v4 = vmul.f32 0.044715, %v3724_v37  ;;  %v3750_v1 = vmul.f32 0.044715, %v3726_v2  ;;  %v3618_v59 = vpop.f32.mrb[57].mxu1  ;;  %v3681_v12 = vpop.f32.mrb[81].mxu0 }
0x1410   : > { %v3769_v26 = vadd.f32 %v3745_v39, %v7121_v57  ;;  %v3771_v33 = vadd.f32 %v3747_v16, %v7124_v40  ;;  %v3749_v13 = vmul.f32 0.044715, %v3725_v51  ;;  %v3751_v5 = vmul.f32 0.044715, %v3727_v38  ;;  %v3620_v50 = vpop.f32.mrb[58].mxu1  ;;  %v3683_v29 = vpop.f32.mrb[82].mxu0 }
0x1411   : > { %v3792_v60 = vmul.f32 0.7978846, %v3768_v8  ;;  %v3794_v52 = vmul.f32 0.7978846, %v3770_v3  ;;  %v3772_v54 = vadd.f32 %v3748_v4, %v7131_v20  ;;  %v3774_v56 = vadd.f32 %v3750_v1, %v7134_v27  ;;  %v3622_v58 = vpop.f32.mrb[59].mxu1  ;;  %v3685_v53 = vpop.f32.mrb[83].mxu0 }
0x1412   : > { %v3793_v63 = vmul.f32 0.7978846, %v3769_v26  ;;  %v3795_v9 = vmul.f32 0.7978846, %v3771_v33  ;;  %v3773_v47 = vadd.f32 %v3749_v13, %v7141_v18  ;;  %v3775_v45 = vadd.f32 %v3751_v5, %v7144_v48 }
0x1413   : > { %5888 = vtanh.f32 %v3792_v60  ;;  %v3796_v36 = vmul.f32 0.7978846, %v3772_v54  ;;  %v3798_v55 = vmul.f32 0.7978846, %v3774_v56  ;;  %v7171_v46 = vadd.f32 %v3616_v42, %v6879_v23 }
0x1414   : > { %5890 = vtanh.f32 %v3794_v52  ;;  %v3797_v22 = vmul.f32 0.7978846, %v3773_v47  ;;  %v3799_v24 = vmul.f32 0.7978846, %v3775_v45  ;;  %v7174_v10 = vadd.f32 %v3679_v28, %v6929_v7 }
0x1415   : > { %5892 = vtanh.f32 %v3793_v63  ;;  %v3704_v31 = vmul.f32 %v7171_v46, %v7171_v46  ;;  %v7179_v34 = vadd.f32 %v3618_v59, %v6883_v62  ;;  %v7182_v35 = vadd.f32 %v3681_v12, %v6932_v43 }
0x1416   : > { %5894 = vtanh.f32 %v3795_v9  ;;  %v3706_v14 = vmul.f32 %v7174_v10, %v7174_v10  ;;  %v7187_v25 = vadd.f32 %v3620_v50, %v6879_v23  ;;  %v7190_v15 = vadd.f32 %v3683_v29, %v6929_v7  ;;  %v5203_v41 = vpop.f32.mrb[60].mxu1  ;;  %v5237_v21 = vpop.f32.mrb[84].mxu0 }
0x1417   : > { %5896 = vtanh.f32 %v3796_v36  ;;  %v3728_v0 = vmul.f32 %v3704_v31, %v7171_v46  ;;  %v3705_v37 = vmul.f32 %v7179_v34, %v7179_v34  ;;  %v3707_v2 = vmul.f32 %v7182_v35, %v7182_v35  ;;  %v5204_v39 = vpop.f32.mrb[61].mxu1  ;;  %v5238_v16 = vpop.f32.mrb[85].mxu0 }
0x1418   : > { %5898 = vtanh.f32 %v3798_v55  ;;  %v3730_v23 = vmul.f32 %v3706_v14, %v7174_v10  ;;  %v3708_v7 = vmul.f32 %v7187_v25, %v7187_v25  ;;  %v3710_v51 = vmul.f32 %v7190_v15, %v7190_v15  ;;  %v5206_v38 = vpop.f32.mrb[62].mxu1  ;;  %v5240_v42 = vpop.f32.mrb[86].mxu0 }
0x1419   : > { %5900 = vtanh.f32 %v3797_v22  ;;  %v3752_v28 = vmul.f32 0.044715, %v3728_v0  ;;  %v3729_v8 = vmul.f32 %v3705_v37, %v7179_v34  ;;  %v3731_v3 = vmul.f32 %v3707_v2, %v7182_v35  ;;  %v5207_v4 = vpop.f32.mrb[63].mxu1  ;;  %v5241_v1 = vpop.f32.mrb[87].mxu0 }
0x141a   : > { %5902 = vtanh.f32 %v3799_v24  ;;  %v3754_v59 = vmul.f32 0.044715, %v3730_v23  ;;  %v3732_v12 = vmul.f32 %v3708_v7, %v7187_v25  ;;  %v3734_v26 = vmul.f32 %v3710_v51, %v7190_v15  ;;  %v7227_v23 = vld [vmem:[%s7427_s16] ss:$0 sm:$0xff] }
0x141b   : > { %v3776_v33 = vadd.f32 %v3752_v28, %v7171_v46  ;;  %v3753_v13 = vmul.f32 0.044715, %v3729_v8  ;;  %v3755_v5 = vmul.f32 0.044715, %v3731_v3  ;;  %v7208_v50 = vadd.f32 %v3622_v58, %v6883_v62 }
0x141c   : > { %v3778_v29 = vadd.f32 %v3754_v59, %v7174_v10  ;;  %v3756_v60 = vmul.f32 0.044715, %v3732_v12  ;;  %v3758_v52 = vmul.f32 0.044715, %v3734_v26  ;;  %v7212_v54 = vadd.f32 %v3685_v53, %v6932_v43 }
0x141d   : > { %v5889_v56 = vpop.eup %5888  ;;  %v3800_v63 = vmul.f32 0.7978846, %v3776_v33  ;;  %v3777_v9 = vadd.f32 %v3753_v13, %v7179_v34  ;;  %v3779_v47 = vadd.f32 %v3755_v5, %v7182_v35  ;;  %v3709_v45 = vmul.f32 %v7208_v50, %v7208_v50 }
0x141e   : > { %v5891_v36 = vpop.eup %5890  ;;  %v3802_v55 = vmul.f32 0.7978846, %v3778_v29  ;;  %v3780_v62 = vadd.f32 %v3756_v60, %v7187_v25  ;;  %v3782_v58 = vadd.f32 %v3758_v52, %v7190_v15  ;;  %v3711_v22 = vmul.f32 %v7212_v54, %v7212_v54 }
0x141f   : > { %v5893_v43 = vpop.eup %5892  ;;  %5904 = vtanh.f32 %v3800_v63  ;;  %v3801_v53 = vmul.f32 0.7978846, %v3777_v9  ;;  %v3803_v24 = vmul.f32 0.7978846, %v3779_v47  ;;  %v3733_v31 = vmul.f32 %v3709_v45, %v7208_v50 }
0x1420   : > { %v5895_v14 = vpop.eup %5894  ;;  %5906 = vtanh.f32 %v3802_v55  ;;  %v3804_v0 = vmul.f32 0.7978846, %v3780_v62  ;;  %v3806_v37 = vmul.f32 0.7978846, %v3782_v58  ;;  %v3735_v2 = vmul.f32 %v3711_v22, %v7212_v54 }
0x1421   : > { %v5897_v7 = vpop.eup %5896  ;;  %5908 = vtanh.f32 %v3801_v53  ;;  %v3757_v51 = vmul.f32 0.044715, %v3733_v31  ;;  %v5205_v28 = vadd.f32 %v5204_v39, %v5203_v41  ;;  %v5239_v8 = vadd.f32 %v5238_v16, %v5237_v21 }
0x1422   : > { %v5899_v3 = vpop.eup %5898  ;;  %5910 = vtanh.f32 %v3803_v24  ;;  %v3759_v59 = vmul.f32 0.044715, %v3735_v2  ;;  %v5208_v12 = vadd.f32 %v5207_v4, %v5206_v38  ;;  %v5242_v26 = vadd.f32 %v5241_v1, %v5240_v42 }
0x1423   : > { %v5901_v33 = vpop.eup %5900  ;;  %5912 = vtanh.f32 %v3804_v0  ;;  %v3781_v13 = vadd.f32 %v3757_v51, %v7208_v50  ;;  %v4214_v5 = vadd.f32 %v5205_v28, %v7227_v23  ;;  %v3841_v29 = vadd.f32 1.0, %v5893_v43 }
0x1424   : > { %v5903_v60 = vpop.eup %5902  ;;  %5914 = vtanh.f32 %v3806_v37  ;;  %v3783_v52 = vadd.f32 %v3759_v59, %v7212_v54  ;;  %v4217_v63 = vadd.f32 %v5208_v12, %v7227_v23  ;;  %v3845_v41 = vadd.f32 1.0, %v5901_v33 }
0x1425   : > { %v3805_v21 = vmul.f32 0.7978846, %v3781_v13  ;;  %v4271_v39 = vadd.f32 %v5239_v8, %v4214_v5  ;;  %v3865_v16 = vmul.f32 0.5, %v3841_v29  ;;  %v3843_v9 = vadd.f32 1.0, %v5895_v14 }
0x1426   : > { %v3807_v38 = vmul.f32 0.7978846, %v3783_v52  ;;  %v4274_v42 = vadd.f32 %v5242_v26, %v4217_v63  ;;  %v3869_v4 = vmul.f32 0.5, %v3845_v41  ;;  %v3847_v1 = vadd.f32 1.0, %v5903_v60 }
0x1427   : > { %5916 = vtanh.f32 %v3805_v21  ;;  %v7234_v47 = vadd.f32 %v4271_v39, %v6797_v44  ;;  %v3889_v45 = vmul.f32 %v3865_v16, %v7121_v57  ;;  %v3867_v55 = vmul.f32 0.5, %v3843_v9 }
0x1428   : > { %5918 = vtanh.f32 %v3807_v38  ;;  %v7238_v62 = vadd.f32 %v4274_v42, %v6800_v19  ;;  %v3893_v58 = vmul.f32 %v3869_v4, %v7141_v18  ;;  %v3871_v22 = vmul.f32 0.5, %v3847_v1 }
0x1429   : > { %v5905_v43 = vpop.eup %5904  ;;  %4301 = vadd.xlane.f32.xlu0 %v7234_v47  ;;  %v4319_v53 = vmul.f32 %v7234_v47, %v7234_v47  ;;  %v3840_v24 = vadd.f32 1.0, %v5889_v56  ;;  %v3844_v31 = vadd.f32 1.0, %v5897_v7  ;;  %v3891_v14 = vmul.f32 %v3867_v55, %v7124_v40 }
0x142a   : > { %v5907_v44 = vpop.eup %5906  ;;  %4303 = vadd.xlane.f32.xlu1 %v7238_v62  ;;  %v3909_v57 = vpack.c.bf16 %v3893_v58, %v3889_v45  ;;  %v3895_v19 = vmul.f32 %v3871_v22, %v7144_v48  ;;  %v3842_v0 = vadd.f32 1.0, %v5891_v36  ;;  %v3846_v51 = vadd.f32 1.0, %v5899_v3 }
0x142b   : > { %v5909_v37 = vpop.eup %5908  ;;  %v3864_v18 = vmul.f32 0.5, %v3840_v24  ;;  %v3868_v2 = vmul.f32 0.5, %v3844_v31  ;;  %v3848_v28 = vadd.f32 1.0, %v5905_v43  ;;  %v4320_v59 = vmul.f32 %v7238_v62, %v7238_v62 }
0x142c   : > { %v5911_v8 = vpop.eup %5910  ;;  %4219 = vmatprep.mubr.bf16.mxu1 %v3909_v57  ;;  %v3911_v56 = vpack.c.bf16 %v3895_v19, %v3891_v14  ;;  %v3866_v7 = vmul.f32 0.5, %v3842_v0  ;;  %v3850_v12 = vadd.f32 1.0, %v5907_v44  ;;  %v3870_v36 = vmul.f32 0.5, %v3846_v51 }
0x142d   : > { %v5913_v26 = vpop.eup %5912  ;;  %4325 = vadd.xlane.f32.xlu0 %v4319_v53  ;;  %v3888_v40 = vmul.f32 %v3864_v18, %v7115_v61  ;;  %v3892_v48 = vmul.f32 %v3868_v2, %v7131_v20  ;;  %v3849_v3 = vadd.f32 1.0, %v5909_v37  ;;  %v3851_v13 = vadd.f32 1.0, %v5911_v8 }
0x142e   : > { %v5915_v33 = vpop.eup %5914  ;;  %4327 = vadd.xlane.f32.xlu1 %v4320_v59  ;;  %4276 = vmatprep.mubr.bf16.mxu0 %v3911_v56  ;;  %v3852_v5 = vadd.f32 1.0, %v5913_v26  ;;  %v3872_v29 = vmul.f32 0.5, %v3848_v28  ;;  %v3890_v52 = vmul.f32 %v3866_v7, %v7118_v30  ;;  %v3894_v63 = vmul.f32 %v3870_v36, %v7134_v27 }
0x142f   : > { %v3908_v60 = vpack.c.bf16 %v3892_v48, %v3888_v40  ;;  %v3854_v41 = vadd.f32 1.0, %v5915_v33  ;;  %v3874_v39 = vmul.f32 0.5, %v3850_v12  ;;  %v3873_v42 = vmul.f32 0.5, %v3849_v3 }
0x1430   : > { %v3876_v21 = vmul.f32 0.5, %v3852_v5  ;;  %v3910_v61 = vpack.c.bf16 %v3894_v63, %v3890_v52  ;;  %v3896_v4 = vmul.f32 %v3872_v29, %v7171_v46  ;;  %v3875_v55 = vmul.f32 0.5, %v3851_v13 }
0x1431   : > { %v5917_v16 = vpop.eup %5916  ;;  %4220 = vmatmul.mubr.bf16.gmra.mrb[64].mxu1 %v3908_v60  ;;  %v3878_v20 = vmul.f32 0.5, %v3854_v41  ;;  %v3898_v30 = vmul.f32 %v3874_v39, %v7174_v10  ;;  %v3897_v24 = vmul.f32 %v3873_v42, %v7179_v34  ;;  %v5732_v42 = vld [vmem:[%s7430_s19 + $0x50] sm:$0xff]  }
0x1432   : > { %v5919_v9 = vpop.eup %5918  ;;  %v3853_v38 = vadd.f32 1.0, %v5917_v16  ;;  %v3900_v1 = vmul.f32 %v3876_v21, %v7187_v25  ;;  %4277 = vmatmul.mubr.bf16.gmra.mrb[88].mxu0 %v3910_v61  ;;  %v3899_v44 = vmul.f32 %v3875_v55, %v7182_v35  ;;  %v5736_v55 = vld [vmem:[%s7430_s19 + $0x60] sm:$0xff]  }
0x1433   : > { %v3855_v45 = vadd.f32 1.0, %v5919_v9  ;;  %v3902_v27 = vmul.f32 %v3878_v20, %v7190_v15  ;;  %v5729_v9 = vld [vmem:[%s7430_s19] sm:$0xff]  }
0x1434   : > { %v3877_v58 = vmul.f32 0.5, %v3853_v38  ;;  %v3912_v22 = vpack.c.bf16 %v3900_v1, %v3896_v4  ;;  %5523 = vmatpush3.bf16.msra.mxu0 %v5729_v9  ;;  %v5731_v38 = vld [vmem:[%s7430_s19 + $0x8] sm:$0xff]   ;;  %v5733_v4 = vld [vmem:[%s7430_s19 + $0x10] sm:$0xff]   ;;  %v5734_v1 = vld [vmem:[%s7430_s19 + $0x58] sm:$0xff]  }
0x1435   : > { %v3879_v43 = vmul.f32 0.5, %v3855_v45  ;;  %v3914_v53 = vpack.c.bf16 %v3902_v27, %v3898_v30  ;;  %5524 = vmatprep.subr.bf16.mxu0 %v5940_v32  ;;  %v5735_v45 = vld [vmem:[%s7430_s19 + $0x18] sm:$0xff]   ;;  %v5737_v30 = vld [vmem:[%s7430_s19 + $0x20] sm:$0xff]   ;;  %v5738_v27 = vld [vmem:[%s7430_s19 + $0x68] sm:$0xff]  }
0x1436   : > { %v3901_v31 = vmul.f32 %v3877_v58, %v7208_v50  ;;  %v5739_v58 = vld [vmem:[%s7430_s19 + $0x28] sm:$0xff]  }
0x1437   : > { %v3903_v46 = vmul.f32 %v3879_v43, %v7212_v54  ;;  %v5741_v43 = vld [vmem:[%s7430_s19 + $0x30] sm:$0xff]  }
0x1438   : > { %v3913_v25 = vpack.c.bf16 %v3901_v31, %v3897_v24  ;;  %5525 = vmatpush3.bf16.msra.mxu0 %v5731_v38  ;;  %v5743_v24 = vld [vmem:[%s7430_s19 + $0x38] sm:$0xff]  }
0x1439   : > { %v3915_v57 = vpack.c.bf16 %v3903_v46, %v3899_v44  ;;  %5526 = vmatprep.subr.bf16.mxu0 %v5940_v32 }
0x143a   : > { %4227 = vmatprep.mubr.bf16.mxu1 %v3913_v25 }
0x143b   : > { %4284 = vmatprep.mubr.bf16.mxu0 %v3915_v57  ;;  %4228 = vmatmul.mubr.bf16.gmra.mrb[68].mxu1 %v3912_v22  ;;  %v5740_v22 = vld [vmem:[%s7430_s19 + $0x70] sm:$0xff]  }
0x143c   : > { %4285 = vmatmul.mubr.bf16.gmra.mrb[92].mxu0 %v3914_v53  ;;  %5518 = vmatprep.mubr.msk.bf16.mxu1 %vm5942_vm0, %v5940_v32  ;;  %v5742_v53 = vld [vmem:[%s7430_s19 + $0x78] sm:$0xff]  }
0x143d   : > { %5538 = vmatprep.mubr.msk.bf16.mxu0 %vm5942_vm0, %v5940_v32  ;;  %5527 = vmatpush3.bf16.msra.mxu0 %v5733_v4 }
0x143e   : > { %5528 = vmatprep.subr.bf16.mxu0 %v5940_v32 }
0x1441   : > { %5529 = vmatpush3.bf16.msra.mxu0 %v5735_v45 }
0x1442   : > { %5530 = vmatprep.subr.bf16.mxu0 %v5940_v32 }
0x1445   : > { %5531 = vmatpush3.bf16.msra.mxu0 %v5737_v30 }
0x1446   : > { %5532 = vmatprep.subr.bf16.mxu0 %v5940_v32 }
0x1449   : > { %5533 = vmatpush3.bf16.msra.mxu0 %v5739_v58  ;;  %v5049_v58 = vld [vmem:[%s7428_s17] ss:$0 sm:$0xff] }
0x144a   : > { %5534 = vmatprep.subr.bf16.mxu0 %v5940_v32 }
0x144d   : > { %5535 = vmatpush3.bf16.msra.mxu0 %v5741_v43 }
0x144e   : > { %5536 = vmatprep.subr.bf16.mxu0 %v5940_v32 }
0x1451   : > { %5537 = vmatpush3.bf16.msra.mxu0 %v5743_v24 }
0x14b6   : > { %v4302_v44 = vpop.xlane.xlu0 %4301 }
0x14b7   : > { %v4304_v31 = vpop.xlane.xlu1 %4303 }
0x14b8   : > { %v4314_v25 = vmul.f32 0.0078125, %v4304_v31 }
0x14ba   : > { %v4326_v57 = vpop.xlane.xlu0 %4325 }
0x14bb   : > { %v4328_v46 = vpop.xlane.xlu1 %4327 }
0x1504   : > { %v5209_v10 = vpop.f32.mrb[64].mxu1 }
0x1505   : > { %v5210_v34 = vpop.f32.mrb[65].mxu1  ;;  %v5243_v15 = vpop.f32.mrb[88].mxu0 }
0x1506   : > { %v5211_v50 = vadd.f32 %v5210_v34, %v5209_v10  ;;  %v5212_v14 = vpop.f32.mrb[66].mxu1  ;;  %v5244_v35 = vpop.f32.mrb[89].mxu0  ;;  %v4313_v10 = vmul.f32 0.0078125, %v4302_v44  ;;  %v4338_v34 = vmul.f32 0.0078125, %v4328_v46 }
0x1507   : > { %v5213_v19 = vpop.f32.mrb[67].mxu1  ;;  %v5245_v0 = vadd.f32 %v5244_v35, %v5243_v15  ;;  %v5246_v37 = vpop.f32.mrb[90].mxu0  ;;  %v4344_v15 = vmul.f32 %v4314_v25, %v4314_v25 }
0x1508   : > { %v4222_v54 = vadd.f32 %v5211_v50, %v7227_v23  ;;  %v5214_v18 = vadd.f32 %v5213_v19, %v5212_v14  ;;  %v5247_v2 = vpop.f32.mrb[91].mxu0  ;;  %v4337_v50 = vmul.f32 0.0078125, %v4326_v57  ;;  %v4343_v14 = vmul.f32 %v4313_v10, %v4313_v10 }
0x1509   : > { %v5248_v8 = vadd.f32 %v5247_v2, %v5246_v37  ;;  %v4350_v35 = vsub.f32 %v4338_v34, %v4344_v15 }
0x150a   : > { %v4279_v51 = vadd.f32 %v5245_v0, %v4222_v54  ;;  %v4225_v28 = vadd.f32 %v5214_v18, %v7227_v23  ;;  %v4349_v54 = vsub.f32 %v4337_v50, %v4343_v14 }
0x150b   : > { %v4356_v0 = vmax.f32 %v4350_v35, 0.0 }
0x150c   : > { %v4282_v59 = vadd.f32 %v5248_v8, %v4225_v28  ;;  %v7268_v56 = vadd.f32 %v4279_v51, %v7082_v49  ;;  %v4355_v18 = vmax.f32 %v4349_v54, 0.0 }
0x150d   : > { %v4368_v51 = vadd.f32 1e-12, %v4356_v0 }
0x150e   : > { %v5215_v7 = vpop.f32.mrb[68].mxu1  ;;  %4305 = vadd.xlane.f32.xlu0 %v7268_v56  ;;  %v7272_v33 = vadd.f32 %v4282_v59, %v7085_v17  ;;  %v4321_v16 = vmul.f32 %v7268_v56, %v7268_v56  ;;  %v4367_v8 = vadd.f32 1e-12, %v4355_v18 }
0x150f   : > { %v5249_v12 = vpop.f32.mrb[92].mxu0  ;;  %v5216_v26 = vpop.f32.mrb[69].mxu1  ;;  %5920 = vrsqrt.f32 %v4368_v51 }
0x1510   : > { %v5217_v40 = vadd.f32 %v5216_v26, %v5215_v7  ;;  %v5250_v48 = vpop.f32.mrb[93].mxu0  ;;  %v5218_v36 = vpop.f32.mrb[70].mxu1  ;;  %v4322_v21 = vmul.f32 %v7272_v33, %v7272_v33  ;;  %5922 = vrsqrt.f32 %v4367_v8 }
0x1511   : > { %v5251_v3 = vadd.f32 %v5250_v48, %v5249_v12  ;;  %v5252_v13 = vpop.f32.mrb[94].mxu0  ;;  %v5219_v5 = vpop.f32.mrb[71].mxu1 }
0x1512   : > { %v4230_v29 = vadd.f32 %v5217_v40, %v7227_v23  ;;  %v5220_v60 = vadd.f32 %v5219_v5, %v5218_v36  ;;  %v5253_v52 = vpop.f32.mrb[95].mxu0  ;;  %4307 = vadd.xlane.f32.xlu0 %v7272_v33 }
0x1513   : > { %v5254_v49 = vadd.f32 %v5253_v52, %v5252_v13 }
0x1514   : > { %v4287_v63 = vadd.f32 %v5251_v3, %v4230_v29  ;;  %v4233_v41 = vadd.f32 %v5220_v60, %v7227_v23 }
0x1516   : > { %v4290_v39 = vadd.f32 %v5254_v49, %v4233_v41  ;;  %4331 = vadd.xlane.f32.xlu0 %v4322_v21  ;;  %v7280_v17 = vadd.f32 %v4287_v63, %v7095_v6  ;;  %v5728_v6 = vld [vmem:[%s7430_s19 + $0x40] sm:$0xff]  }
0x1517   : > { %5503 = vmatpush3.bf16.msra.mxu1 %v5728_v6  ;;  %v4362_v6 = vsub.f32 %v7238_v62, %v4314_v25 }
0x1518   : > { %4309 = vadd.xlane.f32.xlu1 %v7280_v17  ;;  %v7286_v61 = vadd.f32 %v4290_v39, %v7098_v11  ;;  %v4323_v23 = vmul.f32 %v7280_v17, %v7280_v17  ;;  %5504 = vmatprep.subr.bf16.mxu1 %v5940_v32  ;;  %v5730_v11 = vld [vmem:[%s7430_s19 + $0x48] sm:$0xff]  }
0x151a   : > { %4329 = vadd.xlane.f32.xlu0 %v4321_v16  ;;  %v4324_v20 = vmul.f32 %v7286_v61, %v7286_v61 }
0x151b   : > { %5505 = vmatpush3.bf16.msra.mxu1 %v5730_v11 }
0x151c   : > { %4311 = vadd.xlane.f32.xlu1 %v7286_v61  ;;  %5506 = vmatprep.subr.bf16.mxu1 %v5940_v32 }
0x151f   : > { %5507 = vmatpush3.bf16.msra.mxu1 %v5732_v42 }
0x1520   : > { %4333 = vadd.xlane.f32.xlu1 %v4323_v23  ;;  %5508 = vmatprep.subr.bf16.mxu1 %v5940_v32  ;;  %v5921_v23 = vpop.eup %5920 }
0x1521   : > { %v5923_v11 = vpop.eup %5922  ;;  %v4380_v45 = vmul.f32 %v5921_v23, %v4362_v6 }
0x1523   : > { %5509 = vmatpush3.bf16.msra.mxu1 %v5734_v1  ;;  %v4361_v1 = vsub.f32 %v7234_v47, %v4313_v10  ;;  %v4392_v43 = vmul.f32 %v5049_v58, %v4380_v45  ;;  %v5050_v47 = vld [vmem:[%s7429_s18] ss:$0 sm:$0xff] }
0x1524   : > { %4335 = vadd.xlane.f32.xlu1 %v4324_v20  ;;  %5510 = vmatprep.subr.bf16.mxu1 %v5940_v32 }
0x1525   : > { %v4404_v44 = vadd.f32 %v5050_v47, %v4392_v43 }
0x1527   : > { %5511 = vmatpush3.bf16.msra.mxu1 %v5736_v55 }
0x1528   : > { %5512 = vmatprep.subr.bf16.mxu1 %v5940_v32 }
0x152b   : > { %5513 = vmatpush3.bf16.msra.mxu1 %v5738_v27  ;;  %v4379_v27 = vmul.f32 %v5923_v11, %v4361_v1 }
0x152c   : > { %5514 = vmatprep.subr.bf16.mxu1 %v5940_v32 }
0x152f   : > { %5515 = vmatpush3.bf16.msra.mxu1 %v5740_v22 }
0x1530   : > { %5516 = vmatprep.subr.bf16.mxu1 %v5940_v32 }
0x1533   : > { %5517 = vmatpush3.bf16.msra.mxu1 %v5742_v53  ;;  %v4391_v53 = vmul.f32 %v5049_v58, %v4379_v27 }
0x1534   : > { %5542 = vmatprep.subr.bf16.mxu1 %v5940_v32 }
0x1535   : > { %v4403_v57 = vadd.f32 %v5050_v47, %v4391_v53 }
0x1537   : > { %v4409_v15 = vadd.f32 %v4404_v44, %v4403_v57 }
0x159b   : > { %v4306_v19 = vpop.xlane.xlu0 %4305 }
0x159c   : > { %v4315_v59 = vmul.f32 0.0078125, %v4306_v19 }
0x159e   : > { %v4345_v36 = vmul.f32 %v4315_v59, %v4315_v59  ;;  %v4363_v24 = vsub.f32 %v7268_v56, %v4315_v59 }
0x159f   : > { %v4308_v37 = vpop.xlane.xlu0 %4307 }
0x15a0   : > { %v4316_v2 = vmul.f32 0.0078125, %v4308_v37 }
0x15a2   : > { %v4346_v7 = vmul.f32 %v4316_v2, %v4316_v2  ;;  %v4364_v10 = vsub.f32 %v7272_v33, %v4316_v2 }
0x15a3   : > { %v4332_v28 = vpop.xlane.xlu0 %4331 }
0x15a4   : > { %v4340_v12 = vmul.f32 0.0078125, %v4332_v28 }
0x15a5   : > { %v4310_v26 = vpop.xlane.xlu1 %4309 }
0x15a6   : > { %v4352_v40 = vsub.f32 %v4340_v12, %v4346_v7  ;;  %v4317_v13 = vmul.f32 0.0078125, %v4310_v26 }
0x15a7   : > { %v4330_v48 = vpop.xlane.xlu0 %4329 }
0x15a8   : > { %v4339_v3 = vmul.f32 0.0078125, %v4330_v48  ;;  %v4358_v29 = vmax.f32 %v4352_v40, 0.0  ;;  %v4347_v49 = vmul.f32 %v4317_v13, %v4317_v13  ;;  %v4365_v14 = vsub.f32 %v7280_v17, %v4317_v13 }
0x15a9   : > { %v4312_v5 = vpop.xlane.xlu1 %4311 }
0x15aa   : > { %v4351_v60 = vsub.f32 %v4339_v3, %v4345_v36  ;;  %v4370_v41 = vadd.f32 1e-12, %v4358_v29  ;;  %v4318_v39 = vmul.f32 0.0078125, %v4312_v5 }
0x15ac   : > { %v4357_v52 = vmax.f32 %v4351_v60, 0.0  ;;  %v4348_v38 = vmul.f32 %v4318_v39, %v4318_v39  ;;  %v4366_v37 = vsub.f32 %v7286_v61, %v4318_v39 }
0x15ad   : > { %v4334_v63 = vpop.xlane.xlu1 %4333 }
0x15ae   : > { %v4369_v21 = vadd.f32 1e-12, %v4357_v52  ;;  %v4341_v16 = vmul.f32 0.0078125, %v4334_v63 }
0x15b0   : > { %5924 = vrsqrt.f32 %v4369_v21  ;;  %v4353_v20 = vsub.f32 %v4341_v16, %v4347_v49 }
0x15b1   : > { %v4336_v9 = vpop.xlane.xlu1 %4335  ;;  %5926 = vrsqrt.f32 %v4370_v41 }
0x15b2   : > { %v4359_v42 = vmax.f32 %v4353_v20, 0.0  ;;  %v4342_v4 = vmul.f32 0.0078125, %v4336_v9 }
0x15b4   : > { %v4371_v55 = vadd.f32 1e-12, %v4359_v42  ;;  %v4354_v30 = vsub.f32 %v4342_v4, %v4348_v38 }
0x15b6   : > { %5928 = vrsqrt.f32 %v4371_v55  ;;  %v4360_v22 = vmax.f32 %v4354_v30, 0.0 }
0x15b8   : > { %v4372_v62 = vadd.f32 1e-12, %v4360_v22 }
0x15ba   : > { %v5925_v31 = vpop.eup %5924  ;;  %5930 = vrsqrt.f32 %v4372_v62 }
0x15bb   : > { %v4381_v46 = vmul.f32 %v5925_v31, %v4363_v24  ;;  %v5927_v25 = vpop.eup %5926 }
0x15bc   : > { %v4382_v50 = vmul.f32 %v5927_v25, %v4364_v10  ;;  %v5745_v10 = vld [vmem:[%s7432_s21 + $0x8] sm:$0xff]  }
0x15bd   : > { %v4393_v34 = vmul.f32 %v5049_v58, %v4381_v46  ;;  %v5744_v46 = vld [vmem:[%s7432_s21] sm:$0xff]  }
0x15be   : > { %v4394_v18 = vmul.f32 %v5049_v58, %v4382_v50  ;;  %v5748_v50 = vld [vmem:[%s7432_s21 + $0x20] sm:$0xff]  }
0x15bf   : > { %v4405_v35 = vadd.f32 %v5050_v47, %v4393_v34  ;;  %v5746_v34 = vld [vmem:[%s7432_s21 + $0x10] sm:$0xff]  }
0x15c0   : > { %v5929_v19 = vpop.eup %5928  ;;  %v4406_v26 = vadd.f32 %v5050_v47, %v4394_v18 }
0x15c1   : > { %v4410_v56 = vadd.f32 %v4409_v15, %v4405_v35  ;;  %v4428_v54 = vmax.f32 %v4403_v57, %v4405_v35  ;;  %v4383_v0 = vmul.f32 %v5929_v19, %v4365_v14  ;;  %v5747_v15 = vld [vmem:[%s7432_s21 + $0x18] sm:$0xff]   ;;  %v5749_v14 = vld [vmem:[%s7432_s21 + $0x28] sm:$0xff]   ;;  %v5750_v35 = vld [vmem:[%s7432_s21 + $0x30] sm:$0xff]  }
0x15c2   : > { %v5751_v19 = vld [vmem:[%s7432_s21 + $0x38] sm:$0xff]  }
0x15c3   : > { %v4411_v51 = vrot.slane %v4410_v56, 4  ;;  %v4429_v28 = vmax.f32 %v4428_v54, %v4404_v44  ;;  %v4395_v8 = vmul.f32 %v5049_v58, %v4383_v0  ;;  %v5067_v0 = vld [vmem:[%s7431_s20] ss:$0 sm:$0xff] }
0x15c4   : > { %v5931_v59 = vpop.eup %5930 }
0x15c5   : > { %v4407_v7 = vadd.f32 %v5050_v47, %v4395_v8  ;;  %v4384_v12 = vmul.f32 %v5931_v59, %v4366_v37  ;;  %v4430_v33 = vrot.slane %v4429_v28, 4  ;;  %v4412_v2 = vadd.f32 %v4411_v51, %v4410_v56 }
0x15c7   : > { %v4396_v40 = vmul.f32 %v5049_v58, %v4384_v12  ;;  %v4431_v48 = vmax.f32 %v4429_v28, %v4430_v33  ;;  %v4413_v17 = vrot.slane %v4412_v2, 2  ;;  %v4417_v36 = vadd.f32 %v4407_v7, %v4406_v26  ;;  %v5068_v33 = vld [vmem:[#allocation3] ss:$0 sm:$0xff] }
0x15c9   : > { %v4408_v3 = vadd.f32 %v5050_v47, %v4396_v40  ;;  %v4432_v13 = vrot.slane %v4431_v48, 2  ;;  %v4414_v5 = vadd.f32 %v4413_v17, %v4412_v2 }
0x15cb   : > { %v4418_v29 = vadd.f32 %v4417_v36, %v4408_v3  ;;  %v4436_v60 = vmax.f32 %v4406_v26, %v4408_v3  ;;  %v4433_v49 = vmax.f32 %v4431_v48, %v4432_v13  ;;  %v4415_v63 = vrot.slane %v4414_v5, 1 }
0x15cd   : > { %v4419_v61 = vrot.slane %v4418_v29, 4  ;;  %v4437_v52 = vmax.f32 %v4436_v60, %v4407_v7  ;;  %v4434_v39 = vrot.slane %v4433_v49, 1  ;;  %v4416_v23 = vadd.f32 %v4415_v63, %v4414_v5 }
0x15cf   : > { %v4438_v41 = vrot.slane %v4437_v52, 4  ;;  %v4420_v21 = vadd.f32 %v4419_v61, %v4418_v29  ;;  %v4435_v11 = vmax.f32 %v4433_v49, %v4434_v39  ;;  %v4426_v4 = vmul.f32 0.041666668, %v4416_v23 }
0x15d1   : > { %v4439_v16 = vmax.f32 %v4437_v52, %v4438_v41  ;;  %v4421_v20 = vrot.slane %v4420_v21, 2  ;;  %v4462_v30 = vpack.c.bf16 %v4435_v11, %v4435_v11  ;;  %v4444_v58 = vpack.c.bf16 %v4426_v4, %v4426_v4 }
0x15d3   : > { %v4440_v6 = vrot.slane %v4439_v16, 2  ;;  %v4422_v9 = vadd.f32 %v4421_v20, %v4420_v21  ;;  %v4482_v62 = vunpack.c.l.b16 %v4462_v30  ;;  %v4578_v24 = vunpack.c.l.b16 %v4444_v58 }
0x15d5   : > { %v4441_v38 = vmax.f32 %v4439_v16, %v4440_v6  ;;  %v4423_v42 = vrot.slane %v4422_v9, 1 }
0x15d7   : > { %v4442_v1 = vrot.slane %v4441_v38, 1  ;;  %v4424_v45 = vadd.f32 %v4423_v42, %v4422_v9 }
0x15d9   : > { %v4443_v55 = vmax.f32 %v4441_v38, %v4442_v1  ;;  %v4427_v27 = vmul.f32 0.041666668, %v4424_v45 }
0x15db   : > { %v4463_v22 = vpack.c.bf16 %v4443_v55, %v4443_v55  ;;  %v4445_v43 = vpack.c.bf16 %v4427_v27, %v4427_v27 }
0x15dd   : > { %v4483_v53 = vunpack.c.l.b16 %v4463_v22  ;;  %v4579_v31 = vunpack.c.l.b16 %v4445_v43 }
0x15df   : > { %v4485_v47 = vsel %vm4484_vm4, %v4483_v53, %v4482_v62  ;;  %v4580_v44 = vsel %vm4484_vm4, %v4579_v31, %v4578_v24 }
0x15e0   : > { %v4486_v25 = vpack.c.b16 %v4485_v47, %v4485_v47  ;;  %v4581_v57 = vpack.c.b16 %v4580_v44, %v4580_v44 }
0x15e2   : > { %5519 = vmatmul.mubr.bf16.vlgmr.msra.gmra.mrb[72].mxu1 %v4486_v25  ;;  %5539 = vmatmul.mubr.bf16.vlgmr.msra.gmra.mrb[96].mxu0 %v4581_v57 }
0x15e3   : > { %5543 = vmatpush3.bf16.msra.mxu1 %v5744_v46  ;;  %5558 = vmatprep.mubr.msk.bf16.mxu1 %vm5942_vm0, %v5940_v32 }
0x15e4   : > { %5544 = vmatprep.subr.bf16.mxu1 %v5940_v32 }
0x15e7   : > { %5545 = vmatpush3.bf16.msra.mxu1 %v5745_v10 }
0x15e8   : > { %5546 = vmatprep.subr.bf16.mxu1 %v5940_v32 }
0x15eb   : > { %5547 = vmatpush3.bf16.msra.mxu1 %v5746_v34 }
0x15ec   : > { %5548 = vmatprep.subr.bf16.mxu1 %v5940_v32 }
0x15ef   : > { %5549 = vmatpush3.bf16.msra.mxu1 %v5747_v15 }
0x15f0   : > { %5550 = vmatprep.subr.bf16.mxu1 %v5940_v32 }
0x15f3   : > { %5551 = vmatpush3.bf16.msra.mxu1 %v5748_v50 }
0x15f4   : > { %5552 = vmatprep.subr.bf16.mxu1 %v5940_v32 }
0x15f7   : > { %5553 = vmatpush3.bf16.msra.mxu1 %v5749_v14 }
0x15f8   : > { %5554 = vmatprep.subr.bf16.mxu1 %v5940_v32 }
0x15fb   : > { %5555 = vmatpush3.bf16.msra.mxu1 %v5750_v35 }
0x15fc   : > { %5556 = vmatprep.subr.bf16.mxu1 %v5940_v32 }
0x15ff   : > { %5557 = vmatpush3.bf16.msra.mxu1 %v5751_v19 }
0x16b5   : > { %v4570_v56 = vpop.f32.mrb[72].mxu1  ;;  %v4665_v54 = vpop.f32.mrb[96].mxu0 }
0x16b6   : > { %v4666_v37 = vadd.f32 %v4665_v54, %v4570_v56  ;;  %v5520_v18 = vpop.f32.mrb[73].mxu1  ;;  %v5540_v51 = vpop.f32.mrb[97].mxu0 }
0x16b7   : > { %v4573_v28 = vpop.f32.mrb[74].mxu1  ;;  %v4668_v8 = vpop.f32.mrb[98].mxu0 }
0x16b8   : > { %v4678_v59 = vadd.f32 %v5067_v0, %v4666_v37  ;;  %v5521_v7 = vpop.f32.mrb[75].mxu1  ;;  %v5541_v32 = vpop.f32.mrb[99].mxu0 }
0x16ba   : > { %v4679_v12 = vpack.c.bf16 %v4678_v59, %v4678_v59 }
0x16bc   : > { %5559 = vmatmul.mubr.bf16.vlgmr.msra.gmra.mrb[76].mxu1 %v4679_v12 }
0x178f   : > { %v4785_v2 = vpop.f32.mrb[76].mxu1 }
0x1790   : > { %v4786_v26 = vadd.f32 %v5068_v33, %v4785_v2  ;;  %v5560_v40 = vpop.f32.mrb[77].mxu1 }
0x1791   : > { %v4788_v48 = vpop.f32.mrb[78].mxu1 }
0x1792   : > { %4792 = vst.msk [vmem:[%s751_s29] sm:$0x3] %vm4791_vm5, %v4786_v26  ;;  %v5561_v17 = vpop.f32.mrb[79].mxu1 }
0x1793 PF: > { %s35_s24 = sadd.s32 1, %s5938_s24  }
0x1794   : > { %p32_p5 = scmp.ge.s32.totalorder %s35_s24, 4  }
0x1796   :  { %34 = sbr.rel (!%p32_p5) target bundleno = 9 (0x9), region = 149 }

</bundles_post_ra>
